<compile_context>
chip_gen: v5e
topology: v5e:2x2
jax: 0.10.0
libtpu: 0.0.40
codegen_flags: <defaults>
</compile_context>

<pallas_src>
import functools
import math

import jax
import jax.numpy as jnp
from jax.experimental import pallas as pl
from jax.experimental.pallas import tpu as pltpu


def _round_up(x, m):
    return ((x + m - 1) // m) * m


def _sigmoid(v):
    # tanh-form sigmoid: one EUP op + two cheap VPU ops (no f32 divide).
    return 0.5 * (jnp.tanh(0.5 * v) + 1.0)


def _rnn_fc_kernel(*refs, variant, num_layers, hidden_pad, t_chunk,
                   compute_dtype):
    """One (batch_tile, time_chunk) grid step: TCHUNK timesteps of all RNN
    layers + fc projection, packed into one lane-dense output slab.

    refs = [x,
            per layer: (wx, wh, b)            for LSTM
                       (wx, wh, b, b_hn)      for GRU
            w_fc, b_fc,                       # inputs
            out,                              # output (bt, TCHUNK*Dp) f32
            h_state (, c_state)]              # VMEM scratch (bf16 / f32)
    """
    Hp = hidden_pad
    per = 3 if variant == "lstm" else 4

    x_ref = refs[0]
    idx = 1
    layer_refs = [refs[idx + per * l: idx + per * (l + 1)]
                  for l in range(num_layers)]
    idx += per * num_layers
    wfc_ref, bfc_ref = refs[idx], refs[idx + 1]
    idx += 2
    o_ref = refs[idx]
    idx += 1
    h_ref = refs[idx]
    idx += 1
    c_ref = refs[idx] if variant == "lstm" else None

    tc = pl.program_id(1)

    # NOTE: the carried-state scheme requires the time-chunk axis to stay the
    # innermost, "arbitrary" grid axis.  Do not reorder the grid or mark it
    # "parallel".
    @pl.when(tc == 0)
    def _():
        h_ref[...] = jnp.zeros_like(h_ref)
        if variant == "lstm":
            c_ref[...] = jnp.zeros_like(c_ref)

    cdt = compute_dtype
    xc = x_ref[...].astype(cdt)                     # (bt, TCHUNK, D_in) bf16

    # Keep the recurrent state in values (vregs) for the whole chunk; write
    # back to scratch once at the end.
    h = [h_ref[l] for l in range(num_layers)]       # bf16 (bt, Hp)
    c = ([c_ref[l] for l in range(num_layers)]
         if variant == "lstm" else None)

    ys = []
    for ts in range(t_chunk):                       # fully unrolled, static slices
        inp = xc[:, ts, :]                          # (bt, D_in) / (bt, Hp) bf16
        for l in range(num_layers):
            if variant == "lstm":
                wx_ref, wh_ref, b_ref = layer_refs[l]
                # PyTorch gate order: i, f, g, o ; bias pre-added (b_ih + b_hh).
                g = (jnp.dot(inp, wx_ref[...],
                             preferred_element_type=jnp.float32)
                     + jnp.dot(h[l], wh_ref[...],
                               preferred_element_type=jnp.float32)
                     + b_ref[...])
                i_g = _sigmoid(g[:, 0 * Hp:1 * Hp])
                f_g = _sigmoid(g[:, 1 * Hp:2 * Hp])
                g_g = jnp.tanh(g[:, 2 * Hp:3 * Hp])
                o_g = _sigmoid(g[:, 3 * Hp:4 * Hp])
                c_new = f_g * c[l] + i_g * g_g
                h_new = o_g * jnp.tanh(c_new)
                c[l] = c_new
            else:
                # PyTorch GRU gate order: r, z, n.  r/z biases pre-added; b_hn
                # stays inside r * (W_hn h + b_hn).
                wx_ref, wh_ref, b_ref, bhn_ref = layer_refs[l]
                gx = jnp.dot(inp, wx_ref[...],
                             preferred_element_type=jnp.float32) + b_ref[...]
                gh = jnp.dot(h[l], wh_ref[...],
                             preferred_element_type=jnp.float32)
                r_g = _sigmoid(gx[:, 0 * Hp:1 * Hp] + gh[:, 0 * Hp:1 * Hp])
                z_g = _sigmoid(gx[:, 1 * Hp:2 * Hp] + gh[:, 1 * Hp:2 * Hp])
                n_g = jnp.tanh(gx[:, 2 * Hp:3 * Hp]
                               + r_g * (gh[:, 2 * Hp:3 * Hp] + bhn_ref[...]))
                h_new = (1.0 - z_g) * n_g + z_g * h[l].astype(jnp.float32)

            h[l] = h_new.astype(cdt)
            # TODO(synk): training-mode inter-layer dropout (eval == identity).
            inp = h[l]

        ys.append(jnp.dot(inp, wfc_ref[...],
                          preferred_element_type=jnp.float32) + bfc_ref[...])

    # Persist state for the next time chunk.
    for l in range(num_layers):
        h_ref[l] = h[l]
        if variant == "lstm":
            c_ref[l] = c[l]

    # One lane-dense (bt, TCHUNK*Dp) store per grid step.
    slab = jnp.concatenate(ys, axis=-1) if len(ys) > 1 else ys[0]
    o_ref[...] = slab.astype(o_ref.dtype)


def rnn_forward(x, params, *, variant="lstm", batch_tile=128, t_chunk=8,
                compute_dtype=jnp.bfloat16):
    """x: [B, T, D_in] f32. params: {'layers': [(wx, wh, b_ih, b_hh), ...],
    'fc': (w_fc [H, D_in], b_fc [1, D_in])}. Weights stored as [in, out]."""
    assert variant in ("lstm", "gru")
    assert t_chunk % 8 == 0, "t_chunk must be a multiple of 8"
    layers = params["layers"]
    w_fc, b_fc = params["fc"]

    B, T, D_in = x.shape
    L = len(layers)
    H = layers[0][1].shape[0]
    G = 4 if variant == "lstm" else 3

    # --- batch tiling ---------------------------------------------------------
    # Multiple of 16 (bf16 sublane packing); split into >=2 tiles when the
    # batch allows so the "parallel" axis can feed both TensorCores on v7x.
    bt = _round_up(min(batch_tile, max(B, 1)), 16)
    if B <= bt and B >= 32:
        bt = _round_up((B + 1) // 2, 16)
    B_pad = _round_up(B, bt)

    # --- time chunking --------------------------------------------------------
    T_pad = _round_up(T, t_chunk)
    n_chunks = T_pad // t_chunk

    # Gate columns in 128-lane-aligned blocks (no cross-lane shuffles when
    # slicing gates); no-op when H % 128 == 0.
    Hp = _round_up(H, 128)
    # fc output width padded just enough that TCHUNK*Dp is a multiple of 128
    # (lane-dense slab store, minimal HBM write amplification).
    Dp = _round_up(D_in, 128 // math.gcd(t_chunk, 128))

    # --- weight prep (hoisted casts, pre-added biases, per-gate padding) ------
    def pad_gate_cols(w, n_gates):
        if Hp == H:
            return w
        parts = [jnp.pad(w[:, g * H:(g + 1) * H], ((0, 0), (0, Hp - H)))
                 for g in range(n_gates)]
        return jnp.concatenate(parts, axis=-1)

    def pad_rows(w):
        return w if Hp == H else jnp.pad(w, ((0, Hp - H), (0, 0)))

    def full_spec(arr):
        nd = arr.ndim
        return pl.BlockSpec(arr.shape, lambda b, t: (0,) * nd)

    flat_w = []
    in_specs = [pl.BlockSpec((bt, t_chunk, D_in), lambda b, t: (b, t, 0))]

    for li, (wx, wh, bih, bhh) in enumerate(layers):
        wx_p = pad_gate_cols(wx, G)
        if li > 0:                       # layers > 0 consume the Hp-wide hidden
            wx_p = pad_rows(wx_p)
        wh_p = pad_rows(pad_gate_cols(wh, G))
        if variant == "lstm":
            b_p = pad_gate_cols(bih + bhh, G)
            layer_ws = (wx_p.astype(compute_dtype),
                        wh_p.astype(compute_dtype),
                        b_p.astype(jnp.float32))
        else:
            b_main = jnp.concatenate(
                [bih[:, :2 * H] + bhh[:, :2 * H], bih[:, 2 * H:3 * H]], axis=-1)
            b_p = pad_gate_cols(b_main, G)
            b_hn = bhh[:, 2 * H:3 * H]
            if Hp != H:
                b_hn = jnp.pad(b_hn, ((0, 0), (0, Hp - H)))
            layer_ws = (wx_p.astype(compute_dtype),
                        wh_p.astype(compute_dtype),
                        b_p.astype(jnp.float32),
                        b_hn.astype(jnp.float32))
        for a in layer_ws:
            flat_w.append(a)
            in_specs.append(full_spec(a))

    w_fc_p = pad_rows(jnp.pad(w_fc, ((0, 0), (0, Dp - D_in)))).astype(compute_dtype)
    b_fc_p = jnp.pad(b_fc, ((0, 0), (0, Dp - D_in))).astype(jnp.float32)
    flat_w += [w_fc_p, b_fc_p]
    in_specs += [full_spec(w_fc_p), full_spec(b_fc_p)]

    # --- input: batch-first, f32 straight from the caller (cast in-kernel) ----
    if B_pad != B or T_pad != T:
        x = jnp.pad(x, ((0, B_pad - B), (0, T_pad - T), (0, 0)))

    out_shape = jax.ShapeDtypeStruct((B_pad, n_chunks * t_chunk * Dp), jnp.float32)
    out_specs = pl.BlockSpec((bt, t_chunk * Dp), lambda b, t: (b, t))

    scratch = [pltpu.VMEM((L, bt, Hp), compute_dtype)]        # h state (bf16)
    if variant == "lstm":
        scratch.append(pltpu.VMEM((L, bt, Hp), jnp.float32))  # c state (f32)

    # --- advisory cost estimate ------------------------------------------------
    def _nbytes(a):
        return a.size * a.dtype.itemsize

    flops_per_step = 0
    d_l = D_in
    for _ in range(L):
        flops_per_step += 2 * (d_l + Hp) * G * Hp
        d_l = Hp
    flops_per_step += 2 * Hp * Dp
    flops = B_pad * T_pad * flops_per_step
    transcendentals = B_pad * T_pad * L * (5 if variant == "lstm" else 3) * Hp
    bytes_accessed = (_nbytes(x) + sum(_nbytes(a) for a in flat_w)
                      + B_pad * T_pad * Dp * 4)
    cost = pl.CostEstimate(flops=int(flops),
                           transcendentals=int(transcendentals),
                           bytes_accessed=int(bytes_accessed))

    # --- explicit VMEM budget ---------------------------------------------------
    weight_bytes = sum(_nbytes(a) for a in flat_w)
    io_bytes = 2 * (bt * t_chunk * D_in * 4 + bt * t_chunk * Dp * 4)  # dbl-buffered
    state_bytes = L * bt * Hp * 2 + (L * bt * Hp * 4 if variant == "lstm" else 0)
    tmp_bytes = bt * (2 * G * Hp + t_chunk * Dp + 4 * Hp) * 4
    footprint = 2 * weight_bytes + io_bytes + state_bytes + tmp_bytes
    vmem_limit = int(min(max(2 * footprint, 32 * 1024 * 1024), 64 * 1024 * 1024))

    kernel = functools.partial(_rnn_fc_kernel, variant=variant, num_layers=L,
                               hidden_pad=Hp, t_chunk=t_chunk,
                               compute_dtype=compute_dtype)

    y_flat = pl.pallas_call(
        kernel,
        out_shape=out_shape,
        grid_spec=pltpu.PrefetchScalarGridSpec(
            num_scalar_prefetch=0,
            grid=(B_pad // bt, n_chunks),
            in_specs=in_specs,
            out_specs=out_specs,
            scratch_shapes=scratch,
        ),
        compiler_params=pltpu.CompilerParams(
            dimension_semantics=("parallel", "arbitrary"),
            vmem_limit_bytes=vmem_limit),
        cost_estimate=cost,
    )(x, *flat_w)

    # Contiguous reshape (metadata-only) then strip batch/time/feature padding.
    y = y_flat.reshape(B_pad, T_pad, Dp)
    return y[:B, :T, :D_in]


def init_rnn_params(key, variant, input_size, hidden_size, num_layers,
                    dtype=jnp.float32):
    """Mimics PyTorch RNN/Linear init: U(-1/sqrt(H), 1/sqrt(H)).
    Weights stored as [in, gates*H] (transposed vs. PyTorch)."""
    G = 4 if variant == "lstm" else 3
    bound = 1.0 / float(hidden_size) ** 0.5
    layers = []
    in_dim = input_size
    for _ in range(num_layers):
        key, k1, k2, k3, k4 = jax.random.split(key, 5)
        wx = jax.random.uniform(k1, (in_dim, G * hidden_size), dtype, -bound, bound)
        wh = jax.random.uniform(k2, (hidden_size, G * hidden_size), dtype, -bound, bound)
        bih = jax.random.uniform(k3, (1, G * hidden_size), dtype, -bound, bound)
        bhh = jax.random.uniform(k4, (1, G * hidden_size), dtype, -bound, bound)
        layers.append((wx, wh, bih, bhh))
        in_dim = hidden_size
    key, k1, k2 = jax.random.split(key, 3)
    w_fc = jax.random.uniform(k1, (hidden_size, input_size), dtype, -bound, bound)
    b_fc = jax.random.uniform(k2, (1, input_size), dtype, -bound, bound)
    return {"layers": layers, "fc": (w_fc, b_fc)}


def reference_forward(x, params, *, variant, compute_dtype=jnp.bfloat16):
    """Pure-JAX reference with the same mixed-precision math as the kernel
    (bf16 matmul operands + bf16 h carry, f32 accumulation / c state)."""
    layers = params["layers"]
    w_fc, b_fc = params["fc"]
    B, T, _ = x.shape
    H = layers[0][1].shape[0]
    h = [jnp.zeros((B, H), compute_dtype) for _ in layers]
    c = [jnp.zeros((B, H), jnp.float32) for _ in layers]
    w_fc_c = w_fc.astype(compute_dtype)
    outs = []
    for t in range(T):
        inp = x[:, t, :].astype(compute_dtype)
        for l, (wx, wh, bih, bhh) in enumerate(layers):
            gx = jnp.dot(inp, wx.astype(compute_dtype),
                         preferred_element_type=jnp.float32) + bih
            gh = jnp.dot(h[l], wh.astype(compute_dtype),
                         preferred_element_type=jnp.float32) + bhh
            if variant == "lstm":
                g = gx + gh
                i_g = _sigmoid(g[:, 0 * H:1 * H])
                f_g = _sigmoid(g[:, 1 * H:2 * H])
                g_g = jnp.tanh(g[:, 2 * H:3 * H])
                o_g = _sigmoid(g[:, 3 * H:4 * H])
                c[l] = f_g * c[l] + i_g * g_g
                h_new = o_g * jnp.tanh(c[l])
            else:
                r_g = _sigmoid(gx[:, 0 * H:1 * H] + gh[:, 0 * H:1 * H])
                z_g = _sigmoid(gx[:, 1 * H:2 * H] + gh[:, 1 * H:2 * H])
                n_g = jnp.tanh(gx[:, 2 * H:3 * H] + r_g * gh[:, 2 * H:3 * H])
                h_new = (1.0 - z_g) * n_g + z_g * h[l].astype(jnp.float32)
            h[l] = h_new.astype(compute_dtype)
            inp = h[l]
        outs.append(jnp.dot(inp, w_fc_c, preferred_element_type=jnp.float32) + b_fc)
    return jnp.stack(outs, axis=1)


if __name__ == "__main__":
    # RNNModel(variant, input_size=16, hidden_size=32, num_layers=2, dropout=0.1)
    batch, seq_len = 4, 8
    input_size, hidden_size, num_layers = 16, 32, 2

    key = jax.random.PRNGKey(0)
    for variant in ("lstm", "gru"):
        key, k_x, k_p = jax.random.split(key, 3)
        x = jax.random.normal(k_x, (batch, seq_len, input_size), jnp.float32)
        params = init_rnn_params(k_p, variant, input_size, hidden_size, num_layers)

        y = rnn_forward(x, params, variant=variant)
        y = jax.block_until_ready(y)
        assert y.shape == (batch, seq_len, input_size)

        y_ref = reference_forward(x, params, variant=variant)
        err = float(jnp.max(jnp.abs(y - y_ref)))
        assert err < 5e-3, f"{variant}: max abs err {err} vs JAX reference"

    print("KERNEL_OK")
</pallas_src>

<mosaic_0001>
module attributes {stable_mosaic.version = 11 : i64} {
  func.func @_rnn_fc_kernel(%arg0: i32, %arg1: i32, %arg2: memref<16x8x16xf32, #tpu.memory_space<vmem>>, %arg3: memref<16x512xbf16, #tpu.memory_space<vmem>>, %arg4: memref<128x512xbf16, #tpu.memory_space<vmem>>, %arg5: memref<1x512xf32, #tpu.memory_space<vmem>>, %arg6: memref<128x512xbf16, #tpu.memory_space<vmem>>, %arg7: memref<128x512xbf16, #tpu.memory_space<vmem>>, %arg8: memref<1x512xf32, #tpu.memory_space<vmem>>, %arg9: memref<128x16xbf16, #tpu.memory_space<vmem>>, %arg10: memref<1x16xf32, #tpu.memory_space<vmem>>, %arg11: memref<16x128xf32, #tpu.memory_space<vmem>>, %arg12: memref<2x16x128xbf16, #tpu.memory_space<vmem>>, %arg13: memref<2x16x128xf32, #tpu.memory_space<vmem>>) attributes {dimension_semantics = [#tpu.dimension_semantics<parallel>, #tpu.dimension_semantics<arbitrary>], iteration_bounds = array<i64: 1, 1>, scalar_prefetch = 0 : i64, scratch_operands = 2 : i64, tpu.core_type = #tpu.core_type<tc>, window_params = [{transform_indices = @transform_0, window_bounds = array<i64: 16, 8, 16>}, {pipeline_mode = #tpu.pipeline_mode<synchronous>, transform_indices = @transform_1, window_bounds = array<i64: 16, 512>}, {pipeline_mode = #tpu.pipeline_mode<synchronous>, transform_indices = @transform_2, window_bounds = array<i64: 128, 512>}, {pipeline_mode = #tpu.pipeline_mode<synchronous>, transform_indices = @transform_3, window_bounds = array<i64: 1, 512>}, {pipeline_mode = #tpu.pipeline_mode<synchronous>, transform_indices = @transform_4, window_bounds = array<i64: 128, 512>}, {pipeline_mode = #tpu.pipeline_mode<synchronous>, transform_indices = @transform_5, window_bounds = array<i64: 128, 512>}, {pipeline_mode = #tpu.pipeline_mode<synchronous>, transform_indices = @transform_6, window_bounds = array<i64: 1, 512>}, {pipeline_mode = #tpu.pipeline_mode<synchronous>, transform_indices = @transform_7, window_bounds = array<i64: 128, 16>}, {pipeline_mode = #tpu.pipeline_mode<synchronous>, transform_indices = @transform_8, window_bounds = array<i64: 1, 16>}, {transform_indices = @transform_9, window_bounds = array<i64: 16, 128>}]} {
    %c0_i32 = arith.constant 0 : i32
    %0 = arith.cmpi eq, %arg1, %c0_i32 : i32
    %1 = arith.extui %0 : i1 to i32
    %c0_i32_0 = arith.constant 0 : i32
    %2 = arith.cmpi ne, %1, %c0_i32_0 : i32
    scf.if %2 {
      %cst_339 = arith.constant 0.000000e+00 : bf16
      %723 = vector.broadcast %cst_339 : bf16 to vector<2x16x128xbf16>
      %c0_340 = arith.constant 0 : index
      %c0_341 = arith.constant 0 : index
      %c0_342 = arith.constant 0 : index
      %724 = vector.load %arg12[%c0_340, %c0_341, %c0_342] : memref<2x16x128xbf16, #tpu.memory_space<vmem>>, vector<2x16x128xbf16>
      tpu.vector_store %arg12[%c0_340, %c0_341, %c0_342], %723 {strides = array<i32>} : memref<2x16x128xbf16, #tpu.memory_space<vmem>>, vector<2x16x128xbf16>,
      %cst_343 = arith.constant 0.000000e+00 : f32
      %725 = vector.broadcast %cst_343 : f32 to vector<2x16x128xf32>
      %c0_344 = arith.constant 0 : index
      %c0_345 = arith.constant 0 : index
      %c0_346 = arith.constant 0 : index
      %726 = vector.load %arg13[%c0_344, %c0_345, %c0_346] : memref<2x16x128xf32, #tpu.memory_space<vmem>>, vector<2x16x128xf32>
      tpu.vector_store %arg13[%c0_344, %c0_345, %c0_346], %725 {strides = array<i32>} : memref<2x16x128xf32, #tpu.memory_space<vmem>>, vector<2x16x128xf32>,
    } else {
    }
    %c0 = arith.constant 0 : index
    %c0_1 = arith.constant 0 : index
    %c0_2 = arith.constant 0 : index
    %3 = vector.load %arg2[%c0, %c0_1, %c0_2] : memref<16x8x16xf32, #tpu.memory_space<vmem>>, vector<16x8x16xf32>
    %4 = arith.truncf %3 : vector<16x8x16xf32> to vector<16x8x16xbf16>
    %c0_3 = arith.constant 0 : index
    %c0_4 = arith.constant 0 : index
    %c0_5 = arith.constant 0 : index
    %5 = vector.load %arg12[%c0_3, %c0_4, %c0_5] : memref<2x16x128xbf16, #tpu.memory_space<vmem>>, vector<1x16x128xbf16>
    %6 = vector.shape_cast %5 : vector<1x16x128xbf16> to vector<16x128xbf16>
    %c1 = arith.constant 1 : index
    %c0_6 = arith.constant 0 : index
    %c0_7 = arith.constant 0 : index
    %7 = vector.load %arg12[%c1, %c0_6, %c0_7] : memref<2x16x128xbf16, #tpu.memory_space<vmem>>, vector<1x16x128xbf16>
    %8 = vector.shape_cast %7 : vector<1x16x128xbf16> to vector<16x128xbf16>
    %c0_8 = arith.constant 0 : index
    %c0_9 = arith.constant 0 : index
    %c0_10 = arith.constant 0 : index
    %9 = vector.load %arg13[%c0_8, %c0_9, %c0_10] : memref<2x16x128xf32, #tpu.memory_space<vmem>>, vector<1x16x128xf32>
    %10 = vector.shape_cast %9 : vector<1x16x128xf32> to vector<16x128xf32>
    %c1_11 = arith.constant 1 : index
    %c0_12 = arith.constant 0 : index
    %c0_13 = arith.constant 0 : index
    %11 = vector.load %arg13[%c1_11, %c0_12, %c0_13] : memref<2x16x128xf32, #tpu.memory_space<vmem>>, vector<1x16x128xf32>
    %12 = vector.shape_cast %11 : vector<1x16x128xf32> to vector<16x128xf32>
    %13 = vector.extract_strided_slice %4 {offsets = [0, 0, 0], sizes = [16, 1, 16], strides = [1, 1, 1]} : vector<16x8x16xbf16> to vector<16x1x16xbf16>
    %14 = vector.shape_cast %13 : vector<16x1x16xbf16> to vector<16x16xbf16>
    %c0_14 = arith.constant 0 : index
    %c0_15 = arith.constant 0 : index
    %15 = vector.load %arg3[%c0_14, %c0_15] : memref<16x512xbf16, #tpu.memory_space<vmem>>, vector<16x512xbf16>
    %cst = arith.constant dense<0.000000e+00> : vector<16x512xf32>
    %16 = tpu.matmul %14, %15, %cst {dimension_numbers = #tpu.dot_dimension_numbers<[1], [0], [0], [1], [0, 0, 1, 1], [], []>} : vector<16x16xbf16>, vector<16x512xbf16>, vector<16x512xf32> -> vector<16x512xf32>
    %c0_16 = arith.constant 0 : index
    %c0_17 = arith.constant 0 : index
    %17 = vector.load %arg4[%c0_16, %c0_17] : memref<128x512xbf16, #tpu.memory_space<vmem>>, vector<128x512xbf16>
    %cst_18 = arith.constant dense<0.000000e+00> : vector<16x512xf32>
    %18 = tpu.matmul %6, %17, %cst_18 {dimension_numbers = #tpu.dot_dimension_numbers<[1], [0], [0], [1], [0, 0, 1, 1], [], []>} : vector<16x128xbf16>, vector<128x512xbf16>, vector<16x512xf32> -> vector<16x512xf32>
    %19 = arith.addf %16, %18 : vector<16x512xf32>
    %c0_19 = arith.constant 0 : index
    %c0_20 = arith.constant 0 : index
    %20 = vector.load %arg5[%c0_19, %c0_20] : memref<1x512xf32, #tpu.memory_space<vmem>>, vector<1x512xf32>
    %21 = vector.broadcast %20 : vector<1x512xf32> to vector<16x512xf32>
    %22 = arith.addf %19, %21 : vector<16x512xf32>
    %23 = vector.extract_strided_slice %22 {offsets = [0, 0], sizes = [16, 128], strides = [1, 1]} : vector<16x512xf32> to vector<16x128xf32>
    %cst_21 = arith.constant 5.000000e-01 : f32
    %24 = vector.broadcast %cst_21 : f32 to vector<16x128xf32>
    %25 = arith.mulf %24, %23 : vector<16x128xf32>
    %26 = math.tanh %25 : vector<16x128xf32>
    %cst_22 = arith.constant 1.000000e+00 : f32
    %27 = vector.broadcast %cst_22 : f32 to vector<16x128xf32>
    %28 = arith.addf %26, %27 : vector<16x128xf32>
    %cst_23 = arith.constant 5.000000e-01 : f32
    %29 = vector.broadcast %cst_23 : f32 to vector<16x128xf32>
    %30 = arith.mulf %29, %28 : vector<16x128xf32>
    %31 = vector.extract_strided_slice %22 {offsets = [0, 128], sizes = [16, 128], strides = [1, 1]} : vector<16x512xf32> to vector<16x128xf32>
    %cst_24 = arith.constant 5.000000e-01 : f32
    %32 = vector.broadcast %cst_24 : f32 to vector<16x128xf32>
    %33 = arith.mulf %32, %31 : vector<16x128xf32>
    %34 = math.tanh %33 : vector<16x128xf32>
    %cst_25 = arith.constant 1.000000e+00 : f32
    %35 = vector.broadcast %cst_25 : f32 to vector<16x128xf32>
    %36 = arith.addf %34, %35 : vector<16x128xf32>
    %cst_26 = arith.constant 5.000000e-01 : f32
    %37 = vector.broadcast %cst_26 : f32 to vector<16x128xf32>
    %38 = arith.mulf %37, %36 : vector<16x128xf32>
    %39 = vector.extract_strided_slice %22 {offsets = [0, 256], sizes = [16, 128], strides = [1, 1]} : vector<16x512xf32> to vector<16x128xf32>
    %40 = math.tanh %39 : vector<16x128xf32>
    %41 = vector.extract_strided_slice %22 {offsets = [0, 384], sizes = [16, 128], strides = [1, 1]} : vector<16x512xf32> to vector<16x128xf32>
    %cst_27 = arith.constant 5.000000e-01 : f32
    %42 = vector.broadcast %cst_27 : f32 to vector<16x128xf32>
    %43 = arith.mulf %42, %41 : vector<16x128xf32>
    %44 = math.tanh %43 : vector<16x128xf32>
    %cst_28 = arith.constant 1.000000e+00 : f32
    %45 = vector.broadcast %cst_28 : f32 to vector<16x128xf32>
    %46 = arith.addf %44, %45 : vector<16x128xf32>
    %cst_29 = arith.constant 5.000000e-01 : f32
    %47 = vector.broadcast %cst_29 : f32 to vector<16x128xf32>
    %48 = arith.mulf %47, %46 : vector<16x128xf32>
    %49 = arith.mulf %38, %10 : vector<16x128xf32>
    %50 = arith.mulf %30, %40 : vector<16x128xf32>
    %51 = arith.addf %49, %50 : vector<16x128xf32>
    %52 = math.tanh %51 : vector<16x128xf32>
    %53 = arith.mulf %48, %52 : vector<16x128xf32>
    %54 = arith.truncf %53 : vector<16x128xf32> to vector<16x128xbf16>
    %c0_30 = arith.constant 0 : index
    %c0_31 = arith.constant 0 : index
    %55 = vector.load %arg6[%c0_30, %c0_31] : memref<128x512xbf16, #tpu.memory_space<vmem>>, vector<128x512xbf16>
    %cst_32 = arith.constant dense<0.000000e+00> : vector<16x512xf32>
    %56 = tpu.matmul %54, %55, %cst_32 {dimension_numbers = #tpu.dot_dimension_numbers<[1], [0], [0], [1], [0, 0, 1, 1], [], []>} : vector<16x128xbf16>, vector<128x512xbf16>, vector<16x512xf32> -> vector<16x512xf32>
    %c0_33 = arith.constant 0 : index
    %c0_34 = arith.constant 0 : index
    %57 = vector.load %arg7[%c0_33, %c0_34] : memref<128x512xbf16, #tpu.memory_space<vmem>>, vector<128x512xbf16>
    %cst_35 = arith.constant dense<0.000000e+00> : vector<16x512xf32>
    %58 = tpu.matmul %8, %57, %cst_35 {dimension_numbers = #tpu.dot_dimension_numbers<[1], [0], [0], [1], [0, 0, 1, 1], [], []>} : vector<16x128xbf16>, vector<128x512xbf16>, vector<16x512xf32> -> vector<16x512xf32>
    %59 = arith.addf %56, %58 : vector<16x512xf32>
    %c0_36 = arith.constant 0 : index
    %c0_37 = arith.constant 0 : index
    %60 = vector.load %arg8[%c0_36, %c0_37] : memref<1x512xf32, #tpu.memory_space<vmem>>, vector<1x512xf32>
    %61 = vector.broadcast %60 : vector<1x512xf32> to vector<16x512xf32>
    %62 = arith.addf %59, %61 : vector<16x512xf32>
    %63 = vector.extract_strided_slice %62 {offsets = [0, 0], sizes = [16, 128], strides = [1, 1]} : vector<16x512xf32> to vector<16x128xf32>
    %cst_38 = arith.constant 5.000000e-01 : f32
    %64 = vector.broadcast %cst_38 : f32 to vector<16x128xf32>
    %65 = arith.mulf %64, %63 : vector<16x128xf32>
    %66 = math.tanh %65 : vector<16x128xf32>
    %cst_39 = arith.constant 1.000000e+00 : f32
    %67 = vector.broadcast %cst_39 : f32 to vector<16x128xf32>
    %68 = arith.addf %66, %67 : vector<16x128xf32>
    %cst_40 = arith.constant 5.000000e-01 : f32
    %69 = vector.broadcast %cst_40 : f32 to vector<16x128xf32>
    %70 = arith.mulf %69, %68 : vector<16x128xf32>
    %71 = vector.extract_strided_slice %62 {offsets = [0, 128], sizes = [16, 128], strides = [1, 1]} : vector<16x512xf32> to vector<16x128xf32>
    %cst_41 = arith.constant 5.000000e-01 : f32
    %72 = vector.broadcast %cst_41 : f32 to vector<16x128xf32>
    %73 = arith.mulf %72, %71 : vector<16x128xf32>
    %74 = math.tanh %73 : vector<16x128xf32>
    %cst_42 = arith.constant 1.000000e+00 : f32
    %75 = vector.broadcast %cst_42 : f32 to vector<16x128xf32>
    %76 = arith.addf %74, %75 : vector<16x128xf32>
    %cst_43 = arith.constant 5.000000e-01 : f32
    %77 = vector.broadcast %cst_43 : f32 to vector<16x128xf32>
    %78 = arith.mulf %77, %76 : vector<16x128xf32>
    %79 = vector.extract_strided_slice %62 {offsets = [0, 256], sizes = [16, 128], strides = [1, 1]} : vector<16x512xf32> to vector<16x128xf32>
    %80 = math.tanh %79 : vector<16x128xf32>
    %81 = vector.extract_strided_slice %62 {offsets = [0, 384], sizes = [16, 128], strides = [1, 1]} : vector<16x512xf32> to vector<16x128xf32>
    %cst_44 = arith.constant 5.000000e-01 : f32
    %82 = vector.broadcast %cst_44 : f32 to vector<16x128xf32>
    %83 = arith.mulf %82, %81 : vector<16x128xf32>
    %84 = math.tanh %83 : vector<16x128xf32>
    %cst_45 = arith.constant 1.000000e+00 : f32
    %85 = vector.broadcast %cst_45 : f32 to vector<16x128xf32>
    %86 = arith.addf %84, %85 : vector<16x128xf32>
    %cst_46 = arith.constant 5.000000e-01 : f32
    %87 = vector.broadcast %cst_46 : f32 to vector<16x128xf32>
    %88 = arith.mulf %87, %86 : vector<16x128xf32>
    %89 = arith.mulf %78, %12 : vector<16x128xf32>
    %90 = arith.mulf %70, %80 : vector<16x128xf32>
    %91 = arith.addf %89, %90 : vector<16x128xf32>
    %92 = math.tanh %91 : vector<16x128xf32>
    %93 = arith.mulf %88, %92 : vector<16x128xf32>
    %94 = arith.truncf %93 : vector<16x128xf32> to vector<16x128xbf16>
    %c0_47 = arith.constant 0 : index
    %c0_48 = arith.constant 0 : index
    %95 = vector.load %arg9[%c0_47, %c0_48] : memref<128x16xbf16, #tpu.memory_space<vmem>>, vector<128x16xbf16>
    %cst_49 = arith.constant dense<0.000000e+00> : vector<16x16xf32>
    %96 = tpu.matmul %94, %95, %cst_49 {dimension_numbers = #tpu.dot_dimension_numbers<[1], [0], [0], [1], [0, 0, 1, 1], [], []>} : vector<16x128xbf16>, vector<128x16xbf16>, vector<16x16xf32> -> vector<16x16xf32>
    %c0_50 = arith.constant 0 : index
    %c0_51 = arith.constant 0 : index
    %97 = vector.load %arg10[%c0_50, %c0_51] : memref<1x16xf32, #tpu.memory_space<vmem>>, vector<1x16xf32>
    %98 = vector.broadcast %97 : vector<1x16xf32> to vector<16x16xf32>
    %99 = arith.addf %96, %98 : vector<16x16xf32>
    %100 = vector.extract_strided_slice %4 {offsets = [0, 1, 0], sizes = [16, 1, 16], strides = [1, 1, 1]} : vector<16x8x16xbf16> to vector<16x1x16xbf16>
    %101 = vector.shape_cast %100 : vector<16x1x16xbf16> to vector<16x16xbf16>
    %c0_52 = arith.constant 0 : index
    %c0_53 = arith.constant 0 : index
    %102 = vector.load %arg3[%c0_52, %c0_53] : memref<16x512xbf16, #tpu.memory_space<vmem>>, vector<16x512xbf16>
    %cst_54 = arith.constant dense<0.000000e+00> : vector<16x512xf32>
    %103 = tpu.matmul %101, %102, %cst_54 {dimension_numbers = #tpu.dot_dimension_numbers<[1], [0], [0], [1], [0, 0, 1, 1], [], []>} : vector<16x16xbf16>, vector<16x512xbf16>, vector<16x512xf32> -> vector<16x512xf32>
    %c0_55 = arith.constant 0 : index
    %c0_56 = arith.constant 0 : index
    %104 = vector.load %arg4[%c0_55, %c0_56] : memref<128x512xbf16, #tpu.memory_space<vmem>>, vector<128x512xbf16>
    %cst_57 = arith.constant dense<0.000000e+00> : vector<16x512xf32>
    %105 = tpu.matmul %54, %104, %cst_57 {dimension_numbers = #tpu.dot_dimension_numbers<[1], [0], [0], [1], [0, 0, 1, 1], [], []>} : vector<16x128xbf16>, vector<128x512xbf16>, vector<16x512xf32> -> vector<16x512xf32>
    %106 = arith.addf %103, %105 : vector<16x512xf32>
    %c0_58 = arith.constant 0 : index
    %c0_59 = arith.constant 0 : index
    %107 = vector.load %arg5[%c0_58, %c0_59] : memref<1x512xf32, #tpu.memory_space<vmem>>, vector<1x512xf32>
    %108 = vector.broadcast %107 : vector<1x512xf32> to vector<16x512xf32>
    %109 = arith.addf %106, %108 : vector<16x512xf32>
    %110 = vector.extract_strided_slice %109 {offsets = [0, 0], sizes = [16, 128], strides = [1, 1]} : vector<16x512xf32> to vector<16x128xf32>
    %cst_60 = arith.constant 5.000000e-01 : f32
    %111 = vector.broadcast %cst_60 : f32 to vector<16x128xf32>
    %112 = arith.mulf %111, %110 : vector<16x128xf32>
    %113 = math.tanh %112 : vector<16x128xf32>
    %cst_61 = arith.constant 1.000000e+00 : f32
    %114 = vector.broadcast %cst_61 : f32 to vector<16x128xf32>
    %115 = arith.addf %113, %114 : vector<16x128xf32>
    %cst_62 = arith.constant 5.000000e-01 : f32
    %116 = vector.broadcast %cst_62 : f32 to vector<16x128xf32>
    %117 = arith.mulf %116, %115 : vector<16x128xf32>
    %118 = vector.extract_strided_slice %109 {offsets = [0, 128], sizes = [16, 128], strides = [1, 1]} : vector<16x512xf32> to vector<16x128xf32>
    %cst_63 = arith.constant 5.000000e-01 : f32
    %119 = vector.broadcast %cst_63 : f32 to vector<16x128xf32>
    %120 = arith.mulf %119, %118 : vector<16x128xf32>
    %121 = math.tanh %120 : vector<16x128xf32>
    %cst_64 = arith.constant 1.000000e+00 : f32
    %122 = vector.broadcast %cst_64 : f32 to vector<16x128xf32>
    %123 = arith.addf %121, %122 : vector<16x128xf32>
    %cst_65 = arith.constant 5.000000e-01 : f32
    %124 = vector.broadcast %cst_65 : f32 to vector<16x128xf32>
    %125 = arith.mulf %124, %123 : vector<16x128xf32>
    %126 = vector.extract_strided_slice %109 {offsets = [0, 256], sizes = [16, 128], strides = [1, 1]} : vector<16x512xf32> to vector<16x128xf32>
    %127 = math.tanh %126 : vector<16x128xf32>
    %128 = vector.extract_strided_slice %109 {offsets = [0, 384], sizes = [16, 128], strides = [1, 1]} : vector<16x512xf32> to vector<16x128xf32>
    %cst_66 = arith.constant 5.000000e-01 : f32
    %129 = vector.broadcast %cst_66 : f32 to vector<16x128xf32>
    %130 = arith.mulf %129, %128 : vector<16x128xf32>
    %131 = math.tanh %130 : vector<16x128xf32>
    %cst_67 = arith.constant 1.000000e+00 : f32
    %132 = vector.broadcast %cst_67 : f32 to vector<16x128xf32>
    %133 = arith.addf %131, %132 : vector<16x128xf32>
    %cst_68 = arith.constant 5.000000e-01 : f32
    %134 = vector.broadcast %cst_68 : f32 to vector<16x128xf32>
    %135 = arith.mulf %134, %133 : vector<16x128xf32>
    %136 = arith.mulf %125, %51 : vector<16x128xf32>
    %137 = arith.mulf %117, %127 : vector<16x128xf32>
    %138 = arith.addf %136, %137 : vector<16x128xf32>
    %139 = math.tanh %138 : vector<16x128xf32>
    %140 = arith.mulf %135, %139 : vector<16x128xf32>
    %141 = arith.truncf %140 : vector<16x128xf32> to vector<16x128xbf16>
    %c0_69 = arith.constant 0 : index
    %c0_70 = arith.constant 0 : index
    %142 = vector.load %arg6[%c0_69, %c0_70] : memref<128x512xbf16, #tpu.memory_space<vmem>>, vector<128x512xbf16>
    %cst_71 = arith.constant dense<0.000000e+00> : vector<16x512xf32>
    %143 = tpu.matmul %141, %142, %cst_71 {dimension_numbers = #tpu.dot_dimension_numbers<[1], [0], [0], [1], [0, 0, 1, 1], [], []>} : vector<16x128xbf16>, vector<128x512xbf16>, vector<16x512xf32> -> vector<16x512xf32>
    %c0_72 = arith.constant 0 : index
    %c0_73 = arith.constant 0 : index
    %144 = vector.load %arg7[%c0_72, %c0_73] : memref<128x512xbf16, #tpu.memory_space<vmem>>, vector<128x512xbf16>
    %cst_74 = arith.constant dense<0.000000e+00> : vector<16x512xf32>
    %145 = tpu.matmul %94, %144, %cst_74 {dimension_numbers = #tpu.dot_dimension_numbers<[1], [0], [0], [1], [0, 0, 1, 1], [], []>} : vector<16x128xbf16>, vector<128x512xbf16>, vector<16x512xf32> -> vector<16x512xf32>
    %146 = arith.addf %143, %145 : vector<16x512xf32>
    %c0_75 = arith.constant 0 : index
    %c0_76 = arith.constant 0 : index
    %147 = vector.load %arg8[%c0_75, %c0_76] : memref<1x512xf32, #tpu.memory_space<vmem>>, vector<1x512xf32>
    %148 = vector.broadcast %147 : vector<1x512xf32> to vector<16x512xf32>
    %149 = arith.addf %146, %148 : vector<16x512xf32>
    %150 = vector.extract_strided_slice %149 {offsets = [0, 0], sizes = [16, 128], strides = [1, 1]} : vector<16x512xf32> to vector<16x128xf32>
    %cst_77 = arith.constant 5.000000e-01 : f32
    %151 = vector.broadcast %cst_77 : f32 to vector<16x128xf32>
    %152 = arith.mulf %151, %150 : vector<16x128xf32>
    %153 = math.tanh %152 : vector<16x128xf32>
    %cst_78 = arith.constant 1.000000e+00 : f32
    %154 = vector.broadcast %cst_78 : f32 to vector<16x128xf32>
    %155 = arith.addf %153, %154 : vector<16x128xf32>
    %cst_79 = arith.constant 5.000000e-01 : f32
    %156 = vector.broadcast %cst_79 : f32 to vector<16x128xf32>
    %157 = arith.mulf %156, %155 : vector<16x128xf32>
    %158 = vector.extract_strided_slice %149 {offsets = [0, 128], sizes = [16, 128], strides = [1, 1]} : vector<16x512xf32> to vector<16x128xf32>
    %cst_80 = arith.constant 5.000000e-01 : f32
    %159 = vector.broadcast %cst_80 : f32 to vector<16x128xf32>
    %160 = arith.mulf %159, %158 : vector<16x128xf32>
    %161 = math.tanh %160 : vector<16x128xf32>
    %cst_81 = arith.constant 1.000000e+00 : f32
    %162 = vector.broadcast %cst_81 : f32 to vector<16x128xf32>
    %163 = arith.addf %161, %162 : vector<16x128xf32>
    %cst_82 = arith.constant 5.000000e-01 : f32
    %164 = vector.broadcast %cst_82 : f32 to vector<16x128xf32>
    %165 = arith.mulf %164, %163 : vector<16x128xf32>
    %166 = vector.extract_strided_slice %149 {offsets = [0, 256], sizes = [16, 128], strides = [1, 1]} : vector<16x512xf32> to vector<16x128xf32>
    %167 = math.tanh %166 : vector<16x128xf32>
    %168 = vector.extract_strided_slice %149 {offsets = [0, 384], sizes = [16, 128], strides = [1, 1]} : vector<16x512xf32> to vector<16x128xf32>
    %cst_83 = arith.constant 5.000000e-01 : f32
    %169 = vector.broadcast %cst_83 : f32 to vector<16x128xf32>
    %170 = arith.mulf %169, %168 : vector<16x128xf32>
    %171 = math.tanh %170 : vector<16x128xf32>
    %cst_84 = arith.constant 1.000000e+00 : f32
    %172 = vector.broadcast %cst_84 : f32 to vector<16x128xf32>
    %173 = arith.addf %171, %172 : vector<16x128xf32>
    %cst_85 = arith.constant 5.000000e-01 : f32
    %174 = vector.broadcast %cst_85 : f32 to vector<16x128xf32>
    %175 = arith.mulf %174, %173 : vector<16x128xf32>
    %176 = arith.mulf %165, %91 : vector<16x128xf32>
    %177 = arith.mulf %157, %167 : vector<16x128xf32>
    %178 = arith.addf %176, %177 : vector<16x128xf32>
    %179 = math.tanh %178 : vector<16x128xf32>
    %180 = arith.mulf %175, %179 : vector<16x128xf32>
    %181 = arith.truncf %180 : vector<16x128xf32> to vector<16x128xbf16>
    %c0_86 = arith.constant 0 : index
    %c0_87 = arith.constant 0 : index
    %182 = vector.load %arg9[%c0_86, %c0_87] : memref<128x16xbf16, #tpu.memory_space<vmem>>, vector<128x16xbf16>
    %cst_88 = arith.constant dense<0.000000e+00> : vector<16x16xf32>
    %183 = tpu.matmul %181, %182, %cst_88 {dimension_numbers = #tpu.dot_dimension_numbers<[1], [0], [0], [1], [0, 0, 1, 1], [], []>} : vector<16x128xbf16>, vector<128x16xbf16>, vector<16x16xf32> -> vector<16x16xf32>
    %c0_89 = arith.constant 0 : index
    %c0_90 = arith.constant 0 : index
    %184 = vector.load %arg10[%c0_89, %c0_90] : memref<1x16xf32, #tpu.memory_space<vmem>>, vector<1x16xf32>
    %185 = vector.broadcast %184 : vector<1x16xf32> to vector<16x16xf32>
    %186 = arith.addf %183, %185 : vector<16x16xf32>
    %187 = vector.extract_strided_slice %4 {offsets = [0, 2, 0], sizes = [16, 1, 16], strides = [1, 1, 1]} : vector<16x8x16xbf16> to vector<16x1x16xbf16>
    %188 = vector.shape_cast %187 : vector<16x1x16xbf16> to vector<16x16xbf16>
    %c0_91 = arith.constant 0 : index
    %c0_92 = arith.constant 0 : index
    %189 = vector.load %arg3[%c0_91, %c0_92] : memref<16x512xbf16, #tpu.memory_space<vmem>>, vector<16x512xbf16>
    %cst_93 = arith.constant dense<0.000000e+00> : vector<16x512xf32>
    %190 = tpu.matmul %188, %189, %cst_93 {dimension_numbers = #tpu.dot_dimension_numbers<[1], [0], [0], [1], [0, 0, 1, 1], [], []>} : vector<16x16xbf16>, vector<16x512xbf16>, vector<16x512xf32> -> vector<16x512xf32>
    %c0_94 = arith.constant 0 : index
    %c0_95 = arith.constant 0 : index
    %191 = vector.load %arg4[%c0_94, %c0_95] : memref<128x512xbf16, #tpu.memory_space<vmem>>, vector<128x512xbf16>
    %cst_96 = arith.constant dense<0.000000e+00> : vector<16x512xf32>
    %192 = tpu.matmul %141, %191, %cst_96 {dimension_numbers = #tpu.dot_dimension_numbers<[1], [0], [0], [1], [0, 0, 1, 1], [], []>} : vector<16x128xbf16>, vector<128x512xbf16>, vector<16x512xf32> -> vector<16x512xf32>
    %193 = arith.addf %190, %192 : vector<16x512xf32>
    %c0_97 = arith.constant 0 : index
    %c0_98 = arith.constant 0 : index
    %194 = vector.load %arg5[%c0_97, %c0_98] : memref<1x512xf32, #tpu.memory_space<vmem>>, vector<1x512xf32>
    %195 = vector.broadcast %194 : vector<1x512xf32> to vector<16x512xf32>
    %196 = arith.addf %193, %195 : vector<16x512xf32>
    %197 = vector.extract_strided_slice %196 {offsets = [0, 0], sizes = [16, 128], strides = [1, 1]} : vector<16x512xf32> to vector<16x128xf32>
    %cst_99 = arith.constant 5.000000e-01 : f32
    %198 = vector.broadcast %cst_99 : f32 to vector<16x128xf32>
    %199 = arith.mulf %198, %197 : vector<16x128xf32>
    %200 = math.tanh %199 : vector<16x128xf32>
    %cst_100 = arith.constant 1.000000e+00 : f32
    %201 = vector.broadcast %cst_100 : f32 to vector<16x128xf32>
    %202 = arith.addf %200, %201 : vector<16x128xf32>
    %cst_101 = arith.constant 5.000000e-01 : f32
    %203 = vector.broadcast %cst_101 : f32 to vector<16x128xf32>
    %204 = arith.mulf %203, %202 : vector<16x128xf32>
    %205 = vector.extract_strided_slice %196 {offsets = [0, 128], sizes = [16, 128], strides = [1, 1]} : vector<16x512xf32> to vector<16x128xf32>
    %cst_102 = arith.constant 5.000000e-01 : f32
    %206 = vector.broadcast %cst_102 : f32 to vector<16x128xf32>
    %207 = arith.mulf %206, %205 : vector<16x128xf32>
    %208 = math.tanh %207 : vector<16x128xf32>
    %cst_103 = arith.constant 1.000000e+00 : f32
    %209 = vector.broadcast %cst_103 : f32 to vector<16x128xf32>
    %210 = arith.addf %208, %209 : vector<16x128xf32>
    %cst_104 = arith.constant 5.000000e-01 : f32
    %211 = vector.broadcast %cst_104 : f32 to vector<16x128xf32>
    %212 = arith.mulf %211, %210 : vector<16x128xf32>
    %213 = vector.extract_strided_slice %196 {offsets = [0, 256], sizes = [16, 128], strides = [1, 1]} : vector<16x512xf32> to vector<16x128xf32>
    %214 = math.tanh %213 : vector<16x128xf32>
    %215 = vector.extract_strided_slice %196 {offsets = [0, 384], sizes = [16, 128], strides = [1, 1]} : vector<16x512xf32> to vector<16x128xf32>
    %cst_105 = arith.constant 5.000000e-01 : f32
    %216 = vector.broadcast %cst_105 : f32 to vector<16x128xf32>
    %217 = arith.mulf %216, %215 : vector<16x128xf32>
    %218 = math.tanh %217 : vector<16x128xf32>
    %cst_106 = arith.constant 1.000000e+00 : f32
    %219 = vector.broadcast %cst_106 : f32 to vector<16x128xf32>
    %220 = arith.addf %218, %219 : vector<16x128xf32>
    %cst_107 = arith.constant 5.000000e-01 : f32
    %221 = vector.broadcast %cst_107 : f32 to vector<16x128xf32>
    %222 = arith.mulf %221, %220 : vector<16x128xf32>
    %223 = arith.mulf %212, %138 : vector<16x128xf32>
    %224 = arith.mulf %204, %214 : vector<16x128xf32>
    %225 = arith.addf %223, %224 : vector<16x128xf32>
    %226 = math.tanh %225 : vector<16x128xf32>
    %227 = arith.mulf %222, %226 : vector<16x128xf32>
    %228 = arith.truncf %227 : vector<16x128xf32> to vector<16x128xbf16>
    %c0_108 = arith.constant 0 : index
    %c0_109 = arith.constant 0 : index
    %229 = vector.load %arg6[%c0_108, %c0_109] : memref<128x512xbf16, #tpu.memory_space<vmem>>, vector<128x512xbf16>
    %cst_110 = arith.constant dense<0.000000e+00> : vector<16x512xf32>
    %230 = tpu.matmul %228, %229, %cst_110 {dimension_numbers = #tpu.dot_dimension_numbers<[1], [0], [0], [1], [0, 0, 1, 1], [], []>} : vector<16x128xbf16>, vector<128x512xbf16>, vector<16x512xf32> -> vector<16x512xf32>
    %c0_111 = arith.constant 0 : index
    %c0_112 = arith.constant 0 : index
    %231 = vector.load %arg7[%c0_111, %c0_112] : memref<128x512xbf16, #tpu.memory_space<vmem>>, vector<128x512xbf16>
    %cst_113 = arith.constant dense<0.000000e+00> : vector<16x512xf32>
    %232 = tpu.matmul %181, %231, %cst_113 {dimension_numbers = #tpu.dot_dimension_numbers<[1], [0], [0], [1], [0, 0, 1, 1], [], []>} : vector<16x128xbf16>, vector<128x512xbf16>, vector<16x512xf32> -> vector<16x512xf32>
    %233 = arith.addf %230, %232 : vector<16x512xf32>
    %c0_114 = arith.constant 0 : index
    %c0_115 = arith.constant 0 : index
    %234 = vector.load %arg8[%c0_114, %c0_115] : memref<1x512xf32, #tpu.memory_space<vmem>>, vector<1x512xf32>
    %235 = vector.broadcast %234 : vector<1x512xf32> to vector<16x512xf32>
    %236 = arith.addf %233, %235 : vector<16x512xf32>
    %237 = vector.extract_strided_slice %236 {offsets = [0, 0], sizes = [16, 128], strides = [1, 1]} : vector<16x512xf32> to vector<16x128xf32>
    %cst_116 = arith.constant 5.000000e-01 : f32
    %238 = vector.broadcast %cst_116 : f32 to vector<16x128xf32>
    %239 = arith.mulf %238, %237 : vector<16x128xf32>
    %240 = math.tanh %239 : vector<16x128xf32>
    %cst_117 = arith.constant 1.000000e+00 : f32
    %241 = vector.broadcast %cst_117 : f32 to vector<16x128xf32>
    %242 = arith.addf %240, %241 : vector<16x128xf32>
    %cst_118 = arith.constant 5.000000e-01 : f32
    %243 = vector.broadcast %cst_118 : f32 to vector<16x128xf32>
    %244 = arith.mulf %243, %242 : vector<16x128xf32>
    %245 = vector.extract_strided_slice %236 {offsets = [0, 128], sizes = [16, 128], strides = [1, 1]} : vector<16x512xf32> to vector<16x128xf32>
    %cst_119 = arith.constant 5.000000e-01 : f32
    %246 = vector.broadcast %cst_119 : f32 to vector<16x128xf32>
    %247 = arith.mulf %246, %245 : vector<16x128xf32>
    %248 = math.tanh %247 : vector<16x128xf32>
    %cst_120 = arith.constant 1.000000e+00 : f32
    %249 = vector.broadcast %cst_120 : f32 to vector<16x128xf32>
    %250 = arith.addf %248, %249 : vector<16x128xf32>
    %cst_121 = arith.constant 5.000000e-01 : f32
    %251 = vector.broadcast %cst_121 : f32 to vector<16x128xf32>
    %252 = arith.mulf %251, %250 : vector<16x128xf32>
    %253 = vector.extract_strided_slice %236 {offsets = [0, 256], sizes = [16, 128], strides = [1, 1]} : vector<16x512xf32> to vector<16x128xf32>
    %254 = math.tanh %253 : vector<16x128xf32>
    %255 = vector.extract_strided_slice %236 {offsets = [0, 384], sizes = [16, 128], strides = [1, 1]} : vector<16x512xf32> to vector<16x128xf32>
    %cst_122 = arith.constant 5.000000e-01 : f32
    %256 = vector.broadcast %cst_122 : f32 to vector<16x128xf32>
    %257 = arith.mulf %256, %255 : vector<16x128xf32>
    %258 = math.tanh %257 : vector<16x128xf32>
    %cst_123 = arith.constant 1.000000e+00 : f32
    %259 = vector.broadcast %cst_123 : f32 to vector<16x128xf32>
    %260 = arith.addf %258, %259 : vector<16x128xf32>
    %cst_124 = arith.constant 5.000000e-01 : f32
    %261 = vector.broadcast %cst_124 : f32 to vector<16x128xf32>
    %262 = arith.mulf %261, %260 : vector<16x128xf32>
    %263 = arith.mulf %252, %178 : vector<16x128xf32>
    %264 = arith.mulf %244, %254 : vector<16x128xf32>
    %265 = arith.addf %263, %264 : vector<16x128xf32>
    %266 = math.tanh %265 : vector<16x128xf32>
    %267 = arith.mulf %262, %266 : vector<16x128xf32>
    %268 = arith.truncf %267 : vector<16x128xf32> to vector<16x128xbf16>
    %c0_125 = arith.constant 0 : index
    %c0_126 = arith.constant 0 : index
    %269 = vector.load %arg9[%c0_125, %c0_126] : memref<128x16xbf16, #tpu.memory_space<vmem>>, vector<128x16xbf16>
    %cst_127 = arith.constant dense<0.000000e+00> : vector<16x16xf32>
    %270 = tpu.matmul %268, %269, %cst_127 {dimension_numbers = #tpu.dot_dimension_numbers<[1], [0], [0], [1], [0, 0, 1, 1], [], []>} : vector<16x128xbf16>, vector<128x16xbf16>, vector<16x16xf32> -> vector<16x16xf32>
    %c0_128 = arith.constant 0 : index
    %c0_129 = arith.constant 0 : index
    %271 = vector.load %arg10[%c0_128, %c0_129] : memref<1x16xf32, #tpu.memory_space<vmem>>, vector<1x16xf32>
    %272 = vector.broadcast %271 : vector<1x16xf32> to vector<16x16xf32>
    %273 = arith.addf %270, %272 : vector<16x16xf32>
    %274 = vector.extract_strided_slice %4 {offsets = [0, 3, 0], sizes = [16, 1, 16], strides = [1, 1, 1]} : vector<16x8x16xbf16> to vector<16x1x16xbf16>
    %275 = vector.shape_cast %274 : vector<16x1x16xbf16> to vector<16x16xbf16>
    %c0_130 = arith.constant 0 : index
    %c0_131 = arith.constant 0 : index
    %276 = vector.load %arg3[%c0_130, %c0_131] : memref<16x512xbf16, #tpu.memory_space<vmem>>, vector<16x512xbf16>
    %cst_132 = arith.constant dense<0.000000e+00> : vector<16x512xf32>
    %277 = tpu.matmul %275, %276, %cst_132 {dimension_numbers = #tpu.dot_dimension_numbers<[1], [0], [0], [1], [0, 0, 1, 1], [], []>} : vector<16x16xbf16>, vector<16x512xbf16>, vector<16x512xf32> -> vector<16x512xf32>
    %c0_133 = arith.constant 0 : index
    %c0_134 = arith.constant 0 : index
    %278 = vector.load %arg4[%c0_133, %c0_134] : memref<128x512xbf16, #tpu.memory_space<vmem>>, vector<128x512xbf16>
    %cst_135 = arith.constant dense<0.000000e+00> : vector<16x512xf32>
    %279 = tpu.matmul %228, %278, %cst_135 {dimension_numbers = #tpu.dot_dimension_numbers<[1], [0], [0], [1], [0, 0, 1, 1], [], []>} : vector<16x128xbf16>, vector<128x512xbf16>, vector<16x512xf32> -> vector<16x512xf32>
    %280 = arith.addf %277, %279 : vector<16x512xf32>
    %c0_136 = arith.constant 0 : index
    %c0_137 = arith.constant 0 : index
    %281 = vector.load %arg5[%c0_136, %c0_137] : memref<1x512xf32, #tpu.memory_space<vmem>>, vector<1x512xf32>
    %282 = vector.broadcast %281 : vector<1x512xf32> to vector<16x512xf32>
    %283 = arith.addf %280, %282 : vector<16x512xf32>
    %284 = vector.extract_strided_slice %283 {offsets = [0, 0], sizes = [16, 128], strides = [1, 1]} : vector<16x512xf32> to vector<16x128xf32>
    %cst_138 = arith.constant 5.000000e-01 : f32
    %285 = vector.broadcast %cst_138 : f32 to vector<16x128xf32>
    %286 = arith.mulf %285, %284 : vector<16x128xf32>
    %287 = math.tanh %286 : vector<16x128xf32>
    %cst_139 = arith.constant 1.000000e+00 : f32
    %288 = vector.broadcast %cst_139 : f32 to vector<16x128xf32>
    %289 = arith.addf %287, %288 : vector<16x128xf32>
    %cst_140 = arith.constant 5.000000e-01 : f32
    %290 = vector.broadcast %cst_140 : f32 to vector<16x128xf32>
    %291 = arith.mulf %290, %289 : vector<16x128xf32>
    %292 = vector.extract_strided_slice %283 {offsets = [0, 128], sizes = [16, 128], strides = [1, 1]} : vector<16x512xf32> to vector<16x128xf32>
    %cst_141 = arith.constant 5.000000e-01 : f32
    %293 = vector.broadcast %cst_141 : f32 to vector<16x128xf32>
    %294 = arith.mulf %293, %292 : vector<16x128xf32>
    %295 = math.tanh %294 : vector<16x128xf32>
    %cst_142 = arith.constant 1.000000e+00 : f32
    %296 = vector.broadcast %cst_142 : f32 to vector<16x128xf32>
    %297 = arith.addf %295, %296 : vector<16x128xf32>
    %cst_143 = arith.constant 5.000000e-01 : f32
    %298 = vector.broadcast %cst_143 : f32 to vector<16x128xf32>
    %299 = arith.mulf %298, %297 : vector<16x128xf32>
    %300 = vector.extract_strided_slice %283 {offsets = [0, 256], sizes = [16, 128], strides = [1, 1]} : vector<16x512xf32> to vector<16x128xf32>
    %301 = math.tanh %300 : vector<16x128xf32>
    %302 = vector.extract_strided_slice %283 {offsets = [0, 384], sizes = [16, 128], strides = [1, 1]} : vector<16x512xf32> to vector<16x128xf32>
    %cst_144 = arith.constant 5.000000e-01 : f32
    %303 = vector.broadcast %cst_144 : f32 to vector<16x128xf32>
    %304 = arith.mulf %303, %302 : vector<16x128xf32>
    %305 = math.tanh %304 : vector<16x128xf32>
    %cst_145 = arith.constant 1.000000e+00 : f32
    %306 = vector.broadcast %cst_145 : f32 to vector<16x128xf32>
    %307 = arith.addf %305, %306 : vector<16x128xf32>
    %cst_146 = arith.constant 5.000000e-01 : f32
    %308 = vector.broadcast %cst_146 : f32 to vector<16x128xf32>
    %309 = arith.mulf %308, %307 : vector<16x128xf32>
    %310 = arith.mulf %299, %225 : vector<16x128xf32>
    %311 = arith.mulf %291, %301 : vector<16x128xf32>
    %312 = arith.addf %310, %311 : vector<16x128xf32>
    %313 = math.tanh %312 : vector<16x128xf32>
    %314 = arith.mulf %309, %313 : vector<16x128xf32>
    %315 = arith.truncf %314 : vector<16x128xf32> to vector<16x128xbf16>
    %c0_147 = arith.constant 0 : index
    %c0_148 = arith.constant 0 : index
    %316 = vector.load %arg6[%c0_147, %c0_148] : memref<128x512xbf16, #tpu.memory_space<vmem>>, vector<128x512xbf16>
    %cst_149 = arith.constant dense<0.000000e+00> : vector<16x512xf32>
    %317 = tpu.matmul %315, %316, %cst_149 {dimension_numbers = #tpu.dot_dimension_numbers<[1], [0], [0], [1], [0, 0, 1, 1], [], []>} : vector<16x128xbf16>, vector<128x512xbf16>, vector<16x512xf32> -> vector<16x512xf32>
    %c0_150 = arith.constant 0 : index
    %c0_151 = arith.constant 0 : index
    %318 = vector.load %arg7[%c0_150, %c0_151] : memref<128x512xbf16, #tpu.memory_space<vmem>>, vector<128x512xbf16>
    %cst_152 = arith.constant dense<0.000000e+00> : vector<16x512xf32>
    %319 = tpu.matmul %268, %318, %cst_152 {dimension_numbers = #tpu.dot_dimension_numbers<[1], [0], [0], [1], [0, 0, 1, 1], [], []>} : vector<16x128xbf16>, vector<128x512xbf16>, vector<16x512xf32> -> vector<16x512xf32>
    %320 = arith.addf %317, %319 : vector<16x512xf32>
    %c0_153 = arith.constant 0 : index
    %c0_154 = arith.constant 0 : index
    %321 = vector.load %arg8[%c0_153, %c0_154] : memref<1x512xf32, #tpu.memory_space<vmem>>, vector<1x512xf32>
    %322 = vector.broadcast %321 : vector<1x512xf32> to vector<16x512xf32>
    %323 = arith.addf %320, %322 : vector<16x512xf32>
    %324 = vector.extract_strided_slice %323 {offsets = [0, 0], sizes = [16, 128], strides = [1, 1]} : vector<16x512xf32> to vector<16x128xf32>
    %cst_155 = arith.constant 5.000000e-01 : f32
    %325 = vector.broadcast %cst_155 : f32 to vector<16x128xf32>
    %326 = arith.mulf %325, %324 : vector<16x128xf32>
    %327 = math.tanh %326 : vector<16x128xf32>
    %cst_156 = arith.constant 1.000000e+00 : f32
    %328 = vector.broadcast %cst_156 : f32 to vector<16x128xf32>
    %329 = arith.addf %327, %328 : vector<16x128xf32>
    %cst_157 = arith.constant 5.000000e-01 : f32
    %330 = vector.broadcast %cst_157 : f32 to vector<16x128xf32>
    %331 = arith.mulf %330, %329 : vector<16x128xf32>
    %332 = vector.extract_strided_slice %323 {offsets = [0, 128], sizes = [16, 128], strides = [1, 1]} : vector<16x512xf32> to vector<16x128xf32>
    %cst_158 = arith.constant 5.000000e-01 : f32
    %333 = vector.broadcast %cst_158 : f32 to vector<16x128xf32>
    %334 = arith.mulf %333, %332 : vector<16x128xf32>
    %335 = math.tanh %334 : vector<16x128xf32>
    %cst_159 = arith.constant 1.000000e+00 : f32
    %336 = vector.broadcast %cst_159 : f32 to vector<16x128xf32>
    %337 = arith.addf %335, %336 : vector<16x128xf32>
    %cst_160 = arith.constant 5.000000e-01 : f32
    %338 = vector.broadcast %cst_160 : f32 to vector<16x128xf32>
    %339 = arith.mulf %338, %337 : vector<16x128xf32>
    %340 = vector.extract_strided_slice %323 {offsets = [0, 256], sizes = [16, 128], strides = [1, 1]} : vector<16x512xf32> to vector<16x128xf32>
    %341 = math.tanh %340 : vector<16x128xf32>
    %342 = vector.extract_strided_slice %323 {offsets = [0, 384], sizes = [16, 128], strides = [1, 1]} : vector<16x512xf32> to vector<16x128xf32>
    %cst_161 = arith.constant 5.000000e-01 : f32
    %343 = vector.broadcast %cst_161 : f32 to vector<16x128xf32>
    %344 = arith.mulf %343, %342 : vector<16x128xf32>
    %345 = math.tanh %344 : vector<16x128xf32>
    %cst_162 = arith.constant 1.000000e+00 : f32
    %346 = vector.broadcast %cst_162 : f32 to vector<16x128xf32>
    %347 = arith.addf %345, %346 : vector<16x128xf32>
    %cst_163 = arith.constant 5.000000e-01 : f32
    %348 = vector.broadcast %cst_163 : f32 to vector<16x128xf32>
    %349 = arith.mulf %348, %347 : vector<16x128xf32>
    %350 = arith.mulf %339, %265 : vector<16x128xf32>
    %351 = arith.mulf %331, %341 : vector<16x128xf32>
    %352 = arith.addf %350, %351 : vector<16x128xf32>
    %353 = math.tanh %352 : vector<16x128xf32>
    %354 = arith.mulf %349, %353 : vector<16x128xf32>
    %355 = arith.truncf %354 : vector<16x128xf32> to vector<16x128xbf16>
    %c0_164 = arith.constant 0 : index
    %c0_165 = arith.constant 0 : index
    %356 = vector.load %arg9[%c0_164, %c0_165] : memref<128x16xbf16, #tpu.memory_space<vmem>>, vector<128x16xbf16>
    %cst_166 = arith.constant dense<0.000000e+00> : vector<16x16xf32>
    %357 = tpu.matmul %355, %356, %cst_166 {dimension_numbers = #tpu.dot_dimension_numbers<[1], [0], [0], [1], [0, 0, 1, 1], [], []>} : vector<16x128xbf16>, vector<128x16xbf16>, vector<16x16xf32> -> vector<16x16xf32>
    %c0_167 = arith.constant 0 : index
    %c0_168 = arith.constant 0 : index
    %358 = vector.load %arg10[%c0_167, %c0_168] : memref<1x16xf32, #tpu.memory_space<vmem>>, vector<1x16xf32>
    %359 = vector.broadcast %358 : vector<1x16xf32> to vector<16x16xf32>
    %360 = arith.addf %357, %359 : vector<16x16xf32>
    %361 = vector.extract_strided_slice %4 {offsets = [0, 4, 0], sizes = [16, 1, 16], strides = [1, 1, 1]} : vector<16x8x16xbf16> to vector<16x1x16xbf16>
    %362 = vector.shape_cast %361 : vector<16x1x16xbf16> to vector<16x16xbf16>
    %c0_169 = arith.constant 0 : index
    %c0_170 = arith.constant 0 : index
    %363 = vector.load %arg3[%c0_169, %c0_170] : memref<16x512xbf16, #tpu.memory_space<vmem>>, vector<16x512xbf16>
    %cst_171 = arith.constant dense<0.000000e+00> : vector<16x512xf32>
    %364 = tpu.matmul %362, %363, %cst_171 {dimension_numbers = #tpu.dot_dimension_numbers<[1], [0], [0], [1], [0, 0, 1, 1], [], []>} : vector<16x16xbf16>, vector<16x512xbf16>, vector<16x512xf32> -> vector<16x512xf32>
    %c0_172 = arith.constant 0 : index
    %c0_173 = arith.constant 0 : index
    %365 = vector.load %arg4[%c0_172, %c0_173] : memref<128x512xbf16, #tpu.memory_space<vmem>>, vector<128x512xbf16>
    %cst_174 = arith.constant dense<0.000000e+00> : vector<16x512xf32>
    %366 = tpu.matmul %315, %365, %cst_174 {dimension_numbers = #tpu.dot_dimension_numbers<[1], [0], [0], [1], [0, 0, 1, 1], [], []>} : vector<16x128xbf16>, vector<128x512xbf16>, vector<16x512xf32> -> vector<16x512xf32>
    %367 = arith.addf %364, %366 : vector<16x512xf32>
    %c0_175 = arith.constant 0 : index
    %c0_176 = arith.constant 0 : index
    %368 = vector.load %arg5[%c0_175, %c0_176] : memref<1x512xf32, #tpu.memory_space<vmem>>, vector<1x512xf32>
    %369 = vector.broadcast %368 : vector<1x512xf32> to vector<16x512xf32>
    %370 = arith.addf %367, %369 : vector<16x512xf32>
    %371 = vector.extract_strided_slice %370 {offsets = [0, 0], sizes = [16, 128], strides = [1, 1]} : vector<16x512xf32> to vector<16x128xf32>
    %cst_177 = arith.constant 5.000000e-01 : f32
    %372 = vector.broadcast %cst_177 : f32 to vector<16x128xf32>
    %373 = arith.mulf %372, %371 : vector<16x128xf32>
    %374 = math.tanh %373 : vector<16x128xf32>
    %cst_178 = arith.constant 1.000000e+00 : f32
    %375 = vector.broadcast %cst_178 : f32 to vector<16x128xf32>
    %376 = arith.addf %374, %375 : vector<16x128xf32>
    %cst_179 = arith.constant 5.000000e-01 : f32
    %377 = vector.broadcast %cst_179 : f32 to vector<16x128xf32>
    %378 = arith.mulf %377, %376 : vector<16x128xf32>
    %379 = vector.extract_strided_slice %370 {offsets = [0, 128], sizes = [16, 128], strides = [1, 1]} : vector<16x512xf32> to vector<16x128xf32>
    %cst_180 = arith.constant 5.000000e-01 : f32
    %380 = vector.broadcast %cst_180 : f32 to vector<16x128xf32>
    %381 = arith.mulf %380, %379 : vector<16x128xf32>
    %382 = math.tanh %381 : vector<16x128xf32>
    %cst_181 = arith.constant 1.000000e+00 : f32
    %383 = vector.broadcast %cst_181 : f32 to vector<16x128xf32>
    %384 = arith.addf %382, %383 : vector<16x128xf32>
    %cst_182 = arith.constant 5.000000e-01 : f32
    %385 = vector.broadcast %cst_182 : f32 to vector<16x128xf32>
    %386 = arith.mulf %385, %384 : vector<16x128xf32>
    %387 = vector.extract_strided_slice %370 {offsets = [0, 256], sizes = [16, 128], strides = [1, 1]} : vector<16x512xf32> to vector<16x128xf32>
    %388 = math.tanh %387 : vector<16x128xf32>
    %389 = vector.extract_strided_slice %370 {offsets = [0, 384], sizes = [16, 128], strides = [1, 1]} : vector<16x512xf32> to vector<16x128xf32>
    %cst_183 = arith.constant 5.000000e-01 : f32
    %390 = vector.broadcast %cst_183 : f32 to vector<16x128xf32>
    %391 = arith.mulf %390, %389 : vector<16x128xf32>
    %392 = math.tanh %391 : vector<16x128xf32>
    %cst_184 = arith.constant 1.000000e+00 : f32
    %393 = vector.broadcast %cst_184 : f32 to vector<16x128xf32>
    %394 = arith.addf %392, %393 : vector<16x128xf32>
    %cst_185 = arith.constant 5.000000e-01 : f32
    %395 = vector.broadcast %cst_185 : f32 to vector<16x128xf32>
    %396 = arith.mulf %395, %394 : vector<16x128xf32>
    %397 = arith.mulf %386, %312 : vector<16x128xf32>
    %398 = arith.mulf %378, %388 : vector<16x128xf32>
    %399 = arith.addf %397, %398 : vector<16x128xf32>
    %400 = math.tanh %399 : vector<16x128xf32>
    %401 = arith.mulf %396, %400 : vector<16x128xf32>
    %402 = arith.truncf %401 : vector<16x128xf32> to vector<16x128xbf16>
    %c0_186 = arith.constant 0 : index
    %c0_187 = arith.constant 0 : index
    %403 = vector.load %arg6[%c0_186, %c0_187] : memref<128x512xbf16, #tpu.memory_space<vmem>>, vector<128x512xbf16>
    %cst_188 = arith.constant dense<0.000000e+00> : vector<16x512xf32>
    %404 = tpu.matmul %402, %403, %cst_188 {dimension_numbers = #tpu.dot_dimension_numbers<[1], [0], [0], [1], [0, 0, 1, 1], [], []>} : vector<16x128xbf16>, vector<128x512xbf16>, vector<16x512xf32> -> vector<16x512xf32>
    %c0_189 = arith.constant 0 : index
    %c0_190 = arith.constant 0 : index
    %405 = vector.load %arg7[%c0_189, %c0_190] : memref<128x512xbf16, #tpu.memory_space<vmem>>, vector<128x512xbf16>
    %cst_191 = arith.constant dense<0.000000e+00> : vector<16x512xf32>
    %406 = tpu.matmul %355, %405, %cst_191 {dimension_numbers = #tpu.dot_dimension_numbers<[1], [0], [0], [1], [0, 0, 1, 1], [], []>} : vector<16x128xbf16>, vector<128x512xbf16>, vector<16x512xf32> -> vector<16x512xf32>
    %407 = arith.addf %404, %406 : vector<16x512xf32>
    %c0_192 = arith.constant 0 : index
    %c0_193 = arith.constant 0 : index
    %408 = vector.load %arg8[%c0_192, %c0_193] : memref<1x512xf32, #tpu.memory_space<vmem>>, vector<1x512xf32>
    %409 = vector.broadcast %408 : vector<1x512xf32> to vector<16x512xf32>
    %410 = arith.addf %407, %409 : vector<16x512xf32>
    %411 = vector.extract_strided_slice %410 {offsets = [0, 0], sizes = [16, 128], strides = [1, 1]} : vector<16x512xf32> to vector<16x128xf32>
    %cst_194 = arith.constant 5.000000e-01 : f32
    %412 = vector.broadcast %cst_194 : f32 to vector<16x128xf32>
    %413 = arith.mulf %412, %411 : vector<16x128xf32>
    %414 = math.tanh %413 : vector<16x128xf32>
    %cst_195 = arith.constant 1.000000e+00 : f32
    %415 = vector.broadcast %cst_195 : f32 to vector<16x128xf32>
    %416 = arith.addf %414, %415 : vector<16x128xf32>
    %cst_196 = arith.constant 5.000000e-01 : f32
    %417 = vector.broadcast %cst_196 : f32 to vector<16x128xf32>
    %418 = arith.mulf %417, %416 : vector<16x128xf32>
    %419 = vector.extract_strided_slice %410 {offsets = [0, 128], sizes = [16, 128], strides = [1, 1]} : vector<16x512xf32> to vector<16x128xf32>
    %cst_197 = arith.constant 5.000000e-01 : f32
    %420 = vector.broadcast %cst_197 : f32 to vector<16x128xf32>
    %421 = arith.mulf %420, %419 : vector<16x128xf32>
    %422 = math.tanh %421 : vector<16x128xf32>
    %cst_198 = arith.constant 1.000000e+00 : f32
    %423 = vector.broadcast %cst_198 : f32 to vector<16x128xf32>
    %424 = arith.addf %422, %423 : vector<16x128xf32>
    %cst_199 = arith.constant 5.000000e-01 : f32
    %425 = vector.broadcast %cst_199 : f32 to vector<16x128xf32>
    %426 = arith.mulf %425, %424 : vector<16x128xf32>
    %427 = vector.extract_strided_slice %410 {offsets = [0, 256], sizes = [16, 128], strides = [1, 1]} : vector<16x512xf32> to vector<16x128xf32>
    %428 = math.tanh %427 : vector<16x128xf32>
    %429 = vector.extract_strided_slice %410 {offsets = [0, 384], sizes = [16, 128], strides = [1, 1]} : vector<16x512xf32> to vector<16x128xf32>
    %cst_200 = arith.constant 5.000000e-01 : f32
    %430 = vector.broadcast %cst_200 : f32 to vector<16x128xf32>
    %431 = arith.mulf %430, %429 : vector<16x128xf32>
    %432 = math.tanh %431 : vector<16x128xf32>
    %cst_201 = arith.constant 1.000000e+00 : f32
    %433 = vector.broadcast %cst_201 : f32 to vector<16x128xf32>
    %434 = arith.addf %432, %433 : vector<16x128xf32>
    %cst_202 = arith.constant 5.000000e-01 : f32
    %435 = vector.broadcast %cst_202 : f32 to vector<16x128xf32>
    %436 = arith.mulf %435, %434 : vector<16x128xf32>
    %437 = arith.mulf %426, %352 : vector<16x128xf32>
    %438 = arith.mulf %418, %428 : vector<16x128xf32>
    %439 = arith.addf %437, %438 : vector<16x128xf32>
    %440 = math.tanh %439 : vector<16x128xf32>
    %441 = arith.mulf %436, %440 : vector<16x128xf32>
    %442 = arith.truncf %441 : vector<16x128xf32> to vector<16x128xbf16>
    %c0_203 = arith.constant 0 : index
    %c0_204 = arith.constant 0 : index
    %443 = vector.load %arg9[%c0_203, %c0_204] : memref<128x16xbf16, #tpu.memory_space<vmem>>, vector<128x16xbf16>
    %cst_205 = arith.constant dense<0.000000e+00> : vector<16x16xf32>
    %444 = tpu.matmul %442, %443, %cst_205 {dimension_numbers = #tpu.dot_dimension_numbers<[1], [0], [0], [1], [0, 0, 1, 1], [], []>} : vector<16x128xbf16>, vector<128x16xbf16>, vector<16x16xf32> -> vector<16x16xf32>
    %c0_206 = arith.constant 0 : index
    %c0_207 = arith.constant 0 : index
    %445 = vector.load %arg10[%c0_206, %c0_207] : memref<1x16xf32, #tpu.memory_space<vmem>>, vector<1x16xf32>
    %446 = vector.broadcast %445 : vector<1x16xf32> to vector<16x16xf32>
    %447 = arith.addf %444, %446 : vector<16x16xf32>
    %448 = vector.extract_strided_slice %4 {offsets = [0, 5, 0], sizes = [16, 1, 16], strides = [1, 1, 1]} : vector<16x8x16xbf16> to vector<16x1x16xbf16>
    %449 = vector.shape_cast %448 : vector<16x1x16xbf16> to vector<16x16xbf16>
    %c0_208 = arith.constant 0 : index
    %c0_209 = arith.constant 0 : index
    %450 = vector.load %arg3[%c0_208, %c0_209] : memref<16x512xbf16, #tpu.memory_space<vmem>>, vector<16x512xbf16>
    %cst_210 = arith.constant dense<0.000000e+00> : vector<16x512xf32>
    %451 = tpu.matmul %449, %450, %cst_210 {dimension_numbers = #tpu.dot_dimension_numbers<[1], [0], [0], [1], [0, 0, 1, 1], [], []>} : vector<16x16xbf16>, vector<16x512xbf16>, vector<16x512xf32> -> vector<16x512xf32>
    %c0_211 = arith.constant 0 : index
    %c0_212 = arith.constant 0 : index
    %452 = vector.load %arg4[%c0_211, %c0_212] : memref<128x512xbf16, #tpu.memory_space<vmem>>, vector<128x512xbf16>
    %cst_213 = arith.constant dense<0.000000e+00> : vector<16x512xf32>
    %453 = tpu.matmul %402, %452, %cst_213 {dimension_numbers = #tpu.dot_dimension_numbers<[1], [0], [0], [1], [0, 0, 1, 1], [], []>} : vector<16x128xbf16>, vector<128x512xbf16>, vector<16x512xf32> -> vector<16x512xf32>
    %454 = arith.addf %451, %453 : vector<16x512xf32>
    %c0_214 = arith.constant 0 : index
    %c0_215 = arith.constant 0 : index
    %455 = vector.load %arg5[%c0_214, %c0_215] : memref<1x512xf32, #tpu.memory_space<vmem>>, vector<1x512xf32>
    %456 = vector.broadcast %455 : vector<1x512xf32> to vector<16x512xf32>
    %457 = arith.addf %454, %456 : vector<16x512xf32>
    %458 = vector.extract_strided_slice %457 {offsets = [0, 0], sizes = [16, 128], strides = [1, 1]} : vector<16x512xf32> to vector<16x128xf32>
    %cst_216 = arith.constant 5.000000e-01 : f32
    %459 = vector.broadcast %cst_216 : f32 to vector<16x128xf32>
    %460 = arith.mulf %459, %458 : vector<16x128xf32>
    %461 = math.tanh %460 : vector<16x128xf32>
    %cst_217 = arith.constant 1.000000e+00 : f32
    %462 = vector.broadcast %cst_217 : f32 to vector<16x128xf32>
    %463 = arith.addf %461, %462 : vector<16x128xf32>
    %cst_218 = arith.constant 5.000000e-01 : f32
    %464 = vector.broadcast %cst_218 : f32 to vector<16x128xf32>
    %465 = arith.mulf %464, %463 : vector<16x128xf32>
    %466 = vector.extract_strided_slice %457 {offsets = [0, 128], sizes = [16, 128], strides = [1, 1]} : vector<16x512xf32> to vector<16x128xf32>
    %cst_219 = arith.constant 5.000000e-01 : f32
    %467 = vector.broadcast %cst_219 : f32 to vector<16x128xf32>
    %468 = arith.mulf %467, %466 : vector<16x128xf32>
    %469 = math.tanh %468 : vector<16x128xf32>
    %cst_220 = arith.constant 1.000000e+00 : f32
    %470 = vector.broadcast %cst_220 : f32 to vector<16x128xf32>
    %471 = arith.addf %469, %470 : vector<16x128xf32>
    %cst_221 = arith.constant 5.000000e-01 : f32
    %472 = vector.broadcast %cst_221 : f32 to vector<16x128xf32>
    %473 = arith.mulf %472, %471 : vector<16x128xf32>
    %474 = vector.extract_strided_slice %457 {offsets = [0, 256], sizes = [16, 128], strides = [1, 1]} : vector<16x512xf32> to vector<16x128xf32>
    %475 = math.tanh %474 : vector<16x128xf32>
    %476 = vector.extract_strided_slice %457 {offsets = [0, 384], sizes = [16, 128], strides = [1, 1]} : vector<16x512xf32> to vector<16x128xf32>
    %cst_222 = arith.constant 5.000000e-01 : f32
    %477 = vector.broadcast %cst_222 : f32 to vector<16x128xf32>
    %478 = arith.mulf %477, %476 : vector<16x128xf32>
    %479 = math.tanh %478 : vector<16x128xf32>
    %cst_223 = arith.constant 1.000000e+00 : f32
    %480 = vector.broadcast %cst_223 : f32 to vector<16x128xf32>
    %481 = arith.addf %479, %480 : vector<16x128xf32>
    %cst_224 = arith.constant 5.000000e-01 : f32
    %482 = vector.broadcast %cst_224 : f32 to vector<16x128xf32>
    %483 = arith.mulf %482, %481 : vector<16x128xf32>
    %484 = arith.mulf %473, %399 : vector<16x128xf32>
    %485 = arith.mulf %465, %475 : vector<16x128xf32>
    %486 = arith.addf %484, %485 : vector<16x128xf32>
    %487 = math.tanh %486 : vector<16x128xf32>
    %488 = arith.mulf %483, %487 : vector<16x128xf32>
    %489 = arith.truncf %488 : vector<16x128xf32> to vector<16x128xbf16>
    %c0_225 = arith.constant 0 : index
    %c0_226 = arith.constant 0 : index
    %490 = vector.load %arg6[%c0_225, %c0_226] : memref<128x512xbf16, #tpu.memory_space<vmem>>, vector<128x512xbf16>
    %cst_227 = arith.constant dense<0.000000e+00> : vector<16x512xf32>
    %491 = tpu.matmul %489, %490, %cst_227 {dimension_numbers = #tpu.dot_dimension_numbers<[1], [0], [0], [1], [0, 0, 1, 1], [], []>} : vector<16x128xbf16>, vector<128x512xbf16>, vector<16x512xf32> -> vector<16x512xf32>
    %c0_228 = arith.constant 0 : index
    %c0_229 = arith.constant 0 : index
    %492 = vector.load %arg7[%c0_228, %c0_229] : memref<128x512xbf16, #tpu.memory_space<vmem>>, vector<128x512xbf16>
    %cst_230 = arith.constant dense<0.000000e+00> : vector<16x512xf32>
    %493 = tpu.matmul %442, %492, %cst_230 {dimension_numbers = #tpu.dot_dimension_numbers<[1], [0], [0], [1], [0, 0, 1, 1], [], []>} : vector<16x128xbf16>, vector<128x512xbf16>, vector<16x512xf32> -> vector<16x512xf32>
    %494 = arith.addf %491, %493 : vector<16x512xf32>
    %c0_231 = arith.constant 0 : index
    %c0_232 = arith.constant 0 : index
    %495 = vector.load %arg8[%c0_231, %c0_232] : memref<1x512xf32, #tpu.memory_space<vmem>>, vector<1x512xf32>
    %496 = vector.broadcast %495 : vector<1x512xf32> to vector<16x512xf32>
    %497 = arith.addf %494, %496 : vector<16x512xf32>
    %498 = vector.extract_strided_slice %497 {offsets = [0, 0], sizes = [16, 128], strides = [1, 1]} : vector<16x512xf32> to vector<16x128xf32>
    %cst_233 = arith.constant 5.000000e-01 : f32
    %499 = vector.broadcast %cst_233 : f32 to vector<16x128xf32>
    %500 = arith.mulf %499, %498 : vector<16x128xf32>
    %501 = math.tanh %500 : vector<16x128xf32>
    %cst_234 = arith.constant 1.000000e+00 : f32
    %502 = vector.broadcast %cst_234 : f32 to vector<16x128xf32>
    %503 = arith.addf %501, %502 : vector<16x128xf32>
    %cst_235 = arith.constant 5.000000e-01 : f32
    %504 = vector.broadcast %cst_235 : f32 to vector<16x128xf32>
    %505 = arith.mulf %504, %503 : vector<16x128xf32>
    %506 = vector.extract_strided_slice %497 {offsets = [0, 128], sizes = [16, 128], strides = [1, 1]} : vector<16x512xf32> to vector<16x128xf32>
    %cst_236 = arith.constant 5.000000e-01 : f32
    %507 = vector.broadcast %cst_236 : f32 to vector<16x128xf32>
    %508 = arith.mulf %507, %506 : vector<16x128xf32>
    %509 = math.tanh %508 : vector<16x128xf32>
    %cst_237 = arith.constant 1.000000e+00 : f32
    %510 = vector.broadcast %cst_237 : f32 to vector<16x128xf32>
    %511 = arith.addf %509, %510 : vector<16x128xf32>
    %cst_238 = arith.constant 5.000000e-01 : f32
    %512 = vector.broadcast %cst_238 : f32 to vector<16x128xf32>
    %513 = arith.mulf %512, %511 : vector<16x128xf32>
    %514 = vector.extract_strided_slice %497 {offsets = [0, 256], sizes = [16, 128], strides = [1, 1]} : vector<16x512xf32> to vector<16x128xf32>
    %515 = math.tanh %514 : vector<16x128xf32>
    %516 = vector.extract_strided_slice %497 {offsets = [0, 384], sizes = [16, 128], strides = [1, 1]} : vector<16x512xf32> to vector<16x128xf32>
    %cst_239 = arith.constant 5.000000e-01 : f32
    %517 = vector.broadcast %cst_239 : f32 to vector<16x128xf32>
    %518 = arith.mulf %517, %516 : vector<16x128xf32>
    %519 = math.tanh %518 : vector<16x128xf32>
    %cst_240 = arith.constant 1.000000e+00 : f32
    %520 = vector.broadcast %cst_240 : f32 to vector<16x128xf32>
    %521 = arith.addf %519, %520 : vector<16x128xf32>
    %cst_241 = arith.constant 5.000000e-01 : f32
    %522 = vector.broadcast %cst_241 : f32 to vector<16x128xf32>
    %523 = arith.mulf %522, %521 : vector<16x128xf32>
    %524 = arith.mulf %513, %439 : vector<16x128xf32>
    %525 = arith.mulf %505, %515 : vector<16x128xf32>
    %526 = arith.addf %524, %525 : vector<16x128xf32>
    %527 = math.tanh %526 : vector<16x128xf32>
    %528 = arith.mulf %523, %527 : vector<16x128xf32>
    %529 = arith.truncf %528 : vector<16x128xf32> to vector<16x128xbf16>
    %c0_242 = arith.constant 0 : index
    %c0_243 = arith.constant 0 : index
    %530 = vector.load %arg9[%c0_242, %c0_243] : memref<128x16xbf16, #tpu.memory_space<vmem>>, vector<128x16xbf16>
    %cst_244 = arith.constant dense<0.000000e+00> : vector<16x16xf32>
    %531 = tpu.matmul %529, %530, %cst_244 {dimension_numbers = #tpu.dot_dimension_numbers<[1], [0], [0], [1], [0, 0, 1, 1], [], []>} : vector<16x128xbf16>, vector<128x16xbf16>, vector<16x16xf32> -> vector<16x16xf32>
    %c0_245 = arith.constant 0 : index
    %c0_246 = arith.constant 0 : index
    %532 = vector.load %arg10[%c0_245, %c0_246] : memref<1x16xf32, #tpu.memory_space<vmem>>, vector<1x16xf32>
    %533 = vector.broadcast %532 : vector<1x16xf32> to vector<16x16xf32>
    %534 = arith.addf %531, %533 : vector<16x16xf32>
    %535 = vector.extract_strided_slice %4 {offsets = [0, 6, 0], sizes = [16, 1, 16], strides = [1, 1, 1]} : vector<16x8x16xbf16> to vector<16x1x16xbf16>
    %536 = vector.shape_cast %535 : vector<16x1x16xbf16> to vector<16x16xbf16>
    %c0_247 = arith.constant 0 : index
    %c0_248 = arith.constant 0 : index
    %537 = vector.load %arg3[%c0_247, %c0_248] : memref<16x512xbf16, #tpu.memory_space<vmem>>, vector<16x512xbf16>
    %cst_249 = arith.constant dense<0.000000e+00> : vector<16x512xf32>
    %538 = tpu.matmul %536, %537, %cst_249 {dimension_numbers = #tpu.dot_dimension_numbers<[1], [0], [0], [1], [0, 0, 1, 1], [], []>} : vector<16x16xbf16>, vector<16x512xbf16>, vector<16x512xf32> -> vector<16x512xf32>
    %c0_250 = arith.constant 0 : index
    %c0_251 = arith.constant 0 : index
    %539 = vector.load %arg4[%c0_250, %c0_251] : memref<128x512xbf16, #tpu.memory_space<vmem>>, vector<128x512xbf16>
    %cst_252 = arith.constant dense<0.000000e+00> : vector<16x512xf32>
    %540 = tpu.matmul %489, %539, %cst_252 {dimension_numbers = #tpu.dot_dimension_numbers<[1], [0], [0], [1], [0, 0, 1, 1], [], []>} : vector<16x128xbf16>, vector<128x512xbf16>, vector<16x512xf32> -> vector<16x512xf32>
    %541 = arith.addf %538, %540 : vector<16x512xf32>
    %c0_253 = arith.constant 0 : index
    %c0_254 = arith.constant 0 : index
    %542 = vector.load %arg5[%c0_253, %c0_254] : memref<1x512xf32, #tpu.memory_space<vmem>>, vector<1x512xf32>
    %543 = vector.broadcast %542 : vector<1x512xf32> to vector<16x512xf32>
    %544 = arith.addf %541, %543 : vector<16x512xf32>
    %545 = vector.extract_strided_slice %544 {offsets = [0, 0], sizes = [16, 128], strides = [1, 1]} : vector<16x512xf32> to vector<16x128xf32>
    %cst_255 = arith.constant 5.000000e-01 : f32
    %546 = vector.broadcast %cst_255 : f32 to vector<16x128xf32>
    %547 = arith.mulf %546, %545 : vector<16x128xf32>
    %548 = math.tanh %547 : vector<16x128xf32>
    %cst_256 = arith.constant 1.000000e+00 : f32
    %549 = vector.broadcast %cst_256 : f32 to vector<16x128xf32>
    %550 = arith.addf %548, %549 : vector<16x128xf32>
    %cst_257 = arith.constant 5.000000e-01 : f32
    %551 = vector.broadcast %cst_257 : f32 to vector<16x128xf32>
    %552 = arith.mulf %551, %550 : vector<16x128xf32>
    %553 = vector.extract_strided_slice %544 {offsets = [0, 128], sizes = [16, 128], strides = [1, 1]} : vector<16x512xf32> to vector<16x128xf32>
    %cst_258 = arith.constant 5.000000e-01 : f32
    %554 = vector.broadcast %cst_258 : f32 to vector<16x128xf32>
    %555 = arith.mulf %554, %553 : vector<16x128xf32>
    %556 = math.tanh %555 : vector<16x128xf32>
    %cst_259 = arith.constant 1.000000e+00 : f32
    %557 = vector.broadcast %cst_259 : f32 to vector<16x128xf32>
    %558 = arith.addf %556, %557 : vector<16x128xf32>
    %cst_260 = arith.constant 5.000000e-01 : f32
    %559 = vector.broadcast %cst_260 : f32 to vector<16x128xf32>
    %560 = arith.mulf %559, %558 : vector<16x128xf32>
    %561 = vector.extract_strided_slice %544 {offsets = [0, 256], sizes = [16, 128], strides = [1, 1]} : vector<16x512xf32> to vector<16x128xf32>
    %562 = math.tanh %561 : vector<16x128xf32>
    %563 = vector.extract_strided_slice %544 {offsets = [0, 384], sizes = [16, 128], strides = [1, 1]} : vector<16x512xf32> to vector<16x128xf32>
    %cst_261 = arith.constant 5.000000e-01 : f32
    %564 = vector.broadcast %cst_261 : f32 to vector<16x128xf32>
    %565 = arith.mulf %564, %563 : vector<16x128xf32>
    %566 = math.tanh %565 : vector<16x128xf32>
    %cst_262 = arith.constant 1.000000e+00 : f32
    %567 = vector.broadcast %cst_262 : f32 to vector<16x128xf32>
    %568 = arith.addf %566, %567 : vector<16x128xf32>
    %cst_263 = arith.constant 5.000000e-01 : f32
    %569 = vector.broadcast %cst_263 : f32 to vector<16x128xf32>
    %570 = arith.mulf %569, %568 : vector<16x128xf32>
    %571 = arith.mulf %560, %486 : vector<16x128xf32>
    %572 = arith.mulf %552, %562 : vector<16x128xf32>
    %573 = arith.addf %571, %572 : vector<16x128xf32>
    %574 = math.tanh %573 : vector<16x128xf32>
    %575 = arith.mulf %570, %574 : vector<16x128xf32>
    %576 = arith.truncf %575 : vector<16x128xf32> to vector<16x128xbf16>
    %c0_264 = arith.constant 0 : index
    %c0_265 = arith.constant 0 : index
    %577 = vector.load %arg6[%c0_264, %c0_265] : memref<128x512xbf16, #tpu.memory_space<vmem>>, vector<128x512xbf16>
    %cst_266 = arith.constant dense<0.000000e+00> : vector<16x512xf32>
    %578 = tpu.matmul %576, %577, %cst_266 {dimension_numbers = #tpu.dot_dimension_numbers<[1], [0], [0], [1], [0, 0, 1, 1], [], []>} : vector<16x128xbf16>, vector<128x512xbf16>, vector<16x512xf32> -> vector<16x512xf32>
    %c0_267 = arith.constant 0 : index
    %c0_268 = arith.constant 0 : index
    %579 = vector.load %arg7[%c0_267, %c0_268] : memref<128x512xbf16, #tpu.memory_space<vmem>>, vector<128x512xbf16>
    %cst_269 = arith.constant dense<0.000000e+00> : vector<16x512xf32>
    %580 = tpu.matmul %529, %579, %cst_269 {dimension_numbers = #tpu.dot_dimension_numbers<[1], [0], [0], [1], [0, 0, 1, 1], [], []>} : vector<16x128xbf16>, vector<128x512xbf16>, vector<16x512xf32> -> vector<16x512xf32>
    %581 = arith.addf %578, %580 : vector<16x512xf32>
    %c0_270 = arith.constant 0 : index
    %c0_271 = arith.constant 0 : index
    %582 = vector.load %arg8[%c0_270, %c0_271] : memref<1x512xf32, #tpu.memory_space<vmem>>, vector<1x512xf32>
    %583 = vector.broadcast %582 : vector<1x512xf32> to vector<16x512xf32>
    %584 = arith.addf %581, %583 : vector<16x512xf32>
    %585 = vector.extract_strided_slice %584 {offsets = [0, 0], sizes = [16, 128], strides = [1, 1]} : vector<16x512xf32> to vector<16x128xf32>
    %cst_272 = arith.constant 5.000000e-01 : f32
    %586 = vector.broadcast %cst_272 : f32 to vector<16x128xf32>
    %587 = arith.mulf %586, %585 : vector<16x128xf32>
    %588 = math.tanh %587 : vector<16x128xf32>
    %cst_273 = arith.constant 1.000000e+00 : f32
    %589 = vector.broadcast %cst_273 : f32 to vector<16x128xf32>
    %590 = arith.addf %588, %589 : vector<16x128xf32>
    %cst_274 = arith.constant 5.000000e-01 : f32
    %591 = vector.broadcast %cst_274 : f32 to vector<16x128xf32>
    %592 = arith.mulf %591, %590 : vector<16x128xf32>
    %593 = vector.extract_strided_slice %584 {offsets = [0, 128], sizes = [16, 128], strides = [1, 1]} : vector<16x512xf32> to vector<16x128xf32>
    %cst_275 = arith.constant 5.000000e-01 : f32
    %594 = vector.broadcast %cst_275 : f32 to vector<16x128xf32>
    %595 = arith.mulf %594, %593 : vector<16x128xf32>
    %596 = math.tanh %595 : vector<16x128xf32>
    %cst_276 = arith.constant 1.000000e+00 : f32
    %597 = vector.broadcast %cst_276 : f32 to vector<16x128xf32>
    %598 = arith.addf %596, %597 : vector<16x128xf32>
    %cst_277 = arith.constant 5.000000e-01 : f32
    %599 = vector.broadcast %cst_277 : f32 to vector<16x128xf32>
    %600 = arith.mulf %599, %598 : vector<16x128xf32>
    %601 = vector.extract_strided_slice %584 {offsets = [0, 256], sizes = [16, 128], strides = [1, 1]} : vector<16x512xf32> to vector<16x128xf32>
    %602 = math.tanh %601 : vector<16x128xf32>
    %603 = vector.extract_strided_slice %584 {offsets = [0, 384], sizes = [16, 128], strides = [1, 1]} : vector<16x512xf32> to vector<16x128xf32>
    %cst_278 = arith.constant 5.000000e-01 : f32
    %604 = vector.broadcast %cst_278 : f32 to vector<16x128xf32>
    %605 = arith.mulf %604, %603 : vector<16x128xf32>
    %606 = math.tanh %605 : vector<16x128xf32>
    %cst_279 = arith.constant 1.000000e+00 : f32
    %607 = vector.broadcast %cst_279 : f32 to vector<16x128xf32>
    %608 = arith.addf %606, %607 : vector<16x128xf32>
    %cst_280 = arith.constant 5.000000e-01 : f32
    %609 = vector.broadcast %cst_280 : f32 to vector<16x128xf32>
    %610 = arith.mulf %609, %608 : vector<16x128xf32>
    %611 = arith.mulf %600, %526 : vector<16x128xf32>
    %612 = arith.mulf %592, %602 : vector<16x128xf32>
    %613 = arith.addf %611, %612 : vector<16x128xf32>
    %614 = math.tanh %613 : vector<16x128xf32>
    %615 = arith.mulf %610, %614 : vector<16x128xf32>
    %616 = arith.truncf %615 : vector<16x128xf32> to vector<16x128xbf16>
    %c0_281 = arith.constant 0 : index
    %c0_282 = arith.constant 0 : index
    %617 = vector.load %arg9[%c0_281, %c0_282] : memref<128x16xbf16, #tpu.memory_space<vmem>>, vector<128x16xbf16>
    %cst_283 = arith.constant dense<0.000000e+00> : vector<16x16xf32>
    %618 = tpu.matmul %616, %617, %cst_283 {dimension_numbers = #tpu.dot_dimension_numbers<[1], [0], [0], [1], [0, 0, 1, 1], [], []>} : vector<16x128xbf16>, vector<128x16xbf16>, vector<16x16xf32> -> vector<16x16xf32>
    %c0_284 = arith.constant 0 : index
    %c0_285 = arith.constant 0 : index
    %619 = vector.load %arg10[%c0_284, %c0_285] : memref<1x16xf32, #tpu.memory_space<vmem>>, vector<1x16xf32>
    %620 = vector.broadcast %619 : vector<1x16xf32> to vector<16x16xf32>
    %621 = arith.addf %618, %620 : vector<16x16xf32>
    %622 = vector.extract_strided_slice %4 {offsets = [0, 7, 0], sizes = [16, 1, 16], strides = [1, 1, 1]} : vector<16x8x16xbf16> to vector<16x1x16xbf16>
    %623 = vector.shape_cast %622 : vector<16x1x16xbf16> to vector<16x16xbf16>
    %c0_286 = arith.constant 0 : index
    %c0_287 = arith.constant 0 : index
    %624 = vector.load %arg3[%c0_286, %c0_287] : memref<16x512xbf16, #tpu.memory_space<vmem>>, vector<16x512xbf16>
    %cst_288 = arith.constant dense<0.000000e+00> : vector<16x512xf32>
    %625 = tpu.matmul %623, %624, %cst_288 {dimension_numbers = #tpu.dot_dimension_numbers<[1], [0], [0], [1], [0, 0, 1, 1], [], []>} : vector<16x16xbf16>, vector<16x512xbf16>, vector<16x512xf32> -> vector<16x512xf32>
    %c0_289 = arith.constant 0 : index
    %c0_290 = arith.constant 0 : index
    %626 = vector.load %arg4[%c0_289, %c0_290] : memref<128x512xbf16, #tpu.memory_space<vmem>>, vector<128x512xbf16>
    %cst_291 = arith.constant dense<0.000000e+00> : vector<16x512xf32>
    %627 = tpu.matmul %576, %626, %cst_291 {dimension_numbers = #tpu.dot_dimension_numbers<[1], [0], [0], [1], [0, 0, 1, 1], [], []>} : vector<16x128xbf16>, vector<128x512xbf16>, vector<16x512xf32> -> vector<16x512xf32>
    %628 = arith.addf %625, %627 : vector<16x512xf32>
    %c0_292 = arith.constant 0 : index
    %c0_293 = arith.constant 0 : index
    %629 = vector.load %arg5[%c0_292, %c0_293] : memref<1x512xf32, #tpu.memory_space<vmem>>, vector<1x512xf32>
    %630 = vector.broadcast %629 : vector<1x512xf32> to vector<16x512xf32>
    %631 = arith.addf %628, %630 : vector<16x512xf32>
    %632 = vector.extract_strided_slice %631 {offsets = [0, 0], sizes = [16, 128], strides = [1, 1]} : vector<16x512xf32> to vector<16x128xf32>
    %cst_294 = arith.constant 5.000000e-01 : f32
    %633 = vector.broadcast %cst_294 : f32 to vector<16x128xf32>
    %634 = arith.mulf %633, %632 : vector<16x128xf32>
    %635 = math.tanh %634 : vector<16x128xf32>
    %cst_295 = arith.constant 1.000000e+00 : f32
    %636 = vector.broadcast %cst_295 : f32 to vector<16x128xf32>
    %637 = arith.addf %635, %636 : vector<16x128xf32>
    %cst_296 = arith.constant 5.000000e-01 : f32
    %638 = vector.broadcast %cst_296 : f32 to vector<16x128xf32>
    %639 = arith.mulf %638, %637 : vector<16x128xf32>
    %640 = vector.extract_strided_slice %631 {offsets = [0, 128], sizes = [16, 128], strides = [1, 1]} : vector<16x512xf32> to vector<16x128xf32>
    %cst_297 = arith.constant 5.000000e-01 : f32
    %641 = vector.broadcast %cst_297 : f32 to vector<16x128xf32>
    %642 = arith.mulf %641, %640 : vector<16x128xf32>
    %643 = math.tanh %642 : vector<16x128xf32>
    %cst_298 = arith.constant 1.000000e+00 : f32
    %644 = vector.broadcast %cst_298 : f32 to vector<16x128xf32>
    %645 = arith.addf %643, %644 : vector<16x128xf32>
    %cst_299 = arith.constant 5.000000e-01 : f32
    %646 = vector.broadcast %cst_299 : f32 to vector<16x128xf32>
    %647 = arith.mulf %646, %645 : vector<16x128xf32>
    %648 = vector.extract_strided_slice %631 {offsets = [0, 256], sizes = [16, 128], strides = [1, 1]} : vector<16x512xf32> to vector<16x128xf32>
    %649 = math.tanh %648 : vector<16x128xf32>
    %650 = vector.extract_strided_slice %631 {offsets = [0, 384], sizes = [16, 128], strides = [1, 1]} : vector<16x512xf32> to vector<16x128xf32>
    %cst_300 = arith.constant 5.000000e-01 : f32
    %651 = vector.broadcast %cst_300 : f32 to vector<16x128xf32>
    %652 = arith.mulf %651, %650 : vector<16x128xf32>
    %653 = math.tanh %652 : vector<16x128xf32>
    %cst_301 = arith.constant 1.000000e+00 : f32
    %654 = vector.broadcast %cst_301 : f32 to vector<16x128xf32>
    %655 = arith.addf %653, %654 : vector<16x128xf32>
    %cst_302 = arith.constant 5.000000e-01 : f32
    %656 = vector.broadcast %cst_302 : f32 to vector<16x128xf32>
    %657 = arith.mulf %656, %655 : vector<16x128xf32>
    %658 = arith.mulf %647, %573 : vector<16x128xf32>
    %659 = arith.mulf %639, %649 : vector<16x128xf32>
    %660 = arith.addf %658, %659 : vector<16x128xf32>
    %661 = math.tanh %660 : vector<16x128xf32>
    %662 = arith.mulf %657, %661 : vector<16x128xf32>
    %663 = arith.truncf %662 : vector<16x128xf32> to vector<16x128xbf16>
    %c0_303 = arith.constant 0 : index
    %c0_304 = arith.constant 0 : index
    %664 = vector.load %arg6[%c0_303, %c0_304] : memref<128x512xbf16, #tpu.memory_space<vmem>>, vector<128x512xbf16>
    %cst_305 = arith.constant dense<0.000000e+00> : vector<16x512xf32>
    %665 = tpu.matmul %663, %664, %cst_305 {dimension_numbers = #tpu.dot_dimension_numbers<[1], [0], [0], [1], [0, 0, 1, 1], [], []>} : vector<16x128xbf16>, vector<128x512xbf16>, vector<16x512xf32> -> vector<16x512xf32>
    %c0_306 = arith.constant 0 : index
    %c0_307 = arith.constant 0 : index
    %666 = vector.load %arg7[%c0_306, %c0_307] : memref<128x512xbf16, #tpu.memory_space<vmem>>, vector<128x512xbf16>
    %cst_308 = arith.constant dense<0.000000e+00> : vector<16x512xf32>
    %667 = tpu.matmul %616, %666, %cst_308 {dimension_numbers = #tpu.dot_dimension_numbers<[1], [0], [0], [1], [0, 0, 1, 1], [], []>} : vector<16x128xbf16>, vector<128x512xbf16>, vector<16x512xf32> -> vector<16x512xf32>
    %668 = arith.addf %665, %667 : vector<16x512xf32>
    %c0_309 = arith.constant 0 : index
    %c0_310 = arith.constant 0 : index
    %669 = vector.load %arg8[%c0_309, %c0_310] : memref<1x512xf32, #tpu.memory_space<vmem>>, vector<1x512xf32>
    %670 = vector.broadcast %669 : vector<1x512xf32> to vector<16x512xf32>
    %671 = arith.addf %668, %670 : vector<16x512xf32>
    %672 = vector.extract_strided_slice %671 {offsets = [0, 0], sizes = [16, 128], strides = [1, 1]} : vector<16x512xf32> to vector<16x128xf32>
    %cst_311 = arith.constant 5.000000e-01 : f32
    %673 = vector.broadcast %cst_311 : f32 to vector<16x128xf32>
    %674 = arith.mulf %673, %672 : vector<16x128xf32>
    %675 = math.tanh %674 : vector<16x128xf32>
    %cst_312 = arith.constant 1.000000e+00 : f32
    %676 = vector.broadcast %cst_312 : f32 to vector<16x128xf32>
    %677 = arith.addf %675, %676 : vector<16x128xf32>
    %cst_313 = arith.constant 5.000000e-01 : f32
    %678 = vector.broadcast %cst_313 : f32 to vector<16x128xf32>
    %679 = arith.mulf %678, %677 : vector<16x128xf32>
    %680 = vector.extract_strided_slice %671 {offsets = [0, 128], sizes = [16, 128], strides = [1, 1]} : vector<16x512xf32> to vector<16x128xf32>
    %cst_314 = arith.constant 5.000000e-01 : f32
    %681 = vector.broadcast %cst_314 : f32 to vector<16x128xf32>
    %682 = arith.mulf %681, %680 : vector<16x128xf32>
    %683 = math.tanh %682 : vector<16x128xf32>
    %cst_315 = arith.constant 1.000000e+00 : f32
    %684 = vector.broadcast %cst_315 : f32 to vector<16x128xf32>
    %685 = arith.addf %683, %684 : vector<16x128xf32>
    %cst_316 = arith.constant 5.000000e-01 : f32
    %686 = vector.broadcast %cst_316 : f32 to vector<16x128xf32>
    %687 = arith.mulf %686, %685 : vector<16x128xf32>
    %688 = vector.extract_strided_slice %671 {offsets = [0, 256], sizes = [16, 128], strides = [1, 1]} : vector<16x512xf32> to vector<16x128xf32>
    %689 = math.tanh %688 : vector<16x128xf32>
    %690 = vector.extract_strided_slice %671 {offsets = [0, 384], sizes = [16, 128], strides = [1, 1]} : vector<16x512xf32> to vector<16x128xf32>
    %cst_317 = arith.constant 5.000000e-01 : f32
    %691 = vector.broadcast %cst_317 : f32 to vector<16x128xf32>
    %692 = arith.mulf %691, %690 : vector<16x128xf32>
    %693 = math.tanh %692 : vector<16x128xf32>
    %cst_318 = arith.constant 1.000000e+00 : f32
    %694 = vector.broadcast %cst_318 : f32 to vector<16x128xf32>
    %695 = arith.addf %693, %694 : vector<16x128xf32>
    %cst_319 = arith.constant 5.000000e-01 : f32
    %696 = vector.broadcast %cst_319 : f32 to vector<16x128xf32>
    %697 = arith.mulf %696, %695 : vector<16x128xf32>
    %698 = arith.mulf %687, %613 : vector<16x128xf32>
    %699 = arith.mulf %679, %689 : vector<16x128xf32>
    %700 = arith.addf %698, %699 : vector<16x128xf32>
    %701 = math.tanh %700 : vector<16x128xf32>
    %702 = arith.mulf %697, %701 : vector<16x128xf32>
    %703 = arith.truncf %702 : vector<16x128xf32> to vector<16x128xbf16>
    %c0_320 = arith.constant 0 : index
    %c0_321 = arith.constant 0 : index
    %704 = vector.load %arg9[%c0_320, %c0_321] : memref<128x16xbf16, #tpu.memory_space<vmem>>, vector<128x16xbf16>
    %cst_322 = arith.constant dense<0.000000e+00> : vector<16x16xf32>
    %705 = tpu.matmul %703, %704, %cst_322 {dimension_numbers = #tpu.dot_dimension_numbers<[1], [0], [0], [1], [0, 0, 1, 1], [], []>} : vector<16x128xbf16>, vector<128x16xbf16>, vector<16x16xf32> -> vector<16x16xf32>
    %c0_323 = arith.constant 0 : index
    %c0_324 = arith.constant 0 : index
    %706 = vector.load %arg10[%c0_323, %c0_324] : memref<1x16xf32, #tpu.memory_space<vmem>>, vector<1x16xf32>
    %707 = vector.broadcast %706 : vector<1x16xf32> to vector<16x16xf32>
    %708 = arith.addf %705, %707 : vector<16x16xf32>
    %c0_325 = arith.constant 0 : index
    %c0_326 = arith.constant 0 : index
    %c0_327 = arith.constant 0 : index
    %709 = vector.load %arg12[%c0_325, %c0_326, %c0_327] : memref<2x16x128xbf16, #tpu.memory_space<vmem>>, vector<1x16x128xbf16>
    %710 = vector.shape_cast %709 : vector<1x16x128xbf16> to vector<16x128xbf16>
    %711 = vector.shape_cast %663 : vector<16x128xbf16> to vector<1x16x128xbf16>
    tpu.vector_store %arg12[%c0_325, %c0_326, %c0_327], %711 {strides = array<i32>} : memref<2x16x128xbf16, #tpu.memory_space<vmem>>, vector<1x16x128xbf16>,
    %c0_328 = arith.constant 0 : index
    %c0_329 = arith.constant 0 : index
    %c0_330 = arith.constant 0 : index
    %712 = vector.load %arg13[%c0_328, %c0_329, %c0_330] : memref<2x16x128xf32, #tpu.memory_space<vmem>>, vector<1x16x128xf32>
    %713 = vector.shape_cast %712 : vector<1x16x128xf32> to vector<16x128xf32>
    %714 = vector.shape_cast %660 : vector<16x128xf32> to vector<1x16x128xf32>
    tpu.vector_store %arg13[%c0_328, %c0_329, %c0_330], %714 {strides = array<i32>} : memref<2x16x128xf32, #tpu.memory_space<vmem>>, vector<1x16x128xf32>,
    %c1_331 = arith.constant 1 : index
    %c0_332 = arith.constant 0 : index
    %c0_333 = arith.constant 0 : index
    %715 = vector.load %arg12[%c1_331, %c0_332, %c0_333] : memref<2x16x128xbf16, #tpu.memory_space<vmem>>, vector<1x16x128xbf16>
    %716 = vector.shape_cast %715 : vector<1x16x128xbf16> to vector<16x128xbf16>
    %717 = vector.shape_cast %703 : vector<16x128xbf16> to vector<1x16x128xbf16>
    tpu.vector_store %arg12[%c1_331, %c0_332, %c0_333], %717 {strides = array<i32>} : memref<2x16x128xbf16, #tpu.memory_space<vmem>>, vector<1x16x128xbf16>,
    %c1_334 = arith.constant 1 : index
    %c0_335 = arith.constant 0 : index
    %c0_336 = arith.constant 0 : index
    %718 = vector.load %arg13[%c1_334, %c0_335, %c0_336] : memref<2x16x128xf32, #tpu.memory_space<vmem>>, vector<1x16x128xf32>
    %719 = vector.shape_cast %718 : vector<1x16x128xf32> to vector<16x128xf32>
    %720 = vector.shape_cast %700 : vector<16x128xf32> to vector<1x16x128xf32>
    tpu.vector_store %arg13[%c1_334, %c0_335, %c0_336], %720 {strides = array<i32>} : memref<2x16x128xf32, #tpu.memory_space<vmem>>, vector<1x16x128xf32>,
    %721 = tpu.concatenate %99, %186, %273, %360, %447, %534, %621, %708 in 1 : vector<16x16xf32>, vector<16x16xf32>, vector<16x16xf32>, vector<16x16xf32>, vector<16x16xf32>, vector<16x16xf32>, vector<16x16xf32>, vector<16x16xf32> -> vector<16x128xf32>
    %c0_337 = arith.constant 0 : index
    %c0_338 = arith.constant 0 : index
    %722 = vector.load %arg11[%c0_337, %c0_338] : memref<16x128xf32, #tpu.memory_space<vmem>>, vector<16x128xf32>
    tpu.vector_store %arg11[%c0_337, %c0_338], %721 {strides = array<i32>} : memref<16x128xf32, #tpu.memory_space<vmem>>, vector<16x128xf32>,
    return
  }
  func.func @transform_0(%arg0: i32, %arg1: i32) -> (i32, i32, i32) {
    %c0_i32 = arith.constant 0 : i32
    %c0_i32_0 = arith.constant 0 : i32
    return %arg0, %arg1, %c0_i32 : i32, i32, i32
  }
  func.func @transform_1(%arg0: i32, %arg1: i32) -> (i32, i32) {
    %c0_i32 = arith.constant 0 : i32
    %c0_i32_0 = arith.constant 0 : i32
    %c0_i32_1 = arith.constant 0 : i32
    return %c0_i32, %c0_i32_0 : i32, i32
  }
  func.func @transform_2(%arg0: i32, %arg1: i32) -> (i32, i32) {
    %c0_i32 = arith.constant 0 : i32
    %c0_i32_0 = arith.constant 0 : i32
    %c0_i32_1 = arith.constant 0 : i32
    return %c0_i32, %c0_i32_0 : i32, i32
  }
  func.func @transform_3(%arg0: i32, %arg1: i32) -> (i32, i32) {
    %c0_i32 = arith.constant 0 : i32
    %c0_i32_0 = arith.constant 0 : i32
    %c0_i32_1 = arith.constant 0 : i32
    return %c0_i32, %c0_i32_0 : i32, i32
  }
  func.func @transform_4(%arg0: i32, %arg1: i32) -> (i32, i32) {
    %c0_i32 = arith.constant 0 : i32
    %c0_i32_0 = arith.constant 0 : i32
    %c0_i32_1 = arith.constant 0 : i32
    return %c0_i32, %c0_i32_0 : i32, i32
  }
  func.func @transform_5(%arg0: i32, %arg1: i32) -> (i32, i32) {
    %c0_i32 = arith.constant 0 : i32
    %c0_i32_0 = arith.constant 0 : i32
    %c0_i32_1 = arith.constant 0 : i32
    return %c0_i32, %c0_i32_0 : i32, i32
  }
  func.func @transform_6(%arg0: i32, %arg1: i32) -> (i32, i32) {
    %c0_i32 = arith.constant 0 : i32
    %c0_i32_0 = arith.constant 0 : i32
    %c0_i32_1 = arith.constant 0 : i32
    return %c0_i32, %c0_i32_0 : i32, i32
  }
  func.func @transform_7(%arg0: i32, %arg1: i32) -> (i32, i32) {
    %c0_i32 = arith.constant 0 : i32
    %c0_i32_0 = arith.constant 0 : i32
    %c0_i32_1 = arith.constant 0 : i32
    return %c0_i32, %c0_i32_0 : i32, i32
  }
  func.func @transform_8(%arg0: i32, %arg1: i32) -> (i32, i32) {
    %c0_i32 = arith.constant 0 : i32
    %c0_i32_0 = arith.constant 0 : i32
    %c0_i32_1 = arith.constant 0 : i32
    return %c0_i32, %c0_i32_0 : i32, i32
  }
  func.func @transform_9(%arg0: i32, %arg1: i32) -> (i32, i32) {
    %c0_i32 = arith.constant 0 : i32
    return %arg0, %arg1 : i32, i32
  }
}

</mosaic_0001>

<bundles_post_ra>
// kernel: tpu_custom_call.1
= control target key start
LH: loop header
LB: loop body
LE: loop exit
PB: predicated region body
PF: predicated region fallthrough
CT: control target
= control target key end

     0   :  { %14 = vsyncpa [#allocation5], 0  ;;  %s7054_s0 = inlined_call_operand.hbm [shape: f32[16,8,16], index: 0, kind: input, shape index: {}]   ;;  %s7055_s1 = inlined_call_operand.vmem [shape: bf16[16,512], index: 1, kind: input, shape index: {}]   ;;  %s7056_s2 = inlined_call_operand.hbm [shape: bf16[128,512], index: 2, kind: input, shape index: {}]   ;;  %s7057_s3 = inlined_call_operand.vmem [shape: f32[1,512], index: 3, kind: input, shape index: {}]   ;;  %s7058_s4 = inlined_call_operand.hbm [shape: bf16[128,512], index: 4, kind: input, shape index: {}]   ;;  %s7059_s5 = inlined_call_operand.hbm [shape: bf16[128,512], index: 5, kind: input, shape index: {}]   ;;  %s7060_s6 = inlined_call_operand.vmem [shape: f32[1,512], index: 6, kind: input, shape index: {}]   ;;  %s7061_s7 = inlined_call_operand.vmem [shape: bf16[128,16], index: 7, kind: input, shape index: {}]   ;;  %s7062_s8 = inlined_call_operand.vmem [shape: f32[1,16], index: 8, kind: input, shape index: {}]   ;;  %s7063_s9 = inlined_call_operand.hbm [shape: f32[16,128], index: 9, kind: output, shape index: {}]  }
   0x1   :  { %15 = vsyncpa [#allocation8], 0 }
   0x2   :  { %16 = vsyncpa [#allocation11], 0  ;;  %s37_s11 = sshll.u32 %s7056_s2, 4  ;;  %s38_s11 = int_to_ptr.hbm [resolvable:$true] %s37_s11 }
   0x3   :  { %17 = vsyncpa [#allocation6], 0  ;;  %s5023_s12 = smov [#allocation7]   ;;  %s22_s16 = sshll.u32 %s7054_s0, 4  ;;  %s23_s16 = int_to_ptr.hbm [resolvable:$true] %s22_s16 }
   0x4   :  { %s39_s13 = sshll.u32 %s5023_s12, 4  ;;  %s5024_s17 = smov 256   ;;  %s40_s13 = int_to_ptr.vmem [resolvable:$true] %s39_s13 }
   0x5   :  { %s5025_s18 = smov 16   ;;  %s5026_s19 = smov [#allocation4]  }
   0x6   :  { %45 = dma.hbm_to_vmem [thread:$0]  %s38_s11, 4096, %s40_s13, [#allocation8], %s5024_s17, %s5024_s17, %s5025_s18  }
   0x7   :  { %s24_s20 = sshll.u32 %s5026_s19, 4  ;;  %s5027_s21 = smov 128   ;;  %s25_s20 = int_to_ptr.vmem [resolvable:$true] %s24_s20 }
   0x8   :  { %s5028_s22 = smov 8   ;;  %s52_s24 = sshll.u32 %s7058_s4, 4  ;;  %s53_s24 = int_to_ptr.hbm [resolvable:$true] %s52_s24 }
   0x9   :  { %30 = dma.hbm_to_vmem [thread:$0]  %s23_s16, 2048, %s25_s20, [#allocation5], %s5027_s21, %s5027_s21, %s5028_s22  }
   0xa   :  { %s5029_s0 = smov [#allocation9]   ;;  %s65_s28 = sshll.u32 %s7059_s5, 4  ;;  %s66_s28 = int_to_ptr.hbm [resolvable:$true] %s65_s28 }
   0xb   :  { %s54_s25 = sshll.u32 %s5029_s0, 4  ;;  %s5030_s29 = smov [#allocation10]   ;;  %s55_s25 = int_to_ptr.vmem [resolvable:$true] %s54_s25 }
   0xc   :  { %60 = dma.hbm_to_vmem [thread:$0]  %s53_s24, 4096, %s55_s25, [#allocation8], %s5024_s17, %s5024_s17, %s5025_s18  }
   0xd   :  { %s67_s30 = sshll.u32 %s5030_s29, 4  ;;  %s68_s30 = int_to_ptr.vmem [resolvable:$true] %s67_s30 }
   0xe   :  { %73 = dma.hbm_to_vmem [thread:$0]  %s66_s28, 4096, %s68_s30, [#allocation11], %s5024_s17, %s5024_s17, %s5025_s18  }
   0xf   :  { %5015 = dma.done.wait [#allocation5], 2048  }
  0x10   :  { %5016 = vsyncadd [#allocation5], 4294965248 }
  0x11   :  { %5017 = dma.done.wait [#allocation8], 8192  }
  0x12   :  { %5018 = vsyncadd [#allocation8], 4294959104 }
  0x13   :  { %5019 = dma.done.wait [#allocation11], 4096  }
  0x14   :  { %5020 = vsyncadd [#allocation11], 4294963200  ;;  %v5031_v0 = vmov 0   ;;  %v4042_v1 = vld [vmem:[#allocation7 + $0xe0] sm:$0xf]  ;;  %vm474_vm0 = vcmask 1041409  }
  0x15   :  { %101 = vst [vmem:[#allocation2] sm:$0xf] %v5031_v0  ;;  %v4448_v2 = vld [vmem:[#allocation7 + $0xec] sm:$0xf0]  ;;  %v4446_v3 = vld [vmem:[#allocation7 + $0xe4] sm:$0xf] }
  0x16   :  { %102 = vst [vmem:[#allocation2 + $0x4] sm:$0xf] %v5031_v0  ;;  %v5107_v4 = vor.u32 %v4448_v2, %v4042_v1  ;;  %v4044_v5 = vld [vmem:[#allocation7 + $0xf0] sm:$0xf0]  ;;  %v4447_v6 = vld [vmem:[#allocation7 + $0xec] sm:$0xf] }
  0x17   :  { %103 = vst [vmem:[#allocation2 + $0x8] sm:$0xf] %v5031_v0  ;;  %v4052_v7 = vld [vmem:[#allocation7 + $0xf8] sm:$0xf0]  ;;  %v5109_v8 = vor.u32 %v4446_v3, %v4044_v5  ;;  %v4026_v10 = vld [vmem:[#allocation7 + $0xc0] sm:$0xf] }
  0x18   :  { %104 = vst [vmem:[#allocation2 + $0xc] sm:$0xf] %v5031_v0  ;;  %v5111_v9 = vor.u32 %v4447_v6, %v4052_v7  ;;  %v4444_v11 = vld [vmem:[#allocation7 + $0xcc] sm:$0xf0]  ;;  %v4442_v12 = vld [vmem:[#allocation7 + $0xc4] sm:$0xf]  ;;  %353 = vmatpush.bf16.msra.mxu0 %v5107_v4 }
  0x19   :  { %7333 = vst [vmem:[#allocation17_spill] sm:$0xff] %v5109_v8  ;;  %v5114_v13 = vor.u32 %v4444_v11, %v4026_v10  ;;  %v4028_v14 = vld [vmem:[#allocation7 + $0xd0] sm:$0xf0]  ;;  %v4443_v15 = vld [vmem:[#allocation7 + $0xcc] sm:$0xf]  ;;  %367 = vmatpush.bf16.msra.mxu1 %v5109_v8  ;;  %vm477_vm1 = vcmask 1042434  }
  0x1a   :  { %7334 = vst [vmem:[#allocation18_spill] sm:$0xff] %v5111_v9  ;;  %v4036_v16 = vld [vmem:[#allocation7 + $0xd8] sm:$0xf0]  ;;  %395 = vmatpush.bf16.msra.mxu3 %v5111_v9  ;;  %v5118_v17 = vor.u32 %v4442_v12, %v4028_v14  ;;  %v4010_v19 = vld [vmem:[#allocation7 + $0xa0] sm:$0xf]  ;;  %vm480_vm2 = vcmask 1043459  }
  0x1b   :  { %v5120_v18 = vor.u32 %v4443_v15, %v4036_v16  ;;  %v4440_v20 = vld [vmem:[#allocation7 + $0xac] sm:$0xf0]  ;;  %v4438_v21 = vld [vmem:[#allocation7 + $0xa4] sm:$0xf]  ;;  %v4012_v22 = vld [vmem:[#allocation7 + $0xb0] sm:$0xf0] }
  0x1c   :  { %7335 = vst [vmem:[#allocation19_spill] sm:$0xff] %v5118_v17  ;;  %v4439_v23 = vld [vmem:[#allocation7 + $0xac] sm:$0xf]  ;;  %v4020_v24 = vld [vmem:[#allocation7 + $0xb8] sm:$0xf0]  ;;  %354 = vmatpush.bf16.msra.mxu0 %v5114_v13  ;;  %v5123_v25 = vor.u32 %v4440_v20, %v4010_v19  ;;  %v5127_v28 = vor.u32 %v4438_v21, %v4012_v22  ;;  %vm483_vm3 = vcmask 1044484  }
  0x1d   :  { %7336 = vst [vmem:[#allocation20_spill] sm:$0xff] %v5120_v18  ;;  %v3994_v26 = vld [vmem:[#allocation7 + $0x80] sm:$0xf]  ;;  %v4436_v27 = vld [vmem:[#allocation7 + $0x8c] sm:$0xf0]  ;;  %368 = vmatpush.bf16.msra.mxu1 %v5118_v17  ;;  %v5129_v29 = vor.u32 %v4439_v23, %v4020_v24  ;;  %vm486_vm4 = vcmask 1045509  }
  0x1e   :  { %396 = vmatpush.bf16.msra.mxu3 %v5120_v18  ;;  %7337 = vst [vmem:[#allocation21_spill] sm:$0xff] %v5127_v28  ;;  %v4434_v30 = vld [vmem:[#allocation7 + $0x84] sm:$0xf]  ;;  %v3996_v31 = vld [vmem:[#allocation7 + $0x90] sm:$0xf0]  ;;  %v5134_v37 = vor.u32 %v4436_v27, %v3994_v26  ;;  %vm489_vm5 = vcmask 1046534  }
  0x1f   :  { %7338 = vst [vmem:[#allocation22_spill] sm:$0xff] %v5129_v29  ;;  %v4435_v32 = vld [vmem:[#allocation7 + $0x8c] sm:$0xf]  ;;  %v4004_v33 = vld [vmem:[#allocation7 + $0x98] sm:$0xf0]  ;;  %v5138_v40 = vor.u32 %v4434_v30, %v3996_v31  ;;  %vm492_vm6 = vcmask 1047559  }
  0x20   :  { %v4050_v34 = vld [vmem:[#allocation7 + $0xe8] sm:$0xf]  ;;  %v4449_v35 = vld [vmem:[#allocation7 + $0xf4] sm:$0xf0]  ;;  %355 = vmatpush.bf16.msra.mxu0 %v5123_v25  ;;  %v3978_v38 = vld [vmem:[#allocation7 + $0x60] sm:$0xf]  ;;  %v5140_v41 = vor.u32 %v4435_v32, %v4004_v33 }
  0x21   :  { %v5131_v36 = vor.u32 %v4449_v35, %v4050_v34  ;;  %v4432_v39 = vld [vmem:[#allocation7 + $0x6c] sm:$0xf0]  ;;  %369 = vmatpush.bf16.msra.mxu1 %v5127_v28  ;;  %7339 = vst [vmem:[#allocation23_spill] sm:$0xff] %v5138_v40  ;;  %v4430_v42 = vld [vmem:[#allocation7 + $0x64] sm:$0xf]  ;;  %vm529_vm7 = vcmask 130048  }
  0x22   :  { %397 = vmatpush.bf16.msra.mxu3 %v5129_v29  ;;  %7340 = vst [vmem:[#allocation24_spill] sm:$0xff] %v5140_v41  ;;  %v4034_v43 = vld [vmem:[#allocation7 + $0xc8] sm:$0xf]  ;;  %v4445_v44 = vld [vmem:[#allocation7 + $0xd4] sm:$0xf0]  ;;  %v5146_v52 = vor.u32 %v4432_v39, %v3978_v38  ;;  %s5032_s12 = smov 32  }
  0x23   :  { %v3980_v45 = vld [vmem:[#allocation7 + $0x70] sm:$0xf0]  ;;  %381 = vmatpush.bf16.msra.mxu2 %v5131_v36  ;;  %v4431_v46 = vld [vmem:[#allocation7 + $0x6c] sm:$0xf]  ;;  %v3988_v47 = vld [vmem:[#allocation7 + $0x78] sm:$0xf0]  ;;  %v5143_v48 = vor.u32 %v4445_v44, %v4034_v43 }
  0x24   :  { %v3962_v49 = vld [vmem:[#allocation7 + $0x40] sm:$0xf]  ;;  %v4428_v50 = vld [vmem:[#allocation7 + $0x4c] sm:$0xf0]  ;;  %v4018_v51 = vld [vmem:[#allocation7 + $0xa8] sm:$0xf]  ;;  %356 = vmatpush.bf16.msra.mxu0 %v5134_v37  ;;  %v5150_v57 = vor.u32 %v4430_v42, %v3980_v45  ;;  %v5152_v58 = vor.u32 %v4431_v46, %v3988_v47 }
  0x25   :  { %v4426_v53 = vld [vmem:[#allocation7 + $0x44] sm:$0xf]  ;;  %v3964_v54 = vld [vmem:[#allocation7 + $0x50] sm:$0xf0]  ;;  %v4427_v55 = vld [vmem:[#allocation7 + $0x4c] sm:$0xf]  ;;  %370 = vmatpush.bf16.msra.mxu1 %v5138_v40  ;;  %v5158_v15 = vor.u32 %v4428_v50, %v3962_v49 }
  0x26   :  { %v4441_v56 = vld [vmem:[#allocation7 + $0xb4] sm:$0xf0]  ;;  %398 = vmatpush.bf16.msra.mxu3 %v5140_v41  ;;  %7341 = vst [vmem:[#allocation25_spill] sm:$0xff] %v5150_v57  ;;  %v3972_v59 = vld [vmem:[#allocation7 + $0x58] sm:$0xf0]  ;;  %v5168_v21 = vor.u32 %v4426_v53, %v3964_v54  ;;  %v109_v53 = vld [vmem:[#allocation4] sm:$0xff] }
  0x27   :  { %7342 = vst [vmem:[#allocation26_spill] sm:$0xff] %v5152_v58  ;;  %v3946_v60 = vld [vmem:[#allocation7 + $0x20] sm:$0xf]  ;;  %v4424_v61 = vld [vmem:[#allocation7 + $0x2c] sm:$0xf0]  ;;  %382 = vmatpush.bf16.msra.mxu2 %v5143_v48  ;;  %v5155_v0 = vor.u32 %v4441_v56, %v4018_v51  ;;  %v5170_v22 = vor.u32 %v4427_v55, %v3972_v59  ;;  %v110_v59 = vld [vmem:[#allocation4 + $0x8] sm:$0xff] }
  0x28   :  { %v4422_v62 = vld [vmem:[#allocation7 + $0x24] sm:$0xf]  ;;  %v3948_v63 = vld [vmem:[#allocation7 + $0x30] sm:$0xf0]  ;;  %v4423_v1 = vld [vmem:[#allocation7 + $0x2c] sm:$0xf]  ;;  %357 = vmatpush.bf16.msra.mxu0 %v5146_v52  ;;  %v5172_v27 = vor.u32 %v4424_v61, %v3946_v60 }
  0x29   :  { %v3956_v2 = vld [vmem:[#allocation7 + $0x38] sm:$0xf0]  ;;  %v3930_v3 = vld [vmem:[#allocation7] sm:$0xf]  ;;  %v4420_v5 = vld [vmem:[#allocation7 + $0xc] sm:$0xf0]  ;;  %371 = vmatpush.bf16.msra.mxu1 %v5150_v57  ;;  %v5180_v34 = vor.u32 %v4422_v62, %v3948_v63 }
  0x2a   :  { %v4418_v6 = vld [vmem:[#allocation7 + $0x4] sm:$0xf]  ;;  %v3932_v7 = vld [vmem:[#allocation7 + $0x10] sm:$0xf0]  ;;  %v4002_v10 = vld [vmem:[#allocation7 + $0x88] sm:$0xf]  ;;  %399 = vmatpush.bf16.msra.mxu3 %v5152_v58  ;;  %v5182_v35 = vor.u32 %v4423_v1, %v3956_v2  ;;  %v5184_v38 = vor.u32 %v4420_v5, %v3930_v3  ;;  %v126_v3 = vpack.c.bf16 %v110_v59, %v110_v59 }
  0x2b   :  { %v4437_v11 = vld [vmem:[#allocation7 + $0x94] sm:$0xf0]  ;;  %v4419_v12 = vld [vmem:[#allocation7 + $0xc] sm:$0xf]  ;;  %v3940_v14 = vld [vmem:[#allocation7 + $0x18] sm:$0xf0]  ;;  %383 = vmatpush.bf16.msra.mxu2 %v5155_v0  ;;  %v5186_v39 = vor.u32 %v4418_v6, %v3932_v7 }
  0x2c   :  { %v4082_v16 = vld [vmem:[%s7055_s1 + $0x8] sm:$0xf]  ;;  %v4417_v19 = vld [vmem:[%s7055_s1 + $0x14] sm:$0xf0]  ;;  %7343 = vst [vmem:[#allocation27_spill] sm:$0xff] %v5168_v21  ;;  %v5175_v30 = vor.u32 %v4437_v11, %v4002_v10  ;;  %358 = vmatpush.bf16.msra.mxu0 %v5158_v15  ;;  %v5198_v45 = vor.u32 %v4419_v12, %v3940_v14  ;;  %v111_v60 = vld [vmem:[#allocation4 + $0x10] sm:$0xff]  ;;  %v125_v12 = vpack.c.bf16 %v109_v53, %v109_v53 }
  0x2d   :  { %v3986_v20 = vld [vmem:[#allocation7 + $0x68] sm:$0xf]  ;;  %7344 = vst [vmem:[#allocation28_spill] sm:$0xff] %v5170_v22  ;;  %v4433_v23 = vld [vmem:[#allocation7 + $0x74] sm:$0xf0]  ;;  %v5200_v46 = vor.u32 %v4417_v19, %v4082_v16  ;;  %372 = vmatpush.bf16.msra.mxu1 %v5168_v21  ;;  %v113_v63 = vld [vmem:[#allocation4 + $0x20] sm:$0xff]  ;;  %v127_v5 = vpack.c.bf16 %v111_v60, %v111_v60 }
  0x2e   :  { %v3970_v24 = vld [vmem:[#allocation7 + $0x48] sm:$0xf]  ;;  %v4429_v26 = vld [vmem:[#allocation7 + $0x54] sm:$0xf0]  ;;  %v4074_v33 = vld [vmem:[%s7055_s1] sm:$0xf]  ;;  %v5202_v47 = vor.u32 %v4433_v23, %v3986_v20  ;;  %400 = vmatpush.bf16.msra.mxu3 %v5170_v22  ;;  %v129_v14 = vpack.c.bf16 %v113_v63, %v113_v63 }
  0x2f   :  { %v3954_v31 = vld [vmem:[#allocation7 + $0x28] sm:$0xf]  ;;  %v4425_v32 = vld [vmem:[#allocation7 + $0x34] sm:$0xf0]  ;;  %7345 = vst [vmem:[#allocation29_spill] sm:$0xff] %v5180_v34  ;;  %v5204_v49 = vor.u32 %v4429_v26, %v3970_v24  ;;  %384 = vmatpush.bf16.msra.mxu2 %v5175_v30  ;;  %v115_v2 = vld [vmem:[#allocation4 + $0x30] sm:$0xff]  ;;  %v427_v59 = vunpack.c.l.b16 %v127_v5 }
  0x30   :  { %7346 = vst [vmem:[#allocation30_spill] sm:$0xff] %v5182_v35  ;;  %v4416_v42 = vld [vmem:[%s7055_s1 + $0xc] sm:$0xf0]  ;;  %v4414_v43 = vld [vmem:[%s7055_s1 + $0x4] sm:$0xf]  ;;  %v5208_v54 = vor.u32 %v4425_v32, %v3954_v31  ;;  %v112_v61 = vld [vmem:[#allocation4 + $0x18] sm:$0xff]  ;;  %v131_v19 = vpack.c.bf16 %v115_v2, %v115_v2  ;;  %359 = vmatpush.bf16.msra.mxu0 %v5172_v27 }
  0x31   :  { %7347 = vst [vmem:[#allocation31_spill] sm:$0xff] %v5184_v38  ;;  %v4076_v44 = vld [vmem:[%s7055_s1 + $0x10] sm:$0xf0]  ;;  %v3938_v50 = vld [vmem:[#allocation7 + $0x8] sm:$0xf]  ;;  %v5210_v55 = vor.u32 %v4416_v42, %v4074_v33  ;;  %v128_v6 = vpack.c.bf16 %v112_v61, %v112_v61  ;;  %v116_v7 = vld [vmem:[#allocation4 + $0x38] sm:$0xff]  ;;  %v426_v33 = vunpack.c.l.b16 %v126_v3  ;;  %373 = vmatpush.bf16.msra.mxu1 %v5180_v34  ;;  %v425_v3 = vunpack.c.l.b16 %v125_v12 }
  0x32   :  { %7348 = vst [vmem:[#allocation32_spill] sm:$0xff] %v5186_v39  ;;  %v4421_v51 = vld [vmem:[#allocation7 + $0x14] sm:$0xf0]  ;;  %v5212_v56 = vor.u32 %v4414_v43, %v4076_v44  ;;  %v114_v1 = vld [vmem:[#allocation4 + $0x28] sm:$0xff]  ;;  %v117_v10 = vld [vmem:[#allocation4 + $0x40] sm:$0xff]  ;;  %v132_v26 = vpack.c.bf16 %v116_v7, %v116_v7  ;;  %401 = vmatpush.bf16.msra.mxu3 %v5182_v35  ;;  %v429_v7 = vunpack.c.l.b16 %v129_v14  ;;  %s5033_s15 = smov 48  }
  0x33   :  { %7349 = vst [vmem:[#allocation33_spill] sm:$0xff] %v5198_v45  ;;  %v5215_v62 = vor.u32 %v4421_v51, %v3938_v50  ;;  %v118_v11 = vld [vmem:[#allocation4 + $0x48] sm:$0xff]  ;;  %v130_v16 = vpack.c.bf16 %v114_v1, %v114_v1  ;;  %v119_v20 = vld [vmem:[#allocation4 + $0x50] sm:$0xff]  ;;  %v120_v23 = vld [vmem:[#allocation4 + $0x58] sm:$0xff]  ;;  %v133_v31 = vpack.c.bf16 %v117_v10, %v117_v10  ;;  %385 = vmatpush.bf16.msra.mxu2 %v5202_v47  ;;  %v428_v1 = vunpack.c.l.b16 %v128_v6  ;;  %s5034_s29 = smov 64   ;;  %s5035_s5 = smov 80  }
  0x34   :  { %7350 = vst [vmem:[#allocation34_spill] sm:$0xff] %v5200_v46  ;;  %v121_v24 = vld [vmem:[#allocation4 + $0x60] sm:$0xff]  ;;  %v134_v32 = vpack.c.bf16 %v118_v11, %v118_v11  ;;  %v122_v42 = vld [vmem:[#allocation4 + $0x68] sm:$0xff]  ;;  %v123_v43 = vld [vmem:[#allocation4 + $0x70] sm:$0xff]  ;;  %v135_v50 = vpack.c.bf16 %v119_v20, %v119_v20  ;;  %v136_v51 = vpack.c.bf16 %v120_v23, %v120_v23  ;;  %v431_v11 = vunpack.c.l.b16 %v131_v19  ;;  %360 = vmatpush.bf16.msra.mxu0 %v5184_v38  ;;  %s5037_s0 = smov 112   ;;  %s3909_s27 = sshll.u32 %s7063_s9, 4  ;;  %s3910_s27 = int_to_ptr.hbm [resolvable:$true] %s3909_s27 }
  0x35   :  { %7351 = vst [vmem:[#allocation35_spill] sm:$0xff] %v5210_v55  ;;  %v124_v44 = vld [vmem:[#allocation4 + $0x78] sm:$0xff]  ;;  %v137_v53 = vpack.c.bf16 %v121_v24, %v121_v24  ;;  %v138_v60 = vpack.c.bf16 %v122_v42, %v122_v42  ;;  %v139_v61 = vpack.c.bf16 %v123_v43, %v123_v43  ;;  %v5221_v2 = vld [vmem:[#allocation2] sm:$0xff]  ;;  %v430_v10 = vunpack.c.l.b16 %v130_v16  ;;  %374 = vmatpush.bf16.msra.mxu1 %v5186_v39  ;;  %v4218_v22 = vld [vmem:[#allocation10 + $0xe8] sm:$0xf] }
  0x36   :  { %7352 = vst [vmem:[#allocation36_spill] sm:$0xff] %v5212_v56  ;;  %v140_v63 = vpack.c.bf16 %v124_v44, %v124_v44  ;;  %v432_v20 = vunpack.c.l.b16 %v132_v26  ;;  %v433_v23 = vunpack.c.l.b16 %v133_v31  ;;  %v434_v5 = vunpack.c.l.b16 %v134_v32  ;;  %402 = vmatpush.bf16.msra.mxu3 %v5198_v45  ;;  %v4513_v18 = vld [vmem:[#allocation10 + $0xf4] sm:$0xf0] }
  0x37   :  { %7353 = vst [vmem:[#allocation37_spill] sm:$0xff] %v5215_v62  ;;  %v435_v24 = vunpack.c.l.b16 %v135_v50  ;;  %v436_v6 = vunpack.c.l.b16 %v136_v51  ;;  %v437_v42 = vunpack.c.l.b16 %v137_v53  ;;  %v438_v43 = vunpack.c.l.b16 %v138_v60  ;;  %386 = vmatpush.bf16.msra.mxu2 %v5204_v49  ;;  %361 = vmatmul.bf16.vlgmr.msra.gmra.mxu0 %v5221_v2 }
  0x38   :  { %v439_v44 = vunpack.c.l.b16 %v139_v61  ;;  %v440_v12 = vunpack.c.l.b16 %v140_v63  ;;  %v5228_v14 = vunpack.i.l.s16 %v426_v33  ;;  %v5230_v16 = vunpack.i.l.s16 %v427_v59  ;;  %375 = vmatmul.bf16.vlgmr.msra.gmra.mxu1 %v5221_v2  ;;  %540 = vmatpush.bf16.msrb.mxu0 %v5210_v55 }
  0x39   :  { %v5232_v19 = vunpack.i.l.s16 %v428_v1  ;;  %554 = vmatpush.bf16.msrb.mxu1 %v5212_v56  ;;  %v5236_v26 = vunpack.i.l.s16 %v425_v3  ;;  %v5238_v31 = vunpack.i.l.s16 %v429_v7  ;;  %v5240_v32 = vunpack.i.l.s16 %v430_v10  ;;  %403 = vmatmul.bf16.vlgmr.msra.gmra.mxu3 %v5221_v2 }
  0x3a   :  { %568 = vmatpush.bf16.msrb.mxu3 %v5200_v46  ;;  %7354 = vst [vmem:[#allocation38_spill] sm:$0xff] %v5228_v14  ;;  %v5242_v50 = vunpack.i.l.s16 %v431_v11  ;;  %v5246_v33 = vunpack.i.l.s16 %v432_v20  ;;  %v5248_v51 = vunpack.i.l.s16 %v433_v23  ;;  %v5250_v53 = vunpack.i.l.s16 %v434_v5  ;;  %v4415_v20 = vld [vmem:[%s7055_s1 + $0xc] sm:$0xf]  ;;  %v4084_v23 = vld [vmem:[%s7055_s1 + $0x18] sm:$0xf0]  ;;  %s5038_s1 = smov [#allocation12]  }
  0x3b   :  { %7355 = vst [vmem:[#allocation39_spill] sm:$0xff] %v5230_v16  ;;  %v5252_v59 = vunpack.i.l.s16 %v435_v24  ;;  %v5255_v60 = vunpack.i.l.s16 %v436_v6  ;;  %v5257_v61 = vunpack.i.l.s16 %v437_v42  ;;  %v5259_v63 = vunpack.i.l.s16 %v438_v43  ;;  %387 = vmatpush.bf16.msra.mxu2 %v5208_v54  ;;  %v4510_v42 = vld [vmem:[#allocation10 + $0xe4] sm:$0xf]  ;;  %v4212_v43 = vld [vmem:[#allocation10 + $0xf0] sm:$0xf0]  ;;  %s3907_s25 = sshll.u32 %s5038_s1, 4  ;;  %s3908_s25 = int_to_ptr.vmem [resolvable:$true] %s3907_s25 }
  0x3c   :  { %7356 = vst [vmem:[#allocation40_spill] sm:$0xff] %v5232_v19  ;;  %v5261_v1 = vunpack.i.l.s16 %v439_v44  ;;  %v5264_v3 = vunpack.i.l.s16 %v440_v12  ;;  %v473_v7 = vrot.slane %v5228_v14, 7  ;;  %v476_v10 = vrot.slane %v5230_v16, 6 }
  0x3d   :  { %7357 = vst [vmem:[#allocation41_spill] sm:$0xff] %v5236_v26  ;;  %v479_v11 = vrot.slane %v5232_v19, 5  ;;  %v482_v5 = vrot.slane %v5238_v31, 4  ;;  %v485_v24 = vrot.slane %v5240_v32, 3  ;;  %v488_v6 = vrot.slane %v5242_v50, 2 }
  0x3e   :  { %7358 = vst [vmem:[#allocation42_spill] sm:$0xff] %v5238_v31  ;;  %v475_v44 = vsel %vm474_vm0, %v473_v7, %v5236_v26  ;;  %v491_v12 = vrot.slane %v5246_v33, 1  ;;  %v494_v45 = vrot.slane %v5250_v53, 7  ;;  %v496_v35 = vrot.slane %v5252_v59, 6 }
  0x3f   :  { %7359 = vst [vmem:[#allocation43_spill] sm:$0xff] %v5240_v32  ;;  %v478_v58 = vsel %vm477_vm1, %v476_v10, %v475_v44  ;;  %v498_v41 = vrot.slane %v5255_v60, 5  ;;  %v500_v29 = vrot.slane %v5257_v61, 4  ;;  %388 = vmatpush.bf16.msra.mxu2 %v5215_v62  ;;  %v506_v44 = vrot.slane %v5264_v3, 1 }
  0x40   :  { %7360 = vst [vmem:[#allocation44_spill] sm:$0xff] %v5242_v50  ;;  %v481_v9 = vsel %vm480_vm2, %v479_v11, %v478_v58  ;;  %v495_v7 = vsel %vm474_vm0, %v494_v45, %v5248_v51  ;;  %v504_v50 = vrot.slane %v5261_v1, 2  ;;  %v5295_v31 = vor.u32 %v4415_v20, %v4084_v23 }
  0x41   :  { %7361 = vst [vmem:[#allocation45_spill] sm:$0xff] %v5246_v33  ;;  %v502_v33 = vrot.slane %v5259_v63, 3  ;;  %v484_v32 = vsel %vm483_vm3, %v482_v5, %v481_v9  ;;  %v497_v10 = vsel %vm477_vm1, %v496_v35, %v495_v7  ;;  %v5299_v11 = vor.u32 %v4510_v42, %v4212_v43  ;;  %v4503_v42 = vld [vmem:[#allocation10 + $0xac] sm:$0xf]  ;;  %v4188_v43 = vld [vmem:[#allocation10 + $0xb8] sm:$0xf0] }
  0x42   :  { %7362 = vst [vmem:[#allocation46_spill] sm:$0xff] %v5248_v51  ;;  %v487_v19 = vsel %vm486_vm4, %v485_v24, %v484_v32  ;;  %v499_v58 = vsel %vm480_vm2, %v498_v41, %v497_v10  ;;  %v5301_v45 = vor.u32 %v4513_v18, %v4218_v22  ;;  %389 = vmatmul.bf16.vlgmr.msra.gmra.mxu2 %v5221_v2  ;;  %v4511_v18 = vld [vmem:[#allocation10 + $0xec] sm:$0xf]  ;;  %v4220_v41 = vld [vmem:[#allocation10 + $0xf8] sm:$0xf0]  ;;  %vm3883_vm8 = vcmask 261120  }
  0x43   :  { %7363 = vst [vmem:[#allocation47_spill] sm:$0xff] %v5250_v53  ;;  %v490_v9 = vsel %vm489_vm5, %v488_v6, %v487_v19  ;;  %v501_v35 = vsel %vm483_vm3, %v500_v29, %v499_v58  ;;  %582 = vmatpush.bf16.msra.mxu3 %v5295_v31  ;;  %888 = vmatpush.bf16.msra.mxu1 %v5299_v11  ;;  %v4204_v24 = vld [vmem:[#allocation10 + $0xd8] sm:$0xf0]  ;;  %v4505_v6 = vld [vmem:[#allocation10 + $0xb4] sm:$0xf0]  ;;  %vm3886_vm9 = vcmask 392192  }
  0x44   :  { %7364 = vst [vmem:[#allocation48_spill] sm:$0xff] %v5252_v59  ;;  %v493_v20 = vsel %vm492_vm6, %v491_v12, %v490_v9  ;;  %v503_v32 = vsel %vm486_vm4, %v502_v33, %v501_v35  ;;  %902 = vmatpush.bf16.msrb.mxu2 %v5301_v45  ;;  %v5317_v5 = vor.u32 %v4511_v18, %v4220_v41  ;;  %v4507_v33 = vld [vmem:[#allocation10 + $0xcc] sm:$0xf]  ;;  %v4498_v10 = vld [vmem:[#allocation10 + $0x84] sm:$0xf]  ;;  %vm3889_vm10 = vcmask 523264  }
  0x45   :  { %7365 = vst [vmem:[#allocation49_spill] sm:$0xff] %v5255_v60  ;;  %v4196_v60 = vld [vmem:[#allocation10 + $0xd0] sm:$0xf0]  ;;  %v505_v2 = vsel %vm489_vm5, %v504_v50, %v503_v32  ;;  %v5325_v50 = vor.u32 %v4507_v33, %v4204_v24  ;;  %v5333_v7 = vor.u32 %v4503_v42, %v4188_v43  ;;  %v4170_v58 = vld [vmem:[#allocation10 + $0x88] sm:$0xf]  ;;  %vm3892_vm11 = vcmask 654336  }
  0x46   :  { %7366 = vst [vmem:[#allocation50_spill] sm:$0xff] %v5257_v61  ;;  %v4506_v61 = vld [vmem:[#allocation10 + $0xc4] sm:$0xf]  ;;  %v507_v29 = vsel %vm492_vm6, %v506_v44, %v505_v2  ;;  %v4164_v44 = vld [vmem:[#allocation10 + $0x90] sm:$0xf0]  ;;  %vm3898_vm12 = vcmask 916480  }
  0x47   :  { %7367 = vst [vmem:[#allocation51_spill] sm:$0xff] %v5259_v63  ;;  %v4202_v63 = vld [vmem:[#allocation10 + $0xc8] sm:$0xf]  ;;  %v5311_v22 = vor.u32 %v4506_v61, %v4196_v60  ;;  %v508_v19 = vpack.c.b16 %v507_v29, %v493_v20  ;;  %v4502_v60 = vld [vmem:[#allocation10 + $0xa4] sm:$0xf]  ;;  %v5338_v9 = vor.u32 %v4498_v10, %v4164_v44  ;;  %vm3895_vm13 = vcmask 785408  }
  0x48   :  { %7368 = vst [vmem:[#allocation52_spill] sm:$0xff] %v5261_v1  ;;  %v4509_v1 = vld [vmem:[#allocation10 + $0xd4] sm:$0xf0]  ;;  %v4180_v61 = vld [vmem:[#allocation10 + $0xb0] sm:$0xf0] }
  0x49   :  { %7369 = vst [vmem:[#allocation53_spill] sm:$0xff] %v5264_v3  ;;  %v5314_v23 = vor.u32 %v4509_v1, %v4202_v63  ;;  %889 = vmatpush.bf16.msra.mxu1 %v5311_v22  ;;  %4088 = vmatmul.msk.bf16.vlgmr.msrb.gmra.mxu0 %vm529_vm7, %v508_v19  ;;  %v4186_v63 = vld [vmem:[#allocation10 + $0xa8] sm:$0xf]  ;;  %v5329_v1 = vor.u32 %v4502_v60, %v4180_v61  ;;  %v4501_v35 = vld [vmem:[#allocation10 + $0x94] sm:$0xf0] }
  0x4a   :  { %7370 = vst [vmem:[#allocation54_spill] sm:$0xff] %v5295_v31  ;;  %4089 = vmatmul.msk.bf16.vlgmr.msrb.gmra.mxu1 %vm529_vm7, %v508_v19  ;;  %4090 = vmatmul.msk.bf16.vlgmr.msrb.gmra.mxu3 %vm529_vm7, %v508_v19  ;;  %v5331_v12 = vor.u32 %v4505_v6, %v4186_v63  ;;  %v4499_v20 = vld [vmem:[#allocation10 + $0x8c] sm:$0xf]  ;;  %v4172_v32 = vld [vmem:[#allocation10 + $0x98] sm:$0xf0]  ;;  %v5340_v18 = vor.u32 %v4501_v35, %v4170_v58 }
  0x4b   :  { %7371 = vst [vmem:[#allocation55_spill] sm:$0xff] %v5299_v11  ;;  %903 = vmatpush.bf16.msrb.mxu2 %v5314_v23  ;;  %916 = vmatpush.bf16.msrb.mxu3 %v5317_v5  ;;  %v5342_v41 = vor.u32 %v4499_v20, %v4172_v32  ;;  %v4210_v2 = vld [vmem:[#allocation10 + $0xe0] sm:$0xf]  ;;  %v4512_v29 = vld [vmem:[#allocation10 + $0xec] sm:$0xf0] }
  0x4c   :  { %7372 = vst [vmem:[#allocation56_spill] sm:$0xff] %v5301_v45  ;;  %v4494_v33 = vld [vmem:[#allocation10 + $0x64] sm:$0xf]  ;;  %v4148_v24 = vld [vmem:[#allocation10 + $0x70] sm:$0xf0] }
  0x4d   :  { %7373 = vst [vmem:[#allocation57_spill] sm:$0xff] %v5311_v22  ;;  %890 = vmatpush.bf16.msra.mxu1 %v5329_v1  ;;  %v4154_v60 = vld [vmem:[#allocation10 + $0x68] sm:$0xf]  ;;  %v5350_v61 = vor.u32 %v4494_v33, %v4148_v24  ;;  %v4497_v63 = vld [vmem:[#allocation10 + $0x74] sm:$0xf0] }
  0x4e   :  { %7374 = vst [vmem:[#allocation58_spill] sm:$0xff] %v5314_v23  ;;  %v4495_v6 = vld [vmem:[#allocation10 + $0x6c] sm:$0xf]  ;;  %v4156_v42 = vld [vmem:[#allocation10 + $0x78] sm:$0xf0]  ;;  %v5352_v43 = vor.u32 %v4497_v63, %v4154_v60 }
  0x4f   :  { %7375 = vst [vmem:[#allocation59_spill] sm:$0xff] %v5317_v5  ;;  %917 = vmatpush.bf16.msrb.mxu3 %v5325_v50  ;;  %904 = vmatpush.bf16.msrb.mxu2 %v5331_v12  ;;  %v5354_v10 = vor.u32 %v4495_v6, %v4156_v42  ;;  %v4194_v44 = vld [vmem:[#allocation10 + $0xc0] sm:$0xf]  ;;  %v4508_v58 = vld [vmem:[#allocation10 + $0xcc] sm:$0xf0] }
  0x50   :  { %7376 = vst [vmem:[#allocation60_spill] sm:$0xff] %v5325_v50  ;;  %v5357_v35 = vor.u32 %v4508_v58, %v4194_v44  ;;  %v4490_v20 = vld [vmem:[#allocation10 + $0x44] sm:$0xf]  ;;  %v4132_v32 = vld [vmem:[#allocation10 + $0x50] sm:$0xf0] }
  0x51   :  { %7377 = vst [vmem:[#allocation61_spill] sm:$0xff] %v5329_v1  ;;  %891 = vmatpush.bf16.msra.mxu1 %v5338_v9  ;;  %v4493_v33 = vld [vmem:[#allocation10 + $0x54] sm:$0xf0]  ;;  %v4491_v24 = vld [vmem:[#allocation10 + $0x4c] sm:$0xf] }
  0x52   :  { %7378 = vst [vmem:[#allocation62_spill] sm:$0xff] %v5331_v12  ;;  %v4140_v60 = vld [vmem:[#allocation10 + $0x58] sm:$0xf0]  ;;  %v4178_v42 = vld [vmem:[#allocation10 + $0xa0] sm:$0xf] }
  0x53   :  { %7379 = vst [vmem:[#allocation63_spill] sm:$0xff] %v5333_v7  ;;  %918 = vmatpush.bf16.msrb.mxu3 %v5333_v7  ;;  %905 = vmatpush.bf16.msrb.mxu2 %v5340_v18  ;;  %v5366_v6 = vor.u32 %v4491_v24, %v4140_v60  ;;  %v4504_v44 = vld [vmem:[#allocation10 + $0xac] sm:$0xf0]  ;;  %v4487_v60 = vld [vmem:[#allocation10 + $0x2c] sm:$0xf] }
  0x54   :  { %7380 = vst [vmem:[#allocation64_spill] sm:$0xff] %v5338_v9  ;;  %v5369_v58 = vor.u32 %v4504_v44, %v4178_v42  ;;  %v4162_v12 = vld [vmem:[#allocation10 + $0x80] sm:$0xf]  ;;  %v4500_v44 = vld [vmem:[#allocation10 + $0x8c] sm:$0xf0] }
  0x55   :  { %7381 = vst [vmem:[#allocation65_spill] sm:$0xff] %v5340_v18  ;;  %892 = vmatpush.bf16.msra.mxu1 %v5350_v61  ;;  %v4124_v18 = vld [vmem:[#allocation10 + $0x38] sm:$0xf0]  ;;  %v4482_v23 = vld [vmem:[#allocation10 + $0x4] sm:$0xf] }
  0x56   :  { %7382 = vst [vmem:[#allocation66_spill] sm:$0xff] %v5342_v41  ;;  %v5379_v42 = vor.u32 %v4487_v60, %v4124_v18  ;;  %v4100_v45 = vld [vmem:[#allocation10 + $0x10] sm:$0xf0]  ;;  %v4146_v60 = vld [vmem:[#allocation10 + $0x60] sm:$0xf] }
  0x57   :  { %919 = vmatpush.bf16.msrb.mxu3 %v5342_v41  ;;  %7384 = vst [vmem:[#allocation68_spill] sm:$0xff] %v5350_v61  ;;  %906 = vmatpush.bf16.msrb.mxu2 %v5352_v43  ;;  %v4340_v41 = vld [vmem:[#allocation9 + $0xf0] sm:$0xf0]  ;;  %v4348_v7 = vld [vmem:[#allocation9 + $0xf8] sm:$0xf0] }
  0x58   :  { %7385 = vst [vmem:[#allocation69_spill] sm:$0xff] %v5352_v43  ;;  %v4486_v43 = vld [vmem:[#allocation10 + $0x24] sm:$0xf]  ;;  %v4338_v50 = vld [vmem:[#allocation9 + $0xe0] sm:$0xf] }
  0x59   :  { %7386 = vst [vmem:[#allocation70_spill] sm:$0xff] %v5354_v10  ;;  %v4252_v1 = vld [vmem:[#allocation9 + $0x38] sm:$0xf0]  ;;  %v4451_v22 = vld [vmem:[#allocation9 + $0xc] sm:$0xf] }
  0x5a   :  { %4091 = vmatmul.msk.bf16.vlgmr.msra.gmra.mxu3 %vm529_vm7, %v508_v19  ;;  %v5345_v19 = vor.u32 %v4512_v29, %v4210_v2  ;;  %7387 = vst [vmem:[#allocation71_spill] sm:$0xff] %v5357_v35  ;;  %v4138_v2 = vld [vmem:[#allocation10 + $0x48] sm:$0xf]  ;;  %v5362_v29 = vor.u32 %v4490_v20, %v4132_v32  ;;  %v4116_v20 = vld [vmem:[#allocation10 + $0x30] sm:$0xf0] }
  0x5b   :  { %920 = vmatpush.bf16.msrb.mxu3 %v5354_v10  ;;  %v5364_v63 = vor.u32 %v4493_v33, %v4138_v2  ;;  %7390 = vst [vmem:[#allocation74_spill] sm:$0xff] %v5366_v6  ;;  %v5374_v32 = vor.u32 %v4486_v43, %v4116_v20  ;;  %v4122_v2 = vld [vmem:[#allocation10 + $0x28] sm:$0xf]  ;;  %v4489_v33 = vld [vmem:[#allocation10 + $0x34] sm:$0xf0]  ;;  %v5385_v20 = vor.u32 %v4482_v23, %v4100_v45 }
  0x5c   :  { %7383 = vst [vmem:[#allocation67_spill] sm:$0xff] %v5345_v19  ;;  %874 = vmatpush.bf16.msra.mxu0 %v5345_v19  ;;  %893 = vmatpush.bf16.msra.mxu1 %v5362_v29  ;;  %v5376_v24 = vor.u32 %v4489_v33, %v4122_v2  ;;  %v4106_v43 = vld [vmem:[#allocation10 + $0x8] sm:$0xf]  ;;  %v4485_v2 = vld [vmem:[#allocation10 + $0x14] sm:$0xf0] }
  0x5d   :  { %7388 = vst [vmem:[#allocation72_spill] sm:$0xff] %v5362_v29  ;;  %907 = vmatpush.bf16.msrb.mxu2 %v5364_v63  ;;  %v4483_v33 = vld [vmem:[#allocation10 + $0xc] sm:$0xf]  ;;  %v5388_v10 = vor.u32 %v4485_v2, %v4106_v43  ;;  %v4481_v23 = vld [vmem:[#allocation9 + $0xf4] sm:$0xf0] }
  0x5e   :  { %7389 = vst [vmem:[#allocation73_spill] sm:$0xff] %v5364_v63  ;;  %v5382_v63 = vor.u32 %v4500_v44, %v4162_v12  ;;  %v4478_v12 = vld [vmem:[#allocation9 + $0xe4] sm:$0xf]  ;;  %v4130_v2 = vld [vmem:[#allocation10 + $0x40] sm:$0xf] }
  0x5f   :  { %7391 = vst [vmem:[#allocation75_spill] sm:$0xff] %v5369_v58  ;;  %921 = vmatpush.bf16.msrb.mxu3 %v5366_v6  ;;  %v4108_v6 = vld [vmem:[#allocation10 + $0x18] sm:$0xf0]  ;;  %v5396_v45 = vor.u32 %v4478_v12, %v4340_v41  ;;  %v4324_v41 = vld [vmem:[#allocation9 + $0xd0] sm:$0xf0] }
  0x60   :  { %875 = vmatpush.bf16.msra.mxu0 %v5357_v35  ;;  %7392 = vst [vmem:[#allocation76_spill] sm:$0xff] %v5374_v32  ;;  %894 = vmatpush.bf16.msra.mxu1 %v5374_v32  ;;  %v5390_v18 = vor.u32 %v4483_v33, %v4108_v6  ;;  %v4479_v32 = vld [vmem:[#allocation9 + $0xec] sm:$0xf]  ;;  %v4492_v33 = vld [vmem:[#allocation10 + $0x4c] sm:$0xf0] }
  0x61   :  { %7393 = vst [vmem:[#allocation77_spill] sm:$0xff] %v5376_v24  ;;  %908 = vmatpush.bf16.msrb.mxu2 %v5376_v24  ;;  %v4496_v24 = vld [vmem:[#allocation10 + $0x6c] sm:$0xf0]  ;;  %v5401_v43 = vor.u32 %v4479_v32, %v4348_v7  ;;  %v4477_v12 = vld [vmem:[#allocation9 + $0xd4] sm:$0xf0] }
  0x62   :  { %7394 = vst [vmem:[#allocation78_spill] sm:$0xff] %v5379_v42  ;;  %v5393_v44 = vor.u32 %v4496_v24, %v4146_v60  ;;  %v5405_v24 = vor.u32 %v4492_v33, %v4130_v2  ;;  %v4330_v60 = vld [vmem:[#allocation9 + $0xc8] sm:$0xf]  ;;  %v4475_v32 = vld [vmem:[#allocation9 + $0xcc] sm:$0xf] }
  0x63   :  { %7395 = vst [vmem:[#allocation79_spill] sm:$0xff] %v5382_v63  ;;  %922 = vmatpush.bf16.msrb.mxu3 %v5379_v42  ;;  %v4346_v42 = vld [vmem:[#allocation9 + $0xe8] sm:$0xf]  ;;  %v5411_v7 = vor.u32 %v4477_v12, %v4330_v60  ;;  %v4488_v29 = vld [vmem:[#allocation10 + $0x2c] sm:$0xf0] }
  0x64   :  { %876 = vmatpush.bf16.msra.mxu0 %v5369_v58  ;;  %7396 = vst [vmem:[#allocation80_spill] sm:$0xff] %v5385_v20  ;;  %895 = vmatpush.bf16.msra.mxu1 %v5385_v20  ;;  %v5399_v6 = vor.u32 %v4481_v23, %v4346_v42  ;;  %v4474_v20 = vld [vmem:[#allocation9 + $0xc4] sm:$0xf]  ;;  %v4332_v23 = vld [vmem:[#allocation9 + $0xd8] sm:$0xf0] }
  0x65   :  { %7397 = vst [vmem:[#allocation81_spill] sm:$0xff] %v5388_v10  ;;  %909 = vmatpush.bf16.msrb.mxu2 %v5388_v10  ;;  %v5409_v42 = vor.u32 %v4474_v20, %v4324_v41  ;;  %v5413_v10 = vor.u32 %v4475_v32, %v4332_v23  ;;  %v4308_v33 = vld [vmem:[#allocation9 + $0xb0] sm:$0xf0]  ;;  %v4471_v12 = vld [vmem:[#allocation9 + $0xac] sm:$0xf] }
  0x66   :  { %7398 = vst [vmem:[#allocation82_spill] sm:$0xff] %v5390_v18  ;;  %v4316_v32 = vld [vmem:[#allocation9 + $0xb8] sm:$0xf0] }
  0x67   :  { %7399 = vst [vmem:[#allocation83_spill] sm:$0xff] %v5393_v44  ;;  %923 = vmatpush.bf16.msrb.mxu3 %v5390_v18  ;;  %v4114_v18 = vld [vmem:[#allocation10 + $0x20] sm:$0xf]  ;;  %v4236_v35 = vld [vmem:[#allocation9 + $0x18] sm:$0xf0] }
  0x68   :  { %877 = vmatpush.bf16.msra.mxu0 %v5382_v63  ;;  %7400 = vst [vmem:[#allocation84_spill] sm:$0xff] %v5396_v45  ;;  %1104 = vmatpush.bf16.msrb.mxu1 %v5396_v45  ;;  %v4470_v45 = vld [vmem:[#allocation9 + $0xa4] sm:$0xf]  ;;  %v5417_v2 = vor.u32 %v4488_v29, %v4114_v18  ;;  %v4098_v29 = vld [vmem:[#allocation10] sm:$0xf] }
  0x69   :  { %7401 = vst [vmem:[#allocation85_spill] sm:$0xff] %v5399_v6  ;;  %1118 = vmatpush.bf16.msra.mxu2 %v5399_v6  ;;  %v4314_v6 = vld [vmem:[#allocation9 + $0xa8] sm:$0xf]  ;;  %v5423_v41 = vor.u32 %v4470_v45, %v4308_v33  ;;  %v4484_v18 = vld [vmem:[#allocation10 + $0xc] sm:$0xf0] }
  0x6a   :  { %7402 = vst [vmem:[#allocation86_spill] sm:$0xff] %v5401_v43  ;;  %v4298_v45 = vld [vmem:[#allocation9 + $0x88] sm:$0xf]  ;;  %v4469_v33 = vld [vmem:[#allocation9 + $0x94] sm:$0xf0] }
  0x6b   :  { %7403 = vst [vmem:[#allocation87_spill] sm:$0xff] %v5405_v24  ;;  %1132 = vmatpush.bf16.msra.mxu3 %v5401_v43  ;;  %v4473_v43 = vld [vmem:[#allocation9 + $0xb4] sm:$0xf0]  ;;  %v4455_v63 = vld [vmem:[#allocation9 + $0x2c] sm:$0xf] }
  0x6c   :  { %878 = vmatpush.bf16.msra.mxu0 %v5393_v44  ;;  %7404 = vst [vmem:[#allocation88_spill] sm:$0xff] %v5409_v42  ;;  %1105 = vmatpush.bf16.msrb.mxu1 %v5409_v42  ;;  %v5425_v60 = vor.u32 %v4473_v43, %v4314_v6  ;;  %v5429_v42 = vor.u32 %v4471_v12, %v4316_v32  ;;  %v4467_v12 = vld [vmem:[#allocation9 + $0x8c] sm:$0xf]  ;;  %v4300_v32 = vld [vmem:[#allocation9 + $0x98] sm:$0xf0] }
  0x6d   :  { %7405 = vst [vmem:[#allocation89_spill] sm:$0xff] %v5411_v7  ;;  %1119 = vmatpush.bf16.msra.mxu2 %v5411_v7  ;;  %v5433_v7 = vor.u32 %v4484_v18, %v4098_v29  ;;  %v5439_v43 = vor.u32 %v4469_v33, %v4298_v45  ;;  %v5441_v61 = vor.u32 %v4467_v12, %v4300_v32  ;;  %v4462_v29 = vld [vmem:[#allocation9 + $0x64] sm:$0xf]  ;;  %v4276_v18 = vld [vmem:[#allocation9 + $0x70] sm:$0xf0] }
  0x6e   :  { %7406 = vst [vmem:[#allocation90_spill] sm:$0xff] %v5413_v10  ;;  %v4282_v44 = vld [vmem:[#allocation9 + $0x68] sm:$0xf]  ;;  %v4463_v45 = vld [vmem:[#allocation9 + $0x6c] sm:$0xf] }
  0x6f   :  { %7407 = vst [vmem:[#allocation91_spill] sm:$0xff] %v5417_v2  ;;  %1133 = vmatpush.bf16.msra.mxu3 %v5413_v10  ;;  %v4292_v10 = vld [vmem:[#allocation9 + $0x90] sm:$0xf0]  ;;  %v4284_v33 = vld [vmem:[#allocation9 + $0x78] sm:$0xf0] }
  0x70   :  { %879 = vmatpush.bf16.msra.mxu0 %v5405_v24  ;;  %7408 = vst [vmem:[#allocation92_spill] sm:$0xff] %v5423_v41  ;;  %v4466_v24 = vld [vmem:[#allocation9 + $0x84] sm:$0xf]  ;;  %1106 = vmatpush.bf16.msrb.mxu1 %v5423_v41  ;;  %v4322_v12 = vld [vmem:[#allocation9 + $0xc0] sm:$0xf] }
  0x71   :  { %7409 = vst [vmem:[#allocation93_spill] sm:$0xff] %v5425_v60  ;;  %1120 = vmatpush.bf16.msra.mxu2 %v5425_v60  ;;  %v5437_v6 = vor.u32 %v4466_v24, %v4292_v10  ;;  %v5449_v10 = vor.u32 %v4462_v29, %v4276_v18  ;;  %v4465_v24 = vld [vmem:[#allocation9 + $0x74] sm:$0xf0]  ;;  %v4476_v32 = vld [vmem:[#allocation9 + $0xcc] sm:$0xf0] }
  0x72   :  { %7410 = vst [vmem:[#allocation94_spill] sm:$0xff] %v5429_v42  ;;  %v5462_v29 = vor.u32 %v4476_v32, %v4322_v12  ;;  %v4458_v18 = vld [vmem:[#allocation9 + $0x44] sm:$0xf]  ;;  %v4472_v12 = vld [vmem:[#allocation9 + $0xac] sm:$0xf0] }
  0x73   :  { %7411 = vst [vmem:[#allocation95_spill] sm:$0xff] %v5433_v7  ;;  %1134 = vmatpush.bf16.msra.mxu3 %v5429_v42  ;;  %v5474_v32 = vld [vmem:[%s7057_s3] sm:$0xf] }
  0x74   :  { %880 = vmatpush.bf16.msra.mxu0 %v5417_v2  ;;  %7412 = vst [vmem:[#allocation96_spill] sm:$0xff] %v5437_v6  ;;  %v4480_v2 = vld [vmem:[#allocation9 + $0xec] sm:$0xf0]  ;;  %1107 = vmatpush.bf16.msrb.mxu1 %v5437_v6  ;;  %v4260_v6 = vld [vmem:[#allocation9 + $0x50] sm:$0xf0]  ;;  %v5493_v58 = vperm.slane %v5474_v32, 0 }
  0x75   :  { %7413 = vst [vmem:[#allocation97_spill] sm:$0xff] %v5439_v43  ;;  %v5443_v41 = vor.u32 %v4480_v2, %v4338_v50  ;;  %1121 = vmatpush.bf16.msra.mxu2 %v5439_v43  ;;  %v5455_v50 = vor.u32 %v4465_v24, %v4282_v44  ;;  %v5457_v2 = vor.u32 %v4463_v45, %v4284_v33  ;;  %v4413_v43 = vld [vmem:[#allocation2 + $0x8] sm:$0xff]  ;;  %v4459_v24 = vld [vmem:[#allocation9 + $0x4c] sm:$0xf] }
  0x76   :  { %7414 = vst [vmem:[#allocation98_spill] sm:$0xff] %v5441_v61  ;;  %v5465_v9 = vor.u32 %v4458_v18, %v4260_v6  ;;  %v4461_v44 = vld [vmem:[#allocation9 + $0x54] sm:$0xf0]  ;;  %v4268_v33 = vld [vmem:[#allocation9 + $0x58] sm:$0xf0]  ;;  %896 = vmatmul.bf16.vlgmr.msra.gmra.mxu1 %v4413_v43  ;;  %910 = vmatmul.bf16.vlgmr.msrb.gmra.mxu2 %v4413_v43 }
  0x77   :  { %7415 = vst [vmem:[#allocation99_spill] sm:$0xff] %v5443_v41  ;;  %1135 = vmatpush.bf16.msra.mxu3 %v5441_v61  ;;  %v4306_v61 = vld [vmem:[#allocation9 + $0xa0] sm:$0xf]  ;;  %v5477_v6 = vor.u32 %v4459_v24, %v4268_v33  ;;  %v5490_v24 = vor.u32 %v4455_v63, %v4252_v1 }
  0x78   :  { %881 = vmatpush.bf16.msra.mxu0 %v5433_v7  ;;  %7416 = vst [vmem:[#allocation100_spill] sm:$0xff] %v5449_v10  ;;  %v4266_v7 = vld [vmem:[#allocation9 + $0x48] sm:$0xf]  ;;  %1108 = vmatpush.bf16.msrb.mxu1 %v5449_v10  ;;  %v5479_v18 = vor.u32 %v4472_v12, %v4306_v61  ;;  %v4290_v33 = vld [vmem:[#allocation9 + $0x80] sm:$0xf] }
  0x79   :  { %7417 = vst [vmem:[#allocation101_spill] sm:$0xff] %v5455_v50  ;;  %1122 = vmatpush.bf16.msra.mxu2 %v5455_v50  ;;  %v5469_v45 = vor.u32 %v4461_v44, %v4266_v7  ;;  %v4454_v50 = vld [vmem:[#allocation9 + $0x24] sm:$0xf]  ;;  %v4244_v7 = vld [vmem:[#allocation9 + $0x30] sm:$0xf0]  ;;  %924 = vmatmul.bf16.vlgmr.msrb.gmra.mxu3 %v4413_v43 }
  0x7a   :  { %7418 = vst [vmem:[#allocation102_spill] sm:$0xff] %v5457_v2  ;;  %v4250_v44 = vld [vmem:[#allocation9 + $0x28] sm:$0xf]  ;;  %v5484_v10 = vor.u32 %v4454_v50, %v4244_v7  ;;  %v4468_v12 = vld [vmem:[#allocation9 + $0x8c] sm:$0xf0]  ;;  %v5496_v7 = vperm.slane %v5474_v32, 1 }
  0x7b   :  { %7419 = vst [vmem:[#allocation103_spill] sm:$0xff] %v5462_v29  ;;  %1136 = vmatpush.bf16.msra.mxu3 %v5457_v2  ;;  %882 = vmatmul.bf16.vlgmr.msra.gmra.mxu0 %v4413_v43  ;;  %v5499_v43 = vor.u32 %v4468_v12, %v4290_v33  ;;  %v4464_v12 = vld [vmem:[#allocation9 + $0x6c] sm:$0xf0] }
  0x7c   :  { %1090 = vmatpush.bf16.msrb.mxu0 %v5443_v41  ;;  %7420 = vst [vmem:[#allocation104_spill] sm:$0xff] %v5465_v9  ;;  %1109 = vmatpush.bf16.msrb.mxu1 %v5465_v9  ;;  %v4457_v41 = vld [vmem:[#allocation9 + $0x34] sm:$0xf0] }
  0x7d   :  { %7421 = vst [vmem:[#allocation105_spill] sm:$0xff] %v5469_v45  ;;  %1123 = vmatpush.bf16.msra.mxu2 %v5469_v45  ;;  %v5488_v61 = vor.u32 %v4457_v41, %v4250_v44  ;;  %v4228_v41 = vld [vmem:[#allocation9 + $0x10] sm:$0xf0]  ;;  %v4234_v44 = vld [vmem:[#allocation9 + $0x8] sm:$0xf] }
  0x7e   :  { %7422 = vst [vmem:[#allocation106_spill] sm:$0xff] %v5477_v6  ;;  %v4453_v9 = vld [vmem:[#allocation9 + $0x14] sm:$0xf0] }
  0x7f   :  { %7423 = vst [vmem:[#allocation107_spill] sm:$0xff] %v5479_v18  ;;  %1137 = vmatpush.bf16.msra.mxu3 %v5477_v6  ;;  %v4450_v6 = vld [vmem:[#allocation9 + $0x4] sm:$0xf]  ;;  %v5508_v33 = vor.u32 %v4453_v9, %v4234_v44 }
  0x80   :  { %1091 = vmatpush.bf16.msrb.mxu0 %v5462_v29  ;;  %7424 = vst [vmem:[#allocation108_spill] sm:$0xff] %v5484_v10  ;;  %1110 = vmatpush.bf16.msrb.mxu1 %v5484_v10  ;;  %v5504_v63 = vor.u32 %v4450_v6, %v4228_v41  ;;  %v4460_v10 = vld [vmem:[#allocation9 + $0x4c] sm:$0xf0] }
  0x81   :  { %7425 = vst [vmem:[#allocation109_spill] sm:$0xff] %v5488_v61  ;;  %1124 = vmatpush.bf16.msra.mxu2 %v5488_v61  ;;  %v4258_v61 = vld [vmem:[#allocation9 + $0x40] sm:$0xf] }
  0x82   :  { %7426 = vst [vmem:[#allocation110_spill] sm:$0xff] %v5490_v24 }
  0x83   :  { %7427 = vst [vmem:[#allocation111_spill] sm:$0xff] %v5493_v58  ;;  %1138 = vmatpush.bf16.msra.mxu3 %v5490_v24 }
  0x84   :  { %7428 = vst [vmem:[#allocation112_spill] sm:$0xff] %v5496_v7  ;;  %1092 = vmatpush.bf16.msrb.mxu0 %v5479_v18  ;;  %1111 = vmatpush.bf16.msrb.mxu1 %v5504_v63 }
  0x85   :  { %7429 = vst [vmem:[#allocation113_spill] sm:$0xff] %v5499_v43  ;;  %1125 = vmatpush.bf16.msra.mxu2 %v5508_v33 }
  0x86   :  { %7430 = vst [vmem:[#allocation114_spill] sm:$0xff] %v5504_v63 }
  0x87   :  { %7431 = vst [vmem:[#allocation115_spill] sm:$0xff] %v5508_v33  ;;  %v4456_v33 = vld [vmem:[#allocation9 + $0x2c] sm:$0xf0] }
  0x88   :  { %1093 = vmatpush.bf16.msrb.mxu0 %v5499_v43  ;;  %1283 = vmatpush.bf16.msra.mxu1 %v5107_v4 }
  0x89   :  { %1297 = vmatpush.bf16.msrb.mxu2 %v5109_v8 }
  0x8c   :  { %1284 = vmatpush.bf16.msra.mxu1 %v5114_v13 }
  0x8d   :  { %1298 = vmatpush.bf16.msrb.mxu2 %v5118_v17 }
  0x90   :  { %1285 = vmatpush.bf16.msra.mxu1 %v5123_v25 }
  0x91   :  { %1299 = vmatpush.bf16.msrb.mxu2 %v5127_v28 }
  0x94   :  { %1286 = vmatpush.bf16.msra.mxu1 %v5134_v37 }
  0x95   :  { %1300 = vmatpush.bf16.msrb.mxu2 %v5138_v40 }
  0x98   :  { %1287 = vmatpush.bf16.msra.mxu1 %v5146_v52 }
  0x99   :  { %1301 = vmatpush.bf16.msrb.mxu2 %v5150_v57 }
  0x9c   :  { %1288 = vmatpush.bf16.msra.mxu1 %v5158_v15 }
  0x9d   :  { %1302 = vmatpush.bf16.msrb.mxu2 %v5168_v21 }
  0xa0   :  { %1289 = vmatpush.bf16.msra.mxu1 %v5172_v27 }
  0xa1   :  { %1303 = vmatpush.bf16.msrb.mxu2 %v5180_v34 }
  0xa4   :  { %1290 = vmatpush.bf16.msra.mxu1 %v5184_v38 }
  0xa5   :  { %1304 = vmatpush.bf16.msrb.mxu2 %v5186_v39 }
  0xb4   :  { %v5419_v20 = vpop.f32.mrf.mxu0 }
  0xb5   :  { %v5427_v23 = vpop.f32.mrf.mxu1 }
  0xbc   :  { %v5445_v5 = vpop.f32.mrf.mxu3  ;;  %v5451_v60 = vpop.f32.mrf.mxu0 }
  0xbd   :  { %v5459_v42 = vpop.f32.mrf.mxu1 }
  0xc4   :  { %v5481_v2 = vpop.f32.mrf.mxu3 }
  0xc5   :  { %v390_v3 = vpop.f32.mrf.mxu2 }
  0xc6   :  { %v542_v29 = vpop.f32.mrf.mxu0 }
  0xc7   :  { %v556_v50 = vpop.f32.mrf.mxu1  ;;  %v543_v45 = vadd.f32 %v542_v29, %v5419_v20  ;;  %v5510_v20 = vor.u32 %v4451_v22, %v4236_v35  ;;  %v4274_v29 = vld [vmem:[#allocation9 + $0x60] sm:$0xf]  ;;  %v5523_v35 = vor.u32 %v4460_v10, %v4258_v61 }
  0xc8   :  { %v557_v1 = vadd.f32 %v556_v50, %v5427_v23  ;;  %v5513_v23 = vor.u32 %v4464_v12, %v4274_v29  ;;  %v4242_v12 = vld [vmem:[#allocation9 + $0x20] sm:$0xf] }
  0xc9   :  { %7432 = vst [vmem:[#allocation116_spill] sm:$0xff] %v5510_v20  ;;  %v599_v6 = vadd.f32 %v5493_v58, %v543_v45  ;;  %1139 = vmatpush.bf16.msra.mxu3 %v5510_v20  ;;  %v5532_v10 = vor.u32 %v4456_v33, %v4242_v12 }
  0xca   :  { %7433 = vst [vmem:[#allocation117_spill] sm:$0xff] %v5513_v23  ;;  %v600_v50 = vadd.f32 %v5496_v7, %v557_v1  ;;  %1094 = vmatpush.bf16.msrb.mxu0 %v5513_v23 }
  0xcb   :  { %7434 = vst [vmem:[#allocation118_spill] sm:$0xff] %v5523_v35  ;;  %v607_v45 = vmul.f32 0.5, %v599_v6 }
  0xcc   :  { %v615_v1 = vmul.f32 0.5, %v600_v50  ;;  %7435 = vst [vmem:[#allocation119_spill] sm:$0xff] %v5532_v10  ;;  %v4226_v50 = vld [vmem:[#allocation9] sm:$0xf] }
  0xcd   :  { %v570_v41 = vpop.f32.mrf.mxu3  ;;  %1311 = vmatpush.bf16.msrb.mxu3 %v5131_v36  ;;  %4549 = vtanh.f32 %v607_v45  ;;  %v392_v61 = vpop.f32.mrf.mxu2 }
  0xce   :  { %v544_v24 = vpop.f32.mrf.mxu0  ;;  %1095 = vmatpush.bf16.msrb.mxu0 %v5523_v35  ;;  %4551 = vtanh.f32 %v615_v1 }
  0xcf   :  { %v545_v22 = vadd.f32 %v544_v24, %v5451_v60  ;;  %v558_v9 = vpop.f32.mrf.mxu1 }
  0xd0   :  { %v559_v44 = vadd.f32 %v558_v9, %v5459_v42  ;;  %v571_v9 = vadd.f32 %v570_v41, %v390_v3 }
  0xd1   :  { %v603_v29 = vadd.f32 %v5493_v58, %v545_v22  ;;  %1312 = vmatpush.bf16.msrb.mxu3 %v5143_v48  ;;  %v4452_v22 = vld [vmem:[#allocation9 + $0xc] sm:$0xf0] }
  0xd2   :  { %v604_v60 = vadd.f32 %v5496_v7, %v559_v44  ;;  %v5537_v44 = vperm.slane %v5474_v32, 2  ;;  %1096 = vmatpush.bf16.msrb.mxu0 %v5532_v10  ;;  %v5541_v33 = vor.u32 %v4452_v22, %v4226_v50 }
  0xd3   :  { %v608_v24 = vmul.f32 0.5, %v603_v29  ;;  %v4550_v45 = vpop.eup %4549 }
  0xd4   :  { %v616_v42 = vmul.f32 0.5, %v604_v60  ;;  %7436 = vst [vmem:[#allocation120_spill] sm:$0xff] %v5537_v44  ;;  %v601_v1 = vadd.f32 %v5537_v44, %v571_v9  ;;  %v4552_v3 = vpop.eup %4551  ;;  %v5550_v60 = vperm.slane %v5474_v32, 3 }
  0xd5   :  { %v572_v6 = vpop.f32.mrf.mxu3  ;;  %4553 = vtanh.f32 %v608_v24  ;;  %7437 = vst [vmem:[#allocation121_spill] sm:$0xff] %v5541_v33  ;;  %1313 = vmatpush.bf16.msrb.mxu3 %v5155_v0  ;;  %v619_v50 = vadd.f32 1.0, %v4552_v3 }
  0xd6   :  { %4555 = vtanh.f32 %v616_v42  ;;  %v573_v29 = vadd.f32 %v572_v6, %v392_v61  ;;  %1097 = vmatpush.bf16.msrb.mxu0 %v5541_v33  ;;  %7438 = vst [vmem:[#allocation122_spill] sm:$0xff] %v5550_v60  ;;  %v611_v6 = vadd.f32 1.0, %v4550_v45 }
  0xd7   :  { %4557 = vtanh.f32 %v601_v1  ;;  %v621_v58 = vmul.f32 0.5, %v619_v50 }
  0xd8   :  { %v605_v41 = vadd.f32 %v5537_v44, %v573_v29  ;;  %v613_v44 = vmul.f32 0.5, %v611_v6 }
  0xd9   :  { %1314 = vmatpush.bf16.msrb.mxu3 %v5175_v30 }
  0xda   :  { %4559 = vtanh.f32 %v605_v41 }
  0xdb   :  { %v4554_v12 = vpop.eup %4553 }
  0xdc   :  { %v4556_v24 = vpop.eup %4555  ;;  %v612_v22 = vadd.f32 1.0, %v4554_v12 }
  0xdd   :  { %v584_v42 = vpop.f32.mrf.mxu3  ;;  %v620_v9 = vadd.f32 1.0, %v4556_v24  ;;  %1315 = vmatpush.bf16.msrb.mxu3 %v5202_v47  ;;  %v4558_v1 = vpop.eup %4557  ;;  %v633_v24 = vmul.f32 0.0, %v621_v58 }
  0xde   :  { %v585_v61 = vadd.f32 %v584_v42, %v5445_v5  ;;  %v614_v5 = vmul.f32 0.5, %v612_v22  ;;  %v635_v42 = vmul.f32 %v4558_v1, %v613_v44 }
  0xdf   :  { %v622_v45 = vmul.f32 0.5, %v620_v9 }
  0xe0   :  { %v602_v29 = vadd.f32 %v5550_v60, %v585_v61  ;;  %v4560_v3 = vpop.eup %4559  ;;  %v5567_v9 = vadd.f32 %v635_v42, %v633_v24  ;;  %v1339_v42 = vrot.slane %v5236_v26, 1  ;;  %v7444_v26 = vld [vmem:[#allocation51_spill] sm:$0xff] }
  0xe1   :  { %1316 = vmatpush.bf16.msrb.mxu3 %v5204_v49  ;;  %v634_v61 = vmul.f32 0.0, %v622_v45  ;;  %v636_v6 = vmul.f32 %v4560_v3, %v614_v5 }
  0xe2   :  { %v625_v32 = vmul.f32 0.5, %v602_v29 }
  0xe4   :  { %4561 = vtanh.f32 %v625_v32  ;;  %v5570_v32 = vadd.f32 %v636_v6, %v634_v61  ;;  %v1353_v61 = vrot.slane %v5248_v51, 1  ;;  %v1341_v6 = vrot.slane %v5230_v16, 7 }
  0xe5   :  { %v586_v41 = vpop.f32.mrf.mxu3  ;;  %1317 = vmatpush.bf16.msrb.mxu3 %v5208_v54 }
  0xe6   :  { %v587_v12 = vadd.f32 %v586_v41, %v5481_v2 }
  0xe8   :  { %v606_v50 = vadd.f32 %v5550_v60, %v587_v12 }
  0xe9   :  { %1318 = vmatpush.bf16.msrb.mxu3 %v5215_v62 }
  0xea   :  { %v626_v22 = vmul.f32 0.5, %v606_v50  ;;  %v4562_v29 = vpop.eup %4561  ;;  %v1355_v50 = vrot.slane %v5252_v59, 7 }
  0xeb   :  { %v629_v58 = vadd.f32 1.0, %v4562_v29  ;;  %v1354_v29 = vsel %vm474_vm0, %v5250_v53, %v1353_v61  ;;  %v1361_v61 = vrot.slane %v7444_v26, 4  ;;  %v7449_v26 = vld [vmem:[#allocation71_spill] sm:$0xff] }
  0xec   :  { %4563 = vtanh.f32 %v626_v22  ;;  %v1340_v22 = vsel %vm474_vm0, %v5228_v14, %v1339_v42  ;;  %v7443_v42 = vld [vmem:[#allocation43_spill] sm:$0xff] }
  0xed   :  { %4565 = vtanh.f32 %v5567_v9  ;;  %v631_v44 = vmul.f32 0.5, %v629_v58  ;;  %v7439_v58 = vld [vmem:[#allocation40_spill] sm:$0xff]  ;;  %v1347_v14 = vrot.slane %v7443_v42, 4 }
  0xee   :  { %4567 = vtanh.f32 %v5570_v32 }
  0xf2   :  { %v4564_v2 = vpop.eup %4563 }
  0xf3   :  { %v630_v1 = vadd.f32 1.0, %v4564_v2  ;;  %v4566_v5 = vpop.eup %4565  ;;  %v1343_v2 = vrot.slane %v7439_v58, 6 }
  0xf4   :  { %v4568_v3 = vpop.eup %4567  ;;  %v641_v41 = vmul.f32 %v4566_v5, %v631_v44  ;;  %v7440_v44 = vld [vmem:[#allocation49_spill] sm:$0xff]  ;;  %v1342_v5 = vsel %vm477_vm1, %v1341_v6, %v1340_v22 }
  0xf5   :  { %v632_v45 = vmul.f32 0.5, %v630_v1  ;;  %v1357_v1 = vrot.slane %v7440_v44, 6  ;;  %v1344_v59 = vsel %vm480_vm2, %v1343_v2, %v1342_v5 }
  0xf7   :  { %v642_v12 = vmul.f32 %v4568_v3, %v632_v45  ;;  %v1356_v45 = vsel %vm477_vm1, %v1355_v50, %v1354_v29  ;;  %v7441_v3 = vld [vmem:[#allocation42_spill] sm:$0xff]  ;;  %v7445_v50 = vld [vmem:[#allocation44_spill] sm:$0xff] }
  0xf8   :  { %v1358_v51 = vsel %vm480_vm2, %v1357_v1, %v1356_v45  ;;  %v1349_v22 = vrot.slane %v7445_v50, 3  ;;  %v7446_v29 = vld [vmem:[#allocation52_spill] sm:$0xff] }
  0xf9   :  { %v5576_v24 = vpack.c.bf16 %v642_v12, %v641_v41  ;;  %v1345_v41 = vrot.slane %v7441_v3, 5  ;;  %v7442_v12 = vld [vmem:[#allocation50_spill] sm:$0xff]  ;;  %v1363_v2 = vrot.slane %v7446_v29, 3  ;;  %v7450_v29 = vld [vmem:[#allocation57_spill] sm:$0xff] }
  0xfa   :  { %v1359_v16 = vrot.slane %v7442_v12, 5  ;;  %v7495_v12 = vld [vmem:[#allocation28_spill] sm:$0xff] }
  0xfb   :  { %1098 = vmatmul.bf16.vlgmr.msrb.gmra.mxu0 %v5576_v24  ;;  %1112 = vmatmul.bf16.vlgmr.msrb.gmra.mxu1 %v5576_v24  ;;  %v1346_v44 = vsel %vm483_vm3, %v1345_v41, %v1344_v59  ;;  %v7447_v59 = vld [vmem:[#allocation45_spill] sm:$0xff] }
  0xfc   :  { %1126 = vmatmul.bf16.vlgmr.msra.gmra.mxu2 %v5576_v24  ;;  %1140 = vmatmul.bf16.vlgmr.msra.gmra.mxu3 %v5576_v24  ;;  %v1360_v6 = vsel %vm483_vm3, %v1359_v16, %v1358_v51  ;;  %v1348_v1 = vsel %vm486_vm4, %v1347_v14, %v1346_v44  ;;  %v1351_v16 = vrot.slane %v7447_v59, 2  ;;  %v7448_v51 = vld [vmem:[#allocation53_spill] sm:$0xff]  ;;  %v7451_v44 = vld [vmem:[#allocation75_spill] sm:$0xff] }
  0xfd   :  { %1378 = vmatpush.bf16.msrb.mxu1 %v5210_v55  ;;  %1392 = vmatpush.bf16.msra.mxu2 %v5212_v56  ;;  %v1362_v5 = vsel %vm486_vm4, %v1361_v61, %v1360_v6  ;;  %v1365_v45 = vrot.slane %v7448_v51, 2  ;;  %v1350_v41 = vsel %vm489_vm5, %v1349_v22, %v1348_v1  ;;  %v7452_v61 = vld [vmem:[#allocation61_spill] sm:$0xff]  ;;  %v7453_v59 = vld [vmem:[#allocation79_spill] sm:$0xff]  ;;  %v7454_v51 = vld [vmem:[#allocation64_spill] sm:$0xff] }
  0xfe   :  { %1406 = vmatpush.bf16.msra.mxu3 %v5200_v46  ;;  %v1364_v50 = vsel %vm489_vm5, %v1363_v2, %v1362_v5  ;;  %v7455_v22 = vld [vmem:[#allocation59_spill] sm:$0xff]  ;;  %v7458_v1 = vld [vmem:[#allocation60_spill] sm:$0xff] }
  0xff   :  { %v1366_v14 = vsel %vm492_vm6, %v1365_v45, %v1364_v50  ;;  %v7456_v2 = vld [vmem:[#allocation83_spill] sm:$0xff]  ;;  %v7457_v50 = vld [vmem:[#allocation68_spill] sm:$0xff] }
 0x100   :  { %v7459_v5 = vld [vmem:[#allocation87_spill] sm:$0xff] }
 0x101   :  { %v7462_v45 = vld [vmem:[#allocation91_spill] sm:$0xff] }
 0x10b   :  { %1291 = vmatmul.bf16.vlgmr.msra.gmra.mxu1 %v5576_v24 }
 0x10c   :  { %1305 = vmatmul.bf16.vlgmr.msrb.gmra.mxu2 %v5576_v24  ;;  %1319 = vmatmul.bf16.vlgmr.msrb.gmra.mxu3 %v5576_v24 }
 0x10d   :  { %1420 = vmatpush.bf16.msra.mxu1 %v5295_v31  ;;  %1472 = vmatpush.bf16.msrb.mxu2 %v5345_v19  ;;  %v1352_v19 = vsel %vm492_vm6, %v1351_v16, %v1350_v41  ;;  %v7461_v16 = vld [vmem:[#allocation63_spill] sm:$0xff]  ;;  %v7463_v41 = vld [vmem:[#allocation76_spill] sm:$0xff] }
 0x10e   :  { %1486 = vmatpush.bf16.msrb.mxu3 %v5299_v11  ;;  %v1367_v6 = vpack.c.b16 %v1366_v14, %v1352_v19  ;;  %v7460_v19 = vld [vmem:[#allocation72_spill] sm:$0xff] }
 0x10f   :  { %v5642_v14 = vld [vmem:[%s7061_s7 + $0x38] sm:$0xff] }
 0x110   :  { %1269 = vmatpush.bf16.msra.mxu0 %v5642_v14 }
 0x111   :  { %1473 = vmatpush.bf16.msrb.mxu2 %v7449_v26 }
 0x112   :  { %1487 = vmatpush.bf16.msrb.mxu3 %v7450_v29 }
 0x115   :  { %1474 = vmatpush.bf16.msrb.mxu2 %v7451_v44 }
 0x116   :  { %1488 = vmatpush.bf16.msrb.mxu3 %v7452_v61 }
 0x119   :  { %1475 = vmatpush.bf16.msrb.mxu2 %v7453_v59 }
 0x11a   :  { %1489 = vmatpush.bf16.msrb.mxu3 %v7454_v51  ;;  %v7492_v51 = vld [vmem:[#allocation26_spill] sm:$0xff] }
 0x11b   :  { %4384 = vmatmul.msk.bf16.vlgmr.msrb.gmra.mxu1 %vm529_vm7, %v1367_v6 }
 0x11c   :  { %4385 = vmatmul.msk.bf16.vlgmr.msra.gmra.mxu2 %vm529_vm7, %v1367_v6  ;;  %4386 = vmatmul.msk.bf16.vlgmr.msra.gmra.mxu3 %vm529_vm7, %v1367_v6 }
 0x11d   :  { %1514 = vmatpush.bf16.msrb.mxu1 %v7455_v22  ;;  %1476 = vmatpush.bf16.msrb.mxu2 %v7456_v2  ;;  %v7464_v2 = vld [vmem:[#allocation66_spill] sm:$0xff]  ;;  %v1146_v22 = vld [vmem:[%s7060_s6] sm:$0xf] }
 0x11e   :  { %1490 = vmatpush.bf16.msrb.mxu3 %v7457_v50  ;;  %v7465_v50 = vld [vmem:[#allocation95_spill] sm:$0xff]  ;;  %v5727_v44 = vperm.slane %v1146_v22, 0  ;;  %v5729_v29 = vperm.slane %v1146_v22, 1 }
 0x120   :  { %7493 = vst [vmem:[#allocation124_spill] sm:$0xff] %v5727_v44 }
 0x121   :  { %1515 = vmatpush.bf16.msrb.mxu1 %v7458_v1  ;;  %1477 = vmatpush.bf16.msrb.mxu2 %v7459_v5  ;;  %v7466_v1 = vld [vmem:[#allocation80_spill] sm:$0xff]  ;;  %v7467_v5 = vld [vmem:[#allocation99_spill] sm:$0xff]  ;;  %7494 = vst [vmem:[#allocation125_spill] sm:$0xff] %v5729_v29 }
 0x122   :  { %1491 = vmatpush.bf16.msrb.mxu3 %v7460_v19  ;;  %v7479_v19 = vld [vmem:[#allocation90_spill] sm:$0xff] }
 0x125   :  { %1516 = vmatpush.bf16.msrb.mxu1 %v7461_v16  ;;  %1478 = vmatpush.bf16.msrb.mxu2 %v7462_v45  ;;  %v5652_v45 = vld [vmem:[%s7061_s7 + $0x30] sm:$0xff]  ;;  %v7469_v16 = vld [vmem:[#allocation70_spill] sm:$0xff] }
 0x126   :  { %1492 = vmatpush.bf16.msrb.mxu3 %v7463_v41  ;;  %v7468_v41 = vld [vmem:[#allocation84_spill] sm:$0xff]  ;;  %1270 = vmatpush.bf16.msra.mxu0 %v5652_v45 }
 0x129   :  { %1517 = vmatpush.bf16.msrb.mxu1 %v7464_v2  ;;  %1479 = vmatpush.bf16.msrb.mxu2 %v7465_v50  ;;  %v7470_v2 = vld [vmem:[#allocation103_spill] sm:$0xff]  ;;  %v7472_v50 = vld [vmem:[#allocation74_spill] sm:$0xff] }
 0x12a   :  { %1493 = vmatpush.bf16.msrb.mxu3 %v7466_v1  ;;  %v7471_v1 = vld [vmem:[#allocation88_spill] sm:$0xff] }
 0x12b   :  { %4387 = vmatmul.msk.bf16.vlgmr.msra.gmra.mxu1 %vm529_vm7, %v1367_v6  ;;  %v5671_v6 = vld [vmem:[%s7061_s7 + $0x20] sm:$0xff] }
 0x12d   :  { %1528 = vmatpush.bf16.msra.mxu2 %v7467_v5  ;;  %1518 = vmatpush.bf16.msrb.mxu1 %v7469_v16  ;;  %v5662_v5 = vld [vmem:[%s7061_s7 + $0x28] sm:$0xff] }
 0x12e   :  { %1542 = vmatpush.bf16.msra.mxu3 %v7468_v41  ;;  %1271 = vmatpush.bf16.msra.mxu0 %v5662_v5  ;;  %v7474_v16 = vld [vmem:[#allocation78_spill] sm:$0xff]  ;;  %v7478_v41 = vld [vmem:[#allocation100_spill] sm:$0xff] }
 0x131   :  { %1529 = vmatpush.bf16.msra.mxu2 %v7470_v2  ;;  %1519 = vmatpush.bf16.msrb.mxu1 %v7472_v50  ;;  %v7473_v2 = vld [vmem:[#allocation92_spill] sm:$0xff]  ;;  %v7476_v50 = vld [vmem:[#allocation82_spill] sm:$0xff] }
 0x132   :  { %1543 = vmatpush.bf16.msra.mxu3 %v7471_v1  ;;  %1272 = vmatpush.bf16.msra.mxu0 %v5671_v6  ;;  %v7475_v1 = vld [vmem:[#allocation96_spill] sm:$0xff] }
 0x135   :  { %1530 = vmatpush.bf16.msra.mxu2 %v5479_v18  ;;  %1520 = vmatpush.bf16.msrb.mxu1 %v7474_v16  ;;  %v7477_v18 = vld [vmem:[#allocation86_spill] sm:$0xff] }
 0x136   :  { %1544 = vmatpush.bf16.msra.mxu3 %v7473_v2  ;;  %v7480_v2 = vld [vmem:[#allocation104_spill] sm:$0xff]  ;;  %v7481_v16 = vld [vmem:[#allocation94_spill] sm:$0xff] }
 0x139   :  { %1531 = vmatpush.bf16.msra.mxu2 %v5499_v43  ;;  %1521 = vmatpush.bf16.msrb.mxu1 %v7476_v50  ;;  %v7482_v43 = vld [vmem:[#allocation108_spill] sm:$0xff] }
 0x13a   :  { %1545 = vmatpush.bf16.msra.mxu3 %v7475_v1  ;;  %v7483_v1 = vld [vmem:[#allocation98_spill] sm:$0xff]  ;;  %v7491_v50 = vld [vmem:[#allocation24_spill] sm:$0xff] }
 0x13d   :  { %1570 = vmatpush.bf16.msra.mxu1 %v7477_v18  ;;  %1532 = vmatpush.bf16.msra.mxu2 %v5513_v23  ;;  %v7484_v23 = vld [vmem:[#allocation102_spill] sm:$0xff] }
 0x13e   :  { %1546 = vmatpush.bf16.msra.mxu3 %v7478_v41  ;;  %v7485_v41 = vld [vmem:[#allocation106_spill] sm:$0xff] }
 0x141   :  { %1571 = vmatpush.bf16.msra.mxu1 %v7479_v19  ;;  %1533 = vmatpush.bf16.msra.mxu2 %v5523_v35  ;;  %v7486_v19 = vld [vmem:[#allocation110_spill] sm:$0xff] }
 0x142   :  { %1547 = vmatpush.bf16.msra.mxu3 %v7480_v2  ;;  %v7490_v2 = vld [vmem:[#allocation22_spill] sm:$0xff] }
 0x145   :  { %1572 = vmatpush.bf16.msra.mxu1 %v7481_v16  ;;  %1534 = vmatpush.bf16.msra.mxu2 %v5532_v10  ;;  %v5698_v10 = vld [vmem:[%s7061_s7 + $0x18] sm:$0xff]  ;;  %v925_v16 = vpop.f32.mrf.mxu3 }
 0x146   :  { %1548 = vmatpush.bf16.msra.mxu3 %v7482_v43  ;;  %1273 = vmatpush.bf16.msra.mxu0 %v5698_v10  ;;  %v911_v43 = vpop.f32.mrf.mxu2 }
 0x149   :  { %1573 = vmatpush.bf16.msra.mxu1 %v7483_v1  ;;  %1535 = vmatpush.bf16.msra.mxu2 %v5541_v33  ;;  %v5704_v33 = vld [vmem:[%s7061_s7 + $0x10] sm:$0xff]  ;;  %v7489_v1 = vld [vmem:[#allocation20_spill] sm:$0xff] }
 0x14a   :  { %1549 = vmatpush.bf16.msra.mxu3 %v5504_v63  ;;  %1274 = vmatpush.bf16.msra.mxu0 %v5704_v33  ;;  %v7488_v63 = vld [vmem:[#allocation18_spill] sm:$0xff] }
 0x14d   :  { %1574 = vmatpush.bf16.msra.mxu1 %v7484_v23  ;;  %v897_v23 = vpop.f32.mrf.mxu1  ;;  %v927_v61 = vpop.f32.mrf.mxu3 }
 0x14e   :  { %v913_v59 = vpop.f32.mrf.mxu2 }
 0x151   :  { %1575 = vmatpush.bf16.msra.mxu1 %v7485_v41  ;;  %v883_v41 = vpop.f32.mrf.mxu0 }
 0x155   :  { %1576 = vmatpush.bf16.msra.mxu1 %v7486_v19  ;;  %v5710_v19 = vld [vmem:[%s7061_s7 + $0x8] sm:$0xff]  ;;  %v899_v18 = vpop.f32.mrf.mxu1 }
 0x156   :  { %1275 = vmatpush.bf16.msra.mxu0 %v5710_v19 }
 0x159   :  { %1577 = vmatpush.bf16.msra.mxu1 %v5510_v20  ;;  %v5716_v20 = vld [vmem:[%s7061_s7] sm:$0xff]  ;;  %v885_v35 = vpop.f32.mrf.mxu0 }
 0x15a   :  { %7487 = vst [vmem:[#allocation123_spill] sm:$0xff] %v5716_v20  ;;  %1276 = vmatpush.bf16.msra.mxu0 %v5716_v20 }
 0x15e   :  { %1325 = vmatpush.bf16.msrb.mxu0 %v7488_v63 }
 0x162   :  { %1326 = vmatpush.bf16.msrb.mxu0 %v7489_v1  ;;  %v5734_v1 = vperm.slane %v1146_v22, 2 }
 0x166   :  { %1327 = vmatpush.bf16.msrb.mxu0 %v7490_v2 }
 0x16a   :  { %1328 = vmatpush.bf16.msrb.mxu0 %v7491_v50 }
 0x16e   :  { %1329 = vmatpush.bf16.msrb.mxu0 %v7492_v51  ;;  %v7496_v51 = vld [vmem:[#allocation30_spill] sm:$0xff] }
 0x172   :  { %1330 = vmatpush.bf16.msrb.mxu0 %v7495_v12  ;;  %v5738_v12 = vperm.slane %v1146_v22, 3 }
 0x176   :  { %1331 = vmatpush.bf16.msrb.mxu0 %v7496_v51 }
 0x178   :  { %v1099_v26 = vpop.f32.mrf.mxu0  ;;  %v1113_v11 = vpop.f32.mrf.mxu1 }
 0x179   :  { %v1100_v31 = vadd.f32 %v1099_v26, %v883_v41  ;;  %v1114_v42 = vadd.f32 %v1113_v11, %v897_v23 }
 0x17b   :  { %v1156_v50 = vadd.f32 %v5727_v44, %v1100_v31  ;;  %v1157_v3 = vadd.f32 %v5729_v29, %v1114_v42  ;;  %v7497_v42 = vld [vmem:[#allocation33_spill] sm:$0xff] }
 0x17c   :  { %1332 = vmatpush.bf16.msrb.mxu0 %v7497_v42 }
 0x17d   :  { %v1164_v2 = vmul.f32 0.5, %v1156_v50  ;;  %v1172_v58 = vmul.f32 0.5, %v1157_v3 }
 0x17f   :  { %4569 = vtanh.f32 %v1164_v2  ;;  %v1127_v63 = vpop.f32.mrf.mxu2  ;;  %v1141_v53 = vpop.f32.mrf.mxu3 }
 0x180   :  { %4571 = vtanh.f32 %v1172_v58  ;;  %v1128_v46 = vadd.f32 %v1127_v63, %v911_v43  ;;  %v1101_v56 = vpop.f32.mrf.mxu0  ;;  %v1115_v26 = vpop.f32.mrf.mxu1  ;;  %v1142_v31 = vadd.f32 %v1141_v53, %v925_v16 }
 0x181   :  { %v1102_v11 = vadd.f32 %v1101_v56, %v885_v35  ;;  %v1116_v23 = vadd.f32 %v1115_v26, %v899_v18 }
 0x182   :  { %v1158_v41 = vadd.f32 %v5734_v1, %v1128_v46  ;;  %v1159_v56 = vadd.f32 %v5738_v12, %v1142_v31 }
 0x183   :  { %v1160_v3 = vadd.f32 %v5727_v44, %v1102_v11  ;;  %v1161_v50 = vadd.f32 %v5729_v29, %v1116_v23 }
 0x184   :  { %4573 = vtanh.f32 %v1158_v41  ;;  %v1182_v44 = vmul.f32 0.5, %v1159_v56 }
 0x185   :  { %v4570_v2 = vpop.eup %4569  ;;  %v1165_v51 = vmul.f32 0.5, %v1160_v3  ;;  %v1173_v58 = vmul.f32 0.5, %v1161_v50 }
 0x186   :  { %v4572_v43 = vpop.eup %4571  ;;  %v1168_v63 = vadd.f32 1.0, %v4570_v2 }
 0x187   :  { %v1176_v18 = vadd.f32 1.0, %v4572_v43  ;;  %4575 = vtanh.f32 %v1165_v51  ;;  %v1129_v46 = vpop.f32.mrf.mxu2  ;;  %v1143_v53 = vpop.f32.mrf.mxu3 }
 0x188   :  { %4577 = vtanh.f32 %v1173_v58  ;;  %v1130_v35 = vadd.f32 %v1129_v46, %v913_v59  ;;  %v1144_v22 = vadd.f32 %v1143_v53, %v927_v61  ;;  %v1170_v16 = vmul.f32 0.5, %v1168_v63 }
 0x189   :  { %v1178_v26 = vmul.f32 0.5, %v1176_v18 }
 0x18a   :  { %v4574_v11 = vpop.eup %4573  ;;  %v1162_v23 = vadd.f32 %v5734_v1, %v1130_v35  ;;  %v1163_v41 = vadd.f32 %v5738_v12, %v1144_v22 }
 0x18b   :  { %v1190_v2 = vmul.f32 0.0, %v1178_v26  ;;  %v1192_v31 = vmul.f32 %v4574_v11, %v1170_v16 }
 0x18c   :  { %4579 = vtanh.f32 %v1162_v23  ;;  %v1183_v3 = vmul.f32 0.5, %v1163_v41 }
 0x18d   :  { %v4576_v50 = vpop.eup %4575  ;;  %4581 = vtanh.f32 %v1182_v44  ;;  %v5746_v61 = vadd.f32 %v1192_v31, %v1190_v2  ;;  %v7499_v2 = vld [vmem:[#allocation58_spill] sm:$0xff] }
 0x18e   :  { %v4578_v43 = vpop.eup %4577  ;;  %v1169_v51 = vadd.f32 1.0, %v4576_v50  ;;  %4583 = vtanh.f32 %v1183_v3  ;;  %v7498_v50 = vld [vmem:[#allocation56_spill] sm:$0xff]  ;;  %v7500_v31 = vld [vmem:[#allocation62_spill] sm:$0xff] }
 0x18f   :  { %v1177_v29 = vadd.f32 1.0, %v4578_v43  ;;  %4585 = vtanh.f32 %v5746_v61  ;;  %v7501_v43 = vld [vmem:[#allocation65_spill] sm:$0xff] }
 0x190   :  { %v1171_v59 = vmul.f32 0.5, %v1169_v51  ;;  %v7502_v51 = vld [vmem:[#allocation69_spill] sm:$0xff] }
 0x191   :  { %v1179_v58 = vmul.f32 0.5, %v1177_v29 }
 0x192   :  { %v4580_v63 = vpop.eup %4579 }
 0x193   :  { %v1191_v56 = vmul.f32 0.0, %v1179_v58  ;;  %v1193_v18 = vmul.f32 %v4580_v63, %v1171_v59  ;;  %v4582_v46 = vpop.eup %4581  ;;  %v7503_v59 = vld [vmem:[#allocation73_spill] sm:$0xff] }
 0x194   :  { %v4584_v53 = vpop.eup %4583  ;;  %v1186_v22 = vadd.f32 1.0, %v4582_v46  ;;  %v7504_v58 = vld [vmem:[#allocation77_spill] sm:$0xff] }
 0x195   :  { %v5749_v35 = vadd.f32 %v1193_v18, %v1191_v56  ;;  %v1187_v44 = vadd.f32 1.0, %v4584_v53  ;;  %v4586_v16 = vpop.eup %4585  ;;  %v7506_v63 = vld [vmem:[#allocation85_spill] sm:$0xff] }
 0x196   :  { %v1188_v26 = vmul.f32 0.5, %v1186_v22  ;;  %v7507_v56 = vld [vmem:[#allocation89_spill] sm:$0xff] }
 0x197   :  { %4587 = vtanh.f32 %v5749_v35  ;;  %v1189_v11 = vmul.f32 0.5, %v1187_v44  ;;  %v7508_v18 = vld [vmem:[#allocation93_spill] sm:$0xff] }
 0x198   :  { %v1198_v41 = vmul.f32 %v4586_v16, %v1188_v26  ;;  %v7509_v46 = vld [vmem:[#allocation97_spill] sm:$0xff]  ;;  %v7513_v16 = vld [vmem:[#allocation115_spill] sm:$0xff]  ;;  %v1306_v26 = vpop.f32.mrf.mxu2 }
 0x199   :  { %v7510_v53 = vld [vmem:[#allocation101_spill] sm:$0xff] }
 0x19a   :  { %v7511_v22 = vld [vmem:[#allocation105_spill] sm:$0xff] }
 0x19b   :  { %v7512_v44 = vld [vmem:[#allocation109_spill] sm:$0xff] }
 0x19d   :  { %v4588_v23 = vpop.eup %4587 }
 0x19e   :  { %v1199_v3 = vmul.f32 %v4588_v23, %v1189_v11  ;;  %v1292_v11 = vpop.f32.mrf.mxu1 }
 0x1a0   :  { %v1200_v29 = vpack.c.bf16 %v1199_v3, %v1198_v41  ;;  %v1308_v23 = vpop.f32.mrf.mxu2  ;;  %v1320_v3 = vpop.f32.mrf.mxu3 }
 0x1a2   :  { %1277 = vmatmul.bf16.vlgmr.msra.gmra.mxu0 %v1200_v29  ;;  %1480 = vmatmul.bf16.vlgmr.msrb.gmra.mxu2 %v1200_v29 }
 0x1a3   :  { %1494 = vmatmul.bf16.vlgmr.msrb.gmra.mxu3 %v1200_v29  ;;  %1522 = vmatmul.bf16.vlgmr.msrb.gmra.mxu1 %v1200_v29 }
 0x1a4   :  { %1500 = vmatpush.bf16.msra.mxu0 %v7498_v50  ;;  %1643 = vmatpush.bf16.msrb.mxu3 %v5107_v4 }
 0x1a5   :  { %1671 = vmatpush.bf16.msrb.mxu1 %v5131_v36  ;;  %1629 = vmatpush.bf16.msrb.mxu2 %v5642_v14 }
 0x1a6   :  { %v1294_v41 = vpop.f32.mrf.mxu1 }
 0x1a8   :  { %1501 = vmatpush.bf16.msra.mxu0 %v7499_v2  ;;  %1644 = vmatpush.bf16.msrb.mxu3 %v5114_v13 }
 0x1a9   :  { %1672 = vmatpush.bf16.msrb.mxu1 %v5143_v48  ;;  %1630 = vmatpush.bf16.msrb.mxu2 %v5652_v45 }
 0x1ac   :  { %1502 = vmatpush.bf16.msra.mxu0 %v7500_v31  ;;  %1645 = vmatpush.bf16.msrb.mxu3 %v5123_v25 }
 0x1ad   :  { %1673 = vmatpush.bf16.msrb.mxu1 %v5155_v0  ;;  %1631 = vmatpush.bf16.msrb.mxu2 %v5662_v5 }
 0x1b0   :  { %1503 = vmatpush.bf16.msra.mxu0 %v7501_v43  ;;  %1646 = vmatpush.bf16.msrb.mxu3 %v5134_v37 }
 0x1b1   :  { %1674 = vmatpush.bf16.msrb.mxu1 %v5175_v30  ;;  %1632 = vmatpush.bf16.msrb.mxu2 %v5671_v6 }
 0x1b2   :  { %1333 = vmatmul.bf16.vlgmr.msrb.gmra.mxu0 %v5576_v24  ;;  %v7505_v24 = vld [vmem:[#allocation81_spill] sm:$0xff] }
 0x1b4   :  { %1504 = vmatpush.bf16.msra.mxu0 %v7502_v51  ;;  %1647 = vmatpush.bf16.msrb.mxu3 %v5146_v52 }
 0x1b5   :  { %1675 = vmatpush.bf16.msrb.mxu1 %v5202_v47  ;;  %1633 = vmatpush.bf16.msrb.mxu2 %v5698_v10 }
 0x1b8   :  { %1505 = vmatpush.bf16.msra.mxu0 %v7503_v59  ;;  %1648 = vmatpush.bf16.msrb.mxu3 %v5158_v15 }
 0x1b9   :  { %1676 = vmatpush.bf16.msrb.mxu1 %v5204_v49  ;;  %1634 = vmatpush.bf16.msrb.mxu2 %v5704_v33 }
 0x1bc   :  { %1506 = vmatpush.bf16.msra.mxu0 %v7504_v58  ;;  %1649 = vmatpush.bf16.msrb.mxu3 %v5172_v27 }
 0x1bd   :  { %1677 = vmatpush.bf16.msrb.mxu1 %v5208_v54  ;;  %1635 = vmatpush.bf16.msrb.mxu2 %v5710_v19 }
 0x1c0   :  { %1507 = vmatpush.bf16.msra.mxu0 %v7505_v24  ;;  %1650 = vmatpush.bf16.msrb.mxu3 %v5184_v38 }
 0x1c1   :  { %1678 = vmatpush.bf16.msrb.mxu1 %v5215_v62  ;;  %1636 = vmatpush.bf16.msrb.mxu2 %v5716_v20 }
 0x1c3   :  { %1508 = vmatmul.bf16.vlgmr.msra.gmra.mxu0 %v1200_v29  ;;  %v1394_v29 = vpop.f32.mrf.mxu2 }
 0x1c4   :  { %1556 = vmatpush.bf16.msrb.mxu0 %v7506_v63 }
 0x1c8   :  { %1557 = vmatpush.bf16.msrb.mxu0 %v7507_v56 }
 0x1cc   :  { %1558 = vmatpush.bf16.msrb.mxu0 %v7508_v18 }
 0x1d0   :  { %1559 = vmatpush.bf16.msrb.mxu0 %v7509_v46  ;;  %v7515_v46 = vld [vmem:[#allocation111_spill] sm:$0xff] }
 0x1d4   :  { %1560 = vmatpush.bf16.msrb.mxu0 %v7510_v53 }
 0x1d8   :  { %1561 = vmatpush.bf16.msrb.mxu0 %v7511_v22 }
 0x1dc   :  { %1562 = vmatpush.bf16.msrb.mxu0 %v7512_v44 }
 0x1e0   :  { %1563 = vmatpush.bf16.msrb.mxu0 %v7513_v16  ;;  %v1396_v16 = vpop.f32.mrf.mxu2 }
 0x1e4   :  { %1657 = vmatpush.bf16.msra.mxu0 %v5109_v8  ;;  %v1380_v8 = vpop.f32.mrf.mxu1 }
 0x1e5   :  { %v1381_v22 = vadd.f32 %v1380_v8, %v1292_v11 }
 0x1e7   :  { %v1427_v18 = vadd.f32 %v1381_v22, %v7515_v46 }
 0x1e8   :  { %1658 = vmatpush.bf16.msra.mxu0 %v5118_v17  ;;  %v1322_v17 = vpop.f32.mrf.mxu3 }
 0x1e9   :  { %v1435_v63 = vmul.f32 0.5, %v1427_v18 }
 0x1ec   :  { %1659 = vmatpush.bf16.msra.mxu0 %v5127_v28  ;;  %v1395_v28 = vadd.f32 %v1394_v29, %v1306_v26  ;;  %v1382_v44 = vpop.f32.mrf.mxu1 }
 0x1ed   :  { %v1383_v53 = vadd.f32 %v1382_v44, %v1294_v41 }
 0x1ef   :  { %v1431_v56 = vadd.f32 %v1383_v53, %v7515_v46 }
 0x1f0   :  { %1660 = vmatpush.bf16.msra.mxu0 %v5138_v40  ;;  %v1397_v40 = vadd.f32 %v1396_v16, %v1308_v23 }
 0x1f1   :  { %v1436_v38 = vmul.f32 0.5, %v1431_v56 }
 0x1f4   :  { %1661 = vmatpush.bf16.msra.mxu0 %v5150_v57  ;;  %v1408_v57 = vpop.f32.mrf.mxu3 }
 0x1f5   :  { %v1409_v44 = vadd.f32 %v1408_v57, %v1320_v3 }
 0x1f8   :  { %1662 = vmatpush.bf16.msra.mxu0 %v5168_v21 }
 0x1fc   :  { %1663 = vmatpush.bf16.msra.mxu0 %v5180_v34  ;;  %v1428_v34 = vadd.f32 %v1395_v28, %v5496_v7  ;;  %v1410_v8 = vpop.f32.mrf.mxu3  ;;  %v1422_v28 = vpop.f32.mrf.mxu1 }
 0x1fd   :  { %v1411_v16 = vadd.f32 %v1410_v8, %v1322_v17 }
 0x1fe   :  { %v1443_v20 = vmul.f32 0.5, %v1428_v34 }
 0x200   :  { %1664 = vmatpush.bf16.msra.mxu0 %v5186_v39  ;;  %v1432_v39 = vadd.f32 %v1397_v40, %v5496_v7  ;;  %4589 = vtanh.f32 %v1443_v20  ;;  %v7517_v40 = vld [vmem:[#allocation120_spill] sm:$0xff] }
 0x201   :  { %v1429_v23 = vadd.f32 %v1409_v44, %v7517_v40  ;;  %v1433_v53 = vadd.f32 %v1411_v16, %v7517_v40 }
 0x202   :  { %v1444_v62 = vmul.f32 0.5, %v1432_v39 }
 0x204   :  { %4591 = vtanh.f32 %v1444_v62  ;;  %v1424_v8 = vpop.f32.mrf.mxu1 }
 0x205   :  { %4593 = vtanh.f32 %v1435_v63 }
 0x206   :  { %4595 = vtanh.f32 %v1436_v38  ;;  %v4590_v11 = vpop.eup %4589 }
 0x207   :  { %v1447_v41 = vadd.f32 1.0, %v4590_v11  ;;  %4597 = vtanh.f32 %v1429_v23 }
 0x208   :  { %4599 = vtanh.f32 %v1433_v53 }
 0x209   :  { %v1449_v38 = vmul.f32 0.5, %v1447_v41 }
 0x20a   :  { %v4592_v22 = vpop.eup %4591 }
 0x20b   :  { %v4594_v39 = vpop.eup %4593  ;;  %v1448_v20 = vadd.f32 1.0, %v4592_v22  ;;  %v1461_v11 = vmul.f32 %v1449_v38, %v5567_v9 }
 0x20c   :  { %v4596_v56 = vpop.eup %4595  ;;  %v1439_v63 = vadd.f32 1.0, %v4594_v39 }
 0x20d   :  { %v1440_v57 = vadd.f32 1.0, %v4596_v56  ;;  %v1450_v3 = vmul.f32 0.5, %v1448_v20 }
 0x20e   :  { %v1441_v29 = vmul.f32 0.5, %v1439_v63 }
 0x20f   :  { %v1442_v16 = vmul.f32 0.5, %v1440_v57  ;;  %v1462_v23 = vmul.f32 %v1450_v3, %v5570_v32  ;;  %v7520_v3 = vld [vmem:[#allocation36_spill] sm:$0xff] }
 0x21f   :  { %v5801_v21 = vpop.f32.mrf.mxu0 }
 0x220   :  { %7514 = vst [vmem:[#allocation56_spill] sm:$0xff] %v5801_v21 }
 0x227   :  { %v5807_v26 = vpop.f32.mrf.mxu0 }
 0x228   :  { %7516 = vst [vmem:[#allocation58_spill] sm:$0xff] %v5807_v26  ;;  %v4598_v26 = vpop.eup %4597 }
 0x22f   :  { %v1334_v34 = vpop.f32.mrf.mxu0 }
 0x230   :  { %v1423_v18 = vadd.f32 %v1422_v28, %v1334_v34  ;;  %v4600_v28 = vpop.eup %4599  ;;  %v1463_v34 = vmul.f32 %v4598_v26, %v1441_v29  ;;  %v7521_v29 = vld [vmem:[#allocation34_spill] sm:$0xff] }
 0x231   :  { %v1464_v53 = vmul.f32 %v4600_v28, %v1442_v16  ;;  %v7523_v16 = vld [vmem:[#allocation38_spill] sm:$0xff] }
 0x232   :  { %v1430_v62 = vadd.f32 %v1423_v18, %v5550_v60  ;;  %v5815_v18 = vadd.f32 %v1463_v34, %v1461_v11  ;;  %v1700_v28 = vrot.slane %v7523_v16, 1  ;;  %v7524_v11 = vld [vmem:[#allocation46_spill] sm:$0xff] }
 0x233   :  { %v5817_v41 = vadd.f32 %v1464_v53, %v1462_v23  ;;  %v1713_v23 = vrot.slane %v7524_v11, 2  ;;  %v7526_v53 = vld [vmem:[#allocation18_spill] sm:$0xff] }
 0x234   :  { %v1453_v17 = vmul.f32 0.5, %v1430_v62  ;;  %7518 = vst [vmem:[#allocation62_spill] sm:$0xff] %v5815_v18  ;;  %v7532_v11 = vld [vmem:[#allocation22_spill] sm:$0xff] }
 0x235   :  { %7519 = vst [vmem:[#allocation65_spill] sm:$0xff] %v5817_v41  ;;  %v7534_v16 = vld [vmem:[#allocation50_spill] sm:$0xff] }
 0x236   :  { %4601 = vtanh.f32 %v1453_v17 }
 0x237   :  { %v1336_v44 = vpop.f32.mrf.mxu0 }
 0x238   :  { %v1425_v21 = vadd.f32 %v1424_v8, %v1336_v44  ;;  %v7522_v8 = vld [vmem:[#allocation41_spill] sm:$0xff] }
 0x239   :  { %v1699_v44 = vrot.slane %v7522_v8, 2  ;;  %v7537_v8 = vld [vmem:[#allocation24_spill] sm:$0xff] }
 0x23a   :  { %v1434_v22 = vadd.f32 %v1425_v21, %v5550_v60 }
 0x23c   :  { %v1454_v39 = vmul.f32 0.5, %v1434_v22  ;;  %v4602_v56 = vpop.eup %4601  ;;  %v7525_v22 = vld [vmem:[#allocation47_spill] sm:$0xff] }
 0x23d   :  { %v1457_v20 = vadd.f32 1.0, %v4602_v56  ;;  %v1714_v34 = vrot.slane %v7525_v22, 1  ;;  %v7533_v22 = vld [vmem:[#allocation42_spill] sm:$0xff] }
 0x23e   :  { %4603 = vtanh.f32 %v1454_v39  ;;  %v1701_v39 = vsel %vm474_vm0, %v1700_v28, %v1699_v44  ;;  %v1719_v44 = vrot.slane %v7534_v16, 6  ;;  %v7538_v16 = vld [vmem:[#allocation44_spill] sm:$0xff] }
 0x23f   :  { %4605 = vtanh.f32 %v5815_v18  ;;  %v1459_v9 = vmul.f32 0.5, %v1457_v20  ;;  %v1715_v56 = vsel %vm474_vm0, %v1714_v34, %v1713_v23  ;;  %v7527_v20 = vld [vmem:[#allocation20_spill] sm:$0xff]  ;;  %v7535_v34 = vld [vmem:[#allocation43_spill] sm:$0xff] }
 0x240   :  { %4607 = vtanh.f32 %v5817_v41 }
 0x244   :  { %v4604_v62 = vpop.eup %4603 }
 0x245   :  { %v1458_v63 = vadd.f32 1.0, %v4604_v62  ;;  %v4606_v32 = vpop.eup %4605  ;;  %v7528_v62 = vld [vmem:[#allocation40_spill] sm:$0xff] }
 0x246   :  { %v4608_v21 = vpop.eup %4607  ;;  %v1469_v26 = vmul.f32 %v4606_v32, %v1459_v9  ;;  %v1703_v9 = vrot.slane %v7528_v62, 7  ;;  %v1707_v62 = vrot.slane %v7535_v34, 5  ;;  %v7541_v34 = vld [vmem:[#allocation67_spill] sm:$0xff] }
 0x247   :  { %v1460_v57 = vmul.f32 0.5, %v1458_v63  ;;  %v7529_v63 = vld [vmem:[#allocation49_spill] sm:$0xff] }
 0x248   :  { %v1717_v32 = vrot.slane %v7529_v63, 7 }
 0x249   :  { %v1470_v17 = vmul.f32 %v4608_v21, %v1460_v57  ;;  %v7530_v57 = vld [vmem:[#allocation39_spill] sm:$0xff] }
 0x24a   :  { %v1702_v21 = vsel %vm477_vm1, %v7530_v57, %v1701_v39 }
 0x24b   :  { %v5821_v38 = vpack.c.bf16 %v1470_v17, %v1469_v26  ;;  %v7531_v26 = vld [vmem:[#allocation48_spill] sm:$0xff]  ;;  %v1704_v28 = vsel %vm480_vm2, %v1703_v9, %v1702_v21  ;;  %v1709_v9 = vrot.slane %v7538_v16, 4 }
 0x24c   :  { %v1716_v17 = vsel %vm477_vm1, %v7531_v26, %v1715_v56  ;;  %v7539_v21 = vld [vmem:[#allocation52_spill] sm:$0xff]  ;;  %v7546_v26 = vld [vmem:[#allocation71_spill] sm:$0xff] }
 0x24d   :  { %1536 = vmatmul.bf16.vlgmr.msra.gmra.mxu2 %v5821_v38  ;;  %1550 = vmatmul.bf16.vlgmr.msra.gmra.mxu3 %v5821_v38  ;;  %v1718_v23 = vsel %vm480_vm2, %v1717_v32, %v1716_v17  ;;  %v1723_v32 = vrot.slane %v7539_v21, 4  ;;  %v7540_v17 = vld [vmem:[#allocation54_spill] sm:$0xff] }
 0x24e   :  { %1564 = vmatmul.bf16.vlgmr.msrb.gmra.mxu0 %v5821_v38  ;;  %1578 = vmatmul.bf16.vlgmr.msra.gmra.mxu1 %v5821_v38  ;;  %v1720_v56 = vsel %vm483_vm3, %v1719_v44, %v1718_v23  ;;  %v7544_v44 = vld [vmem:[#allocation45_spill] sm:$0xff] }
 0x24f   :  { %1738 = vmatpush.bf16.msra.mxu3 %v5210_v55  ;;  %1752 = vmatpush.bf16.msrb.mxu0 %v7520_v3  ;;  %v7545_v23 = vld [vmem:[#allocation53_spill] sm:$0xff] }
 0x250   :  { %1766 = vmatpush.bf16.msra.mxu1 %v7521_v29  ;;  %1685 = vmatpush.bf16.msra.mxu2 %v7526_v53  ;;  %v1705_v53 = vrot.slane %v7533_v22, 6  ;;  %v7542_v22 = vld [vmem:[#allocation55_spill] sm:$0xff] }
 0x252   :  { %v1706_v39 = vsel %vm483_vm3, %v1705_v53, %v1704_v28  ;;  %v7543_v53 = vld [vmem:[#allocation26_spill] sm:$0xff]  ;;  %v1711_v28 = vrot.slane %v7544_v44, 3 }
 0x253   :  { %v7551_v44 = vld [vmem:[#allocation30_spill] sm:$0xff] }
 0x254   :  { %1686 = vmatpush.bf16.msra.mxu2 %v7527_v20  ;;  %v7536_v20 = vld [vmem:[#allocation51_spill] sm:$0xff] }
 0x255   :  { %v1721_v63 = vrot.slane %v7536_v20, 5 }
 0x257   :  { %v1722_v20 = vsel %vm486_vm4, %v1721_v63, %v1720_v56  ;;  %v7550_v56 = vld [vmem:[#allocation61_spill] sm:$0xff] }
 0x258   :  { %1687 = vmatpush.bf16.msra.mxu2 %v7532_v11  ;;  %v1725_v11 = vrot.slane %v7545_v23, 3  ;;  %v1724_v21 = vsel %vm489_vm5, %v1723_v32, %v1722_v20  ;;  %v7553_v20 = vld [vmem:[#allocation64_spill] sm:$0xff]  ;;  %v7558_v32 = vld [vmem:[#allocation87_spill] sm:$0xff] }
 0x25a   :  { %v1726_v63 = vsel %vm492_vm6, %v1725_v11, %v1724_v21  ;;  %v7555_v11 = vld [vmem:[#allocation83_spill] sm:$0xff]  ;;  %v7557_v21 = vld [vmem:[#allocation60_spill] sm:$0xff] }
 0x25c   :  { %1688 = vmatpush.bf16.msra.mxu2 %v7537_v8  ;;  %v1708_v8 = vsel %vm486_vm4, %v1707_v62, %v1706_v39  ;;  %v7549_v39 = vld [vmem:[#allocation75_spill] sm:$0xff] }
 0x25d   :  { %1651 = vmatmul.bf16.vlgmr.msrb.gmra.mxu3 %v5821_v38  ;;  %v1710_v16 = vsel %vm489_vm5, %v1709_v9, %v1708_v8  ;;  %v7552_v8 = vld [vmem:[#allocation79_spill] sm:$0xff]  ;;  %v7556_v9 = vld [vmem:[#allocation68_spill] sm:$0xff] }
 0x25e   :  { %1665 = vmatmul.bf16.vlgmr.msra.gmra.mxu0 %v5821_v38  ;;  %1679 = vmatmul.bf16.vlgmr.msrb.gmra.mxu1 %v5821_v38  ;;  %v1712_v62 = vsel %vm492_vm6, %v1711_v28, %v1710_v16  ;;  %v7554_v16 = vld [vmem:[#allocation59_spill] sm:$0xff]  ;;  %v7559_v28 = vld [vmem:[#allocation72_spill] sm:$0xff] }
 0x25f   :  { %1780 = vmatpush.bf16.msrb.mxu3 %v7540_v17  ;;  %1832 = vmatpush.bf16.msra.mxu0 %v7541_v34  ;;  %v7547_v17 = vld [vmem:[#allocation57_spill] sm:$0xff]  ;;  %v7548_v34 = vld [vmem:[#allocation28_spill] sm:$0xff]  ;;  %v1727_v23 = vpack.c.b16 %v1726_v63, %v1712_v62  ;;  %v7560_v62 = vld [vmem:[#allocation63_spill] sm:$0xff] }
 0x260   :  { %1846 = vmatpush.bf16.msrb.mxu1 %v7542_v22  ;;  %1689 = vmatpush.bf16.msra.mxu2 %v7543_v53  ;;  %v7561_v63 = vld [vmem:[#allocation91_spill] sm:$0xff]  ;;  %v7595_v53 = vld [vmem:[#allocation125_spill] sm:$0xff] }
 0x263   :  { %1833 = vmatpush.bf16.msra.mxu0 %v7546_v26  ;;  %v7594_v26 = vld [vmem:[#allocation124_spill] sm:$0xff] }
 0x264   :  { %1847 = vmatpush.bf16.msrb.mxu1 %v7547_v17  ;;  %1690 = vmatpush.bf16.msra.mxu2 %v7548_v34 }
 0x267   :  { %1834 = vmatpush.bf16.msra.mxu0 %v7549_v39 }
 0x268   :  { %1848 = vmatpush.bf16.msrb.mxu1 %v7550_v56  ;;  %1691 = vmatpush.bf16.msra.mxu2 %v7551_v44 }
 0x26b   :  { %1835 = vmatpush.bf16.msra.mxu0 %v7552_v8  ;;  %v7564_v8 = vld [vmem:[#allocation95_spill] sm:$0xff] }
 0x26c   :  { %1849 = vmatpush.bf16.msrb.mxu1 %v7553_v20  ;;  %1692 = vmatpush.bf16.msra.mxu2 %v7497_v42  ;;  %v7562_v42 = vld [vmem:[#allocation76_spill] sm:$0xff]  ;;  %v7563_v20 = vld [vmem:[#allocation66_spill] sm:$0xff] }
 0x26d   :  { %4388 = vmatmul.msk.bf16.vlgmr.msra.gmra.mxu3 %vm529_vm7, %v1727_v23 }
 0x26e   :  { %4389 = vmatmul.msk.bf16.vlgmr.msrb.gmra.mxu0 %vm529_vm7, %v1727_v23  ;;  %4390 = vmatmul.msk.bf16.vlgmr.msra.gmra.mxu1 %vm529_vm7, %v1727_v23 }
 0x26f   :  { %1874 = vmatpush.bf16.msra.mxu3 %v7554_v16  ;;  %1836 = vmatpush.bf16.msra.mxu0 %v7555_v11  ;;  %v7565_v16 = vld [vmem:[#allocation80_spill] sm:$0xff]  ;;  %v7566_v11 = vld [vmem:[#allocation99_spill] sm:$0xff] }
 0x270   :  { %1850 = vmatpush.bf16.msrb.mxu1 %v7556_v9  ;;  %v1481_v9 = vpop.f32.mrf.mxu2 }
 0x273   :  { %1875 = vmatpush.bf16.msra.mxu3 %v7557_v21  ;;  %1837 = vmatpush.bf16.msra.mxu0 %v7558_v32  ;;  %v7567_v21 = vld [vmem:[#allocation84_spill] sm:$0xff]  ;;  %v7568_v32 = vld [vmem:[#allocation70_spill] sm:$0xff] }
 0x274   :  { %1851 = vmatpush.bf16.msrb.mxu1 %v7559_v28  ;;  %v7569_v28 = vld [vmem:[#allocation103_spill] sm:$0xff] }
 0x277   :  { %1876 = vmatpush.bf16.msra.mxu3 %v7560_v62  ;;  %1838 = vmatpush.bf16.msra.mxu0 %v7561_v63  ;;  %v7570_v62 = vld [vmem:[#allocation88_spill] sm:$0xff]  ;;  %v7571_v63 = vld [vmem:[#allocation74_spill] sm:$0xff] }
 0x278   :  { %1852 = vmatpush.bf16.msrb.mxu1 %v7562_v42  ;;  %v7572_v42 = vld [vmem:[#allocation107_spill] sm:$0xff]  ;;  %v1483_v56 = vpop.f32.mrf.mxu2 }
 0x27b   :  { %1877 = vmatpush.bf16.msra.mxu3 %v7563_v20  ;;  %1839 = vmatpush.bf16.msra.mxu0 %v7564_v8  ;;  %v7573_v20 = vld [vmem:[#allocation92_spill] sm:$0xff]  ;;  %v7574_v8 = vld [vmem:[#allocation78_spill] sm:$0xff] }
 0x27c   :  { %1853 = vmatpush.bf16.msrb.mxu1 %v7565_v16  ;;  %v7575_v16 = vld [vmem:[#allocation113_spill] sm:$0xff] }
 0x27d   :  { %4391 = vmatmul.msk.bf16.vlgmr.msrb.gmra.mxu3 %vm529_vm7, %v1727_v23  ;;  %v7577_v23 = vld [vmem:[#allocation82_spill] sm:$0xff] }
 0x27f   :  { %1888 = vmatpush.bf16.msrb.mxu0 %v7566_v11  ;;  %1878 = vmatpush.bf16.msra.mxu3 %v7568_v32  ;;  %v7576_v11 = vld [vmem:[#allocation96_spill] sm:$0xff]  ;;  %v7579_v32 = vld [vmem:[#allocation117_spill] sm:$0xff] }
 0x280   :  { %1902 = vmatpush.bf16.msra.mxu1 %v7567_v21  ;;  %v7578_v21 = vld [vmem:[#allocation86_spill] sm:$0xff] }
 0x283   :  { %1889 = vmatpush.bf16.msrb.mxu0 %v7569_v28  ;;  %1879 = vmatpush.bf16.msra.mxu3 %v7571_v63  ;;  %v7580_v28 = vld [vmem:[#allocation100_spill] sm:$0xff]  ;;  %v7582_v63 = vld [vmem:[#allocation118_spill] sm:$0xff] }
 0x284   :  { %1903 = vmatpush.bf16.msra.mxu1 %v7570_v62  ;;  %v7581_v62 = vld [vmem:[#allocation90_spill] sm:$0xff] }
 0x287   :  { %1890 = vmatpush.bf16.msrb.mxu0 %v7572_v42  ;;  %1880 = vmatpush.bf16.msra.mxu3 %v7574_v8  ;;  %v7583_v42 = vld [vmem:[#allocation104_spill] sm:$0xff]  ;;  %v7585_v8 = vld [vmem:[#allocation119_spill] sm:$0xff] }
 0x288   :  { %1904 = vmatpush.bf16.msra.mxu1 %v7573_v20  ;;  %v7584_v20 = vld [vmem:[#allocation94_spill] sm:$0xff] }
 0x28b   :  { %1891 = vmatpush.bf16.msrb.mxu0 %v7575_v16  ;;  %1881 = vmatpush.bf16.msra.mxu3 %v7577_v23  ;;  %v7586_v16 = vld [vmem:[#allocation108_spill] sm:$0xff]  ;;  %v7588_v23 = vld [vmem:[#allocation121_spill] sm:$0xff] }
 0x28c   :  { %1905 = vmatpush.bf16.msra.mxu1 %v7576_v11  ;;  %v7587_v11 = vld [vmem:[#allocation98_spill] sm:$0xff] }
 0x28f   :  { %1930 = vmatpush.bf16.msrb.mxu3 %v7578_v21  ;;  %1892 = vmatpush.bf16.msrb.mxu0 %v7579_v32  ;;  %v7589_v21 = vld [vmem:[#allocation114_spill] sm:$0xff] }
 0x290   :  { %1906 = vmatpush.bf16.msra.mxu1 %v7580_v28  ;;  %v7590_v32 = vld [vmem:[#allocation102_spill] sm:$0xff] }
 0x291   :  { %v7591_v28 = vld [vmem:[#allocation106_spill] sm:$0xff] }
 0x293   :  { %1931 = vmatpush.bf16.msrb.mxu3 %v7581_v62  ;;  %1893 = vmatpush.bf16.msrb.mxu0 %v7582_v63  ;;  %v7592_v62 = vld [vmem:[#allocation110_spill] sm:$0xff]  ;;  %v7593_v63 = vld [vmem:[#allocation116_spill] sm:$0xff] }
 0x294   :  { %1907 = vmatpush.bf16.msra.mxu1 %v7583_v42  ;;  %v1523_v42 = vpop.f32.mrf.mxu1 }
 0x297   :  { %1932 = vmatpush.bf16.msrb.mxu3 %v7584_v20  ;;  %1894 = vmatpush.bf16.msrb.mxu0 %v7585_v8  ;;  %v1509_v20 = vpop.f32.mrf.mxu0  ;;  %v1495_v8 = vpop.f32.mrf.mxu3 }
 0x298   :  { %1908 = vmatpush.bf16.msra.mxu1 %v7586_v16 }
 0x29b   :  { %1933 = vmatpush.bf16.msrb.mxu3 %v7587_v11  ;;  %1895 = vmatpush.bf16.msrb.mxu0 %v7588_v23 }
 0x29c   :  { %1909 = vmatpush.bf16.msra.mxu1 %v7589_v21  ;;  %v1525_v44 = vpop.f32.mrf.mxu1 }
 0x29f   :  { %1934 = vmatpush.bf16.msrb.mxu3 %v7590_v32  ;;  %v1511_v16 = vpop.f32.mrf.mxu0  ;;  %v1497_v11 = vpop.f32.mrf.mxu3 }
 0x2a3   :  { %1935 = vmatpush.bf16.msrb.mxu3 %v7591_v28 }
 0x2a7   :  { %1936 = vmatpush.bf16.msrb.mxu3 %v7592_v62 }
 0x2ab   :  { %1937 = vmatpush.bf16.msrb.mxu3 %v7593_v63 }
 0x2cb   :  { %v1565_v39 = vpop.f32.mrf.mxu0  ;;  %v1579_v23 = vpop.f32.mrf.mxu1 }
 0x2cc   :  { %v1566_v57 = vadd.f32 %v1565_v39, %v1509_v20  ;;  %v1580_v7 = vadd.f32 %v1579_v23, %v1523_v42 }
 0x2ce   :  { %v1586_v40 = vadd.f32 %v1566_v57, %v5734_v1  ;;  %v1587_v20 = vadd.f32 %v1580_v7, %v5738_v12 }
 0x2d0   :  { %v1537_v34 = vpop.f32.mrf.mxu2  ;;  %v1551_v21 = vpop.f32.mrf.mxu3 }
 0x2d1   :  { %v1538_v17 = vadd.f32 %v1537_v34, %v1481_v9  ;;  %v1552_v32 = vadd.f32 %v1551_v21, %v1495_v8 }
 0x2d3   :  { %v1584_v28 = vadd.f32 %v1538_v17, %v7594_v26  ;;  %v1585_v62 = vadd.f32 %v1552_v32, %v7595_v53  ;;  %v1567_v29 = vpop.f32.mrf.mxu0  ;;  %v1581_v3 = vpop.f32.mrf.mxu1 }
 0x2d4   :  { %v1568_v34 = vadd.f32 %v1567_v29, %v1511_v16  ;;  %v1582_v8 = vadd.f32 %v1581_v3, %v1525_v44 }
 0x2d5   :  { %v1592_v22 = vmul.f32 0.5, %v1584_v28  ;;  %v1600_v63 = vmul.f32 0.5, %v1585_v62 }
 0x2d7   :  { %4609 = vtanh.f32 %v1592_v22 }
 0x2d8   :  { %4611 = vtanh.f32 %v1600_v63  ;;  %v1539_v55 = vpop.f32.mrf.mxu2  ;;  %v1553_v41 = vpop.f32.mrf.mxu3 }
 0x2d9   :  { %v1540_v18 = vadd.f32 %v1539_v55, %v1483_v56  ;;  %v1554_v60 = vadd.f32 %v1553_v41, %v1497_v11  ;;  %4613 = vtanh.f32 %v1586_v40  ;;  %v1590_v55 = vadd.f32 %v1568_v34, %v5734_v1 }
 0x2da   :  { %v1591_v41 = vadd.f32 %v1582_v8, %v5738_v12 }
 0x2db   :  { %v1588_v17 = vadd.f32 %v1540_v18, %v7594_v26  ;;  %v1589_v9 = vadd.f32 %v1554_v60, %v7595_v53  ;;  %v1610_v18 = vmul.f32 0.5, %v1587_v20 }
 0x2dc   :  { %v1611_v60 = vmul.f32 0.5, %v1591_v41 }
 0x2dd   :  { %v4610_v21 = vpop.eup %4609  ;;  %v1593_v32 = vmul.f32 0.5, %v1588_v17  ;;  %v1601_v39 = vmul.f32 0.5, %v1589_v9 }
 0x2de   :  { %v4612_v22 = vpop.eup %4611  ;;  %v1596_v28 = vadd.f32 1.0, %v4610_v21 }
 0x2df   :  { %v1604_v62 = vadd.f32 1.0, %v4612_v22  ;;  %4615 = vtanh.f32 %v1593_v32  ;;  %v4614_v29 = vpop.eup %4613 }
 0x2e0   :  { %4617 = vtanh.f32 %v1601_v39  ;;  %v1598_v42 = vmul.f32 0.5, %v1596_v28 }
 0x2e1   :  { %v1606_v3 = vmul.f32 0.5, %v1604_v62  ;;  %4619 = vtanh.f32 %v1590_v55 }
 0x2e2   :  { %v1620_v44 = vmul.f32 %v4614_v29, %v1598_v42  ;;  %4621 = vtanh.f32 %v1610_v18  ;;  %v7606_v18 = vld [vmem:[#allocation115_spill] sm:$0xff] }
 0x2e3   :  { %v1618_v40 = vmul.f32 %v1606_v3, %v5746_v61  ;;  %4623 = vtanh.f32 %v1611_v60  ;;  %v7605_v3 = vld [vmem:[#allocation109_spill] sm:$0xff]  ;;  %v7608_v29 = vld [vmem:[#allocation19_spill] sm:$0xff] }
 0x2e4   :  { %v7607_v60 = vld [vmem:[#allocation17_spill] sm:$0xff] }
 0x2e5   :  { %v4616_v57 = vpop.eup %4615  ;;  %v5933_v23 = vadd.f32 %v1620_v44, %v1618_v40  ;;  %v7610_v44 = vld [vmem:[#allocation23_spill] sm:$0xff]  ;;  %v7611_v40 = vld [vmem:[#allocation25_spill] sm:$0xff] }
 0x2e6   :  { %v4618_v56 = vpop.eup %4617  ;;  %v1597_v7 = vadd.f32 1.0, %v4616_v57  ;;  %v7609_v57 = vld [vmem:[#allocation21_spill] sm:$0xff] }
 0x2e7   :  { %v1605_v16 = vadd.f32 1.0, %v4618_v56  ;;  %v4620_v63 = vpop.eup %4619  ;;  %4625 = vtanh.f32 %v5933_v23  ;;  %v7612_v56 = vld [vmem:[#allocation27_spill] sm:$0xff] }
 0x2e8   :  { %v1599_v11 = vmul.f32 0.5, %v1597_v7  ;;  %v4622_v9 = vpop.eup %4621  ;;  %v7613_v7 = vld [vmem:[#allocation29_spill] sm:$0xff] }
 0x2e9   :  { %v1607_v34 = vmul.f32 0.5, %v1605_v16  ;;  %v4624_v21 = vpop.eup %4623  ;;  %v1614_v61 = vadd.f32 1.0, %v4622_v9  ;;  %v7614_v16 = vld [vmem:[#allocation32_spill] sm:$0xff] }
 0x2ea   :  { %v1621_v8 = vmul.f32 %v4620_v63, %v1599_v11  ;;  %v1615_v39 = vadd.f32 1.0, %v4624_v21  ;;  %v1652_v11 = vpop.f32.mrf.mxu3  ;;  %v1666_v63 = vpop.f32.mrf.mxu0 }
 0x2eb   :  { %v1619_v17 = vmul.f32 %v1607_v34, %v5749_v35  ;;  %v1616_v20 = vmul.f32 0.5, %v1614_v61  ;;  %v7602_v35 = vld [vmem:[#allocation97_spill] sm:$0xff] }
 0x2ec   :  { %v1617_v28 = vmul.f32 0.5, %v1615_v39 }
 0x2ed   :  { %v5937_v32 = vadd.f32 %v1621_v8, %v1619_v17  ;;  %v4626_v22 = vpop.eup %4625  ;;  %v1680_v17 = vpop.f32.mrf.mxu1 }
 0x2ee   :  { %v1626_v55 = vmul.f32 %v4626_v22, %v1616_v20 }
 0x2ef   :  { %4627 = vtanh.f32 %v5937_v32 }
 0x2f2   :  { %v1654_v34 = vpop.f32.mrf.mxu3  ;;  %v1668_v8 = vpop.f32.mrf.mxu0 }
 0x2f5   :  { %v4628_v62 = vpop.eup %4627  ;;  %v1682_v61 = vpop.f32.mrf.mxu1 }
 0x2f6   :  { %v1627_v41 = vmul.f32 %v4628_v62, %v1617_v28  ;;  %v5992_v62 = vld [vmem:[%s7062_s8] ss:$0 sm:$0xff] }
 0x2f7   :  { %7615 = vst [vmem:[#allocation69_spill] sm:$0xff] %v5992_v62 }
 0x2f8   :  { %v1628_v42 = vpack.c.bf16 %v1627_v41, %v1626_v55 }
 0x2fa   :  { %1637 = vmatmul.bf16.vlgmr.msrb.gmra.mxu2 %v1628_v42  ;;  %1840 = vmatmul.bf16.vlgmr.msra.gmra.mxu0 %v1628_v42  ;;  %v1740_v9 = vpop.f32.mrf.mxu3  ;;  %v1754_v21 = vpop.f32.mrf.mxu0 }
 0x2fb   :  { %1854 = vmatmul.bf16.vlgmr.msrb.gmra.mxu1 %v1628_v42  ;;  %1882 = vmatmul.bf16.vlgmr.msra.gmra.mxu3 %v1628_v42  ;;  %v1741_v22 = vadd.f32 %v1740_v9, %v1652_v11  ;;  %v1755_v55 = vadd.f32 %v1754_v21, %v1666_v63 }
 0x2fc   :  { %1860 = vmatpush.bf16.msrb.mxu2 %v7498_v50  ;;  %2003 = vmatpush.bf16.msrb.mxu1 %v5107_v4 }
 0x2fd   :  { %2031 = vmatpush.bf16.msra.mxu3 %v5131_v36  ;;  %1989 = vmatpush.bf16.msra.mxu0 %v5642_v14  ;;  %v7599_v14 = vld [vmem:[#allocation123_spill] sm:$0xff]  ;;  %v1768_v41 = vpop.f32.mrf.mxu1 }
 0x300   :  { %1861 = vmatpush.bf16.msrb.mxu2 %v7499_v2  ;;  %2004 = vmatpush.bf16.msrb.mxu1 %v5114_v13 }
 0x301   :  { %2032 = vmatpush.bf16.msra.mxu3 %v5143_v48  ;;  %1990 = vmatpush.bf16.msra.mxu0 %v5652_v45  ;;  %v7598_v45 = vld [vmem:[#allocation37_spill] sm:$0xff] }
 0x302   :  { %v1742_v39 = vpop.f32.mrf.mxu3  ;;  %v1756_v20 = vpop.f32.mrf.mxu0 }
 0x303   :  { %v1743_v28 = vadd.f32 %v1742_v39, %v1654_v34 }
 0x304   :  { %1862 = vmatpush.bf16.msrb.mxu2 %v7500_v31  ;;  %2005 = vmatpush.bf16.msrb.mxu1 %v5123_v25 }
 0x305   :  { %2033 = vmatpush.bf16.msra.mxu3 %v5155_v0  ;;  %1991 = vmatpush.bf16.msra.mxu0 %v5662_v5  ;;  %v7596_v5 = vld [vmem:[#allocation31_spill] sm:$0xff] }
 0x308   :  { %1863 = vmatpush.bf16.msrb.mxu2 %v7501_v43  ;;  %2006 = vmatpush.bf16.msrb.mxu1 %v5134_v37 }
 0x309   :  { %2034 = vmatpush.bf16.msra.mxu3 %v5175_v30  ;;  %1992 = vmatpush.bf16.msra.mxu0 %v5671_v6  ;;  %v7601_v6 = vld [vmem:[#allocation93_spill] sm:$0xff] }
 0x30a   :  { %1693 = vmatmul.bf16.vlgmr.msra.gmra.mxu2 %v5821_v38  ;;  %v7603_v38 = vld [vmem:[#allocation101_spill] sm:$0xff] }
 0x30c   :  { %1864 = vmatpush.bf16.msrb.mxu2 %v7502_v51  ;;  %2007 = vmatpush.bf16.msrb.mxu1 %v5146_v52 }
 0x30d   :  { %2035 = vmatpush.bf16.msra.mxu3 %v5202_v47  ;;  %1993 = vmatpush.bf16.msra.mxu0 %v5698_v10  ;;  %v7597_v10 = vld [vmem:[#allocation85_spill] sm:$0xff] }
 0x310   :  { %1865 = vmatpush.bf16.msrb.mxu2 %v7503_v59  ;;  %2008 = vmatpush.bf16.msrb.mxu1 %v5158_v15 }
 0x311   :  { %2036 = vmatpush.bf16.msra.mxu3 %v5204_v49  ;;  %1994 = vmatpush.bf16.msra.mxu0 %v5704_v33  ;;  %v7600_v33 = vld [vmem:[#allocation89_spill] sm:$0xff] }
 0x314   :  { %1866 = vmatpush.bf16.msrb.mxu2 %v7504_v58  ;;  %2009 = vmatpush.bf16.msrb.mxu1 %v5172_v27 }
 0x315   :  { %2037 = vmatpush.bf16.msra.mxu3 %v5208_v54  ;;  %1995 = vmatpush.bf16.msra.mxu0 %v5710_v19  ;;  %v7604_v19 = vld [vmem:[#allocation105_spill] sm:$0xff] }
 0x318   :  { %1867 = vmatpush.bf16.msrb.mxu2 %v7505_v24  ;;  %2010 = vmatpush.bf16.msrb.mxu1 %v7596_v5 }
 0x319   :  { %2038 = vmatpush.bf16.msra.mxu3 %v7598_v45  ;;  %1996 = vmatpush.bf16.msra.mxu0 %v7599_v14 }
 0x31b   :  { %1868 = vmatmul.bf16.vlgmr.msrb.gmra.mxu2 %v1628_v42  ;;  %v1757_v42 = vadd.f32 %v1756_v20, %v1668_v8  ;;  %v1770_v8 = vpop.f32.mrf.mxu1 }
 0x31c   :  { %1916 = vmatpush.bf16.msra.mxu2 %v7597_v10  ;;  %v1771_v20 = vadd.f32 %v1770_v8, %v1682_v61 }
 0x320   :  { %1917 = vmatpush.bf16.msra.mxu2 %v7600_v33 }
 0x324   :  { %1918 = vmatpush.bf16.msra.mxu2 %v7601_v6 }
 0x328   :  { %1919 = vmatpush.bf16.msra.mxu2 %v7602_v35 }
 0x32c   :  { %1920 = vmatpush.bf16.msra.mxu2 %v7603_v38 }
 0x330   :  { %1921 = vmatpush.bf16.msra.mxu2 %v7604_v19 }
 0x334   :  { %1922 = vmatpush.bf16.msra.mxu2 %v7605_v3 }
 0x338   :  { %1923 = vmatpush.bf16.msra.mxu2 %v7606_v18 }
 0x33c   :  { %2017 = vmatpush.bf16.msrb.mxu2 %v7607_v60 }
 0x340   :  { %2018 = vmatpush.bf16.msrb.mxu2 %v7608_v29 }
 0x344   :  { %2019 = vmatpush.bf16.msrb.mxu2 %v7609_v57 }
 0x348   :  { %2020 = vmatpush.bf16.msrb.mxu2 %v7610_v44 }
 0x34c   :  { %2021 = vmatpush.bf16.msrb.mxu2 %v7611_v40  ;;  %v7616_v40 = vld [vmem:[#allocation112_spill] sm:$0xff] }
 0x34d   :  { %v1788_v44 = vadd.f32 %v1755_v55, %v7616_v40  ;;  %v1792_v11 = vadd.f32 %v1757_v42, %v7616_v40  ;;  %v7617_v55 = vld [vmem:[#allocation120_spill] sm:$0xff] }
 0x34f   :  { %v1803_v39 = vmul.f32 0.5, %v1788_v44  ;;  %v1804_v57 = vmul.f32 0.5, %v1792_v11  ;;  %v1793_v44 = vadd.f32 %v1771_v20, %v7617_v55 }
 0x350   :  { %2022 = vmatpush.bf16.msrb.mxu2 %v7612_v56  ;;  %v1791_v56 = vadd.f32 %v1743_v28, %v7515_v46  ;;  %v1782_v28 = vpop.f32.mrf.mxu3 }
 0x352   :  { %v1796_v9 = vmul.f32 0.5, %v1791_v56 }
 0x354   :  { %2023 = vmatpush.bf16.msrb.mxu2 %v7613_v7 }
 0x358   :  { %2024 = vmatpush.bf16.msrb.mxu2 %v7614_v16  ;;  %v1787_v16 = vadd.f32 %v1741_v22, %v7515_v46  ;;  %v1769_v22 = vadd.f32 %v1768_v41, %v1680_v17 }
 0x35a   :  { %v1795_v34 = vmul.f32 0.5, %v1787_v16  ;;  %v1789_v42 = vadd.f32 %v1769_v22, %v7617_v55  ;;  %v1784_v22 = vpop.f32.mrf.mxu3 }
 0x35c   :  { %4629 = vtanh.f32 %v1795_v34 }
 0x35d   :  { %4631 = vtanh.f32 %v1796_v9 }
 0x35e   :  { %4633 = vtanh.f32 %v1803_v39  ;;  %v7618_v39 = vld [vmem:[#allocation122_spill] sm:$0xff] }
 0x35f   :  { %4635 = vtanh.f32 %v1804_v57 }
 0x360   :  { %4637 = vtanh.f32 %v1789_v42 }
 0x361   :  { %4639 = vtanh.f32 %v1793_v44 }
 0x37d   :  { %v1638_v14 = vpop.f32.mrf.mxu2 }
 0x37e   :  { %v1639_v7 = vadd.f32 %v5992_v62, %v1638_v14 }
 0x380   :  { %3827 = vrot.lane.b32.xlu0 %v1639_v7, %s5025_s18  ;;  %v4630_v7 = vpop.eup %4629 }
 0x381   :  { %v4632_v16 = vpop.eup %4631  ;;  %v1799_v46 = vadd.f32 1.0, %v4630_v7 }
 0x382   :  { %v4634_v14 = vpop.eup %4633  ;;  %v1800_v9 = vadd.f32 1.0, %v4632_v16  ;;  %v7619_v16 = vld [vmem:[#allocation62_spill] sm:$0xff] }
 0x383   :  { %v4636_v34 = vpop.eup %4635  ;;  %v1807_v41 = vadd.f32 1.0, %v4634_v14  ;;  %v7620_v14 = vld [vmem:[#allocation65_spill] sm:$0xff] }
 0x384   :  { %v1808_v57 = vadd.f32 1.0, %v4636_v34  ;;  %v1802_v8 = vmul.f32 0.5, %v1800_v9  ;;  %v4638_v40 = vpop.eup %4637 }
 0x385   :  { %v1640_v63 = vpop.f32.mrf.mxu2 }
 0x386   :  { %v1641_v21 = vadd.f32 %v5992_v62, %v1640_v63  ;;  %v1801_v63 = vmul.f32 0.5, %v1799_v46  ;;  %v1810_v20 = vmul.f32 0.5, %v1808_v57 }
 0x388   :  { %3829 = vrot.lane.b32.xlu0 %v1641_v21, %s5025_s18  ;;  %v1809_v21 = vmul.f32 0.5, %v1807_v41  ;;  %v1822_v44 = vmul.f32 %v1810_v20, %v7620_v14  ;;  %v7623_v20 = vld [vmem:[#allocation35_spill] sm:$0xff]  ;;  %v7628_v14 = vld [vmem:[#allocation46_spill] sm:$0xff] }
 0x38d   :  { %v1694_v56 = vpop.f32.mrf.mxu2 }
 0x38e   :  { %v1783_v11 = vadd.f32 %v1782_v28, %v1694_v56  ;;  %v4640_v28 = vpop.eup %4639  ;;  %v1823_v56 = vmul.f32 %v4638_v40, %v1801_v63 }
 0x38f   :  { %v1824_v7 = vmul.f32 %v4640_v28, %v1802_v8  ;;  %v7624_v28 = vld [vmem:[#allocation36_spill] sm:$0xff] }
 0x390   :  { %v1790_v17 = vadd.f32 %v1783_v11, %v7618_v39  ;;  %v1821_v11 = vmul.f32 %v1809_v21, %v7619_v16  ;;  %v7627_v16 = vld [vmem:[#allocation38_spill] sm:$0xff] }
 0x391   :  { %v6010_v9 = vadd.f32 %v1824_v7, %v1822_v44  ;;  %v7626_v7 = vld [vmem:[#allocation41_spill] sm:$0xff]  ;;  %v2073_v44 = vrot.slane %v7628_v14, 3  ;;  %v7635_v14 = vld [vmem:[#allocation42_spill] sm:$0xff] }
 0x392   :  { %v1813_v61 = vmul.f32 0.5, %v1790_v17  ;;  %v6008_v17 = vadd.f32 %v1823_v56, %v1821_v11  ;;  %v7625_v56 = vld [vmem:[#allocation34_spill] sm:$0xff]  ;;  %v2060_v11 = vrot.slane %v7627_v16, 2 }
 0x393   :  { %7622 = vst [vmem:[#allocation77_spill] sm:$0xff] %v6010_v9 }
 0x394   :  { %4641 = vtanh.f32 %v1813_v61  ;;  %7621 = vst [vmem:[#allocation73_spill] sm:$0xff] %v6008_v17 }
 0x395   :  { %v1696_v62 = vpop.f32.mrf.mxu2 }
 0x396   :  { %v1785_v55 = vadd.f32 %v1784_v22, %v1696_v62 }
 0x398   :  { %v1794_v42 = vadd.f32 %v1785_v55, %v7618_v39 }
 0x39a   :  { %v1814_v34 = vmul.f32 0.5, %v1794_v42  ;;  %v4642_v46 = vpop.eup %4641  ;;  %v2059_v42 = vrot.slane %v7626_v7, 3  ;;  %v7634_v7 = vld [vmem:[#allocation22_spill] sm:$0xff] }
 0x39b   :  { %v1817_v41 = vadd.f32 1.0, %v4642_v46 }
 0x39c   :  { %4643 = vtanh.f32 %v1814_v34  ;;  %v7629_v34 = vld [vmem:[#allocation47_spill] sm:$0xff] }
 0x39d   :  { %4645 = vtanh.f32 %v6008_v17  ;;  %v1819_v62 = vmul.f32 0.5, %v1817_v41  ;;  %v2074_v46 = vrot.slane %v7629_v34, 2  ;;  %v7630_v41 = vld [vmem:[#allocation18_spill] sm:$0xff]  ;;  %v2065_v34 = vrot.slane %v7635_v14, 7  ;;  %v7645_v14 = vld [vmem:[#allocation67_spill] sm:$0xff] }
 0x39e   :  { %4647 = vtanh.f32 %v6010_v9 }
 0x3a2   :  { %v4644_v40 = vpop.eup %4643 }
 0x3a3   :  { %v1818_v57 = vadd.f32 1.0, %v4644_v40  ;;  %v4646_v55 = vpop.eup %4645  ;;  %v7631_v40 = vld [vmem:[#allocation39_spill] sm:$0xff] }
 0x3a4   :  { %v4648_v63 = vpop.eup %4647  ;;  %v1829_v8 = vmul.f32 %v4646_v55, %v1819_v62  ;;  %v2062_v62 = vrot.slane %v7631_v40, 1 }
 0x3a5   :  { %v1820_v61 = vmul.f32 0.5, %v1818_v57  ;;  %v7632_v57 = vld [vmem:[#allocation48_spill] sm:$0xff] }
 0x3a6   :  { %v2076_v55 = vrot.slane %v7632_v57, 1  ;;  %v7638_v57 = vld [vmem:[#allocation49_spill] sm:$0xff] }
 0x3a7   :  { %v1830_v21 = vmul.f32 %v4648_v63, %v1820_v61  ;;  %v2061_v61 = vsel %vm474_vm0, %v2060_v11, %v2059_v42  ;;  %v2075_v63 = vsel %vm474_vm0, %v2074_v46, %v2073_v44  ;;  %v7639_v11 = vld [vmem:[#allocation43_spill] sm:$0xff] }
 0x3a8   :  { %v2077_v16 = vsel %vm477_vm1, %v2076_v55, %v2075_v63  ;;  %v2067_v44 = vrot.slane %v7639_v11, 6  ;;  %v7640_v46 = vld [vmem:[#allocation51_spill] sm:$0xff] }
 0x3a9   :  { %v6014_v22 = vpack.c.bf16 %v1830_v21, %v1829_v8  ;;  %v7633_v8 = vld [vmem:[#allocation20_spill] sm:$0xff]  ;;  %v2063_v21 = vsel %vm477_vm1, %v2062_v62, %v2061_v61  ;;  %v2078_v42 = vsel %vm480_vm2, %v7638_v57, %v2077_v16  ;;  %v7646_v11 = vld [vmem:[#allocation55_spill] sm:$0xff] }
 0x3aa   :  { %v7642_v61 = vld [vmem:[#allocation44_spill] sm:$0xff]  ;;  %v7650_v57 = vld [vmem:[#allocation71_spill] sm:$0xff] }
 0x3ab   :  { %1896 = vmatmul.bf16.vlgmr.msrb.gmra.mxu0 %v6014_v22  ;;  %1910 = vmatmul.bf16.vlgmr.msra.gmra.mxu1 %v6014_v22  ;;  %v2069_v63 = vrot.slane %v7642_v61, 5 }
 0x3ac   :  { %1924 = vmatmul.bf16.vlgmr.msra.gmra.mxu2 %v6014_v22  ;;  %1938 = vmatmul.bf16.vlgmr.msrb.gmra.mxu3 %v6014_v22 }
 0x3ad   :  { %2098 = vmatpush.bf16.msra.mxu1 %v7623_v20  ;;  %2112 = vmatpush.bf16.msra.mxu2 %v7624_v28  ;;  %v7637_v28 = vld [vmem:[#allocation40_spill] sm:$0xff] }
 0x3ae   :  { %2126 = vmatpush.bf16.msrb.mxu3 %v7625_v56  ;;  %2045 = vmatpush.bf16.msrb.mxu0 %v7630_v41  ;;  %v7636_v56 = vld [vmem:[#allocation50_spill] sm:$0xff]  ;;  %v2064_v40 = vsel %vm480_vm2, %v7637_v28, %v2063_v21  ;;  %v7641_v20 = vld [vmem:[#allocation24_spill] sm:$0xff] }
 0x3af   :  { %v2079_v41 = vrot.slane %v7636_v56, 7  ;;  %v2066_v62 = vsel %vm483_vm3, %v2065_v34, %v2064_v40  ;;  %v7643_v21 = vld [vmem:[#allocation52_spill] sm:$0xff]  ;;  %v7644_v56 = vld [vmem:[#allocation54_spill] sm:$0xff] }
 0x3b0   :  { %v2083_v16 = vrot.slane %v7643_v21, 5  ;;  %v7647_v34 = vld [vmem:[#allocation26_spill] sm:$0xff] }
 0x3b1   :  { %v2080_v55 = vsel %vm483_vm3, %v2079_v41, %v2078_v42  ;;  %v7648_v41 = vld [vmem:[#allocation45_spill] sm:$0xff] }
 0x3b2   :  { %2046 = vmatpush.bf16.msrb.mxu0 %v7633_v8  ;;  %v2081_v8 = vrot.slane %v7640_v46, 6  ;;  %v2071_v40 = vrot.slane %v7648_v41, 4  ;;  %v7649_v42 = vld [vmem:[#allocation53_spill] sm:$0xff]  ;;  %v7655_v41 = vld [vmem:[#allocation30_spill] sm:$0xff] }
 0x3b4   :  { %v2082_v46 = vsel %vm486_vm4, %v2081_v8, %v2080_v55  ;;  %v7654_v55 = vld [vmem:[#allocation61_spill] sm:$0xff] }
 0x3b5   :  { %v2084_v21 = vsel %vm489_vm5, %v2083_v16, %v2082_v46  ;;  %v7657_v46 = vld [vmem:[#allocation64_spill] sm:$0xff] }
 0x3b6   :  { %2047 = vmatpush.bf16.msrb.mxu0 %v7634_v7  ;;  %v2085_v7 = vrot.slane %v7649_v42, 4  ;;  %v7662_v16 = vld [vmem:[#allocation60_spill] sm:$0xff] }
 0x3ba   :  { %2048 = vmatpush.bf16.msrb.mxu0 %v7641_v20  ;;  %v2068_v20 = vsel %vm486_vm4, %v2067_v44, %v2066_v62  ;;  %v2086_v44 = vsel %vm492_vm6, %v2085_v7, %v2084_v21  ;;  %v7653_v62 = vld [vmem:[#allocation75_spill] sm:$0xff]  ;;  %v7661_v21 = vld [vmem:[#allocation68_spill] sm:$0xff] }
 0x3bb   :  { %2011 = vmatmul.bf16.vlgmr.msrb.gmra.mxu1 %v6014_v22  ;;  %v2070_v61 = vsel %vm489_vm5, %v2069_v63, %v2068_v20  ;;  %v7656_v20 = vld [vmem:[#allocation79_spill] sm:$0xff]  ;;  %v7658_v63 = vld [vmem:[#allocation33_spill] sm:$0xff] }
 0x3bc   :  { %2025 = vmatmul.bf16.vlgmr.msrb.gmra.mxu2 %v6014_v22  ;;  %2039 = vmatmul.bf16.vlgmr.msra.gmra.mxu3 %v6014_v22  ;;  %v2072_v8 = vsel %vm492_vm6, %v2071_v40, %v2070_v61  ;;  %v7659_v7 = vld [vmem:[#allocation59_spill] sm:$0xff] }
 0x3bd   :  { %2140 = vmatpush.bf16.msrb.mxu1 %v7644_v56  ;;  %2192 = vmatpush.bf16.msrb.mxu2 %v7645_v14  ;;  %v7651_v56 = vld [vmem:[#allocation57_spill] sm:$0xff]  ;;  %v7652_v14 = vld [vmem:[#allocation28_spill] sm:$0xff]  ;;  %v2087_v42 = vpack.c.b16 %v2086_v44, %v2072_v8  ;;  %v7660_v61 = vld [vmem:[#allocation83_spill] sm:$0xff] }
 0x3be   :  { %2206 = vmatpush.bf16.msra.mxu3 %v7646_v11  ;;  %2049 = vmatpush.bf16.msrb.mxu0 %v7647_v34  ;;  %v7663_v40 = vld [vmem:[#allocation87_spill] sm:$0xff]  ;;  %v7664_v8 = vld [vmem:[#allocation72_spill] sm:$0xff] }
 0x3bf   :  { %v7665_v44 = vld [vmem:[#allocation63_spill] sm:$0xff] }
 0x3c1   :  { %2193 = vmatpush.bf16.msrb.mxu2 %v7650_v57 }
 0x3c2   :  { %2207 = vmatpush.bf16.msra.mxu3 %v7651_v56  ;;  %2050 = vmatpush.bf16.msrb.mxu0 %v7652_v14 }
 0x3c5   :  { %2194 = vmatpush.bf16.msrb.mxu2 %v7653_v62 }
 0x3c6   :  { %2208 = vmatpush.bf16.msra.mxu3 %v7654_v55  ;;  %2051 = vmatpush.bf16.msrb.mxu0 %v7655_v41  ;;  %v7669_v41 = vld [vmem:[#allocation95_spill] sm:$0xff] }
 0x3c9   :  { %2195 = vmatpush.bf16.msrb.mxu2 %v7656_v20  ;;  %v7668_v20 = vld [vmem:[#allocation66_spill] sm:$0xff] }
 0x3ca   :  { %2209 = vmatpush.bf16.msra.mxu3 %v7657_v46  ;;  %2052 = vmatpush.bf16.msrb.mxu0 %v7658_v63  ;;  %v7666_v63 = vld [vmem:[#allocation91_spill] sm:$0xff]  ;;  %v7667_v46 = vld [vmem:[#allocation76_spill] sm:$0xff] }
 0x3cb   :  { %4392 = vmatmul.msk.bf16.vlgmr.msra.gmra.mxu1 %vm529_vm7, %v2087_v42 }
 0x3cc   :  { %4393 = vmatmul.msk.bf16.vlgmr.msra.gmra.mxu2 %vm529_vm7, %v2087_v42  ;;  %4394 = vmatmul.msk.bf16.vlgmr.msrb.gmra.mxu3 %vm529_vm7, %v2087_v42 }
 0x3cd   :  { %2234 = vmatpush.bf16.msra.mxu1 %v7659_v7  ;;  %2196 = vmatpush.bf16.msrb.mxu2 %v7660_v61  ;;  %v7670_v7 = vld [vmem:[#allocation80_spill] sm:$0xff]  ;;  %v7671_v61 = vld [vmem:[#allocation99_spill] sm:$0xff] }
 0x3ce   :  { %2210 = vmatpush.bf16.msra.mxu3 %v7661_v21  ;;  %v1883_v21 = vpop.f32.mrf.mxu3 }
 0x3d1   :  { %2235 = vmatpush.bf16.msra.mxu1 %v7662_v16  ;;  %2197 = vmatpush.bf16.msrb.mxu2 %v7663_v40  ;;  %v7672_v16 = vld [vmem:[#allocation84_spill] sm:$0xff]  ;;  %v7673_v40 = vld [vmem:[#allocation70_spill] sm:$0xff] }
 0x3d2   :  { %2211 = vmatpush.bf16.msra.mxu3 %v7664_v8  ;;  %v7674_v8 = vld [vmem:[#allocation103_spill] sm:$0xff] }
 0x3d5   :  { %2236 = vmatpush.bf16.msra.mxu1 %v7665_v44  ;;  %2198 = vmatpush.bf16.msrb.mxu2 %v7666_v63  ;;  %v7675_v44 = vld [vmem:[#allocation88_spill] sm:$0xff]  ;;  %v7676_v63 = vld [vmem:[#allocation74_spill] sm:$0xff] }
 0x3d6   :  { %2212 = vmatpush.bf16.msra.mxu3 %v7667_v46  ;;  %v7677_v46 = vld [vmem:[#allocation107_spill] sm:$0xff]  ;;  %v1885_v62 = vpop.f32.mrf.mxu3 }
 0x3d9   :  { %2237 = vmatpush.bf16.msra.mxu1 %v7668_v20  ;;  %2199 = vmatpush.bf16.msrb.mxu2 %v7669_v41  ;;  %v7678_v20 = vld [vmem:[#allocation92_spill] sm:$0xff]  ;;  %v7679_v41 = vld [vmem:[#allocation78_spill] sm:$0xff] }
 0x3da   :  { %2213 = vmatpush.bf16.msra.mxu3 %v7670_v7  ;;  %v7680_v7 = vld [vmem:[#allocation113_spill] sm:$0xff] }
 0x3db   :  { %4395 = vmatmul.msk.bf16.vlgmr.msrb.gmra.mxu1 %vm529_vm7, %v2087_v42  ;;  %v7682_v42 = vld [vmem:[#allocation82_spill] sm:$0xff] }
 0x3dd   :  { %2248 = vmatpush.bf16.msra.mxu2 %v7671_v61  ;;  %2238 = vmatpush.bf16.msra.mxu1 %v7673_v40  ;;  %v7681_v61 = vld [vmem:[#allocation96_spill] sm:$0xff]  ;;  %v7684_v40 = vld [vmem:[#allocation117_spill] sm:$0xff] }
 0x3de   :  { %2262 = vmatpush.bf16.msrb.mxu3 %v7672_v16  ;;  %v7683_v16 = vld [vmem:[#allocation86_spill] sm:$0xff] }
 0x3e1   :  { %2249 = vmatpush.bf16.msra.mxu2 %v7674_v8  ;;  %2239 = vmatpush.bf16.msra.mxu1 %v7676_v63  ;;  %v7685_v8 = vld [vmem:[#allocation100_spill] sm:$0xff]  ;;  %v7687_v63 = vld [vmem:[#allocation118_spill] sm:$0xff] }
 0x3e2   :  { %2263 = vmatpush.bf16.msrb.mxu3 %v7675_v44  ;;  %v7686_v44 = vld [vmem:[#allocation90_spill] sm:$0xff] }
 0x3e5   :  { %2250 = vmatpush.bf16.msra.mxu2 %v7677_v46  ;;  %2240 = vmatpush.bf16.msra.mxu1 %v7679_v41  ;;  %v7688_v46 = vld [vmem:[#allocation104_spill] sm:$0xff]  ;;  %v7690_v41 = vld [vmem:[#allocation119_spill] sm:$0xff] }
 0x3e6   :  { %2264 = vmatpush.bf16.msrb.mxu3 %v7678_v20  ;;  %v7689_v20 = vld [vmem:[#allocation94_spill] sm:$0xff] }
 0x3e9   :  { %2251 = vmatpush.bf16.msra.mxu2 %v7680_v7  ;;  %2241 = vmatpush.bf16.msra.mxu1 %v7682_v42  ;;  %v7691_v7 = vld [vmem:[#allocation108_spill] sm:$0xff]  ;;  %v7693_v42 = vld [vmem:[#allocation121_spill] sm:$0xff] }
 0x3ea   :  { %2265 = vmatpush.bf16.msrb.mxu3 %v7681_v61  ;;  %v7692_v61 = vld [vmem:[#allocation98_spill] sm:$0xff] }
 0x3ed   :  { %2290 = vmatpush.bf16.msrb.mxu1 %v7683_v16  ;;  %2252 = vmatpush.bf16.msra.mxu2 %v7684_v40  ;;  %v7694_v16 = vld [vmem:[#allocation114_spill] sm:$0xff] }
 0x3ee   :  { %2266 = vmatpush.bf16.msrb.mxu3 %v7685_v8  ;;  %v7695_v40 = vld [vmem:[#allocation102_spill] sm:$0xff] }
 0x3ef   :  { %v7696_v8 = vld [vmem:[#allocation106_spill] sm:$0xff] }
 0x3f1   :  { %2291 = vmatpush.bf16.msrb.mxu1 %v7686_v44  ;;  %2253 = vmatpush.bf16.msra.mxu2 %v7687_v63  ;;  %v7697_v44 = vld [vmem:[#allocation110_spill] sm:$0xff]  ;;  %v7698_v63 = vld [vmem:[#allocation116_spill] sm:$0xff] }
 0x3f2   :  { %2267 = vmatpush.bf16.msrb.mxu3 %v7688_v46  ;;  %v1841_v46 = vpop.f32.mrf.mxu0 }
 0x3f5   :  { %2292 = vmatpush.bf16.msrb.mxu1 %v7689_v20  ;;  %2254 = vmatpush.bf16.msra.mxu2 %v7690_v41  ;;  %v1855_v20 = vpop.f32.mrf.mxu1  ;;  %v1869_v41 = vpop.f32.mrf.mxu2 }
 0x3f6   :  { %2268 = vmatpush.bf16.msrb.mxu3 %v7691_v7 }
 0x3f9   :  { %2293 = vmatpush.bf16.msrb.mxu1 %v7692_v61  ;;  %2255 = vmatpush.bf16.msra.mxu2 %v7693_v42 }
 0x3fa   :  { %2269 = vmatpush.bf16.msrb.mxu3 %v7694_v16  ;;  %v1843_v55 = vpop.f32.mrf.mxu0 }
 0x3fd   :  { %2294 = vmatpush.bf16.msrb.mxu1 %v7695_v40  ;;  %v1857_v7 = vpop.f32.mrf.mxu1  ;;  %v1871_v61 = vpop.f32.mrf.mxu2 }
 0x401   :  { %2295 = vmatpush.bf16.msrb.mxu1 %v7696_v8 }
 0x405   :  { %2296 = vmatpush.bf16.msrb.mxu1 %v7697_v44 }
 0x409   :  { %2297 = vmatpush.bf16.msrb.mxu1 %v7698_v63 }
 0x428   :  { %v1897_v14 = vpop.f32.mrf.mxu0  ;;  %v1911_v42 = vpop.f32.mrf.mxu1 }
 0x429   :  { %v1898_v56 = vadd.f32 %v1897_v14, %v1841_v46  ;;  %v1912_v16 = vadd.f32 %v1911_v42, %v1855_v20 }
 0x42b   :  { %v1944_v40 = vadd.f32 %v1898_v56, %v7594_v26  ;;  %v1945_v8 = vadd.f32 %v1912_v16, %v7595_v53 }
 0x42d   :  { %v1952_v57 = vmul.f32 0.5, %v1944_v40  ;;  %v1960_v44 = vmul.f32 0.5, %v1945_v8 }
 0x42f   :  { %4649 = vtanh.f32 %v1952_v57  ;;  %v1925_v63 = vpop.f32.mrf.mxu2  ;;  %v1939_v34 = vpop.f32.mrf.mxu3 }
 0x430   :  { %4651 = vtanh.f32 %v1960_v44  ;;  %v1926_v11 = vadd.f32 %v1925_v63, %v1869_v41  ;;  %v1899_v28 = vpop.f32.mrf.mxu0  ;;  %v1913_v9 = vpop.f32.mrf.mxu1  ;;  %v1940_v60 = vadd.f32 %v1939_v34, %v1883_v21 }
 0x431   :  { %v1900_v17 = vadd.f32 %v1899_v28, %v1843_v55  ;;  %v1914_v39 = vadd.f32 %v1913_v9, %v1857_v7 }
 0x432   :  { %v1946_v29 = vadd.f32 %v1926_v11, %v5734_v1  ;;  %v1947_v8 = vadd.f32 %v1940_v60, %v5738_v12 }
 0x433   :  { %v1948_v14 = vadd.f32 %v1900_v17, %v7594_v26  ;;  %v1949_v56 = vadd.f32 %v1914_v39, %v7595_v53 }
 0x434   :  { %4653 = vtanh.f32 %v1946_v29  ;;  %v1970_v7 = vmul.f32 0.5, %v1947_v8 }
 0x435   :  { %v4650_v20 = vpop.eup %4649  ;;  %v1953_v46 = vmul.f32 0.5, %v1948_v14  ;;  %v1961_v16 = vmul.f32 0.5, %v1949_v56 }
 0x436   :  { %v4652_v57 = vpop.eup %4651  ;;  %v1956_v40 = vadd.f32 1.0, %v4650_v20 }
 0x437   :  { %v1964_v41 = vadd.f32 1.0, %v4652_v57  ;;  %4655 = vtanh.f32 %v1953_v46  ;;  %v1927_v63 = vpop.f32.mrf.mxu2  ;;  %v1941_v28 = vpop.f32.mrf.mxu3 }
 0x438   :  { %4657 = vtanh.f32 %v1961_v16  ;;  %v1928_v9 = vadd.f32 %v1927_v63, %v1871_v61  ;;  %v1942_v11 = vadd.f32 %v1941_v28, %v1885_v62  ;;  %v1958_v34 = vmul.f32 0.5, %v1956_v40 }
 0x439   :  { %v1966_v55 = vmul.f32 0.5, %v1964_v41 }
 0x43a   :  { %v4654_v17 = vpop.eup %4653  ;;  %v1950_v29 = vadd.f32 %v1928_v9, %v5734_v1  ;;  %v1951_v39 = vadd.f32 %v1942_v11, %v5738_v12 }
 0x43b   :  { %v1978_v60 = vmul.f32 %v1966_v55, %v5933_v23  ;;  %v1980_v42 = vmul.f32 %v4654_v17, %v1958_v34 }
 0x43c   :  { %4659 = vtanh.f32 %v1950_v29  ;;  %v1971_v21 = vmul.f32 0.5, %v1951_v39  ;;  %v6148_v39 = vld [vmem:[%s7061_s7 + $0x30] sm:$0xff] }
 0x43d   :  { %v4656_v44 = vpop.eup %4655  ;;  %4661 = vtanh.f32 %v1970_v7  ;;  %v6126_v61 = vadd.f32 %v1980_v42, %v1978_v60  ;;  %v6176_v60 = vld [vmem:[%s7061_s7 + $0x18] sm:$0xff]  ;;  %v6194_v42 = vld [vmem:[%s7061_s7 + $0x8] sm:$0xff] }
 0x43e   :  { %v4658_v14 = vpop.eup %4657  ;;  %v1957_v56 = vadd.f32 1.0, %v4656_v44  ;;  %4663 = vtanh.f32 %v1971_v21  ;;  %v6157_v21 = vld [vmem:[%s7061_s7 + $0x28] sm:$0xff]  ;;  %v6166_v44 = vld [vmem:[%s7061_s7 + $0x20] sm:$0xff] }
 0x43f   :  { %v1965_v20 = vadd.f32 1.0, %v4658_v14  ;;  %4665 = vtanh.f32 %v6126_v61  ;;  %v6204_v14 = vld [vmem:[%s7061_s7] sm:$0xff] }
 0x440   :  { %v1959_v62 = vmul.f32 0.5, %v1957_v56  ;;  %7699 = vst [vmem:[#allocation81_spill] sm:$0xff] %v6204_v14  ;;  %v7700_v56 = vld [vmem:[#allocation17_spill] sm:$0xff] }
 0x441   :  { %v1967_v46 = vmul.f32 0.5, %v1965_v20  ;;  %v7701_v20 = vld [vmem:[#allocation19_spill] sm:$0xff] }
 0x442   :  { %v4660_v16 = vpop.eup %4659 }
 0x443   :  { %v1979_v57 = vmul.f32 %v1967_v46, %v5937_v32  ;;  %v1981_v40 = vmul.f32 %v4660_v16, %v1959_v62  ;;  %v4662_v8 = vpop.eup %4661  ;;  %v6139_v32 = vld [vmem:[%s7061_s7 + $0x38] sm:$0xff]  ;;  %v7702_v62 = vld [vmem:[#allocation21_spill] sm:$0xff]  ;;  %v7703_v46 = vld [vmem:[#allocation23_spill] sm:$0xff] }
 0x444   :  { %v4664_v41 = vpop.eup %4663  ;;  %v1974_v23 = vadd.f32 1.0, %v4662_v8  ;;  %v7704_v16 = vld [vmem:[#allocation25_spill] sm:$0xff]  ;;  %v7707_v8 = vld [vmem:[#allocation32_spill] sm:$0xff] }
 0x445   :  { %v6130_v63 = vadd.f32 %v1981_v40, %v1979_v57  ;;  %v1975_v28 = vadd.f32 1.0, %v4664_v41  ;;  %v4666_v9 = vpop.eup %4665  ;;  %v7705_v57 = vld [vmem:[#allocation27_spill] sm:$0xff]  ;;  %v7706_v40 = vld [vmem:[#allocation29_spill] sm:$0xff]  ;;  %v2026_v41 = vpop.f32.mrf.mxu2 }
 0x446   :  { %v1976_v11 = vmul.f32 0.5, %v1974_v23  ;;  %v2012_v23 = vpop.f32.mrf.mxu1 }
 0x447   :  { %4667 = vtanh.f32 %v6130_v63  ;;  %v1977_v34 = vmul.f32 0.5, %v1975_v28 }
 0x448   :  { %v1986_v17 = vmul.f32 %v4666_v9, %v1976_v11  ;;  %v2040_v11 = vpop.f32.mrf.mxu3 }
 0x44d   :  { %v4668_v55 = vpop.eup %4667  ;;  %v2028_v28 = vpop.f32.mrf.mxu2 }
 0x44e   :  { %v1987_v7 = vmul.f32 %v4668_v55, %v1977_v34  ;;  %v2014_v9 = vpop.f32.mrf.mxu1 }
 0x450   :  { %v1988_v29 = vpack.c.bf16 %v1987_v7, %v1986_v17  ;;  %v2042_v17 = vpop.f32.mrf.mxu3 }
 0x452   :  { %1997 = vmatmul.bf16.vlgmr.msra.gmra.mxu0 %v1988_v29  ;;  %2200 = vmatmul.bf16.vlgmr.msrb.gmra.mxu2 %v1988_v29 }
 0x453   :  { %2214 = vmatmul.bf16.vlgmr.msra.gmra.mxu3 %v1988_v29  ;;  %2242 = vmatmul.bf16.vlgmr.msra.gmra.mxu1 %v1988_v29 }
 0x454   :  { %2220 = vmatpush.bf16.msra.mxu0 %v7498_v50  ;;  %2363 = vmatpush.bf16.msra.mxu3 %v5107_v4 }
 0x455   :  { %2391 = vmatpush.bf16.msra.mxu1 %v5131_v36  ;;  %2349 = vmatpush.bf16.msrb.mxu2 %v6139_v32  ;;  %v2114_v34 = vpop.f32.mrf.mxu2 }
 0x456   :  { %v2100_v55 = vpop.f32.mrf.mxu1 }
 0x458   :  { %2221 = vmatpush.bf16.msra.mxu0 %v7499_v2  ;;  %2364 = vmatpush.bf16.msra.mxu3 %v5114_v13 }
 0x459   :  { %2392 = vmatpush.bf16.msra.mxu1 %v5143_v48  ;;  %2350 = vmatpush.bf16.msrb.mxu2 %v6148_v39 }
 0x45c   :  { %2222 = vmatpush.bf16.msra.mxu0 %v7500_v31  ;;  %2365 = vmatpush.bf16.msra.mxu3 %v5123_v25 }
 0x45d   :  { %2393 = vmatpush.bf16.msra.mxu1 %v5155_v0  ;;  %2351 = vmatpush.bf16.msrb.mxu2 %v6157_v21  ;;  %v2116_v7 = vpop.f32.mrf.mxu2 }
 0x460   :  { %2223 = vmatpush.bf16.msra.mxu0 %v7501_v43  ;;  %2366 = vmatpush.bf16.msra.mxu3 %v5134_v37 }
 0x461   :  { %2394 = vmatpush.bf16.msra.mxu1 %v5175_v30  ;;  %2352 = vmatpush.bf16.msrb.mxu2 %v6166_v44 }
 0x462   :  { %2053 = vmatmul.bf16.vlgmr.msrb.gmra.mxu0 %v6014_v22  ;;  %v6185_v22 = vld [vmem:[%s7061_s7 + $0x10] sm:$0xff] }
 0x464   :  { %2224 = vmatpush.bf16.msra.mxu0 %v7502_v51  ;;  %2367 = vmatpush.bf16.msra.mxu3 %v5146_v52 }
 0x465   :  { %2395 = vmatpush.bf16.msra.mxu1 %v5202_v47  ;;  %2353 = vmatpush.bf16.msrb.mxu2 %v6176_v60 }
 0x468   :  { %2225 = vmatpush.bf16.msra.mxu0 %v7503_v59  ;;  %2368 = vmatpush.bf16.msra.mxu3 %v5158_v15 }
 0x469   :  { %2396 = vmatpush.bf16.msra.mxu1 %v5204_v49  ;;  %2354 = vmatpush.bf16.msrb.mxu2 %v6185_v22 }
 0x46c   :  { %2226 = vmatpush.bf16.msra.mxu0 %v7504_v58  ;;  %2369 = vmatpush.bf16.msra.mxu3 %v5172_v27 }
 0x46d   :  { %2397 = vmatpush.bf16.msra.mxu1 %v5208_v54  ;;  %2355 = vmatpush.bf16.msrb.mxu2 %v6194_v42 }
 0x470   :  { %2227 = vmatpush.bf16.msra.mxu0 %v7505_v24  ;;  %2370 = vmatpush.bf16.msra.mxu3 %v7596_v5 }
 0x471   :  { %2398 = vmatpush.bf16.msra.mxu1 %v7598_v45  ;;  %2356 = vmatpush.bf16.msrb.mxu2 %v6204_v14 }
 0x473   :  { %2228 = vmatmul.bf16.vlgmr.msra.gmra.mxu0 %v1988_v29  ;;  %v2115_v29 = vadd.f32 %v2114_v34, %v2026_v41 }
 0x474   :  { %2276 = vmatpush.bf16.msrb.mxu0 %v7597_v10 }
 0x478   :  { %2277 = vmatpush.bf16.msrb.mxu0 %v7600_v33 }
 0x47c   :  { %2278 = vmatpush.bf16.msrb.mxu0 %v7601_v6 }
 0x480   :  { %2279 = vmatpush.bf16.msrb.mxu0 %v7602_v35 }
 0x484   :  { %2280 = vmatpush.bf16.msrb.mxu0 %v7603_v38  ;;  %v7710_v38 = vld [vmem:[#allocation111_spill] sm:$0xff] }
 0x488   :  { %2281 = vmatpush.bf16.msrb.mxu0 %v7604_v19 }
 0x48c   :  { %2282 = vmatpush.bf16.msrb.mxu0 %v7605_v3  ;;  %v7709_v3 = vld [vmem:[#allocation69_spill] sm:$0xff] }
 0x490   :  { %2283 = vmatpush.bf16.msrb.mxu0 %v7606_v18  ;;  %v7708_v18 = vld [vmem:[#allocation112_spill] sm:$0xff] }
 0x494   :  { %2377 = vmatpush.bf16.msra.mxu0 %v7700_v56 }
 0x498   :  { %2378 = vmatpush.bf16.msra.mxu0 %v7701_v20  ;;  %v2101_v20 = vadd.f32 %v2100_v55, %v2012_v23 }
 0x49a   :  { %v2147_v35 = vadd.f32 %v2101_v20, %v7710_v38 }
 0x49c   :  { %2379 = vmatpush.bf16.msra.mxu0 %v7702_v62  ;;  %v2102_v62 = vpop.f32.mrf.mxu1  ;;  %v2155_v34 = vmul.f32 0.5, %v2147_v35 }
 0x49d   :  { %v2103_v56 = vadd.f32 %v2102_v62, %v2014_v9 }
 0x49f   :  { %v2151_v6 = vadd.f32 %v2103_v56, %v7710_v38 }
 0x4a0   :  { %2380 = vmatpush.bf16.msra.mxu0 %v7703_v46  ;;  %v2117_v46 = vadd.f32 %v2116_v7, %v2028_v28 }
 0x4a1   :  { %v2156_v28 = vmul.f32 0.5, %v2151_v6 }
 0x4a2   :  { %v2152_v19 = vadd.f32 %v2117_v46, %v7708_v18 }
 0x4a4   :  { %2381 = vmatpush.bf16.msra.mxu0 %v7704_v16  ;;  %v2128_v16 = vpop.f32.mrf.mxu3  ;;  %v2164_v41 = vmul.f32 0.5, %v2152_v19  ;;  %v2142_v20 = vpop.f32.mrf.mxu1 }
 0x4a8   :  { %2382 = vmatpush.bf16.msra.mxu0 %v7705_v57 }
 0x4ac   :  { %2383 = vmatpush.bf16.msra.mxu0 %v7706_v40  ;;  %v2148_v40 = vadd.f32 %v2115_v29, %v7708_v18  ;;  %v2130_v62 = vpop.f32.mrf.mxu3 }
 0x4ad   :  { %v2131_v46 = vadd.f32 %v2130_v62, %v2042_v17 }
 0x4ae   :  { %v2163_v33 = vmul.f32 0.5, %v2148_v40 }
 0x4b0   :  { %2384 = vmatpush.bf16.msra.mxu0 %v7707_v8  ;;  %4669 = vtanh.f32 %v2163_v33 }
 0x4b1   :  { %4671 = vtanh.f32 %v2164_v41  ;;  %v7712_v41 = vld [vmem:[#allocation122_spill] sm:$0xff] }
 0x4b2   :  { %4673 = vtanh.f32 %v2155_v34 }
 0x4b3   :  { %4675 = vtanh.f32 %v2156_v28 }
 0x4b6   :  { %v4670_v55 = vpop.eup %4669 }
 0x4b7   :  { %v4672_v56 = vpop.eup %4671  ;;  %v2167_v29 = vadd.f32 1.0, %v4670_v55 }
 0x4b8   :  { %v4674_v6 = vpop.eup %4673 }
 0x4b9   :  { %v4676_v33 = vpop.eup %4675  ;;  %v2169_v28 = vmul.f32 0.5, %v2167_v29 }
 0x4cf   :  { %v1998_v57 = vpop.f32.mrf.mxu0 }
 0x4d0   :  { %v1999_v8 = vadd.f32 %v7709_v3, %v1998_v57  ;;  %v2129_v57 = vadd.f32 %v2128_v16, %v2040_v11  ;;  %v2159_v16 = vadd.f32 1.0, %v4674_v6  ;;  %v2160_v11 = vadd.f32 1.0, %v4676_v33 }
 0x4d2   :  { %3835 = vrot.lane.b32.xlu1 %v1999_v8, %s5032_s12  ;;  %v7711_v8 = vld [vmem:[#allocation120_spill] sm:$0xff]  ;;  %v2161_v62 = vmul.f32 0.5, %v2159_v16 }
 0x4d3   :  { %v2149_v7 = vadd.f32 %v2129_v57, %v7711_v8  ;;  %v2153_v19 = vadd.f32 %v2131_v46, %v7711_v8  ;;  %v2162_v46 = vmul.f32 0.5, %v2160_v11 }
 0x4d5   :  { %4677 = vtanh.f32 %v2149_v7  ;;  %v7714_v7 = vld [vmem:[#allocation77_spill] sm:$0xff] }
 0x4d6   :  { %4679 = vtanh.f32 %v2153_v19 }
 0x4d7   :  { %v2000_v23 = vpop.f32.mrf.mxu0 }
 0x4d8   :  { %v2001_v9 = vadd.f32 %v7709_v3, %v2000_v23  ;;  %v2168_v3 = vadd.f32 1.0, %v4672_v56 }
 0x4da   :  { %3837 = vrot.lane.b32.xlu1 %v2001_v9, %s5032_s12  ;;  %v2170_v23 = vmul.f32 0.5, %v2168_v3  ;;  %v2144_v9 = vpop.f32.mrf.mxu1 }
 0x4db   :  { %v4678_v18 = vpop.eup %4677 }
 0x4dc   :  { %v2182_v56 = vmul.f32 %v2170_v23, %v7714_v7  ;;  %v2183_v6 = vmul.f32 %v4678_v18, %v2161_v62 }
 0x4df   :  { %v2054_v35 = vpop.f32.mrf.mxu0 }
 0x4e0   :  { %v2143_v40 = vadd.f32 %v2142_v20, %v2054_v35  ;;  %v4680_v20 = vpop.eup %4679  ;;  %v7713_v35 = vld [vmem:[#allocation73_spill] sm:$0xff] }
 0x4e1   :  { %v2181_v55 = vmul.f32 %v2169_v28, %v7713_v35  ;;  %v2184_v19 = vmul.f32 %v4680_v20, %v2162_v46  ;;  %v7717_v46 = vld [vmem:[#allocation35_spill] sm:$0xff]  ;;  %v7718_v20 = vld [vmem:[#allocation36_spill] sm:$0xff]  ;;  %v7719_v35 = vld [vmem:[#allocation34_spill] sm:$0xff] }
 0x4e2   :  { %v2150_v34 = vadd.f32 %v2143_v40, %v7712_v41 }
 0x4e3   :  { %v6236_v3 = vadd.f32 %v2184_v19, %v2182_v56  ;;  %v7721_v56 = vld [vmem:[#allocation38_spill] sm:$0xff] }
 0x4e4   :  { %v2173_v17 = vmul.f32 0.5, %v2150_v34  ;;  %v6234_v34 = vadd.f32 %v2183_v6, %v2181_v55  ;;  %v7720_v55 = vld [vmem:[#allocation41_spill] sm:$0xff]  ;;  %v7722_v6 = vld [vmem:[#allocation46_spill] sm:$0xff] }
 0x4e5   :  { %7716 = vst [vmem:[#allocation125_spill] sm:$0xff] %v6236_v3  ;;  %v2419_v7 = vrot.slane %v7720_v55, 4  ;;  %v2433_v19 = vrot.slane %v7722_v6, 4 }
 0x4e6   :  { %4681 = vtanh.f32 %v2173_v17  ;;  %7715 = vst [vmem:[#allocation124_spill] sm:$0xff] %v6234_v34 }
 0x4e7   :  { %v2056_v57 = vpop.f32.mrf.mxu0 }
 0x4e8   :  { %v2145_v8 = vadd.f32 %v2144_v9, %v2056_v57 }
 0x4ea   :  { %v2154_v40 = vadd.f32 %v2145_v8, %v7712_v41 }
 0x4ec   :  { %v2174_v33 = vmul.f32 0.5, %v2154_v40  ;;  %v4682_v29 = vpop.eup %4681  ;;  %v2420_v40 = vrot.slane %v7721_v56, 3 }
 0x4ed   :  { %v2177_v16 = vadd.f32 1.0, %v4682_v29 }
 0x4ee   :  { %4683 = vtanh.f32 %v2174_v33  ;;  %v7723_v33 = vld [vmem:[#allocation47_spill] sm:$0xff] }
 0x4ef   :  { %4685 = vtanh.f32 %v6234_v34  ;;  %v2179_v17 = vmul.f32 0.5, %v2177_v16  ;;  %v2434_v29 = vrot.slane %v7723_v33, 3  ;;  %v7724_v16 = vld [vmem:[#allocation18_spill] sm:$0xff] }
 0x4f0   :  { %4687 = vtanh.f32 %v6236_v3 }
 0x4f4   :  { %v4684_v11 = vpop.eup %4683 }
 0x4f5   :  { %v2178_v28 = vadd.f32 1.0, %v4684_v11  ;;  %v4686_v23 = vpop.eup %4685  ;;  %v7725_v11 = vld [vmem:[#allocation39_spill] sm:$0xff] }
 0x4f6   :  { %v4688_v8 = vpop.eup %4687  ;;  %v2189_v18 = vmul.f32 %v4686_v23, %v2179_v17  ;;  %v2422_v17 = vrot.slane %v7725_v11, 2 }
 0x4f7   :  { %v2180_v9 = vmul.f32 0.5, %v2178_v28  ;;  %v7726_v28 = vld [vmem:[#allocation48_spill] sm:$0xff] }
 0x4f8   :  { %v2436_v23 = vrot.slane %v7726_v28, 2 }
 0x4f9   :  { %v2190_v62 = vmul.f32 %v4688_v8, %v2180_v9  ;;  %v2421_v9 = vsel %vm474_vm0, %v2420_v40, %v2419_v7  ;;  %v2435_v8 = vsel %vm474_vm0, %v2434_v29, %v2433_v19  ;;  %v7732_v40 = vld [vmem:[#allocation51_spill] sm:$0xff]  ;;  %v7733_v29 = vld [vmem:[#allocation24_spill] sm:$0xff] }
 0x4fa   :  { %v2423_v6 = vsel %vm477_vm1, %v2422_v17, %v2421_v9  ;;  %v2437_v33 = vsel %vm477_vm1, %v2436_v23, %v2435_v8  ;;  %v2441_v19 = vrot.slane %v7732_v40, 7  ;;  %v7735_v17 = vld [vmem:[#allocation50_spill] sm:$0xff]  ;;  %v7739_v8 = vld [vmem:[#allocation67_spill] sm:$0xff] }
 0x4fb   :  { %v6240_v57 = vpack.c.bf16 %v2190_v62, %v2189_v18  ;;  %v7727_v18 = vld [vmem:[#allocation20_spill] sm:$0xff]  ;;  %v7738_v9 = vld [vmem:[#allocation54_spill] sm:$0xff] }
 0x4fc   :  { %v7728_v62 = vld [vmem:[#allocation40_spill] sm:$0xff] }
 0x4fd   :  { %2256 = vmatmul.bf16.vlgmr.msra.gmra.mxu2 %v6240_v57  ;;  %2270 = vmatmul.bf16.vlgmr.msrb.gmra.mxu3 %v6240_v57  ;;  %v2424_v55 = vrot.slane %v7728_v62, 1  ;;  %v7734_v62 = vld [vmem:[#allocation42_spill] sm:$0xff] }
 0x4fe   :  { %2284 = vmatmul.bf16.vlgmr.msrb.gmra.mxu0 %v6240_v57  ;;  %2298 = vmatmul.bf16.vlgmr.msrb.gmra.mxu1 %v6240_v57 }
 0x4ff   :  { %2458 = vmatpush.bf16.msrb.mxu3 %v7717_v46  ;;  %2472 = vmatpush.bf16.msrb.mxu0 %v7718_v20  ;;  %v7730_v20 = vld [vmem:[#allocation22_spill] sm:$0xff]  ;;  %v2425_v11 = vsel %vm480_vm2, %v2424_v55, %v2423_v6  ;;  %v7736_v55 = vld [vmem:[#allocation44_spill] sm:$0xff] }
 0x500   :  { %2486 = vmatpush.bf16.msrb.mxu1 %v7719_v35  ;;  %2405 = vmatpush.bf16.msra.mxu2 %v7724_v16  ;;  %v7729_v35 = vld [vmem:[#allocation49_spill] sm:$0xff]  ;;  %v7731_v16 = vld [vmem:[#allocation43_spill] sm:$0xff]  ;;  %v7737_v6 = vld [vmem:[#allocation52_spill] sm:$0xff] }
 0x501   :  { %v2438_v56 = vrot.slane %v7729_v35, 1  ;;  %v2427_v7 = vrot.slane %v7731_v16, 7  ;;  %v2426_v35 = vsel %vm483_vm3, %v7734_v62, %v2425_v11  ;;  %v7740_v11 = vld [vmem:[#allocation55_spill] sm:$0xff]  ;;  %v7743_v62 = vld [vmem:[#allocation53_spill] sm:$0xff] }
 0x503   :  { %v2439_v28 = vsel %vm480_vm2, %v2438_v56, %v2437_v33  ;;  %v2429_v56 = vrot.slane %v7736_v55, 6  ;;  %v2443_v33 = vrot.slane %v7737_v6, 6  ;;  %v2428_v40 = vsel %vm486_vm4, %v2427_v7, %v2426_v35 }
 0x504   :  { %2406 = vmatpush.bf16.msra.mxu2 %v7727_v18  ;;  %v2440_v23 = vsel %vm483_vm3, %v7735_v17, %v2439_v28  ;;  %v7742_v28 = vld [vmem:[#allocation45_spill] sm:$0xff]  ;;  %v7744_v18 = vld [vmem:[#allocation71_spill] sm:$0xff] }
 0x505   :  { %v2442_v16 = vsel %vm486_vm4, %v2441_v19, %v2440_v23  ;;  %v2431_v17 = vrot.slane %v7742_v28, 5  ;;  %v2430_v55 = vsel %vm489_vm5, %v2429_v56, %v2428_v40  ;;  %v7747_v19 = vld [vmem:[#allocation75_spill] sm:$0xff]  ;;  %v7748_v23 = vld [vmem:[#allocation61_spill] sm:$0xff]  ;;  %v7749_v28 = vld [vmem:[#allocation30_spill] sm:$0xff] }
 0x506   :  { %v2444_v6 = vsel %vm489_vm5, %v2443_v33, %v2442_v16  ;;  %v7750_v40 = vld [vmem:[#allocation79_spill] sm:$0xff]  ;;  %v7751_v16 = vld [vmem:[#allocation64_spill] sm:$0xff]  ;;  %v7752_v56 = vld [vmem:[#allocation33_spill] sm:$0xff] }
 0x507   :  { %v2432_v35 = vsel %vm492_vm6, %v2431_v17, %v2430_v55  ;;  %v7754_v17 = vld [vmem:[#allocation83_spill] sm:$0xff]  ;;  %v7755_v55 = vld [vmem:[#allocation68_spill] sm:$0xff] }
 0x508   :  { %2407 = vmatpush.bf16.msra.mxu2 %v7730_v20  ;;  %v2445_v20 = vrot.slane %v7743_v62, 5  ;;  %v7757_v33 = vld [vmem:[#allocation87_spill] sm:$0xff] }
 0x50a   :  { %v2446_v7 = vsel %vm492_vm6, %v2445_v20, %v2444_v6  ;;  %v7753_v20 = vld [vmem:[#allocation59_spill] sm:$0xff]  ;;  %v7756_v6 = vld [vmem:[#allocation60_spill] sm:$0xff] }
 0x50b   :  { %v2447_v62 = vpack.c.b16 %v2446_v7, %v2432_v35  ;;  %v7758_v35 = vld [vmem:[#allocation72_spill] sm:$0xff]  ;;  %v7759_v7 = vld [vmem:[#allocation63_spill] sm:$0xff] }
 0x50c   :  { %2408 = vmatpush.bf16.msra.mxu2 %v7733_v29  ;;  %v7741_v29 = vld [vmem:[#allocation26_spill] sm:$0xff] }
 0x50d   :  { %2371 = vmatmul.bf16.vlgmr.msra.gmra.mxu3 %v6240_v57 }
 0x50e   :  { %2385 = vmatmul.bf16.vlgmr.msra.gmra.mxu0 %v6240_v57  ;;  %2399 = vmatmul.bf16.vlgmr.msra.gmra.mxu1 %v6240_v57 }
 0x50f   :  { %2500 = vmatpush.bf16.msra.mxu3 %v7738_v9  ;;  %2552 = vmatpush.bf16.msra.mxu0 %v7739_v8  ;;  %v7745_v9 = vld [vmem:[#allocation57_spill] sm:$0xff]  ;;  %v7746_v8 = vld [vmem:[#allocation28_spill] sm:$0xff] }
 0x510   :  { %2566 = vmatpush.bf16.msra.mxu1 %v7740_v11  ;;  %2409 = vmatpush.bf16.msra.mxu2 %v7741_v29 }
 0x513   :  { %2553 = vmatpush.bf16.msra.mxu0 %v7744_v18 }
 0x514   :  { %2567 = vmatpush.bf16.msra.mxu1 %v7745_v9  ;;  %2410 = vmatpush.bf16.msra.mxu2 %v7746_v8 }
 0x517   :  { %2554 = vmatpush.bf16.msra.mxu0 %v7747_v19 }
 0x518   :  { %2568 = vmatpush.bf16.msra.mxu1 %v7748_v23  ;;  %2411 = vmatpush.bf16.msra.mxu2 %v7749_v28  ;;  %v7763_v28 = vld [vmem:[#allocation95_spill] sm:$0xff] }
 0x51b   :  { %2555 = vmatpush.bf16.msra.mxu0 %v7750_v40  ;;  %v7762_v40 = vld [vmem:[#allocation66_spill] sm:$0xff] }
 0x51c   :  { %2569 = vmatpush.bf16.msra.mxu1 %v7751_v16  ;;  %2412 = vmatpush.bf16.msra.mxu2 %v7752_v56  ;;  %v7760_v56 = vld [vmem:[#allocation91_spill] sm:$0xff]  ;;  %v7761_v16 = vld [vmem:[#allocation76_spill] sm:$0xff] }
 0x51d   :  { %4396 = vmatmul.msk.bf16.vlgmr.msrb.gmra.mxu3 %vm529_vm7, %v2447_v62 }
 0x51e   :  { %4397 = vmatmul.msk.bf16.vlgmr.msrb.gmra.mxu0 %vm529_vm7, %v2447_v62  ;;  %4398 = vmatmul.msk.bf16.vlgmr.msrb.gmra.mxu1 %vm529_vm7, %v2447_v62 }
 0x51f   :  { %2594 = vmatpush.bf16.msrb.mxu3 %v7753_v20  ;;  %2556 = vmatpush.bf16.msra.mxu0 %v7754_v17  ;;  %v7764_v20 = vld [vmem:[#allocation80_spill] sm:$0xff]  ;;  %v7765_v17 = vld [vmem:[#allocation99_spill] sm:$0xff] }
 0x520   :  { %2570 = vmatpush.bf16.msra.mxu1 %v7755_v55  ;;  %v2201_v55 = vpop.f32.mrf.mxu2 }
 0x523   :  { %2595 = vmatpush.bf16.msrb.mxu3 %v7756_v6  ;;  %2557 = vmatpush.bf16.msra.mxu0 %v7757_v33  ;;  %v7766_v6 = vld [vmem:[#allocation84_spill] sm:$0xff]  ;;  %v7767_v33 = vld [vmem:[#allocation70_spill] sm:$0xff] }
 0x524   :  { %2571 = vmatpush.bf16.msra.mxu1 %v7758_v35  ;;  %v7768_v35 = vld [vmem:[#allocation103_spill] sm:$0xff] }
 0x527   :  { %2596 = vmatpush.bf16.msrb.mxu3 %v7759_v7  ;;  %2558 = vmatpush.bf16.msra.mxu0 %v7760_v56  ;;  %v7769_v7 = vld [vmem:[#allocation88_spill] sm:$0xff]  ;;  %v7770_v56 = vld [vmem:[#allocation74_spill] sm:$0xff] }
 0x528   :  { %2572 = vmatpush.bf16.msra.mxu1 %v7761_v16  ;;  %v7771_v16 = vld [vmem:[#allocation107_spill] sm:$0xff]  ;;  %v2203_v19 = vpop.f32.mrf.mxu2 }
 0x52b   :  { %2597 = vmatpush.bf16.msrb.mxu3 %v7762_v40  ;;  %2559 = vmatpush.bf16.msra.mxu0 %v7763_v28  ;;  %v7772_v40 = vld [vmem:[#allocation92_spill] sm:$0xff]  ;;  %v7773_v28 = vld [vmem:[#allocation78_spill] sm:$0xff] }
 0x52c   :  { %2573 = vmatpush.bf16.msra.mxu1 %v7764_v20  ;;  %v7774_v20 = vld [vmem:[#allocation113_spill] sm:$0xff] }
 0x52d   :  { %4399 = vmatmul.msk.bf16.vlgmr.msra.gmra.mxu3 %vm529_vm7, %v2447_v62  ;;  %v7776_v62 = vld [vmem:[#allocation82_spill] sm:$0xff] }
 0x52f   :  { %2608 = vmatpush.bf16.msrb.mxu0 %v7765_v17  ;;  %2598 = vmatpush.bf16.msrb.mxu3 %v7767_v33  ;;  %v7775_v17 = vld [vmem:[#allocation96_spill] sm:$0xff]  ;;  %v7778_v33 = vld [vmem:[#allocation117_spill] sm:$0xff] }
 0x530   :  { %2622 = vmatpush.bf16.msrb.mxu1 %v7766_v6  ;;  %v7777_v6 = vld [vmem:[#allocation86_spill] sm:$0xff] }
 0x533   :  { %2609 = vmatpush.bf16.msrb.mxu0 %v7768_v35  ;;  %2599 = vmatpush.bf16.msrb.mxu3 %v7770_v56  ;;  %v7779_v35 = vld [vmem:[#allocation100_spill] sm:$0xff]  ;;  %v7781_v56 = vld [vmem:[#allocation118_spill] sm:$0xff] }
 0x534   :  { %2623 = vmatpush.bf16.msrb.mxu1 %v7769_v7  ;;  %v7780_v7 = vld [vmem:[#allocation90_spill] sm:$0xff] }
 0x537   :  { %2610 = vmatpush.bf16.msrb.mxu0 %v7771_v16  ;;  %2600 = vmatpush.bf16.msrb.mxu3 %v7773_v28  ;;  %v7782_v16 = vld [vmem:[#allocation104_spill] sm:$0xff]  ;;  %v7784_v28 = vld [vmem:[#allocation119_spill] sm:$0xff] }
 0x538   :  { %2624 = vmatpush.bf16.msrb.mxu1 %v7772_v40  ;;  %v7783_v40 = vld [vmem:[#allocation94_spill] sm:$0xff] }
 0x53b   :  { %2611 = vmatpush.bf16.msrb.mxu0 %v7774_v20  ;;  %2601 = vmatpush.bf16.msrb.mxu3 %v7776_v62  ;;  %v7785_v20 = vld [vmem:[#allocation108_spill] sm:$0xff]  ;;  %v7787_v62 = vld [vmem:[#allocation121_spill] sm:$0xff] }
 0x53c   :  { %2625 = vmatpush.bf16.msrb.mxu1 %v7775_v17  ;;  %v7786_v17 = vld [vmem:[#allocation98_spill] sm:$0xff] }
 0x53f   :  { %2650 = vmatpush.bf16.msra.mxu3 %v7777_v6  ;;  %2612 = vmatpush.bf16.msrb.mxu0 %v7778_v33  ;;  %v7788_v6 = vld [vmem:[#allocation114_spill] sm:$0xff] }
 0x540   :  { %2626 = vmatpush.bf16.msrb.mxu1 %v7779_v35  ;;  %v7789_v33 = vld [vmem:[#allocation102_spill] sm:$0xff] }
 0x541   :  { %v7790_v35 = vld [vmem:[#allocation106_spill] sm:$0xff] }
 0x543   :  { %2651 = vmatpush.bf16.msra.mxu3 %v7780_v7  ;;  %2613 = vmatpush.bf16.msrb.mxu0 %v7781_v56  ;;  %v7791_v7 = vld [vmem:[#allocation110_spill] sm:$0xff]  ;;  %v7792_v56 = vld [vmem:[#allocation116_spill] sm:$0xff] }
 0x544   :  { %2627 = vmatpush.bf16.msrb.mxu1 %v7782_v16  ;;  %v2243_v16 = vpop.f32.mrf.mxu1 }
 0x547   :  { %2652 = vmatpush.bf16.msra.mxu3 %v7783_v40  ;;  %2614 = vmatpush.bf16.msrb.mxu0 %v7784_v28  ;;  %v2229_v40 = vpop.f32.mrf.mxu0  ;;  %v2215_v28 = vpop.f32.mrf.mxu3 }
 0x548   :  { %2628 = vmatpush.bf16.msrb.mxu1 %v7785_v20 }
 0x54b   :  { %2653 = vmatpush.bf16.msra.mxu3 %v7786_v17  ;;  %2615 = vmatpush.bf16.msrb.mxu0 %v7787_v62 }
 0x54c   :  { %2629 = vmatpush.bf16.msrb.mxu1 %v7788_v6  ;;  %v2245_v23 = vpop.f32.mrf.mxu1 }
 0x54f   :  { %2654 = vmatpush.bf16.msra.mxu3 %v7789_v33  ;;  %v2231_v20 = vpop.f32.mrf.mxu0  ;;  %v2217_v17 = vpop.f32.mrf.mxu3 }
 0x553   :  { %2655 = vmatpush.bf16.msra.mxu3 %v7790_v35 }
 0x557   :  { %2656 = vmatpush.bf16.msra.mxu3 %v7791_v7 }
 0x55b   :  { %2657 = vmatpush.bf16.msra.mxu3 %v7792_v56 }
 0x57b   :  { %v2285_v8 = vpop.f32.mrf.mxu0  ;;  %v2299_v62 = vpop.f32.mrf.mxu1 }
 0x57c   :  { %v2286_v11 = vadd.f32 %v2285_v8, %v2229_v40  ;;  %v2300_v10 = vadd.f32 %v2299_v62, %v2243_v16 }
 0x57e   :  { %v2306_v45 = vadd.f32 %v2286_v11, %v5734_v1  ;;  %v2307_v40 = vadd.f32 %v2300_v10, %v5738_v12 }
 0x580   :  { %v2257_v9 = vpop.f32.mrf.mxu2  ;;  %v2271_v6 = vpop.f32.mrf.mxu3 }
 0x581   :  { %v2258_v18 = vadd.f32 %v2257_v9, %v2201_v55  ;;  %v2272_v33 = vadd.f32 %v2271_v6, %v2215_v28 }
 0x583   :  { %v2304_v35 = vadd.f32 %v2258_v18, %v7594_v26  ;;  %v2305_v7 = vadd.f32 %v2272_v33, %v7595_v53  ;;  %v2287_v46 = vpop.f32.mrf.mxu0  ;;  %v2301_v3 = vpop.f32.mrf.mxu1 }
 0x584   :  { %v2288_v9 = vadd.f32 %v2287_v46, %v2231_v20  ;;  %v2302_v28 = vadd.f32 %v2301_v3, %v2245_v23 }
 0x585   :  { %v2312_v29 = vmul.f32 0.5, %v2304_v35  ;;  %v2320_v56 = vmul.f32 0.5, %v2305_v7 }
 0x587   :  { %4689 = vtanh.f32 %v2312_v29 }
 0x588   :  { %4691 = vtanh.f32 %v2320_v56  ;;  %v2259_v34 = vpop.f32.mrf.mxu2  ;;  %v2273_v41 = vpop.f32.mrf.mxu3 }
 0x589   :  { %v2260_v38 = vadd.f32 %v2259_v34, %v2203_v19  ;;  %v2274_v14 = vadd.f32 %v2273_v41, %v2217_v17  ;;  %4693 = vtanh.f32 %v2306_v45  ;;  %v2310_v41 = vadd.f32 %v2288_v9, %v5734_v1 }
 0x58a   :  { %v2311_v34 = vadd.f32 %v2302_v28, %v5738_v12 }
 0x58b   :  { %v2308_v18 = vadd.f32 %v2260_v38, %v7594_v26  ;;  %v2309_v55 = vadd.f32 %v2274_v14, %v7595_v53  ;;  %v2330_v38 = vmul.f32 0.5, %v2307_v40 }
 0x58c   :  { %v2331_v14 = vmul.f32 0.5, %v2311_v34 }
 0x58d   :  { %v4690_v6 = vpop.eup %4689  ;;  %v2313_v33 = vmul.f32 0.5, %v2308_v18  ;;  %v2321_v8 = vmul.f32 0.5, %v2309_v55 }
 0x58e   :  { %v4692_v29 = vpop.eup %4691  ;;  %v2316_v56 = vadd.f32 1.0, %v4690_v6 }
 0x58f   :  { %v2324_v35 = vadd.f32 1.0, %v4692_v29  ;;  %4695 = vtanh.f32 %v2313_v33  ;;  %v4694_v11 = vpop.eup %4693 }
 0x590   :  { %4697 = vtanh.f32 %v2321_v8  ;;  %v2318_v3 = vmul.f32 0.5, %v2316_v56 }
 0x591   :  { %v2326_v46 = vmul.f32 0.5, %v2324_v35  ;;  %4699 = vtanh.f32 %v2310_v41 }
 0x592   :  { %v2340_v23 = vmul.f32 %v4694_v11, %v2318_v3  ;;  %4701 = vtanh.f32 %v2330_v38  ;;  %v7803_v38 = vld [vmem:[#allocation17_spill] sm:$0xff] }
 0x593   :  { %v2338_v45 = vmul.f32 %v2326_v46, %v6126_v61  ;;  %4703 = vtanh.f32 %v2331_v14  ;;  %v7802_v46 = vld [vmem:[#allocation115_spill] sm:$0xff]  ;;  %v7805_v11 = vld [vmem:[#allocation21_spill] sm:$0xff] }
 0x594   :  { %v7804_v14 = vld [vmem:[#allocation19_spill] sm:$0xff] }
 0x595   :  { %v4696_v19 = vpop.eup %4695  ;;  %v6352_v62 = vadd.f32 %v2340_v23, %v2338_v45  ;;  %v7807_v23 = vld [vmem:[#allocation25_spill] sm:$0xff]  ;;  %v7808_v45 = vld [vmem:[#allocation27_spill] sm:$0xff] }
 0x596   :  { %v4698_v16 = vpop.eup %4697  ;;  %v2317_v10 = vadd.f32 1.0, %v4696_v19  ;;  %v7806_v19 = vld [vmem:[#allocation23_spill] sm:$0xff] }
 0x597   :  { %v2325_v20 = vadd.f32 1.0, %v4698_v16  ;;  %v4700_v7 = vpop.eup %4699  ;;  %4705 = vtanh.f32 %v6352_v62  ;;  %v7809_v16 = vld [vmem:[#allocation29_spill] sm:$0xff] }
 0x598   :  { %v2319_v17 = vmul.f32 0.5, %v2317_v10  ;;  %v4702_v55 = vpop.eup %4701  ;;  %v7810_v10 = vld [vmem:[#allocation32_spill] sm:$0xff] }
 0x599   :  { %v2327_v9 = vmul.f32 0.5, %v2325_v20  ;;  %v4704_v6 = vpop.eup %4703  ;;  %v2334_v61 = vadd.f32 1.0, %v4702_v55  ;;  %v2372_v20 = vpop.f32.mrf.mxu3 }
 0x59a   :  { %v2341_v28 = vmul.f32 %v4700_v7, %v2319_v17  ;;  %v2335_v8 = vadd.f32 1.0, %v4704_v6  ;;  %v2386_v17 = vpop.f32.mrf.mxu0 }
 0x59b   :  { %v2339_v18 = vmul.f32 %v2327_v9, %v6130_v63  ;;  %v2336_v40 = vmul.f32 0.5, %v2334_v61  ;;  %v7793_v63 = vld [vmem:[#allocation85_spill] sm:$0xff] }
 0x59c   :  { %v2337_v56 = vmul.f32 0.5, %v2335_v8 }
 0x59d   :  { %v6356_v33 = vadd.f32 %v2341_v28, %v2339_v18  ;;  %v4706_v29 = vpop.eup %4705  ;;  %v2400_v28 = vpop.f32.mrf.mxu1 }
 0x59e   :  { %v2346_v41 = vmul.f32 %v4706_v29, %v2336_v40 }
 0x59f   :  { %4707 = vtanh.f32 %v6356_v33 }
 0x5a1   :  { %v2374_v7 = vpop.f32.mrf.mxu3 }
 0x5a2   :  { %v2388_v9 = vpop.f32.mrf.mxu0 }
 0x5a5   :  { %v4708_v35 = vpop.eup %4707  ;;  %v2402_v6 = vpop.f32.mrf.mxu1 }
 0x5a6   :  { %v2347_v34 = vmul.f32 %v4708_v35, %v2337_v56 }
 0x5a8   :  { %v2348_v3 = vpack.c.bf16 %v2347_v34, %v2346_v41 }
 0x5a9   :  { %v2460_v18 = vpop.f32.mrf.mxu3 }
 0x5aa   :  { %2357 = vmatmul.bf16.vlgmr.msrb.gmra.mxu2 %v2348_v3  ;;  %2560 = vmatmul.bf16.vlgmr.msra.gmra.mxu0 %v2348_v3  ;;  %v2474_v55 = vpop.f32.mrf.mxu0  ;;  %v2461_v8 = vadd.f32 %v2460_v18, %v2372_v20 }
 0x5ab   :  { %2574 = vmatmul.bf16.vlgmr.msra.gmra.mxu1 %v2348_v3  ;;  %2602 = vmatmul.bf16.vlgmr.msrb.gmra.mxu3 %v2348_v3  ;;  %v2475_v56 = vadd.f32 %v2474_v55, %v2386_v17 }
 0x5ac   :  { %2580 = vmatpush.bf16.msrb.mxu2 %v7498_v50  ;;  %2723 = vmatpush.bf16.msra.mxu1 %v5107_v4 }
 0x5ad   :  { %2751 = vmatpush.bf16.msrb.mxu3 %v5131_v36  ;;  %2709 = vmatpush.bf16.msra.mxu0 %v6139_v32  ;;  %v7794_v32 = vld [vmem:[#allocation37_spill] sm:$0xff]  ;;  %v2488_v35 = vpop.f32.mrf.mxu1 }
 0x5b0   :  { %2581 = vmatpush.bf16.msrb.mxu2 %v7499_v2  ;;  %2724 = vmatpush.bf16.msra.mxu1 %v5114_v13 }
 0x5b1   :  { %2752 = vmatpush.bf16.msrb.mxu3 %v5143_v48  ;;  %2710 = vmatpush.bf16.msra.mxu0 %v6148_v39  ;;  %v7795_v39 = vld [vmem:[#allocation81_spill] sm:$0xff]  ;;  %v2462_v61 = vpop.f32.mrf.mxu3 }
 0x5b2   :  { %v2476_v29 = vpop.f32.mrf.mxu0  ;;  %v2463_v40 = vadd.f32 %v2462_v61, %v2374_v7 }
 0x5b3   :  { %v2477_v41 = vadd.f32 %v2476_v29, %v2388_v9  ;;  %v2489_v29 = vadd.f32 %v2488_v35, %v2400_v28 }
 0x5b4   :  { %2582 = vmatpush.bf16.msrb.mxu2 %v7500_v31  ;;  %2725 = vmatpush.bf16.msra.mxu1 %v5123_v25 }
 0x5b5   :  { %2753 = vmatpush.bf16.msrb.mxu3 %v5155_v0  ;;  %2711 = vmatpush.bf16.msra.mxu0 %v6157_v21  ;;  %v7796_v21 = vld [vmem:[#allocation89_spill] sm:$0xff]  ;;  %v2490_v61 = vpop.f32.mrf.mxu1 }
 0x5b8   :  { %2583 = vmatpush.bf16.msrb.mxu2 %v7501_v43  ;;  %2726 = vmatpush.bf16.msra.mxu1 %v5134_v37 }
 0x5b9   :  { %2754 = vmatpush.bf16.msrb.mxu3 %v5175_v30  ;;  %2712 = vmatpush.bf16.msra.mxu0 %v6166_v44  ;;  %v7797_v44 = vld [vmem:[#allocation93_spill] sm:$0xff] }
 0x5ba   :  { %2413 = vmatmul.bf16.vlgmr.msra.gmra.mxu2 %v6240_v57  ;;  %v7801_v57 = vld [vmem:[#allocation109_spill] sm:$0xff] }
 0x5bc   :  { %2584 = vmatpush.bf16.msrb.mxu2 %v7502_v51  ;;  %2727 = vmatpush.bf16.msra.mxu1 %v5146_v52 }
 0x5bd   :  { %2755 = vmatpush.bf16.msrb.mxu3 %v5202_v47  ;;  %2713 = vmatpush.bf16.msra.mxu0 %v6176_v60  ;;  %v7798_v60 = vld [vmem:[#allocation97_spill] sm:$0xff] }
 0x5c0   :  { %2585 = vmatpush.bf16.msrb.mxu2 %v7503_v59  ;;  %2728 = vmatpush.bf16.msra.mxu1 %v5158_v15 }
 0x5c1   :  { %2756 = vmatpush.bf16.msrb.mxu3 %v5204_v49  ;;  %2714 = vmatpush.bf16.msra.mxu0 %v6185_v22  ;;  %v7799_v22 = vld [vmem:[#allocation101_spill] sm:$0xff] }
 0x5c4   :  { %2586 = vmatpush.bf16.msrb.mxu2 %v7504_v58  ;;  %2729 = vmatpush.bf16.msra.mxu1 %v5172_v27 }
 0x5c5   :  { %2757 = vmatpush.bf16.msrb.mxu3 %v5208_v54  ;;  %2715 = vmatpush.bf16.msra.mxu0 %v6194_v42  ;;  %v7800_v42 = vld [vmem:[#allocation105_spill] sm:$0xff] }
 0x5c8   :  { %2587 = vmatpush.bf16.msrb.mxu2 %v7505_v24  ;;  %2730 = vmatpush.bf16.msra.mxu1 %v7596_v5 }
 0x5c9   :  { %2758 = vmatpush.bf16.msrb.mxu3 %v7794_v32  ;;  %2716 = vmatpush.bf16.msra.mxu0 %v7795_v39 }
 0x5cb   :  { %2588 = vmatmul.bf16.vlgmr.msrb.gmra.mxu2 %v2348_v3  ;;  %v7811_v3 = vld [vmem:[#allocation111_spill] sm:$0xff] }
 0x5cc   :  { %2636 = vmatpush.bf16.msra.mxu2 %v7793_v63  ;;  %v2507_v39 = vadd.f32 %v2461_v8, %v7811_v3 }
 0x5ce   :  { %v2515_v17 = vmul.f32 0.5, %v2507_v39 }
 0x5d0   :  { %2637 = vmatpush.bf16.msra.mxu2 %v7796_v21  ;;  %4709 = vtanh.f32 %v2515_v17 }
 0x5d4   :  { %2638 = vmatpush.bf16.msra.mxu2 %v7797_v44 }
 0x5d8   :  { %2639 = vmatpush.bf16.msra.mxu2 %v7798_v60 }
 0x5dc   :  { %2640 = vmatpush.bf16.msra.mxu2 %v7799_v22 }
 0x5e0   :  { %2641 = vmatpush.bf16.msra.mxu2 %v7800_v42 }
 0x5e4   :  { %2642 = vmatpush.bf16.msra.mxu2 %v7801_v57 }
 0x5e8   :  { %2643 = vmatpush.bf16.msra.mxu2 %v7802_v46 }
 0x5ec   :  { %2737 = vmatpush.bf16.msrb.mxu2 %v7803_v38 }
 0x5f0   :  { %2738 = vmatpush.bf16.msrb.mxu2 %v7804_v14 }
 0x5f4   :  { %2739 = vmatpush.bf16.msrb.mxu2 %v7805_v11 }
 0x5f8   :  { %2740 = vmatpush.bf16.msrb.mxu2 %v7806_v19 }
 0x5fc   :  { %2741 = vmatpush.bf16.msrb.mxu2 %v7807_v23  ;;  %v7813_v23 = vld [vmem:[#allocation112_spill] sm:$0xff] }
 0x5fd   :  { %v2508_v19 = vadd.f32 %v2475_v56, %v7813_v23  ;;  %v2512_v20 = vadd.f32 %v2477_v41, %v7813_v23  ;;  %v2502_v56 = vpop.f32.mrf.mxu3 }
 0x5ff   :  { %v2523_v9 = vmul.f32 0.5, %v2508_v19  ;;  %v2524_v18 = vmul.f32 0.5, %v2512_v20 }
 0x600   :  { %2742 = vmatpush.bf16.msrb.mxu2 %v7808_v45  ;;  %v2511_v45 = vadd.f32 %v2463_v40, %v7811_v3  ;;  %v2491_v40 = vadd.f32 %v2490_v61, %v2402_v6 }
 0x602   :  { %v2516_v7 = vmul.f32 0.5, %v2511_v45 }
 0x604   :  { %2743 = vmatpush.bf16.msrb.mxu2 %v7809_v16  ;;  %4711 = vtanh.f32 %v2516_v7  ;;  %v7815_v7 = vld [vmem:[#allocation122_spill] sm:$0xff] }
 0x605   :  { %4713 = vtanh.f32 %v2523_v9 }
 0x606   :  { %4715 = vtanh.f32 %v2524_v18 }
 0x608   :  { %2744 = vmatpush.bf16.msrb.mxu2 %v7810_v10  ;;  %v6412_v10 = vld [vmem:[%s7062_s8] ss:$0 sm:$0xff] }
 0x609   :  { %7812 = vst [vmem:[#allocation31_spill] sm:$0xff] %v6412_v10 }
 0x62d   :  { %v2358_v34 = vpop.f32.mrf.mxu2 }
 0x62e   :  { %v2359_v16 = vadd.f32 %v6412_v10, %v2358_v34  ;;  %v4710_v34 = vpop.eup %4709 }
 0x62f   :  { %v4712_v41 = vpop.eup %4711  ;;  %v2519_v23 = vadd.f32 1.0, %v4710_v34 }
 0x630   :  { %3843 = vrot.lane.b32.xlu2 %v2359_v16, %s5033_s15  ;;  %v7814_v16 = vld [vmem:[#allocation120_spill] sm:$0xff]  ;;  %v4714_v39 = vpop.eup %4713 }
 0x631   :  { %v2509_v3 = vadd.f32 %v2489_v29, %v7814_v16  ;;  %v2513_v45 = vadd.f32 %v2491_v40, %v7814_v16  ;;  %v4716_v17 = vpop.eup %4715  ;;  %v2527_v28 = vadd.f32 1.0, %v4714_v39  ;;  %v2521_v18 = vmul.f32 0.5, %v2519_v23  ;;  %v2504_v29 = vpop.f32.mrf.mxu3  ;;  %v7817_v39 = vld [vmem:[#allocation125_spill] sm:$0xff] }
 0x632   :  { %v2528_v35 = vadd.f32 1.0, %v4716_v17 }
 0x633   :  { %4717 = vtanh.f32 %v2509_v3 }
 0x634   :  { %4719 = vtanh.f32 %v2513_v45  ;;  %v2530_v40 = vmul.f32 0.5, %v2528_v35 }
 0x635   :  { %v2360_v55 = vpop.f32.mrf.mxu2 }
 0x636   :  { %v2361_v8 = vadd.f32 %v6412_v10, %v2360_v55  ;;  %v2520_v55 = vadd.f32 1.0, %v4712_v41  ;;  %v7816_v41 = vld [vmem:[#allocation124_spill] sm:$0xff]  ;;  %v2542_v45 = vmul.f32 %v2530_v40, %v7817_v39  ;;  %v7820_v40 = vld [vmem:[#allocation35_spill] sm:$0xff]  ;;  %v7825_v39 = vld [vmem:[#allocation46_spill] sm:$0xff] }
 0x638   :  { %3845 = vrot.lane.b32.xlu2 %v2361_v8, %s5033_s15  ;;  %v2522_v61 = vmul.f32 0.5, %v2520_v55  ;;  %v2529_v8 = vmul.f32 0.5, %v2527_v28 }
 0x639   :  { %v4718_v11 = vpop.eup %4717 }
 0x63d   :  { %v2414_v19 = vpop.f32.mrf.mxu2 }
 0x63e   :  { %v2503_v20 = vadd.f32 %v2502_v56, %v2414_v19  ;;  %v4720_v56 = vpop.eup %4719  ;;  %v2543_v19 = vmul.f32 %v4718_v11, %v2521_v18 }
 0x63f   :  { %v2544_v34 = vmul.f32 %v4720_v56, %v2522_v61  ;;  %v7821_v56 = vld [vmem:[#allocation36_spill] sm:$0xff] }
 0x640   :  { %v2510_v9 = vadd.f32 %v2503_v20, %v7815_v7  ;;  %v2541_v20 = vmul.f32 %v2529_v8, %v7816_v41  ;;  %v7824_v41 = vld [vmem:[#allocation38_spill] sm:$0xff] }
 0x641   :  { %v6427_v55 = vadd.f32 %v2544_v34, %v2542_v45  ;;  %v7823_v34 = vld [vmem:[#allocation41_spill] sm:$0xff]  ;;  %v2793_v45 = vrot.slane %v7825_v39, 5 }
 0x642   :  { %v2533_v6 = vmul.f32 0.5, %v2510_v9  ;;  %v6425_v9 = vadd.f32 %v2543_v19, %v2541_v20  ;;  %v7822_v19 = vld [vmem:[#allocation34_spill] sm:$0xff]  ;;  %v2780_v20 = vrot.slane %v7824_v41, 4 }
 0x643   :  { %7819 = vst [vmem:[#allocation62_spill] sm:$0xff] %v6427_v55 }
 0x644   :  { %4721 = vtanh.f32 %v2533_v6  ;;  %7818 = vst [vmem:[#allocation123_spill] sm:$0xff] %v6425_v9 }
 0x645   :  { %v2416_v10 = vpop.f32.mrf.mxu2 }
 0x646   :  { %v2505_v16 = vadd.f32 %v2504_v29, %v2416_v10 }
 0x648   :  { %v2514_v3 = vadd.f32 %v2505_v16, %v7815_v7 }
 0x64a   :  { %v2534_v17 = vmul.f32 0.5, %v2514_v3  ;;  %v4722_v23 = vpop.eup %4721  ;;  %v2779_v3 = vrot.slane %v7823_v34, 5 }
 0x64b   :  { %v2537_v28 = vadd.f32 1.0, %v4722_v23 }
 0x64c   :  { %4723 = vtanh.f32 %v2534_v17  ;;  %v7826_v17 = vld [vmem:[#allocation47_spill] sm:$0xff] }
 0x64d   :  { %4725 = vtanh.f32 %v6425_v9  ;;  %v2539_v10 = vmul.f32 0.5, %v2537_v28  ;;  %v2794_v23 = vrot.slane %v7826_v17, 4  ;;  %v7827_v28 = vld [vmem:[#allocation18_spill] sm:$0xff] }
 0x64e   :  { %4727 = vtanh.f32 %v6427_v55 }
 0x652   :  { %v4724_v11 = vpop.eup %4723 }
 0x653   :  { %v2538_v35 = vadd.f32 1.0, %v4724_v11  ;;  %v4726_v16 = vpop.eup %4725  ;;  %v7828_v11 = vld [vmem:[#allocation39_spill] sm:$0xff] }
 0x654   :  { %v4728_v18 = vpop.eup %4727  ;;  %v2549_v61 = vmul.f32 %v4726_v16, %v2539_v10  ;;  %v2782_v10 = vrot.slane %v7828_v11, 3 }
 0x655   :  { %v2540_v6 = vmul.f32 0.5, %v2538_v35  ;;  %v7829_v35 = vld [vmem:[#allocation48_spill] sm:$0xff] }
 0x656   :  { %v2796_v16 = vrot.slane %v7829_v35, 3 }
 0x657   :  { %v2550_v8 = vmul.f32 %v4728_v18, %v2540_v6  ;;  %v2781_v6 = vsel %vm474_vm0, %v2780_v20, %v2779_v3  ;;  %v2795_v18 = vsel %vm474_vm0, %v2794_v23, %v2793_v45  ;;  %v7836_v45 = vld [vmem:[#allocation24_spill] sm:$0xff] }
 0x658   :  { %v2783_v39 = vsel %vm477_vm1, %v2782_v10, %v2781_v6  ;;  %v2797_v17 = vsel %vm477_vm1, %v2796_v16, %v2795_v18  ;;  %v7837_v16 = vld [vmem:[#allocation44_spill] sm:$0xff] }
 0x659   :  { %v6431_v29 = vpack.c.bf16 %v2550_v8, %v2549_v61  ;;  %v7830_v61 = vld [vmem:[#allocation20_spill] sm:$0xff]  ;;  %v2789_v6 = vrot.slane %v7837_v16, 7 }
 0x65a   :  { %v7831_v8 = vld [vmem:[#allocation40_spill] sm:$0xff] }
 0x65b   :  { %2616 = vmatmul.bf16.vlgmr.msrb.gmra.mxu0 %v6431_v29  ;;  %2630 = vmatmul.bf16.vlgmr.msrb.gmra.mxu1 %v6431_v29  ;;  %v2784_v34 = vrot.slane %v7831_v8, 2  ;;  %v7838_v18 = vld [vmem:[#allocation52_spill] sm:$0xff] }
 0x65c   :  { %2644 = vmatmul.bf16.vlgmr.msra.gmra.mxu2 %v6431_v29  ;;  %2658 = vmatmul.bf16.vlgmr.msra.gmra.mxu3 %v6431_v29 }
 0x65d   :  { %2818 = vmatpush.bf16.msrb.mxu1 %v7820_v40  ;;  %2832 = vmatpush.bf16.msra.mxu2 %v7821_v56  ;;  %v7833_v56 = vld [vmem:[#allocation22_spill] sm:$0xff]  ;;  %v2785_v3 = vsel %vm480_vm2, %v2784_v34, %v2783_v39  ;;  %v7840_v34 = vld [vmem:[#allocation67_spill] sm:$0xff] }
 0x65e   :  { %2846 = vmatpush.bf16.msra.mxu3 %v7822_v19  ;;  %2765 = vmatpush.bf16.msrb.mxu0 %v7827_v28  ;;  %v7832_v19 = vld [vmem:[#allocation49_spill] sm:$0xff]  ;;  %v7834_v28 = vld [vmem:[#allocation42_spill] sm:$0xff] }
 0x65f   :  { %v2798_v41 = vrot.slane %v7832_v19, 2  ;;  %v2786_v11 = vrot.slane %v7834_v28, 1  ;;  %v7835_v40 = vld [vmem:[#allocation50_spill] sm:$0xff]  ;;  %v7847_v19 = vld [vmem:[#allocation71_spill] sm:$0xff] }
 0x660   :  { %v2800_v35 = vrot.slane %v7835_v40, 1  ;;  %v2803_v40 = vrot.slane %v7838_v18, 7  ;;  %v7839_v28 = vld [vmem:[#allocation54_spill] sm:$0xff] }
 0x661   :  { %v2799_v20 = vsel %vm480_vm2, %v2798_v41, %v2797_v17  ;;  %v2787_v23 = vsel %vm483_vm3, %v2786_v11, %v2785_v3  ;;  %v7841_v41 = vld [vmem:[#allocation43_spill] sm:$0xff] }
 0x662   :  { %2766 = vmatpush.bf16.msrb.mxu0 %v7830_v61  ;;  %v2801_v10 = vsel %vm483_vm3, %v2800_v35, %v2799_v20  ;;  %v2788_v39 = vsel %vm486_vm4, %v7841_v41, %v2787_v23  ;;  %v7842_v17 = vld [vmem:[#allocation51_spill] sm:$0xff]  ;;  %v7844_v35 = vld [vmem:[#allocation26_spill] sm:$0xff]  ;;  %v7845_v20 = vld [vmem:[#allocation45_spill] sm:$0xff] }
 0x663   :  { %v2802_v11 = vsel %vm486_vm4, %v7842_v17, %v2801_v10  ;;  %v7843_v3 = vld [vmem:[#allocation55_spill] sm:$0xff]  ;;  %v2790_v18 = vsel %vm489_vm5, %v2789_v6, %v2788_v39  ;;  %v7849_v23 = vld [vmem:[#allocation28_spill] sm:$0xff]  ;;  %v7855_v39 = vld [vmem:[#allocation33_spill] sm:$0xff] }
 0x664   :  { %v7850_v17 = vld [vmem:[#allocation75_spill] sm:$0xff] }
 0x665   :  { %v7853_v6 = vld [vmem:[#allocation79_spill] sm:$0xff] }
 0x666   :  { %2767 = vmatpush.bf16.msrb.mxu0 %v7833_v56  ;;  %v7846_v56 = vld [vmem:[#allocation53_spill] sm:$0xff] }
 0x667   :  { %v2805_v16 = vrot.slane %v7846_v56, 6 }
 0x66a   :  { %2768 = vmatpush.bf16.msrb.mxu0 %v7836_v45  ;;  %v2791_v45 = vrot.slane %v7845_v20, 6  ;;  %v7852_v20 = vld [vmem:[#allocation30_spill] sm:$0xff] }
 0x66b   :  { %2731 = vmatmul.bf16.vlgmr.msra.gmra.mxu1 %v6431_v29 }
 0x66c   :  { %2745 = vmatmul.bf16.vlgmr.msrb.gmra.mxu2 %v6431_v29  ;;  %2759 = vmatmul.bf16.vlgmr.msrb.gmra.mxu3 %v6431_v29  ;;  %v2792_v10 = vsel %vm492_vm6, %v2791_v45, %v2790_v18  ;;  %v7857_v45 = vld [vmem:[#allocation83_spill] sm:$0xff]  ;;  %v7859_v18 = vld [vmem:[#allocation60_spill] sm:$0xff] }
 0x66d   :  { %2860 = vmatpush.bf16.msra.mxu1 %v7839_v28  ;;  %2912 = vmatpush.bf16.msrb.mxu2 %v7840_v34  ;;  %v2804_v28 = vsel %vm489_vm5, %v2803_v40, %v2802_v11  ;;  %v7848_v34 = vld [vmem:[#allocation57_spill] sm:$0xff]  ;;  %v7854_v40 = vld [vmem:[#allocation64_spill] sm:$0xff]  ;;  %v7860_v11 = vld [vmem:[#allocation87_spill] sm:$0xff] }
 0x66e   :  { %2926 = vmatpush.bf16.msrb.mxu3 %v7843_v3  ;;  %2769 = vmatpush.bf16.msrb.mxu0 %v7844_v35  ;;  %v2806_v3 = vsel %vm492_vm6, %v2805_v16, %v2804_v28  ;;  %v7851_v35 = vld [vmem:[#allocation61_spill] sm:$0xff]  ;;  %v7856_v28 = vld [vmem:[#allocation59_spill] sm:$0xff]  ;;  %v7858_v16 = vld [vmem:[#allocation68_spill] sm:$0xff] }
 0x66f   :  { %v2807_v56 = vpack.c.b16 %v2806_v3, %v2792_v10  ;;  %v7861_v3 = vld [vmem:[#allocation72_spill] sm:$0xff]  ;;  %v7862_v10 = vld [vmem:[#allocation63_spill] sm:$0xff] }
 0x671   :  { %2913 = vmatpush.bf16.msrb.mxu2 %v7847_v19 }
 0x672   :  { %2927 = vmatpush.bf16.msrb.mxu3 %v7848_v34  ;;  %2770 = vmatpush.bf16.msrb.mxu0 %v7849_v23 }
 0x675   :  { %2914 = vmatpush.bf16.msrb.mxu2 %v7850_v17 }
 0x676   :  { %2928 = vmatpush.bf16.msrb.mxu3 %v7851_v35  ;;  %2771 = vmatpush.bf16.msrb.mxu0 %v7852_v20  ;;  %v7866_v20 = vld [vmem:[#allocation95_spill] sm:$0xff] }
 0x679   :  { %2915 = vmatpush.bf16.msrb.mxu2 %v7853_v6  ;;  %v7865_v6 = vld [vmem:[#allocation66_spill] sm:$0xff] }
 0x67a   :  { %2929 = vmatpush.bf16.msrb.mxu3 %v7854_v40  ;;  %2772 = vmatpush.bf16.msrb.mxu0 %v7855_v39  ;;  %v7863_v39 = vld [vmem:[#allocation91_spill] sm:$0xff]  ;;  %v7864_v40 = vld [vmem:[#allocation76_spill] sm:$0xff] }
 0x67b   :  { %4400 = vmatmul.msk.bf16.vlgmr.msrb.gmra.mxu1 %vm529_vm7, %v2807_v56 }
 0x67c   :  { %4401 = vmatmul.msk.bf16.vlgmr.msra.gmra.mxu2 %vm529_vm7, %v2807_v56  ;;  %4402 = vmatmul.msk.bf16.vlgmr.msra.gmra.mxu3 %vm529_vm7, %v2807_v56 }
 0x67d   :  { %2954 = vmatpush.bf16.msrb.mxu1 %v7856_v28  ;;  %2916 = vmatpush.bf16.msrb.mxu2 %v7857_v45  ;;  %v7867_v28 = vld [vmem:[#allocation80_spill] sm:$0xff]  ;;  %v7868_v45 = vld [vmem:[#allocation99_spill] sm:$0xff] }
 0x67e   :  { %2930 = vmatpush.bf16.msrb.mxu3 %v7858_v16  ;;  %v2603_v16 = vpop.f32.mrf.mxu3 }
 0x681   :  { %2955 = vmatpush.bf16.msrb.mxu1 %v7859_v18  ;;  %2917 = vmatpush.bf16.msrb.mxu2 %v7860_v11  ;;  %v7869_v18 = vld [vmem:[#allocation84_spill] sm:$0xff]  ;;  %v7870_v11 = vld [vmem:[#allocation70_spill] sm:$0xff] }
 0x682   :  { %2931 = vmatpush.bf16.msrb.mxu3 %v7861_v3  ;;  %v7871_v3 = vld [vmem:[#allocation103_spill] sm:$0xff] }
 0x685   :  { %2956 = vmatpush.bf16.msrb.mxu1 %v7862_v10  ;;  %2918 = vmatpush.bf16.msrb.mxu2 %v7863_v39  ;;  %v7872_v10 = vld [vmem:[#allocation88_spill] sm:$0xff]  ;;  %v7873_v39 = vld [vmem:[#allocation74_spill] sm:$0xff] }
 0x686   :  { %2932 = vmatpush.bf16.msrb.mxu3 %v7864_v40  ;;  %v7874_v40 = vld [vmem:[#allocation107_spill] sm:$0xff]  ;;  %v2605_v17 = vpop.f32.mrf.mxu3 }
 0x689   :  { %2957 = vmatpush.bf16.msrb.mxu1 %v7865_v6  ;;  %2919 = vmatpush.bf16.msrb.mxu2 %v7866_v20  ;;  %v7875_v6 = vld [vmem:[#allocation92_spill] sm:$0xff]  ;;  %v7876_v20 = vld [vmem:[#allocation78_spill] sm:$0xff] }
 0x68a   :  { %2933 = vmatpush.bf16.msrb.mxu3 %v7867_v28  ;;  %v7877_v28 = vld [vmem:[#allocation113_spill] sm:$0xff] }
 0x68b   :  { %4403 = vmatmul.msk.bf16.vlgmr.msra.gmra.mxu1 %vm529_vm7, %v2807_v56  ;;  %v7879_v56 = vld [vmem:[#allocation82_spill] sm:$0xff] }
 0x68d   :  { %2968 = vmatpush.bf16.msra.mxu2 %v7868_v45  ;;  %2958 = vmatpush.bf16.msrb.mxu1 %v7870_v11  ;;  %v7878_v45 = vld [vmem:[#allocation96_spill] sm:$0xff]  ;;  %v7881_v11 = vld [vmem:[#allocation117_spill] sm:$0xff] }
 0x68e   :  { %2982 = vmatpush.bf16.msra.mxu3 %v7869_v18  ;;  %v7880_v18 = vld [vmem:[#allocation86_spill] sm:$0xff] }
 0x691   :  { %2969 = vmatpush.bf16.msra.mxu2 %v7871_v3  ;;  %2959 = vmatpush.bf16.msrb.mxu1 %v7873_v39  ;;  %v7882_v3 = vld [vmem:[#allocation100_spill] sm:$0xff]  ;;  %v7884_v39 = vld [vmem:[#allocation118_spill] sm:$0xff] }
 0x692   :  { %2983 = vmatpush.bf16.msra.mxu3 %v7872_v10  ;;  %v7883_v10 = vld [vmem:[#allocation90_spill] sm:$0xff] }
 0x695   :  { %2970 = vmatpush.bf16.msra.mxu2 %v7874_v40  ;;  %2960 = vmatpush.bf16.msrb.mxu1 %v7876_v20  ;;  %v7885_v40 = vld [vmem:[#allocation104_spill] sm:$0xff]  ;;  %v7887_v20 = vld [vmem:[#allocation119_spill] sm:$0xff] }
 0x696   :  { %2984 = vmatpush.bf16.msra.mxu3 %v7875_v6  ;;  %v7886_v6 = vld [vmem:[#allocation94_spill] sm:$0xff] }
 0x699   :  { %2971 = vmatpush.bf16.msra.mxu2 %v7877_v28  ;;  %2961 = vmatpush.bf16.msrb.mxu1 %v7879_v56  ;;  %v7888_v28 = vld [vmem:[#allocation108_spill] sm:$0xff]  ;;  %v7890_v56 = vld [vmem:[#allocation121_spill] sm:$0xff] }
 0x69a   :  { %2985 = vmatpush.bf16.msra.mxu3 %v7878_v45  ;;  %v7889_v45 = vld [vmem:[#allocation98_spill] sm:$0xff] }
 0x69d   :  { %3010 = vmatpush.bf16.msra.mxu1 %v7880_v18  ;;  %2972 = vmatpush.bf16.msra.mxu2 %v7881_v11  ;;  %v7891_v18 = vld [vmem:[#allocation114_spill] sm:$0xff] }
 0x69e   :  { %2986 = vmatpush.bf16.msra.mxu3 %v7882_v3  ;;  %v7892_v11 = vld [vmem:[#allocation102_spill] sm:$0xff] }
 0x69f   :  { %v7893_v3 = vld [vmem:[#allocation106_spill] sm:$0xff] }
 0x6a1   :  { %3011 = vmatpush.bf16.msra.mxu1 %v7883_v10  ;;  %2973 = vmatpush.bf16.msra.mxu2 %v7884_v39  ;;  %v7894_v10 = vld [vmem:[#allocation110_spill] sm:$0xff]  ;;  %v7895_v39 = vld [vmem:[#allocation116_spill] sm:$0xff] }
 0x6a2   :  { %2987 = vmatpush.bf16.msra.mxu3 %v7885_v40  ;;  %v2561_v40 = vpop.f32.mrf.mxu0 }
 0x6a5   :  { %3012 = vmatpush.bf16.msra.mxu1 %v7886_v6  ;;  %2974 = vmatpush.bf16.msra.mxu2 %v7887_v20  ;;  %v2575_v6 = vpop.f32.mrf.mxu1  ;;  %v2589_v20 = vpop.f32.mrf.mxu2 }
 0x6a6   :  { %2988 = vmatpush.bf16.msra.mxu3 %v7888_v28 }
 0x6a9   :  { %3013 = vmatpush.bf16.msra.mxu1 %v7889_v45  ;;  %2975 = vmatpush.bf16.msra.mxu2 %v7890_v56 }
 0x6aa   :  { %2989 = vmatpush.bf16.msra.mxu3 %v7891_v18  ;;  %v2563_v35 = vpop.f32.mrf.mxu0 }
 0x6ad   :  { %3014 = vmatpush.bf16.msra.mxu1 %v7892_v11  ;;  %v2577_v28 = vpop.f32.mrf.mxu1  ;;  %v2591_v45 = vpop.f32.mrf.mxu2 }
 0x6b1   :  { %3015 = vmatpush.bf16.msra.mxu1 %v7893_v3 }
 0x6b5   :  { %3016 = vmatpush.bf16.msra.mxu1 %v7894_v10 }
 0x6b9   :  { %3017 = vmatpush.bf16.msra.mxu1 %v7895_v39 }
 0x6d8   :  { %v2617_v23 = vpop.f32.mrf.mxu0  ;;  %v2631_v56 = vpop.f32.mrf.mxu1 }
 0x6d9   :  { %v2618_v34 = vadd.f32 %v2617_v23, %v2561_v40  ;;  %v2632_v18 = vadd.f32 %v2631_v56, %v2575_v6 }
 0x6db   :  { %v2664_v11 = vadd.f32 %v2618_v34, %v7594_v26  ;;  %v2665_v3 = vadd.f32 %v2632_v18, %v7595_v53 }
 0x6dd   :  { %v2672_v19 = vmul.f32 0.5, %v2664_v11  ;;  %v2680_v10 = vmul.f32 0.5, %v2665_v3 }
 0x6df   :  { %4729 = vtanh.f32 %v2672_v19  ;;  %v2645_v39 = vpop.f32.mrf.mxu2  ;;  %v2659_v41 = vpop.f32.mrf.mxu3 }
 0x6e0   :  { %4731 = vtanh.f32 %v2680_v10  ;;  %v2646_v8 = vadd.f32 %v2645_v39, %v2589_v20  ;;  %v2619_v61 = vpop.f32.mrf.mxu0  ;;  %v2633_v55 = vpop.f32.mrf.mxu1  ;;  %v2660_v38 = vadd.f32 %v2659_v41, %v2603_v16 }
 0x6e1   :  { %v2620_v9 = vadd.f32 %v2619_v61, %v2563_v35  ;;  %v2634_v7 = vadd.f32 %v2633_v55, %v2577_v28 }
 0x6e2   :  { %v2666_v14 = vadd.f32 %v2646_v8, %v5734_v1  ;;  %v2667_v3 = vadd.f32 %v2660_v38, %v5738_v12 }
 0x6e3   :  { %v2668_v23 = vadd.f32 %v2620_v9, %v7594_v26  ;;  %v2669_v34 = vadd.f32 %v2634_v7, %v7595_v53 }
 0x6e4   :  { %4733 = vtanh.f32 %v2666_v14  ;;  %v2690_v28 = vmul.f32 0.5, %v2667_v3 }
 0x6e5   :  { %v4730_v6 = vpop.eup %4729  ;;  %v2673_v40 = vmul.f32 0.5, %v2668_v23  ;;  %v2681_v18 = vmul.f32 0.5, %v2669_v34 }
 0x6e6   :  { %v4732_v19 = vpop.eup %4731  ;;  %v2676_v11 = vadd.f32 1.0, %v4730_v6 }
 0x6e7   :  { %v2684_v20 = vadd.f32 1.0, %v4732_v19  ;;  %4735 = vtanh.f32 %v2673_v40  ;;  %v2647_v39 = vpop.f32.mrf.mxu2  ;;  %v2661_v61 = vpop.f32.mrf.mxu3 }
 0x6e8   :  { %4737 = vtanh.f32 %v2681_v18  ;;  %v2648_v55 = vadd.f32 %v2647_v39, %v2591_v45  ;;  %v2662_v8 = vadd.f32 %v2661_v61, %v2605_v17  ;;  %v2678_v41 = vmul.f32 0.5, %v2676_v11 }
 0x6e9   :  { %v2686_v35 = vmul.f32 0.5, %v2684_v20 }
 0x6ea   :  { %v4734_v9 = vpop.eup %4733  ;;  %v2670_v14 = vadd.f32 %v2648_v55, %v5734_v1  ;;  %v2671_v7 = vadd.f32 %v2662_v8, %v5738_v12 }
 0x6eb   :  { %v2698_v38 = vmul.f32 %v2686_v35, %v6352_v62  ;;  %v2700_v56 = vmul.f32 %v4734_v9, %v2678_v41 }
 0x6ec   :  { %4739 = vtanh.f32 %v2670_v14  ;;  %v2691_v16 = vmul.f32 0.5, %v2671_v7  ;;  %v6565_v7 = vld [vmem:[%s7061_s7 + $0x30] sm:$0xff] }
 0x6ed   :  { %v4736_v10 = vpop.eup %4735  ;;  %4741 = vtanh.f32 %v2690_v28  ;;  %v6543_v45 = vadd.f32 %v2700_v56, %v2698_v38  ;;  %v6593_v38 = vld [vmem:[%s7061_s7 + $0x18] sm:$0xff]  ;;  %v6611_v56 = vld [vmem:[%s7061_s7 + $0x8] sm:$0xff] }
 0x6ee   :  { %v4738_v23 = vpop.eup %4737  ;;  %v2677_v34 = vadd.f32 1.0, %v4736_v10  ;;  %4743 = vtanh.f32 %v2691_v16  ;;  %v6574_v16 = vld [vmem:[%s7061_s7 + $0x28] sm:$0xff]  ;;  %v6583_v10 = vld [vmem:[%s7061_s7 + $0x20] sm:$0xff] }
 0x6ef   :  { %v2685_v6 = vadd.f32 1.0, %v4738_v23  ;;  %4745 = vtanh.f32 %v6543_v45  ;;  %v6621_v23 = vld [vmem:[%s7061_s7] sm:$0xff] }
 0x6f0   :  { %v2679_v17 = vmul.f32 0.5, %v2677_v34  ;;  %7896 = vst [vmem:[#allocation65_spill] sm:$0xff] %v6621_v23  ;;  %v7897_v34 = vld [vmem:[#allocation17_spill] sm:$0xff] }
 0x6f1   :  { %v2687_v40 = vmul.f32 0.5, %v2685_v6  ;;  %v7898_v6 = vld [vmem:[#allocation19_spill] sm:$0xff] }
 0x6f2   :  { %v4740_v18 = vpop.eup %4739 }
 0x6f3   :  { %v2699_v19 = vmul.f32 %v2687_v40, %v6356_v33  ;;  %v2701_v11 = vmul.f32 %v4740_v18, %v2679_v17  ;;  %v4742_v3 = vpop.eup %4741  ;;  %v6556_v33 = vld [vmem:[%s7061_s7 + $0x38] sm:$0xff]  ;;  %v7899_v17 = vld [vmem:[#allocation21_spill] sm:$0xff]  ;;  %v7900_v40 = vld [vmem:[#allocation23_spill] sm:$0xff] }
 0x6f4   :  { %v4744_v20 = vpop.eup %4743  ;;  %v2694_v62 = vadd.f32 1.0, %v4742_v3  ;;  %v7901_v18 = vld [vmem:[#allocation25_spill] sm:$0xff]  ;;  %v7904_v3 = vld [vmem:[#allocation32_spill] sm:$0xff] }
 0x6f5   :  { %v6547_v39 = vadd.f32 %v2701_v11, %v2699_v19  ;;  %v2695_v61 = vadd.f32 1.0, %v4744_v20  ;;  %v4746_v55 = vpop.eup %4745  ;;  %v7902_v19 = vld [vmem:[#allocation27_spill] sm:$0xff]  ;;  %v7903_v11 = vld [vmem:[#allocation29_spill] sm:$0xff]  ;;  %v2746_v20 = vpop.f32.mrf.mxu2 }
 0x6f6   :  { %v2696_v8 = vmul.f32 0.5, %v2694_v62  ;;  %v2732_v62 = vpop.f32.mrf.mxu1 }
 0x6f7   :  { %4747 = vtanh.f32 %v6547_v39  ;;  %v2697_v41 = vmul.f32 0.5, %v2695_v61 }
 0x6f8   :  { %v2706_v9 = vmul.f32 %v4746_v55, %v2696_v8  ;;  %v2760_v8 = vpop.f32.mrf.mxu3 }
 0x6fd   :  { %v4748_v35 = vpop.eup %4747  ;;  %v2748_v61 = vpop.f32.mrf.mxu2 }
 0x6fe   :  { %v2707_v28 = vmul.f32 %v4748_v35, %v2697_v41  ;;  %v2734_v55 = vpop.f32.mrf.mxu1 }
 0x700   :  { %v2708_v14 = vpack.c.bf16 %v2707_v28, %v2706_v9  ;;  %v2762_v9 = vpop.f32.mrf.mxu3 }
 0x702   :  { %2717 = vmatmul.bf16.vlgmr.msra.gmra.mxu0 %v2708_v14  ;;  %2920 = vmatmul.bf16.vlgmr.msrb.gmra.mxu2 %v2708_v14 }
 0x703   :  { %2934 = vmatmul.bf16.vlgmr.msrb.gmra.mxu3 %v2708_v14  ;;  %2962 = vmatmul.bf16.vlgmr.msrb.gmra.mxu1 %v2708_v14 }
 0x704   :  { %2940 = vmatpush.bf16.msra.mxu0 %v7498_v50  ;;  %3083 = vmatpush.bf16.msrb.mxu3 %v5107_v4 }
 0x705   :  { %3111 = vmatpush.bf16.msrb.mxu1 %v5131_v36  ;;  %3069 = vmatpush.bf16.msrb.mxu2 %v6556_v33  ;;  %v2834_v41 = vpop.f32.mrf.mxu2 }
 0x706   :  { %v2820_v35 = vpop.f32.mrf.mxu1 }
 0x708   :  { %2941 = vmatpush.bf16.msra.mxu0 %v7499_v2  ;;  %3084 = vmatpush.bf16.msrb.mxu3 %v5114_v13 }
 0x709   :  { %3112 = vmatpush.bf16.msrb.mxu1 %v5143_v48  ;;  %3070 = vmatpush.bf16.msrb.mxu2 %v6565_v7 }
 0x70c   :  { %2942 = vmatpush.bf16.msra.mxu0 %v7500_v31  ;;  %3085 = vmatpush.bf16.msrb.mxu3 %v5123_v25 }
 0x70d   :  { %3113 = vmatpush.bf16.msrb.mxu1 %v5155_v0  ;;  %3071 = vmatpush.bf16.msrb.mxu2 %v6574_v16  ;;  %v2836_v28 = vpop.f32.mrf.mxu2 }
 0x710   :  { %2943 = vmatpush.bf16.msra.mxu0 %v7501_v43  ;;  %3086 = vmatpush.bf16.msrb.mxu3 %v5134_v37 }
 0x711   :  { %3114 = vmatpush.bf16.msrb.mxu1 %v5175_v30  ;;  %3072 = vmatpush.bf16.msrb.mxu2 %v6583_v10 }
 0x712   :  { %2773 = vmatmul.bf16.vlgmr.msrb.gmra.mxu0 %v6431_v29  ;;  %v6602_v29 = vld [vmem:[%s7061_s7 + $0x10] sm:$0xff] }
 0x714   :  { %2944 = vmatpush.bf16.msra.mxu0 %v7502_v51  ;;  %3087 = vmatpush.bf16.msrb.mxu3 %v5146_v52 }
 0x715   :  { %3115 = vmatpush.bf16.msrb.mxu1 %v5202_v47  ;;  %3073 = vmatpush.bf16.msrb.mxu2 %v6593_v38 }
 0x718   :  { %2945 = vmatpush.bf16.msra.mxu0 %v7503_v59  ;;  %3088 = vmatpush.bf16.msrb.mxu3 %v5158_v15 }
 0x719   :  { %3116 = vmatpush.bf16.msrb.mxu1 %v5204_v49  ;;  %3074 = vmatpush.bf16.msrb.mxu2 %v6602_v29 }
 0x71c   :  { %2946 = vmatpush.bf16.msra.mxu0 %v7504_v58  ;;  %3089 = vmatpush.bf16.msrb.mxu3 %v5172_v27 }
 0x71d   :  { %3117 = vmatpush.bf16.msrb.mxu1 %v5208_v54  ;;  %3075 = vmatpush.bf16.msrb.mxu2 %v6611_v56 }
 0x720   :  { %2947 = vmatpush.bf16.msra.mxu0 %v7505_v24  ;;  %3090 = vmatpush.bf16.msrb.mxu3 %v7596_v5 }
 0x721   :  { %3118 = vmatpush.bf16.msrb.mxu1 %v7794_v32  ;;  %3076 = vmatpush.bf16.msrb.mxu2 %v6621_v23 }
 0x723   :  { %2948 = vmatmul.bf16.vlgmr.msra.gmra.mxu0 %v2708_v14  ;;  %v2835_v14 = vadd.f32 %v2834_v41, %v2746_v20 }
 0x724   :  { %2996 = vmatpush.bf16.msrb.mxu0 %v7793_v63 }
 0x728   :  { %2997 = vmatpush.bf16.msrb.mxu0 %v7796_v21 }
 0x72c   :  { %2998 = vmatpush.bf16.msrb.mxu0 %v7797_v44 }
 0x730   :  { %2999 = vmatpush.bf16.msrb.mxu0 %v7798_v60 }
 0x734   :  { %3000 = vmatpush.bf16.msrb.mxu0 %v7799_v22  ;;  %v7907_v22 = vld [vmem:[#allocation111_spill] sm:$0xff] }
 0x738   :  { %3001 = vmatpush.bf16.msrb.mxu0 %v7800_v42 }
 0x73c   :  { %3002 = vmatpush.bf16.msrb.mxu0 %v7801_v57  ;;  %v7906_v57 = vld [vmem:[#allocation31_spill] sm:$0xff] }
 0x740   :  { %3003 = vmatpush.bf16.msrb.mxu0 %v7802_v46  ;;  %v7905_v46 = vld [vmem:[#allocation112_spill] sm:$0xff] }
 0x744   :  { %3097 = vmatpush.bf16.msra.mxu0 %v7897_v34 }
 0x748   :  { %3098 = vmatpush.bf16.msra.mxu0 %v7898_v6  ;;  %v2821_v6 = vadd.f32 %v2820_v35, %v2732_v62 }
 0x74a   :  { %v2867_v60 = vadd.f32 %v2821_v6, %v7907_v22 }
 0x74c   :  { %3099 = vmatpush.bf16.msra.mxu0 %v7899_v17  ;;  %v2822_v17 = vpop.f32.mrf.mxu1  ;;  %v2875_v41 = vmul.f32 0.5, %v2867_v60 }
 0x74d   :  { %v2823_v34 = vadd.f32 %v2822_v17, %v2734_v55 }
 0x74f   :  { %v2871_v44 = vadd.f32 %v2823_v34, %v7907_v22 }
 0x750   :  { %3100 = vmatpush.bf16.msra.mxu0 %v7900_v40  ;;  %v2837_v40 = vadd.f32 %v2836_v28, %v2748_v61 }
 0x751   :  { %v2876_v61 = vmul.f32 0.5, %v2871_v44 }
 0x752   :  { %v2872_v42 = vadd.f32 %v2837_v40, %v7905_v46 }
 0x754   :  { %3101 = vmatpush.bf16.msra.mxu0 %v7901_v18  ;;  %v2848_v18 = vpop.f32.mrf.mxu3  ;;  %v2884_v20 = vmul.f32 0.5, %v2872_v42  ;;  %v2862_v6 = vpop.f32.mrf.mxu1 }
 0x758   :  { %3102 = vmatpush.bf16.msra.mxu0 %v7902_v19 }
 0x75c   :  { %3103 = vmatpush.bf16.msra.mxu0 %v7903_v11  ;;  %v2868_v11 = vadd.f32 %v2835_v14, %v7905_v46  ;;  %v2850_v17 = vpop.f32.mrf.mxu3 }
 0x75d   :  { %v2851_v40 = vadd.f32 %v2850_v17, %v2762_v9 }
 0x75e   :  { %v2883_v21 = vmul.f32 0.5, %v2868_v11 }
 0x760   :  { %3104 = vmatpush.bf16.msra.mxu0 %v7904_v3  ;;  %4749 = vtanh.f32 %v2883_v21 }
 0x761   :  { %4751 = vtanh.f32 %v2884_v20  ;;  %v7909_v20 = vld [vmem:[#allocation122_spill] sm:$0xff] }
 0x762   :  { %4753 = vtanh.f32 %v2875_v41 }
 0x763   :  { %4755 = vtanh.f32 %v2876_v61 }
 0x766   :  { %v4750_v35 = vpop.eup %4749 }
 0x767   :  { %v4752_v34 = vpop.eup %4751  ;;  %v2887_v14 = vadd.f32 1.0, %v4750_v35 }
 0x768   :  { %v4754_v44 = vpop.eup %4753 }
 0x769   :  { %v4756_v21 = vpop.eup %4755  ;;  %v2889_v61 = vmul.f32 0.5, %v2887_v14 }
 0x77f   :  { %v2718_v19 = vpop.f32.mrf.mxu0 }
 0x780   :  { %v2719_v3 = vadd.f32 %v7906_v57, %v2718_v19  ;;  %v2849_v19 = vadd.f32 %v2848_v18, %v2760_v8  ;;  %v2879_v18 = vadd.f32 1.0, %v4754_v44  ;;  %v2880_v8 = vadd.f32 1.0, %v4756_v21 }
 0x782   :  { %3851 = vrot.lane.b32.xlu0 %v2719_v3, %s5034_s29  ;;  %v7908_v3 = vld [vmem:[#allocation120_spill] sm:$0xff]  ;;  %v2881_v17 = vmul.f32 0.5, %v2879_v18 }
 0x783   :  { %v2869_v28 = vadd.f32 %v2849_v19, %v7908_v3  ;;  %v2873_v42 = vadd.f32 %v2851_v40, %v7908_v3  ;;  %v2882_v40 = vmul.f32 0.5, %v2880_v8 }
 0x785   :  { %4757 = vtanh.f32 %v2869_v28  ;;  %v7911_v28 = vld [vmem:[#allocation62_spill] sm:$0xff] }
 0x786   :  { %4759 = vtanh.f32 %v2873_v42 }
 0x787   :  { %v2720_v62 = vpop.f32.mrf.mxu0 }
 0x788   :  { %v2721_v55 = vadd.f32 %v7906_v57, %v2720_v62  ;;  %v2888_v57 = vadd.f32 1.0, %v4752_v34 }
 0x78a   :  { %3853 = vrot.lane.b32.xlu1 %v2721_v55, %s5034_s29  ;;  %v2890_v62 = vmul.f32 0.5, %v2888_v57  ;;  %v2864_v55 = vpop.f32.mrf.mxu1 }
 0x78b   :  { %v4758_v46 = vpop.eup %4757 }
 0x78c   :  { %v2902_v34 = vmul.f32 %v2890_v62, %v7911_v28  ;;  %v2903_v44 = vmul.f32 %v4758_v46, %v2881_v17 }
 0x78f   :  { %v2774_v60 = vpop.f32.mrf.mxu0 }
 0x790   :  { %v2863_v11 = vadd.f32 %v2862_v6, %v2774_v60  ;;  %v4760_v6 = vpop.eup %4759  ;;  %v7910_v60 = vld [vmem:[#allocation123_spill] sm:$0xff] }
 0x791   :  { %v2901_v35 = vmul.f32 %v2889_v61, %v7910_v60  ;;  %v2904_v42 = vmul.f32 %v4760_v6, %v2882_v40  ;;  %v7914_v40 = vld [vmem:[#allocation35_spill] sm:$0xff]  ;;  %v7915_v6 = vld [vmem:[#allocation36_spill] sm:$0xff]  ;;  %v7916_v60 = vld [vmem:[#allocation34_spill] sm:$0xff] }
 0x792   :  { %v2870_v41 = vadd.f32 %v2863_v11, %v7909_v20 }
 0x793   :  { %v6653_v57 = vadd.f32 %v2904_v42, %v2902_v34  ;;  %v7918_v34 = vld [vmem:[#allocation38_spill] sm:$0xff] }
 0x794   :  { %v2893_v9 = vmul.f32 0.5, %v2870_v41  ;;  %v6651_v41 = vadd.f32 %v2903_v44, %v2901_v35  ;;  %v7917_v35 = vld [vmem:[#allocation41_spill] sm:$0xff]  ;;  %v7919_v44 = vld [vmem:[#allocation46_spill] sm:$0xff] }
 0x795   :  { %7913 = vst [vmem:[#allocation73_spill] sm:$0xff] %v6653_v57  ;;  %v3139_v28 = vrot.slane %v7917_v35, 6  ;;  %v3153_v42 = vrot.slane %v7919_v44, 6 }
 0x796   :  { %4761 = vtanh.f32 %v2893_v9  ;;  %7912 = vst [vmem:[#allocation69_spill] sm:$0xff] %v6651_v41 }
 0x797   :  { %v2776_v19 = vpop.f32.mrf.mxu0 }
 0x798   :  { %v2865_v3 = vadd.f32 %v2864_v55, %v2776_v19 }
 0x79a   :  { %v2874_v11 = vadd.f32 %v2865_v3, %v7909_v20 }
 0x79c   :  { %v2894_v21 = vmul.f32 0.5, %v2874_v11  ;;  %v4762_v14 = vpop.eup %4761  ;;  %v3140_v11 = vrot.slane %v7918_v34, 5 }
 0x79d   :  { %v2897_v18 = vadd.f32 1.0, %v4762_v14 }
 0x79e   :  { %4763 = vtanh.f32 %v2894_v21  ;;  %v7920_v21 = vld [vmem:[#allocation47_spill] sm:$0xff] }
 0x79f   :  { %4765 = vtanh.f32 %v6651_v41  ;;  %v2899_v9 = vmul.f32 0.5, %v2897_v18  ;;  %v3154_v14 = vrot.slane %v7920_v21, 5  ;;  %v7921_v18 = vld [vmem:[#allocation18_spill] sm:$0xff] }
 0x7a0   :  { %4767 = vtanh.f32 %v6653_v57  ;;  %v7932_v57 = vld [vmem:[#allocation24_spill] sm:$0xff] }
 0x7a4   :  { %v4764_v8 = vpop.eup %4763 }
 0x7a5   :  { %v2898_v61 = vadd.f32 1.0, %v4764_v8  ;;  %v4766_v62 = vpop.eup %4765  ;;  %v7922_v8 = vld [vmem:[#allocation39_spill] sm:$0xff] }
 0x7a6   :  { %v4768_v3 = vpop.eup %4767  ;;  %v2909_v46 = vmul.f32 %v4766_v62, %v2899_v9  ;;  %v3142_v9 = vrot.slane %v7922_v8, 4 }
 0x7a7   :  { %v2900_v55 = vmul.f32 0.5, %v2898_v61  ;;  %v7923_v61 = vld [vmem:[#allocation48_spill] sm:$0xff] }
 0x7a8   :  { %v3156_v62 = vrot.slane %v7923_v61, 4 }
 0x7a9   :  { %v2910_v17 = vmul.f32 %v4768_v3, %v2900_v55  ;;  %v3141_v55 = vsel %vm474_vm0, %v3140_v11, %v3139_v28  ;;  %v3155_v3 = vsel %vm474_vm0, %v3154_v14, %v3153_v42  ;;  %v7930_v42 = vld [vmem:[#allocation43_spill] sm:$0xff] }
 0x7aa   :  { %v3143_v44 = vsel %vm477_vm1, %v3142_v9, %v3141_v55  ;;  %v3157_v21 = vsel %vm477_vm1, %v3156_v62, %v3155_v3  ;;  %v3148_v14 = vrot.slane %v7930_v42, 1  ;;  %v7933_v55 = vld [vmem:[#allocation54_spill] sm:$0xff]  ;;  %v7940_v42 = vld [vmem:[#allocation52_spill] sm:$0xff] }
 0x7ab   :  { %v6657_v19 = vpack.c.bf16 %v2910_v17, %v2909_v46  ;;  %v7924_v46 = vld [vmem:[#allocation20_spill] sm:$0xff]  ;;  %v7936_v3 = vld [vmem:[#allocation26_spill] sm:$0xff] }
 0x7ac   :  { %v7925_v17 = vld [vmem:[#allocation40_spill] sm:$0xff] }
 0x7ad   :  { %2976 = vmatmul.bf16.vlgmr.msra.gmra.mxu2 %v6657_v19  ;;  %2990 = vmatmul.bf16.vlgmr.msra.gmra.mxu3 %v6657_v19  ;;  %v3144_v35 = vrot.slane %v7925_v17, 3 }
 0x7ae   :  { %3004 = vmatmul.bf16.vlgmr.msrb.gmra.mxu0 %v6657_v19  ;;  %3018 = vmatmul.bf16.vlgmr.msra.gmra.mxu1 %v6657_v19 }
 0x7af   :  { %3178 = vmatpush.bf16.msra.mxu3 %v7914_v40  ;;  %3192 = vmatpush.bf16.msrb.mxu0 %v7915_v6  ;;  %v7927_v6 = vld [vmem:[#allocation22_spill] sm:$0xff]  ;;  %v3145_v28 = vsel %vm480_vm2, %v3144_v35, %v3143_v44  ;;  %v7934_v35 = vld [vmem:[#allocation67_spill] sm:$0xff] }
 0x7b0   :  { %3206 = vmatpush.bf16.msra.mxu1 %v7916_v60  ;;  %3125 = vmatpush.bf16.msra.mxu2 %v7921_v18  ;;  %v7926_v60 = vld [vmem:[#allocation49_spill] sm:$0xff]  ;;  %v7928_v18 = vld [vmem:[#allocation42_spill] sm:$0xff] }
 0x7b1   :  { %v3158_v34 = vrot.slane %v7926_v60, 3  ;;  %v3146_v8 = vrot.slane %v7928_v18, 2  ;;  %v7929_v40 = vld [vmem:[#allocation50_spill] sm:$0xff] }
 0x7b2   :  { %v3160_v61 = vrot.slane %v7929_v40, 2  ;;  %v7941_v40 = vld [vmem:[#allocation71_spill] sm:$0xff] }
 0x7b3   :  { %v3159_v11 = vsel %vm480_vm2, %v3158_v34, %v3157_v21  ;;  %v3147_v9 = vsel %vm483_vm3, %v3146_v8, %v3145_v28  ;;  %v7935_v21 = vld [vmem:[#allocation55_spill] sm:$0xff]  ;;  %v7938_v28 = vld [vmem:[#allocation53_spill] sm:$0xff] }
 0x7b4   :  { %3126 = vmatpush.bf16.msra.mxu2 %v7924_v46  ;;  %v7931_v46 = vld [vmem:[#allocation51_spill] sm:$0xff]  ;;  %v3161_v62 = vsel %vm483_vm3, %v3160_v61, %v3159_v11  ;;  %v3149_v34 = vsel %vm486_vm4, %v3148_v14, %v3147_v9  ;;  %v3165_v61 = vrot.slane %v7938_v28, 7  ;;  %v7939_v11 = vld [vmem:[#allocation44_spill] sm:$0xff]  ;;  %v7946_v28 = vld [vmem:[#allocation30_spill] sm:$0xff] }
 0x7b5   :  { %v3162_v17 = vrot.slane %v7931_v46, 1  ;;  %v3150_v46 = vsel %vm489_vm5, %v7939_v11, %v3149_v34  ;;  %v7943_v14 = vld [vmem:[#allocation28_spill] sm:$0xff] }
 0x7b7   :  { %v3163_v44 = vsel %vm486_vm4, %v3162_v17, %v3161_v62  ;;  %v7944_v62 = vld [vmem:[#allocation75_spill] sm:$0xff] }
 0x7b8   :  { %3127 = vmatpush.bf16.msra.mxu2 %v7927_v6 }
 0x7bc   :  { %3128 = vmatpush.bf16.msra.mxu2 %v7932_v57  ;;  %v7937_v57 = vld [vmem:[#allocation45_spill] sm:$0xff] }
 0x7bd   :  { %3091 = vmatmul.bf16.vlgmr.msrb.gmra.mxu3 %v6657_v19  ;;  %v3151_v8 = vrot.slane %v7937_v57, 7  ;;  %v7945_v57 = vld [vmem:[#allocation61_spill] sm:$0xff] }
 0x7be   :  { %3105 = vmatmul.bf16.vlgmr.msra.gmra.mxu0 %v6657_v19  ;;  %3119 = vmatmul.bf16.vlgmr.msrb.gmra.mxu1 %v6657_v19 }
 0x7bf   :  { %3220 = vmatpush.bf16.msrb.mxu3 %v7933_v55  ;;  %3272 = vmatpush.bf16.msra.mxu0 %v7934_v35  ;;  %v3164_v55 = vsel %vm489_vm5, %v7940_v42, %v3163_v44  ;;  %v7942_v35 = vld [vmem:[#allocation57_spill] sm:$0xff]  ;;  %v3152_v17 = vsel %vm492_vm6, %v3151_v8, %v3150_v46  ;;  %v7948_v44 = vld [vmem:[#allocation64_spill] sm:$0xff]  ;;  %v7950_v46 = vld [vmem:[#allocation59_spill] sm:$0xff] }
 0x7c0   :  { %3286 = vmatpush.bf16.msrb.mxu1 %v7935_v21  ;;  %3129 = vmatpush.bf16.msra.mxu2 %v7936_v3  ;;  %v3166_v9 = vsel %vm492_vm6, %v3165_v61, %v3164_v55  ;;  %v7947_v3 = vld [vmem:[#allocation79_spill] sm:$0xff]  ;;  %v7952_v8 = vld [vmem:[#allocation68_spill] sm:$0xff] }
 0x7c1   :  { %v3167_v34 = vpack.c.b16 %v3166_v9, %v3152_v17  ;;  %v7951_v55 = vld [vmem:[#allocation83_spill] sm:$0xff]  ;;  %v7953_v61 = vld [vmem:[#allocation60_spill] sm:$0xff] }
 0x7c2   :  { %v7954_v17 = vld [vmem:[#allocation87_spill] sm:$0xff]  ;;  %v7955_v9 = vld [vmem:[#allocation72_spill] sm:$0xff] }
 0x7c3   :  { %3273 = vmatpush.bf16.msra.mxu0 %v7941_v40  ;;  %v7949_v40 = vld [vmem:[#allocation33_spill] sm:$0xff] }
 0x7c4   :  { %3287 = vmatpush.bf16.msrb.mxu1 %v7942_v35  ;;  %3130 = vmatpush.bf16.msra.mxu2 %v7943_v14 }
 0x7c7   :  { %3274 = vmatpush.bf16.msra.mxu0 %v7944_v62 }
 0x7c8   :  { %3288 = vmatpush.bf16.msrb.mxu1 %v7945_v57  ;;  %3131 = vmatpush.bf16.msra.mxu2 %v7946_v28  ;;  %v7959_v28 = vld [vmem:[#allocation66_spill] sm:$0xff]  ;;  %v7960_v57 = vld [vmem:[#allocation95_spill] sm:$0xff] }
 0x7cb   :  { %3275 = vmatpush.bf16.msra.mxu0 %v7947_v3  ;;  %v7958_v3 = vld [vmem:[#allocation76_spill] sm:$0xff] }
 0x7cc   :  { %3289 = vmatpush.bf16.msrb.mxu1 %v7948_v44  ;;  %3132 = vmatpush.bf16.msra.mxu2 %v7949_v40  ;;  %v7956_v44 = vld [vmem:[#allocation63_spill] sm:$0xff] }
 0x7cd   :  { %4404 = vmatmul.msk.bf16.vlgmr.msra.gmra.mxu3 %vm529_vm7, %v3167_v34  ;;  %v7957_v40 = vld [vmem:[#allocation91_spill] sm:$0xff] }
 0x7ce   :  { %4405 = vmatmul.msk.bf16.vlgmr.msrb.gmra.mxu0 %vm529_vm7, %v3167_v34  ;;  %4406 = vmatmul.msk.bf16.vlgmr.msra.gmra.mxu1 %vm529_vm7, %v3167_v34 }
 0x7cf   :  { %3314 = vmatpush.bf16.msra.mxu3 %v7950_v46  ;;  %3276 = vmatpush.bf16.msra.mxu0 %v7951_v55  ;;  %v7961_v46 = vld [vmem:[#allocation80_spill] sm:$0xff]  ;;  %v7962_v55 = vld [vmem:[#allocation99_spill] sm:$0xff] }
 0x7d0   :  { %3290 = vmatpush.bf16.msrb.mxu1 %v7952_v8  ;;  %v2921_v8 = vpop.f32.mrf.mxu2 }
 0x7d3   :  { %3315 = vmatpush.bf16.msra.mxu3 %v7953_v61  ;;  %3277 = vmatpush.bf16.msra.mxu0 %v7954_v17  ;;  %v7963_v61 = vld [vmem:[#allocation84_spill] sm:$0xff]  ;;  %v7964_v17 = vld [vmem:[#allocation70_spill] sm:$0xff] }
 0x7d4   :  { %3291 = vmatpush.bf16.msrb.mxu1 %v7955_v9  ;;  %v7965_v9 = vld [vmem:[#allocation103_spill] sm:$0xff] }
 0x7d7   :  { %3316 = vmatpush.bf16.msra.mxu3 %v7956_v44  ;;  %3278 = vmatpush.bf16.msra.mxu0 %v7957_v40  ;;  %v7966_v44 = vld [vmem:[#allocation88_spill] sm:$0xff]  ;;  %v7967_v40 = vld [vmem:[#allocation74_spill] sm:$0xff] }
 0x7d8   :  { %3292 = vmatpush.bf16.msrb.mxu1 %v7958_v3  ;;  %v7968_v3 = vld [vmem:[#allocation107_spill] sm:$0xff]  ;;  %v2923_v14 = vpop.f32.mrf.mxu2 }
 0x7db   :  { %3317 = vmatpush.bf16.msra.mxu3 %v7959_v28  ;;  %3279 = vmatpush.bf16.msra.mxu0 %v7960_v57  ;;  %v7969_v28 = vld [vmem:[#allocation92_spill] sm:$0xff]  ;;  %v7970_v57 = vld [vmem:[#allocation78_spill] sm:$0xff] }
 0x7dc   :  { %3293 = vmatpush.bf16.msrb.mxu1 %v7961_v46  ;;  %v7971_v46 = vld [vmem:[#allocation113_spill] sm:$0xff] }
 0x7dd   :  { %4407 = vmatmul.msk.bf16.vlgmr.msrb.gmra.mxu3 %vm529_vm7, %v3167_v34  ;;  %v7973_v34 = vld [vmem:[#allocation82_spill] sm:$0xff] }
 0x7df   :  { %3328 = vmatpush.bf16.msrb.mxu0 %v7962_v55  ;;  %3318 = vmatpush.bf16.msra.mxu3 %v7964_v17  ;;  %v7972_v55 = vld [vmem:[#allocation96_spill] sm:$0xff]  ;;  %v7975_v17 = vld [vmem:[#allocation117_spill] sm:$0xff] }
 0x7e0   :  { %3342 = vmatpush.bf16.msra.mxu1 %v7963_v61  ;;  %v7974_v61 = vld [vmem:[#allocation86_spill] sm:$0xff] }
 0x7e3   :  { %3329 = vmatpush.bf16.msrb.mxu0 %v7965_v9  ;;  %3319 = vmatpush.bf16.msra.mxu3 %v7967_v40  ;;  %v7976_v9 = vld [vmem:[#allocation100_spill] sm:$0xff]  ;;  %v7978_v40 = vld [vmem:[#allocation118_spill] sm:$0xff] }
 0x7e4   :  { %3343 = vmatpush.bf16.msra.mxu1 %v7966_v44  ;;  %v7977_v44 = vld [vmem:[#allocation90_spill] sm:$0xff] }
 0x7e7   :  { %3330 = vmatpush.bf16.msrb.mxu0 %v7968_v3  ;;  %3320 = vmatpush.bf16.msra.mxu3 %v7970_v57  ;;  %v7979_v3 = vld [vmem:[#allocation104_spill] sm:$0xff]  ;;  %v7981_v57 = vld [vmem:[#allocation119_spill] sm:$0xff] }
 0x7e8   :  { %3344 = vmatpush.bf16.msra.mxu1 %v7969_v28  ;;  %v7980_v28 = vld [vmem:[#allocation94_spill] sm:$0xff] }
 0x7eb   :  { %3331 = vmatpush.bf16.msrb.mxu0 %v7971_v46  ;;  %3321 = vmatpush.bf16.msra.mxu3 %v7973_v34  ;;  %v7982_v46 = vld [vmem:[#allocation108_spill] sm:$0xff]  ;;  %v7984_v34 = vld [vmem:[#allocation121_spill] sm:$0xff] }
 0x7ec   :  { %3345 = vmatpush.bf16.msra.mxu1 %v7972_v55  ;;  %v7983_v55 = vld [vmem:[#allocation98_spill] sm:$0xff] }
 0x7ef   :  { %3370 = vmatpush.bf16.msrb.mxu3 %v7974_v61  ;;  %3332 = vmatpush.bf16.msrb.mxu0 %v7975_v17  ;;  %v7985_v61 = vld [vmem:[#allocation114_spill] sm:$0xff] }
 0x7f0   :  { %3346 = vmatpush.bf16.msra.mxu1 %v7976_v9  ;;  %v7986_v17 = vld [vmem:[#allocation102_spill] sm:$0xff] }
 0x7f1   :  { %v7987_v9 = vld [vmem:[#allocation106_spill] sm:$0xff] }
 0x7f3   :  { %3371 = vmatpush.bf16.msrb.mxu3 %v7977_v44  ;;  %3333 = vmatpush.bf16.msrb.mxu0 %v7978_v40  ;;  %v7988_v44 = vld [vmem:[#allocation110_spill] sm:$0xff]  ;;  %v7989_v40 = vld [vmem:[#allocation116_spill] sm:$0xff] }
 0x7f4   :  { %3347 = vmatpush.bf16.msra.mxu1 %v7979_v3  ;;  %v2963_v3 = vpop.f32.mrf.mxu1 }
 0x7f7   :  { %3372 = vmatpush.bf16.msrb.mxu3 %v7980_v28  ;;  %3334 = vmatpush.bf16.msrb.mxu0 %v7981_v57  ;;  %v2949_v28 = vpop.f32.mrf.mxu0  ;;  %v2935_v57 = vpop.f32.mrf.mxu3 }
 0x7f8   :  { %3348 = vmatpush.bf16.msra.mxu1 %v7982_v46 }
 0x7fb   :  { %3373 = vmatpush.bf16.msrb.mxu3 %v7983_v55  ;;  %3335 = vmatpush.bf16.msrb.mxu0 %v7984_v34 }
 0x7fc   :  { %3349 = vmatpush.bf16.msra.mxu1 %v7985_v61  ;;  %v2965_v62 = vpop.f32.mrf.mxu1 }
 0x7ff   :  { %3374 = vmatpush.bf16.msrb.mxu3 %v7986_v17  ;;  %v2951_v46 = vpop.f32.mrf.mxu0  ;;  %v2937_v55 = vpop.f32.mrf.mxu3 }
 0x803   :  { %3375 = vmatpush.bf16.msrb.mxu3 %v7987_v9 }
 0x807   :  { %3376 = vmatpush.bf16.msrb.mxu3 %v7988_v44 }
 0x80b   :  { %3377 = vmatpush.bf16.msrb.mxu3 %v7989_v40 }
 0x82b   :  { %v3005_v35 = vpop.f32.mrf.mxu0  ;;  %v3019_v34 = vpop.f32.mrf.mxu1 }
 0x82c   :  { %v3006_v18 = vadd.f32 %v3005_v35, %v2949_v28  ;;  %v3020_v63 = vadd.f32 %v3019_v34, %v2963_v3 }
 0x82e   :  { %v3026_v32 = vadd.f32 %v3006_v18, %v5734_v1 }
 0x830   :  { %v2977_v21 = vpop.f32.mrf.mxu2  ;;  %v2991_v61 = vpop.f32.mrf.mxu3 }
 0x831   :  { %v2978_v42 = vadd.f32 %v2977_v21, %v2921_v8  ;;  %v2992_v17 = vadd.f32 %v2991_v61, %v2935_v57 }
 0x833   :  { %v3024_v9 = vadd.f32 %v2978_v42, %v7594_v26  ;;  %v3025_v44 = vadd.f32 %v2992_v17, %v7595_v53  ;;  %v3007_v6 = vpop.f32.mrf.mxu0  ;;  %v3021_v60 = vpop.f32.mrf.mxu1 }
 0x834   :  { %v3008_v21 = vadd.f32 %v3007_v6, %v2951_v46  ;;  %v3022_v57 = vadd.f32 %v3021_v60, %v2965_v62 }
 0x835   :  { %v3032_v11 = vmul.f32 0.5, %v3024_v9  ;;  %v3040_v40 = vmul.f32 0.5, %v3025_v44 }
 0x837   :  { %4769 = vtanh.f32 %v3032_v11 }
 0x838   :  { %4771 = vtanh.f32 %v3040_v40  ;;  %v2979_v41 = vpop.f32.mrf.mxu2  ;;  %v2993_v20 = vpop.f32.mrf.mxu3  ;;  %v3027_v40 = vadd.f32 %v3020_v63, %v5738_v12 }
 0x839   :  { %v2980_v22 = vadd.f32 %v2979_v41, %v2923_v14  ;;  %v2994_v23 = vadd.f32 %v2993_v20, %v2937_v55  ;;  %4773 = vtanh.f32 %v3026_v32  ;;  %v3030_v20 = vadd.f32 %v3008_v21, %v5734_v1 }
 0x83a   :  { %v3031_v41 = vadd.f32 %v3022_v57, %v5738_v12 }
 0x83b   :  { %v3028_v42 = vadd.f32 %v2980_v22, %v7594_v26  ;;  %v3029_v8 = vadd.f32 %v2994_v23, %v7595_v53  ;;  %v3050_v22 = vmul.f32 0.5, %v3027_v40 }
 0x83c   :  { %v3051_v23 = vmul.f32 0.5, %v3031_v41 }
 0x83d   :  { %v4770_v61 = vpop.eup %4769  ;;  %v3033_v44 = vmul.f32 0.5, %v3028_v42  ;;  %v3041_v35 = vmul.f32 0.5, %v3029_v8 }
 0x83e   :  { %v4772_v28 = vpop.eup %4771  ;;  %v3036_v11 = vadd.f32 1.0, %v4770_v61 }
 0x83f   :  { %v3044_v17 = vadd.f32 1.0, %v4772_v28  ;;  %4775 = vtanh.f32 %v3033_v44  ;;  %v4774_v18 = vpop.eup %4773 }
 0x840   :  { %4777 = vtanh.f32 %v3041_v35  ;;  %v3038_v6 = vmul.f32 0.5, %v3036_v11 }
 0x841   :  { %v3046_v60 = vmul.f32 0.5, %v3044_v17  ;;  %4779 = vtanh.f32 %v3030_v20 }
 0x842   :  { %v3060_v14 = vmul.f32 %v4774_v18, %v3038_v6  ;;  %4781 = vtanh.f32 %v3050_v22 }
 0x843   :  { %v3058_v32 = vmul.f32 %v3046_v60, %v6543_v45  ;;  %4783 = vtanh.f32 %v3051_v23 }
 0x845   :  { %v4776_v3 = vpop.eup %4775  ;;  %v6769_v34 = vadd.f32 %v3060_v14, %v3058_v32 }
 0x846   :  { %v4778_v62 = vpop.eup %4777  ;;  %v3037_v63 = vadd.f32 1.0, %v4776_v3 }
 0x847   :  { %v3045_v46 = vadd.f32 1.0, %v4778_v62  ;;  %v4780_v9 = vpop.eup %4779  ;;  %4785 = vtanh.f32 %v6769_v34 }
 0x848   :  { %v3039_v55 = vmul.f32 0.5, %v3037_v63  ;;  %v4782_v8 = vpop.eup %4781 }
 0x849   :  { %v3047_v21 = vmul.f32 0.5, %v3045_v46  ;;  %v4784_v61 = vpop.eup %4783  ;;  %v3054_v45 = vadd.f32 1.0, %v4782_v8  ;;  %v8009_v8 = vld [vmem:[#allocation112_spill] sm:$0xff] }
 0x84a   :  { %v3061_v57 = vmul.f32 %v4780_v9, %v3039_v55  ;;  %v3055_v35 = vadd.f32 1.0, %v4784_v61  ;;  %v8008_v55 = vld [vmem:[#allocation111_spill] sm:$0xff] }
 0x84b   :  { %v3059_v42 = vmul.f32 %v3047_v21, %v6547_v39  ;;  %v3056_v40 = vmul.f32 0.5, %v3054_v45  ;;  %v8005_v39 = vld [vmem:[#allocation27_spill] sm:$0xff]  ;;  %v6829_v21 = vld [vmem:[%s7062_s8] ss:$0 sm:$0xff] }
 0x84c   :  { %v3057_v11 = vmul.f32 0.5, %v3055_v35 }
 0x84d   :  { %v6773_v44 = vadd.f32 %v3061_v57, %v3059_v42  ;;  %v4786_v28 = vpop.eup %4785 }
 0x84e   :  { %v3066_v20 = vmul.f32 %v4786_v28, %v3056_v40 }
 0x84f   :  { %4787 = vtanh.f32 %v6773_v44 }
 0x855   :  { %v4788_v17 = vpop.eup %4787 }
 0x856   :  { %v3067_v41 = vmul.f32 %v4788_v17, %v3057_v11 }
 0x858   :  { %v3068_v6 = vpack.c.bf16 %v3067_v41, %v3066_v20 }
 0x85a   :  { %3077 = vmatmul.bf16.vlgmr.msrb.gmra.mxu2 %v3068_v6  ;;  %3280 = vmatmul.bf16.vlgmr.msra.gmra.mxu0 %v3068_v6 }
 0x85b   :  { %3294 = vmatmul.bf16.vlgmr.msrb.gmra.mxu1 %v3068_v6  ;;  %3322 = vmatmul.bf16.vlgmr.msra.gmra.mxu3 %v3068_v6 }
 0x85c   :  { %3300 = vmatpush.bf16.msrb.mxu2 %v7498_v50  ;;  %3443 = vmatpush.bf16.msrb.mxu1 %v5107_v4  ;;  %v7990_v4 = vld [vmem:[#allocation85_spill] sm:$0xff] }
 0x85d   :  { %3471 = vmatpush.bf16.msra.mxu3 %v5131_v36  ;;  %3429 = vmatpush.bf16.msra.mxu0 %v6556_v33  ;;  %v7993_v36 = vld [vmem:[#allocation89_spill] sm:$0xff] }
 0x85e   :  { %v8006_v33 = vld [vmem:[#allocation29_spill] sm:$0xff] }
 0x860   :  { %3301 = vmatpush.bf16.msrb.mxu2 %v7499_v2  ;;  %3444 = vmatpush.bf16.msrb.mxu1 %v5114_v13  ;;  %v7991_v13 = vld [vmem:[#allocation37_spill] sm:$0xff] }
 0x861   :  { %3472 = vmatpush.bf16.msra.mxu3 %v5143_v48  ;;  %3430 = vmatpush.bf16.msra.mxu0 %v6565_v7  ;;  %v7995_v48 = vld [vmem:[#allocation97_spill] sm:$0xff]  ;;  %v8007_v7 = vld [vmem:[#allocation32_spill] sm:$0xff] }
 0x864   :  { %3302 = vmatpush.bf16.msrb.mxu2 %v7500_v31  ;;  %3445 = vmatpush.bf16.msrb.mxu1 %v5123_v25  ;;  %v7992_v25 = vld [vmem:[#allocation65_spill] sm:$0xff] }
 0x865   :  { %3473 = vmatpush.bf16.msra.mxu3 %v5155_v0  ;;  %3431 = vmatpush.bf16.msra.mxu0 %v6574_v16  ;;  %v7997_v0 = vld [vmem:[#allocation105_spill] sm:$0xff]  ;;  %v3092_v16 = vpop.f32.mrf.mxu3 }
 0x868   :  { %3303 = vmatpush.bf16.msrb.mxu2 %v7501_v43  ;;  %3446 = vmatpush.bf16.msrb.mxu1 %v5134_v37  ;;  %v7994_v37 = vld [vmem:[#allocation93_spill] sm:$0xff] }
 0x869   :  { %3474 = vmatpush.bf16.msra.mxu3 %v5175_v30  ;;  %3432 = vmatpush.bf16.msra.mxu0 %v6583_v10  ;;  %v8000_v30 = vld [vmem:[#allocation17_spill] sm:$0xff]  ;;  %v3106_v10 = vpop.f32.mrf.mxu0 }
 0x86a   :  { %3133 = vmatmul.bf16.vlgmr.msra.gmra.mxu2 %v6657_v19 }
 0x86c   :  { %3304 = vmatpush.bf16.msrb.mxu2 %v7502_v51  ;;  %3447 = vmatpush.bf16.msrb.mxu1 %v5146_v52  ;;  %v7996_v52 = vld [vmem:[#allocation101_spill] sm:$0xff] }
 0x86d   :  { %3475 = vmatpush.bf16.msra.mxu3 %v5202_v47  ;;  %3433 = vmatpush.bf16.msra.mxu0 %v6593_v38  ;;  %v8001_v47 = vld [vmem:[#allocation19_spill] sm:$0xff]  ;;  %v3094_v38 = vpop.f32.mrf.mxu3 }
 0x870   :  { %3305 = vmatpush.bf16.msrb.mxu2 %v7503_v59  ;;  %3448 = vmatpush.bf16.msrb.mxu1 %v5158_v15  ;;  %v7998_v15 = vld [vmem:[#allocation109_spill] sm:$0xff] }
 0x871   :  { %3476 = vmatpush.bf16.msra.mxu3 %v5204_v49  ;;  %3434 = vmatpush.bf16.msra.mxu0 %v6602_v29  ;;  %v8002_v49 = vld [vmem:[#allocation21_spill] sm:$0xff]  ;;  %v3108_v29 = vpop.f32.mrf.mxu0 }
 0x874   :  { %3306 = vmatpush.bf16.msrb.mxu2 %v7504_v58  ;;  %3449 = vmatpush.bf16.msrb.mxu1 %v5172_v27  ;;  %v7999_v27 = vld [vmem:[#allocation115_spill] sm:$0xff] }
 0x875   :  { %3477 = vmatpush.bf16.msra.mxu3 %v5208_v54  ;;  %3435 = vmatpush.bf16.msra.mxu0 %v6611_v56  ;;  %v8003_v54 = vld [vmem:[#allocation23_spill] sm:$0xff]  ;;  %v3120_v56 = vpop.f32.mrf.mxu1  ;;  %v3180_v19 = vpop.f32.mrf.mxu3 }
 0x876   :  { %v3181_v18 = vadd.f32 %v3180_v19, %v3092_v16 }
 0x878   :  { %3307 = vmatpush.bf16.msrb.mxu2 %v7505_v24  ;;  %3450 = vmatpush.bf16.msrb.mxu1 %v7596_v5  ;;  %v8004_v5 = vld [vmem:[#allocation25_spill] sm:$0xff]  ;;  %v3227_v9 = vadd.f32 %v3181_v18, %v8008_v55 }
 0x879   :  { %3478 = vmatpush.bf16.msra.mxu3 %v7991_v13  ;;  %3436 = vmatpush.bf16.msra.mxu0 %v7992_v25  ;;  %v3194_v60 = vpop.f32.mrf.mxu0 }
 0x87a   :  { %v3195_v32 = vadd.f32 %v3194_v60, %v3106_v10  ;;  %v3235_v35 = vmul.f32 0.5, %v3227_v9 }
 0x87b   :  { %3308 = vmatmul.bf16.vlgmr.msrb.gmra.mxu2 %v3068_v6 }
 0x87c   :  { %3356 = vmatpush.bf16.msra.mxu2 %v7990_v4  ;;  %v3228_v61 = vadd.f32 %v3195_v32, %v8009_v8  ;;  %4789 = vtanh.f32 %v3235_v35 }
 0x87d   :  { %v3122_v22 = vpop.f32.mrf.mxu1  ;;  %v3182_v23 = vpop.f32.mrf.mxu3 }
 0x87e   :  { %v3183_v14 = vadd.f32 %v3182_v23, %v3094_v38  ;;  %v3243_v40 = vmul.f32 0.5, %v3228_v61 }
 0x880   :  { %3357 = vmatpush.bf16.msra.mxu2 %v7993_v36  ;;  %v3231_v42 = vadd.f32 %v3183_v14, %v8008_v55 }
 0x881   :  { %v3196_v3 = vpop.f32.mrf.mxu0 }
 0x882   :  { %v3197_v63 = vadd.f32 %v3196_v3, %v3108_v29  ;;  %v3236_v28 = vmul.f32 0.5, %v3231_v42  ;;  %v8011_v29 = vld [vmem:[#allocation122_spill] sm:$0xff] }
 0x884   :  { %3358 = vmatpush.bf16.msra.mxu2 %v7994_v37  ;;  %v3232_v45 = vadd.f32 %v3197_v63, %v8009_v8  ;;  %4791 = vtanh.f32 %v3236_v28  ;;  %v8013_v28 = vld [vmem:[#allocation73_spill] sm:$0xff] }
 0x885   :  { %v3208_v62 = vpop.f32.mrf.mxu1  ;;  %4793 = vtanh.f32 %v3243_v40  ;;  %v3222_v25 = vpop.f32.mrf.mxu3 }
 0x886   :  { %v3244_v11 = vmul.f32 0.5, %v3232_v45  ;;  %v3209_v6 = vadd.f32 %v3208_v62, %v3120_v56  ;;  %v8012_v45 = vld [vmem:[#allocation69_spill] sm:$0xff] }
 0x888   :  { %3359 = vmatpush.bf16.msra.mxu2 %v7995_v48  ;;  %4795 = vtanh.f32 %v3244_v11 }
 0x88c   :  { %3360 = vmatpush.bf16.msra.mxu2 %v7996_v52 }
 0x88d   :  { %v3210_v20 = vpop.f32.mrf.mxu1  ;;  %v3224_v14 = vpop.f32.mrf.mxu3 }
 0x88e   :  { %v3211_v13 = vadd.f32 %v3210_v20, %v3122_v22 }
 0x890   :  { %3361 = vmatpush.bf16.msra.mxu2 %v7997_v0 }
 0x894   :  { %3362 = vmatpush.bf16.msra.mxu2 %v7998_v15 }
 0x898   :  { %3363 = vmatpush.bf16.msra.mxu2 %v7999_v27 }
 0x89c   :  { %3457 = vmatpush.bf16.msrb.mxu2 %v8000_v30  ;;  %v4790_v30 = vpop.eup %4789 }
 0x89d   :  { %v3239_v10 = vadd.f32 1.0, %v4790_v30 }
 0x89f   :  { %v3241_v23 = vmul.f32 0.5, %v3239_v10  ;;  %v8015_v10 = vld [vmem:[#allocation36_spill] sm:$0xff] }
 0x8a0   :  { %3458 = vmatpush.bf16.msrb.mxu2 %v8001_v47  ;;  %v8010_v47 = vld [vmem:[#allocation120_spill] sm:$0xff] }
 0x8a4   :  { %3459 = vmatpush.bf16.msrb.mxu2 %v8002_v49  ;;  %v3229_v49 = vadd.f32 %v3209_v6, %v8010_v47 }
 0x8a6   :  { %4797 = vtanh.f32 %v3229_v49 }
 0x8a8   :  { %3460 = vmatpush.bf16.msrb.mxu2 %v8003_v54  ;;  %v4792_v54 = vpop.eup %4791 }
 0x8a9   :  { %v3240_v38 = vadd.f32 1.0, %v4792_v54 }
 0x8ab   :  { %v3242_v18 = vmul.f32 0.5, %v3240_v38  ;;  %v8016_v38 = vld [vmem:[#allocation34_spill] sm:$0xff] }
 0x8ac   :  { %3461 = vmatpush.bf16.msrb.mxu2 %v8004_v5  ;;  %v3233_v5 = vadd.f32 %v3211_v13, %v8010_v47 }
 0x8ae   :  { %4799 = vtanh.f32 %v3233_v5 }
 0x8b0   :  { %3462 = vmatpush.bf16.msrb.mxu2 %v8005_v39 }
 0x8b4   :  { %3463 = vmatpush.bf16.msrb.mxu2 %v8006_v33  ;;  %v4794_v33 = vpop.eup %4793 }
 0x8b5   :  { %v4796_v16 = vpop.eup %4795  ;;  %v3247_v56 = vadd.f32 1.0, %v4794_v33 }
 0x8b6   :  { %v3248_v60 = vadd.f32 1.0, %v4796_v16  ;;  %v4798_v62 = vpop.eup %4797  ;;  %v8014_v16 = vld [vmem:[#allocation35_spill] sm:$0xff] }
 0x8b7   :  { %v3249_v3 = vmul.f32 0.5, %v3247_v56  ;;  %v4800_v9 = vpop.eup %4799 }
 0x8b8   :  { %3464 = vmatpush.bf16.msrb.mxu2 %v8007_v7  ;;  %v3250_v63 = vmul.f32 0.5, %v3248_v60  ;;  %v3264_v42 = vmul.f32 %v4800_v9, %v3242_v18  ;;  %v8018_v60 = vld [vmem:[#allocation38_spill] sm:$0xff] }
 0x8b9   :  { %v3261_v35 = vmul.f32 %v3249_v3, %v8012_v45  ;;  %v8020_v3 = vld [vmem:[#allocation47_spill] sm:$0xff]  ;;  %v8025_v45 = vld [vmem:[#allocation40_spill] sm:$0xff] }
 0x8ba   :  { %v3262_v40 = vmul.f32 %v3250_v63, %v8013_v28  ;;  %v8026_v28 = vld [vmem:[#allocation49_spill] sm:$0xff] }
 0x8dd   :  { %v3078_v46 = vpop.f32.mrf.mxu2 }
 0x8de   :  { %v3079_v57 = vadd.f32 %v6829_v21, %v3078_v46 }
 0x8e0   :  { %3859 = vrot.lane.b32.xlu2 %v3079_v57, %s5035_s5  ;;  %v3263_v57 = vmul.f32 %v4798_v62, %v3241_v23  ;;  %v8019_v23 = vld [vmem:[#allocation46_spill] sm:$0xff]  ;;  %v8022_v62 = vld [vmem:[#allocation39_spill] sm:$0xff] }
 0x8e1   :  { %v3513_v18 = vrot.slane %v8019_v23, 7  ;;  %v3502_v63 = vrot.slane %v8022_v62, 5  ;;  %v8034_v23 = vld [vmem:[#allocation52_spill] sm:$0xff] }
 0x8e5   :  { %v3080_v17 = vpop.f32.mrf.mxu2 }
 0x8e6   :  { %v3081_v41 = vadd.f32 %v6829_v21, %v3080_v17  ;;  %v6842_v17 = vadd.f32 %v3263_v57, %v3261_v35  ;;  %v3504_v35 = vrot.slane %v8025_v45, 4  ;;  %v8041_v45 = vld [vmem:[#allocation28_spill] sm:$0xff] }
 0x8e8   :  { %3861 = vrot.lane.b32.xlu0 %v3081_v41, %s5035_s5  ;;  %v6844_v41 = vadd.f32 %v3264_v42, %v3262_v40  ;;  %v3518_v40 = vrot.slane %v8026_v28, 4 }
 0x8ed   :  { %v3134_v39 = vpop.f32.mrf.mxu2 }
 0x8ee   :  { %v3223_v7 = vadd.f32 %v3222_v25, %v3134_v39 }
 0x8f0   :  { %v3230_v19 = vadd.f32 %v3223_v7, %v8011_v29 }
 0x8f2   :  { %v3253_v22 = vmul.f32 0.5, %v3230_v19  ;;  %v8017_v19 = vld [vmem:[#allocation41_spill] sm:$0xff] }
 0x8f3   :  { %v3499_v56 = vrot.slane %v8017_v19, 7 }
 0x8f4   :  { %4801 = vtanh.f32 %v3253_v22  ;;  %v3500_v22 = vrot.slane %v8018_v60, 6  ;;  %v8033_v60 = vld [vmem:[#allocation44_spill] sm:$0xff] }
 0x8f5   :  { %v3136_v32 = vpop.f32.mrf.mxu2 }
 0x8f6   :  { %v3225_v46 = vadd.f32 %v3224_v14, %v3136_v32  ;;  %v3514_v14 = vrot.slane %v8020_v3, 6  ;;  %v8021_v32 = vld [vmem:[#allocation18_spill] sm:$0xff]  ;;  %v3501_v57 = vsel %vm474_vm0, %v3500_v22, %v3499_v56  ;;  %v3510_v22 = vrot.slane %v8033_v60, 1  ;;  %v8058_v60 = vld [vmem:[#allocation76_spill] sm:$0xff] }
 0x8f7   :  { %v8035_v3 = vld [vmem:[#allocation54_spill] sm:$0xff] }
 0x8f8   :  { %v3234_v61 = vadd.f32 %v3225_v46, %v8011_v29  ;;  %v8023_v46 = vld [vmem:[#allocation48_spill] sm:$0xff]  ;;  %v3515_v42 = vsel %vm474_vm0, %v3514_v14, %v3513_v18  ;;  %v3524_v18 = vrot.slane %v8034_v23, 1  ;;  %v8036_v14 = vld [vmem:[#allocation67_spill] sm:$0xff] }
 0x8f9   :  { %v3516_v9 = vrot.slane %v8023_v46, 5  ;;  %v8038_v46 = vld [vmem:[#allocation26_spill] sm:$0xff]  ;;  %v8060_v23 = vld [vmem:[#allocation95_spill] sm:$0xff] }
 0x8fa   :  { %v3254_v11 = vmul.f32 0.5, %v3234_v61  ;;  %v4802_v20 = vpop.eup %4801  ;;  %v8024_v61 = vld [vmem:[#allocation20_spill] sm:$0xff] }
 0x8fb   :  { %v3257_v6 = vadd.f32 1.0, %v4802_v20  ;;  %v3517_v20 = vsel %vm477_vm1, %v3516_v9, %v3515_v42  ;;  %v8039_v42 = vld [vmem:[#allocation71_spill] sm:$0xff] }
 0x8fc   :  { %4803 = vtanh.f32 %v3254_v11  ;;  %v3503_v11 = vsel %vm477_vm1, %v3502_v63, %v3501_v57  ;;  %v8037_v63 = vld [vmem:[#allocation55_spill] sm:$0xff] }
 0x8fd   :  { %4805 = vtanh.f32 %v6842_v17  ;;  %v3259_v25 = vmul.f32 0.5, %v3257_v6  ;;  %v8027_v6 = vld [vmem:[#allocation22_spill] sm:$0xff] }
 0x8fe   :  { %4807 = vtanh.f32 %v6844_v41 }
 0x902   :  { %v4804_v13 = vpop.eup %4803 }
 0x903   :  { %v3258_v30 = vadd.f32 1.0, %v4804_v13  ;;  %v4806_v49 = vpop.eup %4805  ;;  %v8028_v13 = vld [vmem:[#allocation42_spill] sm:$0xff] }
 0x904   :  { %v4808_v5 = vpop.eup %4807  ;;  %v3269_v39 = vmul.f32 %v4806_v49, %v3259_v25  ;;  %v3506_v25 = vrot.slane %v8028_v13, 3  ;;  %v8046_v13 = vld [vmem:[#allocation30_spill] sm:$0xff] }
 0x905   :  { %v3260_v54 = vmul.f32 0.5, %v3258_v30  ;;  %v8029_v30 = vld [vmem:[#allocation50_spill] sm:$0xff] }
 0x906   :  { %v3520_v49 = vrot.slane %v8029_v30, 3  ;;  %v8047_v30 = vld [vmem:[#allocation79_spill] sm:$0xff] }
 0x907   :  { %v3270_v33 = vmul.f32 %v4808_v5, %v3260_v54  ;;  %v3505_v54 = vsel %vm480_vm2, %v3504_v35, %v3503_v11  ;;  %v3519_v5 = vsel %vm480_vm2, %v3518_v40, %v3517_v20  ;;  %v8042_v35 = vld [vmem:[#allocation45_spill] sm:$0xff]  ;;  %v8044_v20 = vld [vmem:[#allocation75_spill] sm:$0xff] }
 0x908   :  { %v3507_v19 = vsel %vm483_vm3, %v3506_v25, %v3505_v54  ;;  %v3521_v56 = vsel %vm483_vm3, %v3520_v49, %v3519_v5  ;;  %v8043_v40 = vld [vmem:[#allocation53_spill] sm:$0xff]  ;;  %v8048_v49 = vld [vmem:[#allocation64_spill] sm:$0xff]  ;;  %v8050_v5 = vld [vmem:[#allocation59_spill] sm:$0xff] }
 0x909   :  { %v6848_v7 = vpack.c.bf16 %v3270_v33, %v3269_v39  ;;  %v8030_v39 = vld [vmem:[#allocation43_spill] sm:$0xff]  ;;  %v8049_v54 = vld [vmem:[#allocation33_spill] sm:$0xff] }
 0x90a   :  { %v3508_v33 = vrot.slane %v8030_v39, 2  ;;  %v8051_v39 = vld [vmem:[#allocation83_spill] sm:$0xff] }
 0x90b   :  { %3336 = vmatmul.bf16.vlgmr.msrb.gmra.mxu0 %v6848_v7  ;;  %3350 = vmatmul.bf16.vlgmr.msra.gmra.mxu1 %v6848_v7 }
 0x90c   :  { %3364 = vmatmul.bf16.vlgmr.msra.gmra.mxu2 %v6848_v7  ;;  %3378 = vmatmul.bf16.vlgmr.msrb.gmra.mxu3 %v6848_v7 }
 0x90d   :  { %3538 = vmatpush.bf16.msra.mxu1 %v8014_v16  ;;  %3552 = vmatpush.bf16.msra.mxu2 %v8015_v10  ;;  %v8031_v16 = vld [vmem:[#allocation51_spill] sm:$0xff] }
 0x90e   :  { %3566 = vmatpush.bf16.msrb.mxu3 %v8016_v38  ;;  %3485 = vmatpush.bf16.msrb.mxu0 %v8021_v32  ;;  %v3522_v10 = vrot.slane %v8031_v16, 2  ;;  %v8032_v38 = vld [vmem:[#allocation24_spill] sm:$0xff]  ;;  %v3509_v32 = vsel %vm486_vm4, %v3508_v33, %v3507_v19  ;;  %v8056_v19 = vld [vmem:[#allocation63_spill] sm:$0xff] }
 0x90f   :  { %v3511_v9 = vsel %vm489_vm5, %v3510_v22, %v3509_v32  ;;  %v8052_v33 = vld [vmem:[#allocation68_spill] sm:$0xff]  ;;  %v8059_v22 = vld [vmem:[#allocation66_spill] sm:$0xff] }
 0x910   :  { %v3523_v62 = vsel %vm486_vm4, %v3522_v10, %v3521_v56  ;;  %v3512_v28 = vsel %vm492_vm6, %v8042_v35, %v3511_v9  ;;  %v8053_v16 = vld [vmem:[#allocation60_spill] sm:$0xff]  ;;  %v8054_v10 = vld [vmem:[#allocation87_spill] sm:$0xff]  ;;  %v8064_v32 = vld [vmem:[#allocation70_spill] sm:$0xff] }
 0x911   :  { %v3525_v57 = vsel %vm489_vm5, %v3524_v18, %v3523_v62  ;;  %v8057_v56 = vld [vmem:[#allocation91_spill] sm:$0xff]  ;;  %v8061_v18 = vld [vmem:[#allocation80_spill] sm:$0xff]  ;;  %v8073_v35 = vld [vmem:[#allocation82_spill] sm:$0xff] }
 0x912   :  { %3486 = vmatpush.bf16.msrb.mxu0 %v8024_v61  ;;  %v8040_v61 = vld [vmem:[#allocation57_spill] sm:$0xff]  ;;  %v3526_v11 = vsel %vm492_vm6, %v8043_v40, %v3525_v57  ;;  %v8065_v62 = vld [vmem:[#allocation103_spill] sm:$0xff]  ;;  %v8069_v57 = vld [vmem:[#allocation92_spill] sm:$0xff] }
 0x913   :  { %v3527_v25 = vpack.c.b16 %v3526_v11, %v3512_v28  ;;  %v8068_v9 = vld [vmem:[#allocation107_spill] sm:$0xff]  ;;  %v8074_v28 = vld [vmem:[#allocation86_spill] sm:$0xff]  ;;  %v8075_v40 = vld [vmem:[#allocation117_spill] sm:$0xff] }
 0x914   :  { %v8076_v11 = vld [vmem:[#allocation100_spill] sm:$0xff] }
 0x916   :  { %3487 = vmatpush.bf16.msrb.mxu0 %v8027_v6  ;;  %v8045_v6 = vld [vmem:[#allocation61_spill] sm:$0xff] }
 0x91a   :  { %3488 = vmatpush.bf16.msrb.mxu0 %v8032_v38  ;;  %v8055_v38 = vld [vmem:[#allocation72_spill] sm:$0xff] }
 0x91b   :  { %3451 = vmatmul.bf16.vlgmr.msrb.gmra.mxu1 %v6848_v7 }
 0x91c   :  { %3465 = vmatmul.bf16.vlgmr.msrb.gmra.mxu2 %v6848_v7  ;;  %3479 = vmatmul.bf16.vlgmr.msra.gmra.mxu3 %v6848_v7 }
 0x91d   :  { %3580 = vmatpush.bf16.msrb.mxu1 %v8035_v3  ;;  %3633 = vmatpush.bf16.msrb.mxu2 %v8036_v14  ;;  %v8062_v3 = vld [vmem:[#allocation99_spill] sm:$0xff]  ;;  %v8063_v14 = vld [vmem:[#allocation84_spill] sm:$0xff] }
 0x91e   :  { %3647 = vmatpush.bf16.msra.mxu3 %v8037_v63  ;;  %3489 = vmatpush.bf16.msrb.mxu0 %v8038_v46  ;;  %v8066_v63 = vld [vmem:[#allocation88_spill] sm:$0xff]  ;;  %v8067_v46 = vld [vmem:[#allocation74_spill] sm:$0xff] }
 0x921   :  { %3634 = vmatpush.bf16.msrb.mxu2 %v8039_v42  ;;  %v8070_v42 = vld [vmem:[#allocation78_spill] sm:$0xff] }
 0x922   :  { %3648 = vmatpush.bf16.msra.mxu3 %v8040_v61  ;;  %3490 = vmatpush.bf16.msrb.mxu0 %v8041_v45  ;;  %v8071_v61 = vld [vmem:[#allocation113_spill] sm:$0xff]  ;;  %v8072_v45 = vld [vmem:[#allocation96_spill] sm:$0xff] }
 0x925   :  { %3635 = vmatpush.bf16.msrb.mxu2 %v8044_v20  ;;  %v8077_v20 = vld [vmem:[#allocation90_spill] sm:$0xff] }
 0x926   :  { %3649 = vmatpush.bf16.msra.mxu3 %v8045_v6  ;;  %3491 = vmatpush.bf16.msrb.mxu0 %v8046_v13  ;;  %v8078_v6 = vld [vmem:[#allocation118_spill] sm:$0xff]  ;;  %v8079_v13 = vld [vmem:[#allocation104_spill] sm:$0xff] }
 0x929   :  { %3636 = vmatpush.bf16.msrb.mxu2 %v8047_v30  ;;  %v8081_v30 = vld [vmem:[#allocation119_spill] sm:$0xff] }
 0x92a   :  { %3650 = vmatpush.bf16.msra.mxu3 %v8048_v49  ;;  %3492 = vmatpush.bf16.msrb.mxu0 %v8049_v54  ;;  %v8082_v49 = vld [vmem:[#allocation108_spill] sm:$0xff]  ;;  %v8083_v54 = vld [vmem:[#allocation98_spill] sm:$0xff] }
 0x92b   :  { %4408 = vmatmul.msk.bf16.vlgmr.msra.gmra.mxu1 %vm529_vm7, %v3527_v25 }
 0x92c   :  { %4409 = vmatmul.msk.bf16.vlgmr.msra.gmra.mxu2 %vm529_vm7, %v3527_v25  ;;  %4410 = vmatmul.msk.bf16.vlgmr.msrb.gmra.mxu3 %vm529_vm7, %v3527_v25 }
 0x92d   :  { %3675 = vmatpush.bf16.msra.mxu1 %v8050_v5  ;;  %3637 = vmatpush.bf16.msrb.mxu2 %v8051_v39  ;;  %v8084_v5 = vld [vmem:[#allocation121_spill] sm:$0xff]  ;;  %v8085_v39 = vld [vmem:[#allocation114_spill] sm:$0xff] }
 0x92e   :  { %3651 = vmatpush.bf16.msra.mxu3 %v8052_v33  ;;  %v8086_v33 = vld [vmem:[#allocation102_spill] sm:$0xff] }
 0x931   :  { %3676 = vmatpush.bf16.msra.mxu1 %v8053_v16  ;;  %3638 = vmatpush.bf16.msrb.mxu2 %v8054_v10  ;;  %v8087_v16 = vld [vmem:[#allocation106_spill] sm:$0xff] }
 0x932   :  { %3652 = vmatpush.bf16.msra.mxu3 %v8055_v38  ;;  %v8088_v10 = vld [vmem:[#allocation110_spill] sm:$0xff]  ;;  %v8089_v38 = vld [vmem:[#allocation116_spill] sm:$0xff] }
 0x935   :  { %3677 = vmatpush.bf16.msra.mxu1 %v8056_v19  ;;  %3639 = vmatpush.bf16.msrb.mxu2 %v8057_v56  ;;  %v3281_v19 = vpop.f32.mrf.mxu0  ;;  %v3295_v56 = vpop.f32.mrf.mxu1 }
 0x936   :  { %3653 = vmatpush.bf16.msra.mxu3 %v8058_v60  ;;  %v3323_v60 = vpop.f32.mrf.mxu3 }
 0x939   :  { %3678 = vmatpush.bf16.msra.mxu1 %v8059_v22  ;;  %3640 = vmatpush.bf16.msrb.mxu2 %v8060_v23  ;;  %v3309_v22 = vpop.f32.mrf.mxu2 }
 0x93a   :  { %3654 = vmatpush.bf16.msra.mxu3 %v8061_v18 }
 0x93b   :  { %4411 = vmatmul.msk.bf16.vlgmr.msrb.gmra.mxu1 %vm529_vm7, %v3527_v25  ;;  %v8080_v25 = vld [vmem:[#allocation94_spill] sm:$0xff] }
 0x93d   :  { %3695 = vmatpush.bf16.msra.mxu2 %v8062_v3  ;;  %3679 = vmatpush.bf16.msra.mxu1 %v8064_v32  ;;  %v3283_v23 = vpop.f32.mrf.mxu0  ;;  %v3297_v18 = vpop.f32.mrf.mxu1 }
 0x93e   :  { %3709 = vmatpush.bf16.msrb.mxu3 %v8063_v14  ;;  %v3325_v3 = vpop.f32.mrf.mxu3 }
 0x941   :  { %3696 = vmatpush.bf16.msra.mxu2 %v8065_v62  ;;  %3680 = vmatpush.bf16.msra.mxu1 %v8067_v46  ;;  %v3311_v14 = vpop.f32.mrf.mxu2 }
 0x942   :  { %3710 = vmatpush.bf16.msrb.mxu3 %v8066_v63 }
 0x945   :  { %3697 = vmatpush.bf16.msra.mxu2 %v8068_v9  ;;  %3681 = vmatpush.bf16.msra.mxu1 %v8070_v42 }
 0x946   :  { %3711 = vmatpush.bf16.msrb.mxu3 %v8069_v57 }
 0x949   :  { %3698 = vmatpush.bf16.msra.mxu2 %v8071_v61  ;;  %3682 = vmatpush.bf16.msra.mxu1 %v8073_v35 }
 0x94a   :  { %3712 = vmatpush.bf16.msrb.mxu3 %v8072_v45 }
 0x94d   :  { %3737 = vmatpush.bf16.msrb.mxu1 %v8074_v28  ;;  %3699 = vmatpush.bf16.msra.mxu2 %v8075_v40 }
 0x94e   :  { %3713 = vmatpush.bf16.msrb.mxu3 %v8076_v11 }
 0x951   :  { %3738 = vmatpush.bf16.msrb.mxu1 %v8077_v20  ;;  %3700 = vmatpush.bf16.msra.mxu2 %v8078_v6 }
 0x952   :  { %3714 = vmatpush.bf16.msrb.mxu3 %v8079_v13 }
 0x955   :  { %3739 = vmatpush.bf16.msrb.mxu1 %v8080_v25  ;;  %3701 = vmatpush.bf16.msra.mxu2 %v8081_v30 }
 0x956   :  { %3715 = vmatpush.bf16.msrb.mxu3 %v8082_v49 }
 0x959   :  { %3740 = vmatpush.bf16.msrb.mxu1 %v8083_v54  ;;  %3702 = vmatpush.bf16.msra.mxu2 %v8084_v5 }
 0x95a   :  { %3716 = vmatpush.bf16.msrb.mxu3 %v8085_v39 }
 0x95d   :  { %3741 = vmatpush.bf16.msrb.mxu1 %v8086_v33 }
 0x961   :  { %3742 = vmatpush.bf16.msrb.mxu1 %v8087_v16 }
 0x965   :  { %3743 = vmatpush.bf16.msrb.mxu1 %v8088_v10 }
 0x969   :  { %3744 = vmatpush.bf16.msrb.mxu1 %v8089_v38 }
 0x988   :  { %v3337_v32 = vpop.f32.mrf.mxu0  ;;  %v3351_v62 = vpop.f32.mrf.mxu1 }
 0x989   :  { %v3338_v63 = vadd.f32 %v3337_v32, %v3281_v19  ;;  %v3352_v46 = vadd.f32 %v3351_v62, %v3295_v56 }
 0x98b   :  { %v3384_v9 = vadd.f32 %v3338_v63, %v7594_v26  ;;  %v3385_v57 = vadd.f32 %v3352_v46, %v7595_v53 }
 0x98d   :  { %v3392_v42 = vmul.f32 0.5, %v3384_v9  ;;  %v3400_v61 = vmul.f32 0.5, %v3385_v57 }
 0x98f   :  { %4809 = vtanh.f32 %v3392_v42  ;;  %v3365_v45 = vpop.f32.mrf.mxu2  ;;  %v3379_v35 = vpop.f32.mrf.mxu3 }
 0x990   :  { %4811 = vtanh.f32 %v3400_v61  ;;  %v3366_v28 = vadd.f32 %v3365_v45, %v3309_v22  ;;  %v3339_v40 = vpop.f32.mrf.mxu0  ;;  %v3353_v11 = vpop.f32.mrf.mxu1  ;;  %v3380_v25 = vadd.f32 %v3379_v35, %v3323_v60 }
 0x991   :  { %v3340_v20 = vadd.f32 %v3339_v40, %v3283_v23  ;;  %v3354_v6 = vadd.f32 %v3353_v11, %v3297_v18 }
 0x992   :  { %v3386_v13 = vadd.f32 %v3366_v28, %v5734_v1  ;;  %v3387_v10 = vadd.f32 %v3380_v25, %v5738_v12 }
 0x993   :  { %v3388_v30 = vadd.f32 %v3340_v20, %v7594_v26  ;;  %v3389_v49 = vadd.f32 %v3354_v6, %v7595_v53 }
 0x994   :  { %4813 = vtanh.f32 %v3386_v13  ;;  %v3410_v62 = vmul.f32 0.5, %v3387_v10 }
 0x995   :  { %v4810_v54 = vpop.eup %4809  ;;  %v3393_v5 = vmul.f32 0.5, %v3388_v30  ;;  %v3401_v39 = vmul.f32 0.5, %v3389_v49 }
 0x996   :  { %v4812_v33 = vpop.eup %4811  ;;  %v3396_v16 = vadd.f32 1.0, %v4810_v54 }
 0x997   :  { %v3404_v38 = vadd.f32 1.0, %v4812_v33  ;;  %4815 = vtanh.f32 %v3393_v5  ;;  %v3367_v19 = vpop.f32.mrf.mxu2  ;;  %v3381_v56 = vpop.f32.mrf.mxu3 }
 0x998   :  { %4817 = vtanh.f32 %v3401_v39  ;;  %v3368_v22 = vadd.f32 %v3367_v19, %v3311_v14  ;;  %v3382_v23 = vadd.f32 %v3381_v56, %v3325_v3  ;;  %v3398_v60 = vmul.f32 0.5, %v3396_v16  ;;  %v4888_v19 = vld [vmem:[%s7061_s7 + $0x30] sm:$0xff]  ;;  %v4889_v56 = vld [vmem:[%s7061_s7 + $0x28] sm:$0xff] }
 0x999   :  { %v3406_v18 = vmul.f32 0.5, %v3404_v38 }
 0x99a   :  { %v4814_v32 = vpop.eup %4813  ;;  %v3390_v63 = vadd.f32 %v3368_v22, %v5734_v1  ;;  %v3391_v46 = vadd.f32 %v3382_v23, %v5738_v12 }
 0x99b   :  { %v3418_v42 = vmul.f32 %v3406_v18, %v6769_v34  ;;  %v3420_v61 = vmul.f32 %v4814_v32, %v3398_v60 }
 0x99c   :  { %4819 = vtanh.f32 %v3390_v63  ;;  %v3411_v9 = vmul.f32 0.5, %v3391_v46 }
 0x99d   :  { %v4816_v57 = vpop.eup %4815  ;;  %4821 = vtanh.f32 %v3410_v62  ;;  %v6960_v14 = vadd.f32 %v3420_v61, %v3418_v42 }
 0x99e   :  { %v4818_v45 = vpop.eup %4817  ;;  %v3397_v35 = vadd.f32 1.0, %v4816_v57  ;;  %4823 = vtanh.f32 %v3411_v9 }
 0x99f   :  { %v3405_v28 = vadd.f32 1.0, %v4818_v45  ;;  %4825 = vtanh.f32 %v6960_v14 }
 0x9a0   :  { %v3399_v3 = vmul.f32 0.5, %v3397_v35 }
 0x9a1   :  { %v3407_v40 = vmul.f32 0.5, %v3405_v28 }
 0x9a2   :  { %v4820_v11 = vpop.eup %4819 }
 0x9a3   :  { %v3419_v20 = vmul.f32 %v3407_v40, %v6773_v44  ;;  %v3421_v6 = vmul.f32 %v4820_v11, %v3399_v3  ;;  %v4822_v13 = vpop.eup %4821  ;;  %v4887_v44 = vld [vmem:[%s7061_s7 + $0x38] sm:$0xff] }
 0x9a4   :  { %v4824_v25 = vpop.eup %4823  ;;  %v3414_v34 = vadd.f32 1.0, %v4822_v13 }
 0x9a5   :  { %v6964_v30 = vadd.f32 %v3421_v6, %v3419_v20  ;;  %v3415_v49 = vadd.f32 1.0, %v4824_v25  ;;  %v4826_v54 = vpop.eup %4825 }
 0x9a6   :  { %v3416_v5 = vmul.f32 0.5, %v3414_v34 }
 0x9a7   :  { %4827 = vtanh.f32 %v6964_v30  ;;  %v3417_v39 = vmul.f32 0.5, %v3415_v49 }
 0x9a8   :  { %v3426_v16 = vmul.f32 %v4826_v54, %v3416_v5 }
 0x9ad   :  { %v4828_v33 = vpop.eup %4827 }
 0x9ae   :  { %v3427_v10 = vmul.f32 %v4828_v33, %v3417_v39 }
 0x9b0   :  { %v3428_v38 = vpack.c.bf16 %v3427_v10, %v3426_v16 }
 0x9b2   :  { %3437 = vmatmul.bf16.vlgmr.msra.gmra.mxu0 %v3428_v38  ;;  %3641 = vmatmul.bf16.vlgmr.msrb.gmra.mxu2 %v3428_v38 }
 0x9b3   :  { %3655 = vmatmul.bf16.vlgmr.msra.gmra.mxu3 %v3428_v38  ;;  %3683 = vmatmul.bf16.vlgmr.msra.gmra.mxu1 %v3428_v38 }
 0x9b4   :  { %3661 = vmatpush.bf16.msra.mxu0 %v7498_v50  ;;  %3803 = vmatpush.bf16.msrb.mxu2 %v4887_v44  ;;  %v4890_v50 = vld [vmem:[%s7061_s7 + $0x20] sm:$0xff] }
 0x9b8   :  { %3662 = vmatpush.bf16.msra.mxu0 %v7499_v2  ;;  %3804 = vmatpush.bf16.msrb.mxu2 %v4888_v19  ;;  %v4891_v2 = vld [vmem:[%s7061_s7 + $0x18] sm:$0xff] }
 0x9bc   :  { %3663 = vmatpush.bf16.msra.mxu0 %v7500_v31  ;;  %3805 = vmatpush.bf16.msrb.mxu2 %v4889_v56  ;;  %v4892_v31 = vld [vmem:[%s7061_s7 + $0x10] sm:$0xff] }
 0x9c0   :  { %3664 = vmatpush.bf16.msra.mxu0 %v7501_v43  ;;  %3806 = vmatpush.bf16.msrb.mxu2 %v4890_v50  ;;  %v4893_v43 = vld [vmem:[%s7061_s7 + $0x8] sm:$0xff] }
 0x9c2   :  { %3493 = vmatmul.bf16.vlgmr.msrb.gmra.mxu0 %v6848_v7 }
 0x9c4   :  { %3665 = vmatpush.bf16.msra.mxu0 %v7502_v51  ;;  %3807 = vmatpush.bf16.msrb.mxu2 %v4891_v2  ;;  %v4894_v51 = vld [vmem:[%s7061_s7] sm:$0xff]  ;;  %s5036_s7 = smov 96  }
 0x9c8   :  { %3666 = vmatpush.bf16.msra.mxu0 %v7503_v59  ;;  %3808 = vmatpush.bf16.msrb.mxu2 %v4892_v31  ;;  %v3466_v59 = vpop.f32.mrf.mxu2 }
 0x9cc   :  { %3667 = vmatpush.bf16.msra.mxu0 %v7504_v58  ;;  %3809 = vmatpush.bf16.msrb.mxu2 %v4893_v43  ;;  %v3452_v58 = vpop.f32.mrf.mxu1 }
 0x9d0   :  { %3668 = vmatpush.bf16.msra.mxu0 %v7505_v24  ;;  %3810 = vmatpush.bf16.msrb.mxu2 %v4894_v51  ;;  %v3468_v24 = vpop.f32.mrf.mxu2 }
 0x9d3   :  { %3669 = vmatmul.bf16.vlgmr.msra.gmra.mxu0 %v3428_v38 }
 0x9d4   :  { %3723 = vmatpush.bf16.msrb.mxu0 %v7990_v4  ;;  %v3454_v7 = vpop.f32.mrf.mxu1  ;;  %v3480_v4 = vpop.f32.mrf.mxu3 }
 0x9d8   :  { %3724 = vmatpush.bf16.msrb.mxu0 %v7993_v36  ;;  %v3554_v22 = vpop.f32.mrf.mxu2 }
 0x9d9   :  { %v3555_v60 = vadd.f32 %v3554_v22, %v3466_v59 }
 0x9dc   :  { %3725 = vmatpush.bf16.msrb.mxu0 %v7994_v37  ;;  %v3540_v23 = vpop.f32.mrf.mxu1  ;;  %v3482_v36 = vpop.f32.mrf.mxu3 }
 0x9dd   :  { %v3541_v37 = vadd.f32 %v3540_v23, %v3452_v58 }
 0x9e0   :  { %3726 = vmatpush.bf16.msrb.mxu0 %v7995_v48  ;;  %v3556_v18 = vpop.f32.mrf.mxu2  ;;  %v3588_v48 = vadd.f32 %v3555_v60, %v8009_v8 }
 0x9e1   :  { %v3557_v32 = vadd.f32 %v3556_v18, %v3468_v24 }
 0x9e2   :  { %v3603_v63 = vmul.f32 0.5, %v3588_v48 }
 0x9e3   :  { %v3592_v9 = vadd.f32 %v3557_v32, %v8009_v8 }
 0x9e4   :  { %3727 = vmatpush.bf16.msrb.mxu0 %v7996_v52  ;;  %v3542_v52 = vpop.f32.mrf.mxu1  ;;  %4829 = vtanh.f32 %v3603_v63 }
 0x9e5   :  { %v3543_v62 = vadd.f32 %v3542_v52, %v3454_v7  ;;  %v3604_v61 = vmul.f32 0.5, %v3592_v9 }
 0x9e7   :  { %v3591_v42 = vadd.f32 %v3543_v62, %v8008_v55 }
 0x9e8   :  { %3728 = vmatpush.bf16.msrb.mxu0 %v7997_v0  ;;  %v3587_v0 = vadd.f32 %v3541_v37, %v8008_v55 }
 0x9e9   :  { %v3596_v35 = vmul.f32 0.5, %v3591_v42 }
 0x9ea   :  { %v3595_v57 = vmul.f32 0.5, %v3587_v0  ;;  %v4830_v11 = vpop.eup %4829 }
 0x9eb   :  { %v3607_v13 = vadd.f32 1.0, %v4830_v11 }
 0x9ec   :  { %3729 = vmatpush.bf16.msrb.mxu0 %v7998_v15  ;;  %v3568_v15 = vpop.f32.mrf.mxu3  ;;  %4831 = vtanh.f32 %v3595_v57  ;;  %v3582_v25 = vpop.f32.mrf.mxu1 }
 0x9ed   :  { %v3569_v45 = vadd.f32 %v3568_v15, %v3480_v4  ;;  %4833 = vtanh.f32 %v3604_v61  ;;  %v3609_v33 = vmul.f32 0.5, %v3607_v13 }
 0x9ee   :  { %4835 = vtanh.f32 %v3596_v35 }
 0x9ef   :  { %v3589_v20 = vadd.f32 %v3569_v45, %v8010_v47  ;;  %v3621_v50 = vmul.f32 %v3609_v33, %v6842_v17 }
 0x9f0   :  { %3730 = vmatpush.bf16.msrb.mxu0 %v7999_v27 }
 0x9f1   :  { %4837 = vtanh.f32 %v3589_v20 }
 0x9f2   :  { %v4832_v6 = vpop.eup %4831 }
 0x9f3   :  { %v4834_v55 = vpop.eup %4833  ;;  %v3599_v34 = vadd.f32 1.0, %v4832_v6 }
 0x9f4   :  { %v3570_v3 = vpop.f32.mrf.mxu3  ;;  %v4836_v39 = vpop.eup %4835  ;;  %v3608_v16 = vadd.f32 1.0, %v4834_v55 }
 0x9f5   :  { %v3571_v8 = vadd.f32 %v3570_v3, %v3482_v36  ;;  %v3601_v38 = vmul.f32 0.5, %v3599_v34  ;;  %v3600_v19 = vadd.f32 1.0, %v4836_v39  ;;  %v3584_v43 = vpop.f32.mrf.mxu1 }
 0x9f6   :  { %v3610_v2 = vmul.f32 0.5, %v3608_v16 }
 0x9f7   :  { %v3593_v49 = vadd.f32 %v3571_v8, %v8010_v47  ;;  %v4838_v44 = vpop.eup %4837  ;;  %v3602_v47 = vmul.f32 0.5, %v3600_v19 }
 0x9f8   :  { %v3623_v31 = vmul.f32 %v4838_v44, %v3601_v38  ;;  %v3622_v7 = vmul.f32 %v3610_v2, %v6844_v41 }
 0x9f9   :  { %4839 = vtanh.f32 %v3593_v49 }
 0x9fa   :  { %v3625_v24 = vadd.f32 %v3623_v31, %v3621_v50 }
 0x9ff   :  { %v4840_v58 = vpop.eup %4839 }
 0xa00   :  { %v3624_v23 = vmul.f32 %v4840_v58, %v3602_v47 }
 0xa02   :  { %v3626_v37 = vadd.f32 %v3624_v23, %v3622_v7 }
 0xa2f   :  { %v3438_v27 = vpop.f32.mrf.mxu0 }
 0xa30   :  { %v3439_v46 = vadd.f32 %v6829_v21, %v3438_v27  ;;  %v3684_v57 = vpop.f32.mrf.mxu1 }
 0xa32   :  { %3867 = vrot.lane.b32.xlu1 %v3439_v46, %s5036_s7 }
 0xa35   :  { %v3642_v61 = vpop.f32.mrf.mxu2 }
 0xa36   :  { %v3656_v45 = vpop.f32.mrf.mxu3 }
 0xa37   :  { %v3440_v28 = vpop.f32.mrf.mxu0 }
 0xa38   :  { %v3441_v40 = vadd.f32 %v6829_v21, %v3440_v28  ;;  %v3686_v35 = vpop.f32.mrf.mxu1 }
 0xa3a   :  { %3869 = vrot.lane.b32.xlu2 %v3441_v40, %s5036_s7 }
 0xa3d   :  { %v3644_v3 = vpop.f32.mrf.mxu2 }
 0xa3e   :  { %v3658_v40 = vpop.f32.mrf.mxu3 }
 0xa3f   :  { %v3494_v54 = vpop.f32.mrf.mxu0 }
 0xa40   :  { %v3583_v5 = vadd.f32 %v3582_v25, %v3494_v54 }
 0xa42   :  { %v3590_v10 = vadd.f32 %v3583_v5, %v8011_v29 }
 0xa44   :  { %v3613_v56 = vmul.f32 0.5, %v3590_v10 }
 0xa46   :  { %4841 = vtanh.f32 %v3613_v56 }
 0xa47   :  { %v3496_v51 = vpop.f32.mrf.mxu0  ;;  %4843 = vtanh.f32 %v3625_v24 }
 0xa48   :  { %v3585_v59 = vadd.f32 %v3584_v43, %v3496_v51 }
 0xa4a   :  { %v3594_v4 = vadd.f32 %v3585_v59, %v8011_v29 }
 0xa4c   :  { %v4842_v22 = vpop.eup %4841  ;;  %v3614_v36 = vmul.f32 0.5, %v3594_v4 }
 0xa4d   :  { %v3617_v60 = vadd.f32 1.0, %v4842_v22  ;;  %v4844_v18 = vpop.eup %4843 }
 0xa4e   :  { %4845 = vtanh.f32 %v3614_v36 }
 0xa4f   :  { %v3619_v17 = vmul.f32 0.5, %v3617_v60  ;;  %4847 = vtanh.f32 %v3626_v37 }
 0xa50   :  { %v3670_v42 = vpop.f32.mrf.mxu0 }
 0xa51   :  { %v3629_v52 = vmul.f32 %v4844_v18, %v3619_v17 }
 0xa53   :  { %v3631_v62 = vpack.c.bf16 %v3629_v52, %v3629_v52 }
 0xa54   :  { %v4846_v48 = vpop.eup %4845 }
 0xa55   :  { %v3618_v32 = vadd.f32 1.0, %v4846_v48  ;;  %v4848_v15 = vpop.eup %4847  ;;  %v3691_v29 = vunpack.c.l.b16 %v3631_v62 }
 0xa57   :  { %v3620_v0 = vmul.f32 0.5, %v3618_v32 }
 0xa58   :  { %v3672_v28 = vpop.f32.mrf.mxu0 }
 0xa59   :  { %v3630_v27 = vmul.f32 %v4848_v15, %v3620_v0 }
 0xa5b   :  { %v3632_v41 = vpack.c.bf16 %v3630_v27, %v3630_v27  ;;  %v4525_v63 = vpack.c.bf16 %v3630_v27, %v3629_v52 }
 0xa5d   :  { %v3692_v46 = vunpack.c.l.b16 %v3632_v41  ;;  %4526 = vst [vmem:[#allocation2] sm:$0xff] %v4525_v63  }
 0xa5f   :  { %v3693_v9 = vpack.c.b16 %v3692_v46, %v3691_v29 }
 0xa61   :  { %3703 = vmatmul.bf16.vlgmr.msra.gmra.mxu2 %v3693_v9  ;;  %3717 = vmatmul.bf16.vlgmr.msrb.gmra.mxu3 %v3693_v9 }
 0xa62   :  { %3731 = vmatmul.bf16.vlgmr.msrb.gmra.mxu0 %v3693_v9  ;;  %3745 = vmatmul.bf16.vlgmr.msrb.gmra.mxu1 %v3693_v9 }
 0xadf   :  { %v3732_v11 = vpop.f32.mrf.mxu0  ;;  %v3746_v20 = vpop.f32.mrf.mxu1 }
 0xae0   :  { %v3733_v55 = vadd.f32 %v3732_v11, %v3670_v42  ;;  %v3747_v33 = vadd.f32 %v3746_v20, %v3684_v57 }
 0xae2   :  { %v3753_v39 = vadd.f32 %v3733_v55, %v5734_v1  ;;  %v3754_v50 = vadd.f32 %v3747_v33, %v5738_v12 }
 0xae4   :  { %v3704_v8 = vpop.f32.mrf.mxu2  ;;  %v3718_v6 = vpop.f32.mrf.mxu3  ;;  %v3777_v7 = vmul.f32 0.5, %v3754_v50 }
 0xae5   :  { %v3705_v13 = vadd.f32 %v3704_v8, %v3642_v61  ;;  %v3719_v25 = vadd.f32 %v3718_v6, %v3656_v45 }
 0xae7   :  { %v3751_v34 = vadd.f32 %v3705_v13, %v7594_v26  ;;  %v3752_v49 = vadd.f32 %v3719_v25, %v7595_v53  ;;  %v3734_v16 = vpop.f32.mrf.mxu0  ;;  %v3748_v10 = vpop.f32.mrf.mxu1 }
 0xae8   :  { %v3735_v2 = vadd.f32 %v3734_v16, %v3672_v28  ;;  %v3749_v31 = vadd.f32 %v3748_v10, %v3686_v35 }
 0xae9   :  { %v3759_v54 = vmul.f32 0.5, %v3751_v34  ;;  %v3767_v5 = vmul.f32 0.5, %v3752_v49  ;;  %v3828_v34 = vpop.permute.xlu0 %3827  ;;  %v3836_v49 = vpop.permute.xlu1 %3835 }
 0xaea   :  { %v3757_v23 = vadd.f32 %v3735_v2, %v5734_v1  ;;  %v3758_v36 = vadd.f32 %v3749_v31, %v5738_v12 }
 0xaeb   :  { %4849 = vtanh.f32 %v3759_v54 }
 0xaec   :  { %4851 = vtanh.f32 %v3767_v5  ;;  %v3706_v38 = vpop.f32.mrf.mxu2  ;;  %v3720_v44 = vpop.f32.mrf.mxu3  ;;  %v3778_v18 = vmul.f32 0.5, %v3758_v36 }
 0xaed   :  { %v3707_v19 = vadd.f32 %v3706_v38, %v3644_v3  ;;  %v3721_v56 = vadd.f32 %v3720_v44, %v3658_v40  ;;  %4853 = vtanh.f32 %v3753_v39  ;;  %v3844_v5 = vpop.permute.xlu2 %3843  ;;  %v8090_v44 = vld [vmem:[#allocation56_spill] sm:$0xff] }
 0xaef   :  { %v3755_v43 = vadd.f32 %v3707_v19, %v7594_v26  ;;  %v3756_v51 = vadd.f32 %v3721_v56, %v7595_v53  ;;  %v1279_v19 = vadd.f32 %v6829_v21, %v8090_v44 }
 0xaf1   :  { %v4850_v47 = vpop.eup %4849  ;;  %v3760_v59 = vmul.f32 0.5, %v3755_v43  ;;  %v3768_v58 = vmul.f32 0.5, %v3756_v51  ;;  %v3830_v54 = vpop.permute.xlu0 %3829  ;;  %v3881_v56 = vsel %vm529_vm7, %v1279_v19, %v3828_v34 }
 0xaf2   :  { %v4852_v24 = vpop.eup %4851  ;;  %v3763_v4 = vadd.f32 1.0, %v4850_v47  ;;  %v3838_v39 = vpop.permute.xlu1 %3837  ;;  %v3884_v50 = vsel %vm3883_vm8, %v3881_v56, %v3836_v49 }
 0xaf3   :  { %v3771_v22 = vadd.f32 1.0, %v4852_v24  ;;  %4855 = vtanh.f32 %v3760_v59  ;;  %v4854_v60 = vpop.eup %4853  ;;  %v3887_v31 = vsel %vm3886_vm9, %v3884_v50, %v3844_v5  ;;  %v8091_v24 = vld [vmem:[#allocation58_spill] sm:$0xff] }
 0xaf4   :  { %v3765_v37 = vmul.f32 0.5, %v3763_v4  ;;  %4857 = vtanh.f32 %v3768_v58 }
 0xaf5   :  { %v3773_v17 = vmul.f32 0.5, %v3771_v22  ;;  %4859 = vtanh.f32 %v3777_v7  ;;  %v3846_v16 = vpop.permute.xlu2 %3845  ;;  %v1281_v7 = vadd.f32 %v6829_v21, %v8091_v24 }
 0xaf6   :  { %v3787_v26 = vmul.f32 %v4854_v60, %v3765_v37  ;;  %4861 = vtanh.f32 %v3757_v23 }
 0xaf7   :  { %v3785_v53 = vmul.f32 %v3773_v17, %v6960_v14  ;;  %4863 = vtanh.f32 %v3778_v18  ;;  %v3882_v22 = vsel %vm529_vm7, %v1281_v7, %v3830_v54 }
 0xaf8   :  { %v3885_v23 = vsel %vm3883_vm8, %v3882_v22, %v3838_v39 }
 0xaf9   :  { %v4856_v48 = vpop.eup %4855  ;;  %v3789_v52 = vadd.f32 %v3787_v26, %v3785_v53  ;;  %v3852_v33 = vpop.permute.xlu0 %3851  ;;  %v3888_v36 = vsel %vm3886_vm9, %v3885_v23, %v3846_v16 }
 0xafa   :  { %v4858_v32 = vpop.eup %4857  ;;  %v3764_v0 = vadd.f32 1.0, %v4856_v48  ;;  %v3854_v10 = vpop.permute.xlu1 %3853  ;;  %v3890_v51 = vsel %vm3889_vm10, %v3887_v31, %v3852_v33 }
 0xafb   :  { %v3772_v15 = vadd.f32 1.0, %v4858_v32  ;;  %v4860_v1 = vpop.eup %4859  ;;  %4865 = vtanh.f32 %v3789_v52  ;;  %v3891_v37 = vsel %vm3889_vm10, %v3888_v36, %v3854_v10 }
 0xafc   :  { %v3766_v62 = vmul.f32 0.5, %v3764_v0  ;;  %v4862_v12 = vpop.eup %4861  ;;  %v3781_v29 = vadd.f32 1.0, %v4860_v1 }
 0xafd   :  { %v3774_v27 = vmul.f32 0.5, %v3772_v15  ;;  %v4864_v46 = vpop.eup %4863  ;;  %v3860_v2 = vpop.permute.xlu2 %3859 }
 0xafe   :  { %v3788_v41 = vmul.f32 %v4862_v12, %v3766_v62  ;;  %v3783_v57 = vmul.f32 0.5, %v3781_v29  ;;  %v3782_v42 = vadd.f32 1.0, %v4864_v46  ;;  %v3893_v47 = vsel %vm3892_vm11, %v3890_v51, %v3860_v2 }
 0xaff   :  { %v3786_v63 = vmul.f32 %v3774_v27, %v6964_v30 }
 0xb00   :  { %v3784_v45 = vmul.f32 0.5, %v3782_v42 }
 0xb01   :  { %v3790_v9 = vadd.f32 %v3788_v41, %v3786_v63  ;;  %v4866_v14 = vpop.eup %4865  ;;  %v3862_v38 = vpop.permute.xlu0 %3861 }
 0xb02   :  { %v3793_v61 = vmul.f32 %v4866_v14, %v3783_v57  ;;  %v3868_v43 = vpop.permute.xlu1 %3867 }
 0xb03   :  { %4867 = vtanh.f32 %v3790_v9  ;;  %v3896_v59 = vsel %vm3895_vm13, %v3893_v47, %v3868_v43 }
 0xb04   :  { %v3795_v3 = vpack.c.bf16 %v3793_v61, %v3793_v61 }
 0xb05   :  { %v3870_v60 = vpop.permute.xlu2 %3869 }
 0xb06   :  { %v3799_v20 = vunpack.c.l.b16 %v3795_v3 }
 0xb09   :  { %v4868_v35 = vpop.eup %4867 }
 0xb0a   :  { %v3794_v28 = vmul.f32 %v4868_v35, %v3784_v45 }
 0xb0c   :  { %v3796_v40 = vpack.c.bf16 %v3794_v28, %v3794_v28  ;;  %v4530_v11 = vpack.c.bf16 %v3794_v28, %v3793_v61 }
 0xb0e   :  { %v3800_v8 = vunpack.c.l.b16 %v3796_v40  ;;  %4531 = vst [vmem:[#allocation2 + $0x8] sm:$0xff] %v4530_v11  }
 0xb10   :  { %v3801_v6 = vpack.c.b16 %v3800_v8, %v3799_v20 }
 0xb12   :  { %3811 = vmatmul.bf16.vlgmr.msrb.gmra.mxu2 %v3801_v6 }
 0xb95   :  { %v3812_v30 = vpop.f32.mrf.mxu2 }
 0xb96   :  { %v3813_v13 = vadd.f32 %v6829_v21, %v3812_v30 }
 0xb98   :  { %3875 = vrot.lane.b32.xlu0 %v3813_v13, %s5037_s0 }
 0xb9d   :  { %v3814_v25 = vpop.f32.mrf.mxu2 }
 0xb9e   :  { %v3815_v55 = vadd.f32 %v6829_v21, %v3814_v25  ;;  %v3894_v21 = vsel %vm3892_vm11, %v3891_v37, %v3862_v38 }
 0xb9f   :  { %v3897_v17 = vsel %vm3895_vm13, %v3894_v21, %v3870_v60 }
 0xba0   :  { %3877 = vrot.lane.b32.xlu1 %v3815_v55, %s5037_s0 }
 0xc0a   :  { %v3876_v58 = vpop.permute.xlu0 %3875 }
 0xc0b   :  { %v3899_v4 = vsel %vm3898_vm12, %v3896_v59, %v3876_v58 }
 0xc0c   :  { %3901 = vst [vmem:[#allocation12] sm:$0xff] %v3899_v4 }
 0xc12   :  { %v3878_v26 = vpop.permute.xlu1 %3877 }
 0xc13   :  { %v3900_v53 = vsel %vm3898_vm12, %v3897_v17, %v3878_v26 }
 0xc14   :  { %3902 = vst [vmem:[#allocation12 + $0x8] sm:$0xff] %v3900_v53 }
 0xc15   :  { %3915 = dma.vmem_to_hbm [thread:$0]  %s3908_s25, 256, %s3910_s27, [#allocation6], %s5027_s21, %s5027_s21, %s5028_s22  }
 0xc16   :  { %5021 = dma.done.wait [#allocation6], 256  }
 0xc17   :  { %5022 = vsyncadd [#allocation6], 4294967040 }
 0xc18   :  { %3920 = vsyncpa [#allocation5], 1 }
 0xc19   :  { %3921 = vsyncpa [#allocation8], 1 }
 0xc1a   :  { %3922 = vsyncpa [#allocation11], 1 }
 0xc1b   :  { %3923 = vsyncpa [#allocation6], 1 }

</bundles_post_ra>
